<compile_context>
chip_gen: v7x
topology: tpu7x:2x2x1
jax: 0.10.0
libtpu: 0.0.40
codegen_flags: <defaults>
</compile_context>

<pallas_src>
import functools

import jax
import jax.numpy as jnp
from jax.experimental import pallas as pl
from jax.experimental.pallas import tpu as pltpu


# ----------------------------- math helpers -----------------------------

def _hardsigmoid(x):
    return jnp.clip(0.2 * x + 0.5, 0.0, 1.0)


def _softsign(x):
    return x / (1.0 + jnp.abs(x))


def _dot(a, b):
    # Default precision: single bf16 MXU pass with f32 accumulation.
    return jnp.dot(a, b, preferred_element_type=jnp.float32)


# ------------------------------- kernel ---------------------------------

def _make_kernel(num_layers, B, H):
    """Fused HybridRNN forward kernel factory.

    Kernel args (all VMEM refs), in order:
      x_flat (T*B, D),
      per BiLSTM layer: wxf (Din,4H), whf (H,4H), bf (1,4H),
                        wxb (Din,4H), whb (H,4H), bb (1,4H),
      lstm: wx (H,4H), wh (H,4H), b (1,4H),
      fc:   w (H,D), b (1,D),
      out_flat (T*B, D),
      scratch: buf_a (T*B,H), buf_b (T*B,H).
    Gate order along the 4H axis: (i, f, o, c).
    """

    def kernel(*refs):
        x_ref = refs[0]
        pos = 1
        layer_refs = []
        for _ in range(num_layers):
            layer_refs.append(refs[pos:pos + 6])
            pos += 6
        wxl_ref, whl_ref, bl_ref = refs[pos:pos + 3]; pos += 3
        wfc_ref, bfc_ref = refs[pos:pos + 2]; pos += 2
        out_ref = refs[pos]; pos += 1
        buf_a, buf_b = refs[pos], refs[pos + 1]

        TB = x_ref.shape[0]
        T = TB // B
        bufs = [buf_a, buf_b]

        def step(zx_t, h, c, wh):
            """One ILSTM step. zx_t: (B,4H) hoisted x-projection (+bias)."""
            z = zx_t + _dot(h, wh)                       # (B, 4H), lane-dense
            i_t = _hardsigmoid(z[:, 0 * H:1 * H])
            f_t = _hardsigmoid(z[:, 1 * H:2 * H])
            o_t = _hardsigmoid(z[:, 2 * H:3 * H])
            g_t = _softsign(z[:, 3 * H:4 * H])
            c_new = f_t * c + i_t * g_t
            h_new = o_t * _softsign(c_new)
            return h_new, c_new

        def bilstm(in_flat, out_buf, wxf, whf, bf, wxb, whb, bb):
            # Hoisted input projections (one big MXU call per direction).
            zxf = _dot(in_flat, wxf[...]) + bf[...]      # (T*B, 4H)
            zxb = _dot(in_flat, wxb[...]) + bb[...]      # (T*B, 4H)
            whf_v = whf[...]
            whb_v = whb[...]

            # forward scan; keep per-step outputs as register values
            h = jnp.zeros((B, H), jnp.float32)
            c = jnp.zeros((B, H), jnp.float32)
            h_fwd = []
            for t in range(T):                           # fully unrolled (T static)
                h, c = step(zxf[t * B:(t + 1) * B, :], h, c, whf_v)
                h_fwd.append(h)

            # backward scan, fused combine: out = hardsigmoid(h_fwd + h_bwd)
            h = jnp.zeros((B, H), jnp.float32)
            c = jnp.zeros((B, H), jnp.float32)
            for t in reversed(range(T)):
                h, c = step(zxb[t * B:(t + 1) * B, :], h, c, whb_v)
                out_buf[t * B:(t + 1) * B, :] = _hardsigmoid(h_fwd[t] + h)

        # ---- stacked IBiLSTM layers ----
        cur = x_ref[...]                                 # (T*B, Din)
        for li, lrefs in enumerate(layer_refs):
            out_buf = bufs[li % 2]
            bilstm(cur, out_buf, *lrefs)
            cur = out_buf[...]                           # (T*B, H)

        # ---- final unidirectional ILSTM ----
        zx = _dot(cur, wxl_ref[...]) + bl_ref[...]       # (T*B, 4H)
        whl_v = whl_ref[...]
        h = jnp.zeros((B, H), jnp.float32)
        c = jnp.zeros((B, H), jnp.float32)
        h_buf = bufs[num_layers % 2]                     # reuse the free scratch
        for t in range(T):
            h, c = step(zx[t * B:(t + 1) * B, :], h, c, whl_v)
            h_buf[t * B:(t + 1) * B, :] = h

        # ---- FC head, once, after the scan ----
        out_ref[...] = _dot(h_buf[...], wfc_ref[...]) + bfc_ref[...]

    return kernel


# ------------------------------ wrapper ----------------------------------

_VMEM = functools.partial(pl.BlockSpec, memory_space=pltpu.MemorySpace.VMEM)


@jax.jit
def hybrid_rnn_forward(x, params):
    """x: (batch, seq_len, input_size) -> (batch, seq_len, input_size)."""
    B, T, D = x.shape
    H = params["lstm"]["wh"].shape[0]
    num_layers = len(params["bilstm"])
    assert num_layers >= 1

    # time-major, batch padded to the 8-sublane boundary, flattened to (T*Bp, D)
    Bp = ((B + 7) // 8) * 8
    x_t = jnp.transpose(x, (1, 0, 2)).astype(jnp.float32)        # (T, B, D)
    x_t = jnp.pad(x_t, ((0, 0), (0, Bp - B), (0, 0)))            # (T, Bp, D)
    x_flat = x_t.reshape(T * Bp, D)

    args = [x_flat]
    for lp in params["bilstm"]:
        for d in ("fwd", "bwd"):
            args += [lp[d]["wx"], lp[d]["wh"], lp[d]["b"]]
    args += [params["lstm"]["wx"], params["lstm"]["wh"], params["lstm"]["b"],
             params["fc"]["w"], params["fc"]["b"]]

    y_flat = pl.pallas_call(
        _make_kernel(num_layers, Bp, H),
        out_shape=jax.ShapeDtypeStruct((T * Bp, D), jnp.float32),
        in_specs=[_VMEM()] * len(args),
        out_specs=_VMEM(),
        scratch_shapes=[pltpu.VMEM((T * Bp, H), jnp.float32),
                        pltpu.VMEM((T * Bp, H), jnp.float32)],
    )(*args)

    y = y_flat.reshape(T, Bp, D)[:, :B, :]                       # strip padding
    return jnp.transpose(y, (1, 0, 2))                           # (B, T, D)


# --------------------------- parameter init ------------------------------

def _init_linear(key, in_dim, out_dim):
    # mirrors nn.Linear default init; weight stored pre-transposed (in, out)
    kw, kb = jax.random.split(key)
    bound = 1.0 / (in_dim ** 0.5)
    w = jax.random.uniform(kw, (in_dim, out_dim), jnp.float32, -bound, bound)
    b = jax.random.uniform(kb, (out_dim,), jnp.float32, -bound, bound)
    return w, b


def _init_cell(key, in_dim, hid):
    """ILSTMCell params, gates packed along the last axis (order: i, f, o, c).
    W_x* and W_h* biases are summed (they always appear added together)."""
    keys = jax.random.split(key, 8)
    wx, wh, bias = [], [], []
    for g in range(4):
        w_x, b_x = _init_linear(keys[2 * g], in_dim, hid)
        w_h, b_h = _init_linear(keys[2 * g + 1], hid, hid)
        wx.append(w_x); wh.append(w_h); bias.append(b_x + b_h)
    return {"wx": jnp.concatenate(wx, axis=1),            # (in_dim, 4*hid)
            "wh": jnp.concatenate(wh, axis=1),            # (hid, 4*hid)
            "b": jnp.concatenate(bias)[None, :]}          # (1, 4*hid)


def init_hybrid_rnn(key, input_size, hidden_size, num_bilstm_layers=2):
    keys = jax.random.split(key, 2 * num_bilstm_layers + 2)
    bilstm = []
    for i in range(num_bilstm_layers):
        in_dim = input_size if i == 0 else hidden_size
        bilstm.append({"fwd": _init_cell(keys[2 * i], in_dim, hidden_size),
                       "bwd": _init_cell(keys[2 * i + 1], in_dim, hidden_size)})
    lstm = _init_cell(keys[-2], hidden_size, hidden_size)
    w_fc, b_fc = _init_linear(keys[-1], hidden_size, input_size)
    return {"bilstm": bilstm, "lstm": lstm, "fc": {"w": w_fc, "b": b_fc[None, :]}}


# ------------------------ pure-JAX reference ------------------------------

def _ref_cell(x_t, h, c, p, H):
    z = _dot(x_t, p["wx"]) + p["b"] + _dot(h, p["wh"])
    i_t = _hardsigmoid(z[:, 0 * H:1 * H])
    f_t = _hardsigmoid(z[:, 1 * H:2 * H])
    o_t = _hardsigmoid(z[:, 2 * H:3 * H])
    g_t = _softsign(z[:, 3 * H:4 * H])
    c_new = f_t * c + i_t * g_t
    return o_t * _softsign(c_new), c_new


def _ref_forward(x, params):
    B, T, _ = x.shape
    H = params["lstm"]["wh"].shape[0]
    out = x.astype(jnp.float32)
    for lp in params["bilstm"]:
        hf = jnp.zeros((B, H)); cf = jnp.zeros((B, H))
        hb = jnp.zeros((B, H)); cb = jnp.zeros((B, H))
        fwd = []
        for t in range(T):
            hf, cf = _ref_cell(out[:, t, :], hf, cf, lp["fwd"], H)
            fwd.append(hf)
        bwd = [None] * T
        for t in reversed(range(T)):
            hb, cb = _ref_cell(out[:, t, :], hb, cb, lp["bwd"], H)
            bwd[t] = hb
        out = _hardsigmoid(jnp.stack(fwd, 1) + jnp.stack(bwd, 1))
    h = jnp.zeros((B, H)); c = jnp.zeros((B, H))
    ys = []
    for t in range(T):
        h, c = _ref_cell(out[:, t, :], h, c, params["lstm"], H)
        ys.append(_dot(h, params["fc"]["w"]) + params["fc"]["b"])
    return jnp.stack(ys, 1)


# --------------------------------- main -----------------------------------

if __name__ == "__main__":
    B, T, D, H = 2, 8, 8, 32
    key = jax.random.PRNGKey(0)
    kx, kp = jax.random.split(key)
    x = jax.random.normal(kx, (B, T, D), jnp.float32)
    params = init_hybrid_rnn(kp, input_size=D, hidden_size=H, num_bilstm_layers=2)

    y = jax.block_until_ready(hybrid_rnn_forward(x, params))
    assert y.shape == (B, T, D), y.shape

    y_ref = _ref_forward(x, params)
    max_err = float(jnp.max(jnp.abs(y - y_ref)))
    # default (bf16-MXU) matmul precision -> relaxed tolerance vs f32 reference
    assert jnp.allclose(y, y_ref, atol=2e-2, rtol=2e-2), max_err

    print("KERNEL_OK")
</pallas_src>

<mosaic_0001>
module attributes {stable_mosaic.version = 11 : i64} {
  func.func @kernel(%arg0: memref<64x8xf32, #tpu.memory_space<vmem>>, %arg1: memref<8x128xf32, #tpu.memory_space<vmem>>, %arg2: memref<32x128xf32, #tpu.memory_space<vmem>>, %arg3: memref<1x128xf32, #tpu.memory_space<vmem>>, %arg4: memref<8x128xf32, #tpu.memory_space<vmem>>, %arg5: memref<32x128xf32, #tpu.memory_space<vmem>>, %arg6: memref<1x128xf32, #tpu.memory_space<vmem>>, %arg7: memref<32x128xf32, #tpu.memory_space<vmem>>, %arg8: memref<32x128xf32, #tpu.memory_space<vmem>>, %arg9: memref<1x128xf32, #tpu.memory_space<vmem>>, %arg10: memref<32x128xf32, #tpu.memory_space<vmem>>, %arg11: memref<32x128xf32, #tpu.memory_space<vmem>>, %arg12: memref<1x128xf32, #tpu.memory_space<vmem>>, %arg13: memref<32x128xf32, #tpu.memory_space<vmem>>, %arg14: memref<32x128xf32, #tpu.memory_space<vmem>>, %arg15: memref<1x128xf32, #tpu.memory_space<vmem>>, %arg16: memref<32x8xf32, #tpu.memory_space<vmem>>, %arg17: memref<1x8xf32, #tpu.memory_space<vmem>>, %arg18: memref<64x8xf32, #tpu.memory_space<vmem>>, %arg19: memref<64x32xf32, #tpu.memory_space<vmem>>, %arg20: memref<64x32xf32, #tpu.memory_space<vmem>>) attributes {dimension_semantics = [], scalar_prefetch = 0 : i64, scratch_operands = 2 : i64, tpu.core_type = #tpu.core_type<tc>} {
    %c0 = arith.constant 0 : index
    %c0_0 = arith.constant 0 : index
    %0 = vector.load %arg0[%c0, %c0_0] : memref<64x8xf32, #tpu.memory_space<vmem>>, vector<64x8xf32>
    %c0_1 = arith.constant 0 : index
    %c0_2 = arith.constant 0 : index
    %1 = vector.load %arg1[%c0_1, %c0_2] : memref<8x128xf32, #tpu.memory_space<vmem>>, vector<8x128xf32>
    %cst = arith.constant dense<0.000000e+00> : vector<64x128xf32>
    %2 = tpu.matmul %0, %1, %cst {dimension_numbers = #tpu.dot_dimension_numbers<[1], [0], [0], [1], [0, 0, 1, 1], [], []>} : vector<64x8xf32>, vector<8x128xf32>, vector<64x128xf32> -> vector<64x128xf32>
    %c0_3 = arith.constant 0 : index
    %c0_4 = arith.constant 0 : index
    %3 = vector.load %arg3[%c0_3, %c0_4] : memref<1x128xf32, #tpu.memory_space<vmem>>, vector<1x128xf32>
    %4 = vector.broadcast %3 : vector<1x128xf32> to vector<64x128xf32>
    %5 = arith.addf %2, %4 : vector<64x128xf32>
    %c0_5 = arith.constant 0 : index
    %c0_6 = arith.constant 0 : index
    %6 = vector.load %arg4[%c0_5, %c0_6] : memref<8x128xf32, #tpu.memory_space<vmem>>, vector<8x128xf32>
    %cst_7 = arith.constant dense<0.000000e+00> : vector<64x128xf32>
    %7 = tpu.matmul %0, %6, %cst_7 {dimension_numbers = #tpu.dot_dimension_numbers<[1], [0], [0], [1], [0, 0, 1, 1], [], []>} : vector<64x8xf32>, vector<8x128xf32>, vector<64x128xf32> -> vector<64x128xf32>
    %c0_8 = arith.constant 0 : index
    %c0_9 = arith.constant 0 : index
    %8 = vector.load %arg6[%c0_8, %c0_9] : memref<1x128xf32, #tpu.memory_space<vmem>>, vector<1x128xf32>
    %9 = vector.broadcast %8 : vector<1x128xf32> to vector<64x128xf32>
    %10 = arith.addf %7, %9 : vector<64x128xf32>
    %c0_10 = arith.constant 0 : index
    %c0_11 = arith.constant 0 : index
    %11 = vector.load %arg2[%c0_10, %c0_11] : memref<32x128xf32, #tpu.memory_space<vmem>>, vector<32x128xf32>
    %c0_12 = arith.constant 0 : index
    %c0_13 = arith.constant 0 : index
    %12 = vector.load %arg5[%c0_12, %c0_13] : memref<32x128xf32, #tpu.memory_space<vmem>>, vector<32x128xf32>
    %cst_14 = arith.constant 0.000000e+00 : f32
    %13 = vector.broadcast %cst_14 : f32 to vector<8x32xf32>
    %cst_15 = arith.constant 0.000000e+00 : f32
    %14 = vector.broadcast %cst_15 : f32 to vector<8x32xf32>
    %15 = vector.extract_strided_slice %5 {offsets = [0, 0], sizes = [8, 128], strides = [1, 1]} : vector<64x128xf32> to vector<8x128xf32>
    %cst_16 = arith.constant dense<0.000000e+00> : vector<8x128xf32>
    %16 = tpu.matmul %13, %11, %cst_16 {dimension_numbers = #tpu.dot_dimension_numbers<[1], [0], [0], [1], [0, 0, 1, 1], [], []>} : vector<8x32xf32>, vector<32x128xf32>, vector<8x128xf32> -> vector<8x128xf32>
    %17 = arith.addf %15, %16 : vector<8x128xf32>
    %18 = vector.extract_strided_slice %17 {offsets = [0, 0], sizes = [8, 32], strides = [1, 1]} : vector<8x128xf32> to vector<8x32xf32>
    %cst_17 = arith.constant 2.000000e-01 : f32
    %19 = vector.broadcast %cst_17 : f32 to vector<8x32xf32>
    %20 = arith.mulf %19, %18 : vector<8x32xf32>
    %cst_18 = arith.constant 5.000000e-01 : f32
    %21 = vector.broadcast %cst_18 : f32 to vector<8x32xf32>
    %22 = arith.addf %20, %21 : vector<8x32xf32>
    %cst_19 = arith.constant 0.000000e+00 : f32
    %cst_20 = arith.constant 1.000000e+00 : f32
    %23 = vector.broadcast %cst_19 : f32 to vector<8x32xf32>
    %24 = arith.maximumf %23, %22 : vector<8x32xf32>
    %25 = vector.broadcast %cst_20 : f32 to vector<8x32xf32>
    %26 = arith.minimumf %25, %24 : vector<8x32xf32>
    %27 = vector.extract_strided_slice %17 {offsets = [0, 32], sizes = [8, 32], strides = [1, 1]} : vector<8x128xf32> to vector<8x32xf32>
    %cst_21 = arith.constant 2.000000e-01 : f32
    %28 = vector.broadcast %cst_21 : f32 to vector<8x32xf32>
    %29 = arith.mulf %28, %27 : vector<8x32xf32>
    %cst_22 = arith.constant 5.000000e-01 : f32
    %30 = vector.broadcast %cst_22 : f32 to vector<8x32xf32>
    %31 = arith.addf %29, %30 : vector<8x32xf32>
    %cst_23 = arith.constant 0.000000e+00 : f32
    %cst_24 = arith.constant 1.000000e+00 : f32
    %32 = vector.broadcast %cst_23 : f32 to vector<8x32xf32>
    %33 = arith.maximumf %32, %31 : vector<8x32xf32>
    %34 = vector.broadcast %cst_24 : f32 to vector<8x32xf32>
    %35 = arith.minimumf %34, %33 : vector<8x32xf32>
    %36 = vector.extract_strided_slice %17 {offsets = [0, 64], sizes = [8, 32], strides = [1, 1]} : vector<8x128xf32> to vector<8x32xf32>
    %cst_25 = arith.constant 2.000000e-01 : f32
    %37 = vector.broadcast %cst_25 : f32 to vector<8x32xf32>
    %38 = arith.mulf %37, %36 : vector<8x32xf32>
    %cst_26 = arith.constant 5.000000e-01 : f32
    %39 = vector.broadcast %cst_26 : f32 to vector<8x32xf32>
    %40 = arith.addf %38, %39 : vector<8x32xf32>
    %cst_27 = arith.constant 0.000000e+00 : f32
    %cst_28 = arith.constant 1.000000e+00 : f32
    %41 = vector.broadcast %cst_27 : f32 to vector<8x32xf32>
    %42 = arith.maximumf %41, %40 : vector<8x32xf32>
    %43 = vector.broadcast %cst_28 : f32 to vector<8x32xf32>
    %44 = arith.minimumf %43, %42 : vector<8x32xf32>
    %45 = vector.extract_strided_slice %17 {offsets = [0, 96], sizes = [8, 32], strides = [1, 1]} : vector<8x128xf32> to vector<8x32xf32>
    %46 = math.absf %45 : vector<8x32xf32>
    %cst_29 = arith.constant 1.000000e+00 : f32
    %47 = vector.broadcast %cst_29 : f32 to vector<8x32xf32>
    %48 = arith.addf %47, %46 : vector<8x32xf32>
    %49 = arith.divf %45, %48 : vector<8x32xf32>
    %50 = arith.mulf %35, %14 : vector<8x32xf32>
    %51 = arith.mulf %26, %49 : vector<8x32xf32>
    %52 = arith.addf %50, %51 : vector<8x32xf32>
    %53 = math.absf %52 : vector<8x32xf32>
    %cst_30 = arith.constant 1.000000e+00 : f32
    %54 = vector.broadcast %cst_30 : f32 to vector<8x32xf32>
    %55 = arith.addf %54, %53 : vector<8x32xf32>
    %56 = arith.divf %52, %55 : vector<8x32xf32>
    %57 = arith.mulf %44, %56 : vector<8x32xf32>
    %58 = vector.extract_strided_slice %5 {offsets = [8, 0], sizes = [8, 128], strides = [1, 1]} : vector<64x128xf32> to vector<8x128xf32>
    %cst_31 = arith.constant dense<0.000000e+00> : vector<8x128xf32>
    %59 = tpu.matmul %57, %11, %cst_31 {dimension_numbers = #tpu.dot_dimension_numbers<[1], [0], [0], [1], [0, 0, 1, 1], [], []>} : vector<8x32xf32>, vector<32x128xf32>, vector<8x128xf32> -> vector<8x128xf32>
    %60 = arith.addf %58, %59 : vector<8x128xf32>
    %61 = vector.extract_strided_slice %60 {offsets = [0, 0], sizes = [8, 32], strides = [1, 1]} : vector<8x128xf32> to vector<8x32xf32>
    %cst_32 = arith.constant 2.000000e-01 : f32
    %62 = vector.broadcast %cst_32 : f32 to vector<8x32xf32>
    %63 = arith.mulf %62, %61 : vector<8x32xf32>
    %cst_33 = arith.constant 5.000000e-01 : f32
    %64 = vector.broadcast %cst_33 : f32 to vector<8x32xf32>
    %65 = arith.addf %63, %64 : vector<8x32xf32>
    %cst_34 = arith.constant 0.000000e+00 : f32
    %cst_35 = arith.constant 1.000000e+00 : f32
    %66 = vector.broadcast %cst_34 : f32 to vector<8x32xf32>
    %67 = arith.maximumf %66, %65 : vector<8x32xf32>
    %68 = vector.broadcast %cst_35 : f32 to vector<8x32xf32>
    %69 = arith.minimumf %68, %67 : vector<8x32xf32>
    %70 = vector.extract_strided_slice %60 {offsets = [0, 32], sizes = [8, 32], strides = [1, 1]} : vector<8x128xf32> to vector<8x32xf32>
    %cst_36 = arith.constant 2.000000e-01 : f32
    %71 = vector.broadcast %cst_36 : f32 to vector<8x32xf32>
    %72 = arith.mulf %71, %70 : vector<8x32xf32>
    %cst_37 = arith.constant 5.000000e-01 : f32
    %73 = vector.broadcast %cst_37 : f32 to vector<8x32xf32>
    %74 = arith.addf %72, %73 : vector<8x32xf32>
    %cst_38 = arith.constant 0.000000e+00 : f32
    %cst_39 = arith.constant 1.000000e+00 : f32
    %75 = vector.broadcast %cst_38 : f32 to vector<8x32xf32>
    %76 = arith.maximumf %75, %74 : vector<8x32xf32>
    %77 = vector.broadcast %cst_39 : f32 to vector<8x32xf32>
    %78 = arith.minimumf %77, %76 : vector<8x32xf32>
    %79 = vector.extract_strided_slice %60 {offsets = [0, 64], sizes = [8, 32], strides = [1, 1]} : vector<8x128xf32> to vector<8x32xf32>
    %cst_40 = arith.constant 2.000000e-01 : f32
    %80 = vector.broadcast %cst_40 : f32 to vector<8x32xf32>
    %81 = arith.mulf %80, %79 : vector<8x32xf32>
    %cst_41 = arith.constant 5.000000e-01 : f32
    %82 = vector.broadcast %cst_41 : f32 to vector<8x32xf32>
    %83 = arith.addf %81, %82 : vector<8x32xf32>
    %cst_42 = arith.constant 0.000000e+00 : f32
    %cst_43 = arith.constant 1.000000e+00 : f32
    %84 = vector.broadcast %cst_42 : f32 to vector<8x32xf32>
    %85 = arith.maximumf %84, %83 : vector<8x32xf32>
    %86 = vector.broadcast %cst_43 : f32 to vector<8x32xf32>
    %87 = arith.minimumf %86, %85 : vector<8x32xf32>
    %88 = vector.extract_strided_slice %60 {offsets = [0, 96], sizes = [8, 32], strides = [1, 1]} : vector<8x128xf32> to vector<8x32xf32>
    %89 = math.absf %88 : vector<8x32xf32>
    %cst_44 = arith.constant 1.000000e+00 : f32
    %90 = vector.broadcast %cst_44 : f32 to vector<8x32xf32>
    %91 = arith.addf %90, %89 : vector<8x32xf32>
    %92 = arith.divf %88, %91 : vector<8x32xf32>
    %93 = arith.mulf %78, %52 : vector<8x32xf32>
    %94 = arith.mulf %69, %92 : vector<8x32xf32>
    %95 = arith.addf %93, %94 : vector<8x32xf32>
    %96 = math.absf %95 : vector<8x32xf32>
    %cst_45 = arith.constant 1.000000e+00 : f32
    %97 = vector.broadcast %cst_45 : f32 to vector<8x32xf32>
    %98 = arith.addf %97, %96 : vector<8x32xf32>
    %99 = arith.divf %95, %98 : vector<8x32xf32>
    %100 = arith.mulf %87, %99 : vector<8x32xf32>
    %101 = vector.extract_strided_slice %5 {offsets = [16, 0], sizes = [8, 128], strides = [1, 1]} : vector<64x128xf32> to vector<8x128xf32>
    %cst_46 = arith.constant dense<0.000000e+00> : vector<8x128xf32>
    %102 = tpu.matmul %100, %11, %cst_46 {dimension_numbers = #tpu.dot_dimension_numbers<[1], [0], [0], [1], [0, 0, 1, 1], [], []>} : vector<8x32xf32>, vector<32x128xf32>, vector<8x128xf32> -> vector<8x128xf32>
    %103 = arith.addf %101, %102 : vector<8x128xf32>
    %104 = vector.extract_strided_slice %103 {offsets = [0, 0], sizes = [8, 32], strides = [1, 1]} : vector<8x128xf32> to vector<8x32xf32>
    %cst_47 = arith.constant 2.000000e-01 : f32
    %105 = vector.broadcast %cst_47 : f32 to vector<8x32xf32>
    %106 = arith.mulf %105, %104 : vector<8x32xf32>
    %cst_48 = arith.constant 5.000000e-01 : f32
    %107 = vector.broadcast %cst_48 : f32 to vector<8x32xf32>
    %108 = arith.addf %106, %107 : vector<8x32xf32>
    %cst_49 = arith.constant 0.000000e+00 : f32
    %cst_50 = arith.constant 1.000000e+00 : f32
    %109 = vector.broadcast %cst_49 : f32 to vector<8x32xf32>
    %110 = arith.maximumf %109, %108 : vector<8x32xf32>
    %111 = vector.broadcast %cst_50 : f32 to vector<8x32xf32>
    %112 = arith.minimumf %111, %110 : vector<8x32xf32>
    %113 = vector.extract_strided_slice %103 {offsets = [0, 32], sizes = [8, 32], strides = [1, 1]} : vector<8x128xf32> to vector<8x32xf32>
    %cst_51 = arith.constant 2.000000e-01 : f32
    %114 = vector.broadcast %cst_51 : f32 to vector<8x32xf32>
    %115 = arith.mulf %114, %113 : vector<8x32xf32>
    %cst_52 = arith.constant 5.000000e-01 : f32
    %116 = vector.broadcast %cst_52 : f32 to vector<8x32xf32>
    %117 = arith.addf %115, %116 : vector<8x32xf32>
    %cst_53 = arith.constant 0.000000e+00 : f32
    %cst_54 = arith.constant 1.000000e+00 : f32
    %118 = vector.broadcast %cst_53 : f32 to vector<8x32xf32>
    %119 = arith.maximumf %118, %117 : vector<8x32xf32>
    %120 = vector.broadcast %cst_54 : f32 to vector<8x32xf32>
    %121 = arith.minimumf %120, %119 : vector<8x32xf32>
    %122 = vector.extract_strided_slice %103 {offsets = [0, 64], sizes = [8, 32], strides = [1, 1]} : vector<8x128xf32> to vector<8x32xf32>
    %cst_55 = arith.constant 2.000000e-01 : f32
    %123 = vector.broadcast %cst_55 : f32 to vector<8x32xf32>
    %124 = arith.mulf %123, %122 : vector<8x32xf32>
    %cst_56 = arith.constant 5.000000e-01 : f32
    %125 = vector.broadcast %cst_56 : f32 to vector<8x32xf32>
    %126 = arith.addf %124, %125 : vector<8x32xf32>
    %cst_57 = arith.constant 0.000000e+00 : f32
    %cst_58 = arith.constant 1.000000e+00 : f32
    %127 = vector.broadcast %cst_57 : f32 to vector<8x32xf32>
    %128 = arith.maximumf %127, %126 : vector<8x32xf32>
    %129 = vector.broadcast %cst_58 : f32 to vector<8x32xf32>
    %130 = arith.minimumf %129, %128 : vector<8x32xf32>
    %131 = vector.extract_strided_slice %103 {offsets = [0, 96], sizes = [8, 32], strides = [1, 1]} : vector<8x128xf32> to vector<8x32xf32>
    %132 = math.absf %131 : vector<8x32xf32>
    %cst_59 = arith.constant 1.000000e+00 : f32
    %133 = vector.broadcast %cst_59 : f32 to vector<8x32xf32>
    %134 = arith.addf %133, %132 : vector<8x32xf32>
    %135 = arith.divf %131, %134 : vector<8x32xf32>
    %136 = arith.mulf %121, %95 : vector<8x32xf32>
    %137 = arith.mulf %112, %135 : vector<8x32xf32>
    %138 = arith.addf %136, %137 : vector<8x32xf32>
    %139 = math.absf %138 : vector<8x32xf32>
    %cst_60 = arith.constant 1.000000e+00 : f32
    %140 = vector.broadcast %cst_60 : f32 to vector<8x32xf32>
    %141 = arith.addf %140, %139 : vector<8x32xf32>
    %142 = arith.divf %138, %141 : vector<8x32xf32>
    %143 = arith.mulf %130, %142 : vector<8x32xf32>
    %144 = vector.extract_strided_slice %5 {offsets = [24, 0], sizes = [8, 128], strides = [1, 1]} : vector<64x128xf32> to vector<8x128xf32>
    %cst_61 = arith.constant dense<0.000000e+00> : vector<8x128xf32>
    %145 = tpu.matmul %143, %11, %cst_61 {dimension_numbers = #tpu.dot_dimension_numbers<[1], [0], [0], [1], [0, 0, 1, 1], [], []>} : vector<8x32xf32>, vector<32x128xf32>, vector<8x128xf32> -> vector<8x128xf32>
    %146 = arith.addf %144, %145 : vector<8x128xf32>
    %147 = vector.extract_strided_slice %146 {offsets = [0, 0], sizes = [8, 32], strides = [1, 1]} : vector<8x128xf32> to vector<8x32xf32>
    %cst_62 = arith.constant 2.000000e-01 : f32
    %148 = vector.broadcast %cst_62 : f32 to vector<8x32xf32>
    %149 = arith.mulf %148, %147 : vector<8x32xf32>
    %cst_63 = arith.constant 5.000000e-01 : f32
    %150 = vector.broadcast %cst_63 : f32 to vector<8x32xf32>
    %151 = arith.addf %149, %150 : vector<8x32xf32>
    %cst_64 = arith.constant 0.000000e+00 : f32
    %cst_65 = arith.constant 1.000000e+00 : f32
    %152 = vector.broadcast %cst_64 : f32 to vector<8x32xf32>
    %153 = arith.maximumf %152, %151 : vector<8x32xf32>
    %154 = vector.broadcast %cst_65 : f32 to vector<8x32xf32>
    %155 = arith.minimumf %154, %153 : vector<8x32xf32>
    %156 = vector.extract_strided_slice %146 {offsets = [0, 32], sizes = [8, 32], strides = [1, 1]} : vector<8x128xf32> to vector<8x32xf32>
    %cst_66 = arith.constant 2.000000e-01 : f32
    %157 = vector.broadcast %cst_66 : f32 to vector<8x32xf32>
    %158 = arith.mulf %157, %156 : vector<8x32xf32>
    %cst_67 = arith.constant 5.000000e-01 : f32
    %159 = vector.broadcast %cst_67 : f32 to vector<8x32xf32>
    %160 = arith.addf %158, %159 : vector<8x32xf32>
    %cst_68 = arith.constant 0.000000e+00 : f32
    %cst_69 = arith.constant 1.000000e+00 : f32
    %161 = vector.broadcast %cst_68 : f32 to vector<8x32xf32>
    %162 = arith.maximumf %161, %160 : vector<8x32xf32>
    %163 = vector.broadcast %cst_69 : f32 to vector<8x32xf32>
    %164 = arith.minimumf %163, %162 : vector<8x32xf32>
    %165 = vector.extract_strided_slice %146 {offsets = [0, 64], sizes = [8, 32], strides = [1, 1]} : vector<8x128xf32> to vector<8x32xf32>
    %cst_70 = arith.constant 2.000000e-01 : f32
    %166 = vector.broadcast %cst_70 : f32 to vector<8x32xf32>
    %167 = arith.mulf %166, %165 : vector<8x32xf32>
    %cst_71 = arith.constant 5.000000e-01 : f32
    %168 = vector.broadcast %cst_71 : f32 to vector<8x32xf32>
    %169 = arith.addf %167, %168 : vector<8x32xf32>
    %cst_72 = arith.constant 0.000000e+00 : f32
    %cst_73 = arith.constant 1.000000e+00 : f32
    %170 = vector.broadcast %cst_72 : f32 to vector<8x32xf32>
    %171 = arith.maximumf %170, %169 : vector<8x32xf32>
    %172 = vector.broadcast %cst_73 : f32 to vector<8x32xf32>
    %173 = arith.minimumf %172, %171 : vector<8x32xf32>
    %174 = vector.extract_strided_slice %146 {offsets = [0, 96], sizes = [8, 32], strides = [1, 1]} : vector<8x128xf32> to vector<8x32xf32>
    %175 = math.absf %174 : vector<8x32xf32>
    %cst_74 = arith.constant 1.000000e+00 : f32
    %176 = vector.broadcast %cst_74 : f32 to vector<8x32xf32>
    %177 = arith.addf %176, %175 : vector<8x32xf32>
    %178 = arith.divf %174, %177 : vector<8x32xf32>
    %179 = arith.mulf %164, %138 : vector<8x32xf32>
    %180 = arith.mulf %155, %178 : vector<8x32xf32>
    %181 = arith.addf %179, %180 : vector<8x32xf32>
    %182 = math.absf %181 : vector<8x32xf32>
    %cst_75 = arith.constant 1.000000e+00 : f32
    %183 = vector.broadcast %cst_75 : f32 to vector<8x32xf32>
    %184 = arith.addf %183, %182 : vector<8x32xf32>
    %185 = arith.divf %181, %184 : vector<8x32xf32>
    %186 = arith.mulf %173, %185 : vector<8x32xf32>
    %187 = vector.extract_strided_slice %5 {offsets = [32, 0], sizes = [8, 128], strides = [1, 1]} : vector<64x128xf32> to vector<8x128xf32>
    %cst_76 = arith.constant dense<0.000000e+00> : vector<8x128xf32>
    %188 = tpu.matmul %186, %11, %cst_76 {dimension_numbers = #tpu.dot_dimension_numbers<[1], [0], [0], [1], [0, 0, 1, 1], [], []>} : vector<8x32xf32>, vector<32x128xf32>, vector<8x128xf32> -> vector<8x128xf32>
    %189 = arith.addf %187, %188 : vector<8x128xf32>
    %190 = vector.extract_strided_slice %189 {offsets = [0, 0], sizes = [8, 32], strides = [1, 1]} : vector<8x128xf32> to vector<8x32xf32>
    %cst_77 = arith.constant 2.000000e-01 : f32
    %191 = vector.broadcast %cst_77 : f32 to vector<8x32xf32>
    %192 = arith.mulf %191, %190 : vector<8x32xf32>
    %cst_78 = arith.constant 5.000000e-01 : f32
    %193 = vector.broadcast %cst_78 : f32 to vector<8x32xf32>
    %194 = arith.addf %192, %193 : vector<8x32xf32>
    %cst_79 = arith.constant 0.000000e+00 : f32
    %cst_80 = arith.constant 1.000000e+00 : f32
    %195 = vector.broadcast %cst_79 : f32 to vector<8x32xf32>
    %196 = arith.maximumf %195, %194 : vector<8x32xf32>
    %197 = vector.broadcast %cst_80 : f32 to vector<8x32xf32>
    %198 = arith.minimumf %197, %196 : vector<8x32xf32>
    %199 = vector.extract_strided_slice %189 {offsets = [0, 32], sizes = [8, 32], strides = [1, 1]} : vector<8x128xf32> to vector<8x32xf32>
    %cst_81 = arith.constant 2.000000e-01 : f32
    %200 = vector.broadcast %cst_81 : f32 to vector<8x32xf32>
    %201 = arith.mulf %200, %199 : vector<8x32xf32>
    %cst_82 = arith.constant 5.000000e-01 : f32
    %202 = vector.broadcast %cst_82 : f32 to vector<8x32xf32>
    %203 = arith.addf %201, %202 : vector<8x32xf32>
    %cst_83 = arith.constant 0.000000e+00 : f32
    %cst_84 = arith.constant 1.000000e+00 : f32
    %204 = vector.broadcast %cst_83 : f32 to vector<8x32xf32>
    %205 = arith.maximumf %204, %203 : vector<8x32xf32>
    %206 = vector.broadcast %cst_84 : f32 to vector<8x32xf32>
    %207 = arith.minimumf %206, %205 : vector<8x32xf32>
    %208 = vector.extract_strided_slice %189 {offsets = [0, 64], sizes = [8, 32], strides = [1, 1]} : vector<8x128xf32> to vector<8x32xf32>
    %cst_85 = arith.constant 2.000000e-01 : f32
    %209 = vector.broadcast %cst_85 : f32 to vector<8x32xf32>
    %210 = arith.mulf %209, %208 : vector<8x32xf32>
    %cst_86 = arith.constant 5.000000e-01 : f32
    %211 = vector.broadcast %cst_86 : f32 to vector<8x32xf32>
    %212 = arith.addf %210, %211 : vector<8x32xf32>
    %cst_87 = arith.constant 0.000000e+00 : f32
    %cst_88 = arith.constant 1.000000e+00 : f32
    %213 = vector.broadcast %cst_87 : f32 to vector<8x32xf32>
    %214 = arith.maximumf %213, %212 : vector<8x32xf32>
    %215 = vector.broadcast %cst_88 : f32 to vector<8x32xf32>
    %216 = arith.minimumf %215, %214 : vector<8x32xf32>
    %217 = vector.extract_strided_slice %189 {offsets = [0, 96], sizes = [8, 32], strides = [1, 1]} : vector<8x128xf32> to vector<8x32xf32>
    %218 = math.absf %217 : vector<8x32xf32>
    %cst_89 = arith.constant 1.000000e+00 : f32
    %219 = vector.broadcast %cst_89 : f32 to vector<8x32xf32>
    %220 = arith.addf %219, %218 : vector<8x32xf32>
    %221 = arith.divf %217, %220 : vector<8x32xf32>
    %222 = arith.mulf %207, %181 : vector<8x32xf32>
    %223 = arith.mulf %198, %221 : vector<8x32xf32>
    %224 = arith.addf %222, %223 : vector<8x32xf32>
    %225 = math.absf %224 : vector<8x32xf32>
    %cst_90 = arith.constant 1.000000e+00 : f32
    %226 = vector.broadcast %cst_90 : f32 to vector<8x32xf32>
    %227 = arith.addf %226, %225 : vector<8x32xf32>
    %228 = arith.divf %224, %227 : vector<8x32xf32>
    %229 = arith.mulf %216, %228 : vector<8x32xf32>
    %230 = vector.extract_strided_slice %5 {offsets = [40, 0], sizes = [8, 128], strides = [1, 1]} : vector<64x128xf32> to vector<8x128xf32>
    %cst_91 = arith.constant dense<0.000000e+00> : vector<8x128xf32>
    %231 = tpu.matmul %229, %11, %cst_91 {dimension_numbers = #tpu.dot_dimension_numbers<[1], [0], [0], [1], [0, 0, 1, 1], [], []>} : vector<8x32xf32>, vector<32x128xf32>, vector<8x128xf32> -> vector<8x128xf32>
    %232 = arith.addf %230, %231 : vector<8x128xf32>
    %233 = vector.extract_strided_slice %232 {offsets = [0, 0], sizes = [8, 32], strides = [1, 1]} : vector<8x128xf32> to vector<8x32xf32>
    %cst_92 = arith.constant 2.000000e-01 : f32
    %234 = vector.broadcast %cst_92 : f32 to vector<8x32xf32>
    %235 = arith.mulf %234, %233 : vector<8x32xf32>
    %cst_93 = arith.constant 5.000000e-01 : f32
    %236 = vector.broadcast %cst_93 : f32 to vector<8x32xf32>
    %237 = arith.addf %235, %236 : vector<8x32xf32>
    %cst_94 = arith.constant 0.000000e+00 : f32
    %cst_95 = arith.constant 1.000000e+00 : f32
    %238 = vector.broadcast %cst_94 : f32 to vector<8x32xf32>
    %239 = arith.maximumf %238, %237 : vector<8x32xf32>
    %240 = vector.broadcast %cst_95 : f32 to vector<8x32xf32>
    %241 = arith.minimumf %240, %239 : vector<8x32xf32>
    %242 = vector.extract_strided_slice %232 {offsets = [0, 32], sizes = [8, 32], strides = [1, 1]} : vector<8x128xf32> to vector<8x32xf32>
    %cst_96 = arith.constant 2.000000e-01 : f32
    %243 = vector.broadcast %cst_96 : f32 to vector<8x32xf32>
    %244 = arith.mulf %243, %242 : vector<8x32xf32>
    %cst_97 = arith.constant 5.000000e-01 : f32
    %245 = vector.broadcast %cst_97 : f32 to vector<8x32xf32>
    %246 = arith.addf %244, %245 : vector<8x32xf32>
    %cst_98 = arith.constant 0.000000e+00 : f32
    %cst_99 = arith.constant 1.000000e+00 : f32
    %247 = vector.broadcast %cst_98 : f32 to vector<8x32xf32>
    %248 = arith.maximumf %247, %246 : vector<8x32xf32>
    %249 = vector.broadcast %cst_99 : f32 to vector<8x32xf32>
    %250 = arith.minimumf %249, %248 : vector<8x32xf32>
    %251 = vector.extract_strided_slice %232 {offsets = [0, 64], sizes = [8, 32], strides = [1, 1]} : vector<8x128xf32> to vector<8x32xf32>
    %cst_100 = arith.constant 2.000000e-01 : f32
    %252 = vector.broadcast %cst_100 : f32 to vector<8x32xf32>
    %253 = arith.mulf %252, %251 : vector<8x32xf32>
    %cst_101 = arith.constant 5.000000e-01 : f32
    %254 = vector.broadcast %cst_101 : f32 to vector<8x32xf32>
    %255 = arith.addf %253, %254 : vector<8x32xf32>
    %cst_102 = arith.constant 0.000000e+00 : f32
    %cst_103 = arith.constant 1.000000e+00 : f32
    %256 = vector.broadcast %cst_102 : f32 to vector<8x32xf32>
    %257 = arith.maximumf %256, %255 : vector<8x32xf32>
    %258 = vector.broadcast %cst_103 : f32 to vector<8x32xf32>
    %259 = arith.minimumf %258, %257 : vector<8x32xf32>
    %260 = vector.extract_strided_slice %232 {offsets = [0, 96], sizes = [8, 32], strides = [1, 1]} : vector<8x128xf32> to vector<8x32xf32>
    %261 = math.absf %260 : vector<8x32xf32>
    %cst_104 = arith.constant 1.000000e+00 : f32
    %262 = vector.broadcast %cst_104 : f32 to vector<8x32xf32>
    %263 = arith.addf %262, %261 : vector<8x32xf32>
    %264 = arith.divf %260, %263 : vector<8x32xf32>
    %265 = arith.mulf %250, %224 : vector<8x32xf32>
    %266 = arith.mulf %241, %264 : vector<8x32xf32>
    %267 = arith.addf %265, %266 : vector<8x32xf32>
    %268 = math.absf %267 : vector<8x32xf32>
    %cst_105 = arith.constant 1.000000e+00 : f32
    %269 = vector.broadcast %cst_105 : f32 to vector<8x32xf32>
    %270 = arith.addf %269, %268 : vector<8x32xf32>
    %271 = arith.divf %267, %270 : vector<8x32xf32>
    %272 = arith.mulf %259, %271 : vector<8x32xf32>
    %273 = vector.extract_strided_slice %5 {offsets = [48, 0], sizes = [8, 128], strides = [1, 1]} : vector<64x128xf32> to vector<8x128xf32>
    %cst_106 = arith.constant dense<0.000000e+00> : vector<8x128xf32>
    %274 = tpu.matmul %272, %11, %cst_106 {dimension_numbers = #tpu.dot_dimension_numbers<[1], [0], [0], [1], [0, 0, 1, 1], [], []>} : vector<8x32xf32>, vector<32x128xf32>, vector<8x128xf32> -> vector<8x128xf32>
    %275 = arith.addf %273, %274 : vector<8x128xf32>
    %276 = vector.extract_strided_slice %275 {offsets = [0, 0], sizes = [8, 32], strides = [1, 1]} : vector<8x128xf32> to vector<8x32xf32>
    %cst_107 = arith.constant 2.000000e-01 : f32
    %277 = vector.broadcast %cst_107 : f32 to vector<8x32xf32>
    %278 = arith.mulf %277, %276 : vector<8x32xf32>
    %cst_108 = arith.constant 5.000000e-01 : f32
    %279 = vector.broadcast %cst_108 : f32 to vector<8x32xf32>
    %280 = arith.addf %278, %279 : vector<8x32xf32>
    %cst_109 = arith.constant 0.000000e+00 : f32
    %cst_110 = arith.constant 1.000000e+00 : f32
    %281 = vector.broadcast %cst_109 : f32 to vector<8x32xf32>
    %282 = arith.maximumf %281, %280 : vector<8x32xf32>
    %283 = vector.broadcast %cst_110 : f32 to vector<8x32xf32>
    %284 = arith.minimumf %283, %282 : vector<8x32xf32>
    %285 = vector.extract_strided_slice %275 {offsets = [0, 32], sizes = [8, 32], strides = [1, 1]} : vector<8x128xf32> to vector<8x32xf32>
    %cst_111 = arith.constant 2.000000e-01 : f32
    %286 = vector.broadcast %cst_111 : f32 to vector<8x32xf32>
    %287 = arith.mulf %286, %285 : vector<8x32xf32>
    %cst_112 = arith.constant 5.000000e-01 : f32
    %288 = vector.broadcast %cst_112 : f32 to vector<8x32xf32>
    %289 = arith.addf %287, %288 : vector<8x32xf32>
    %cst_113 = arith.constant 0.000000e+00 : f32
    %cst_114 = arith.constant 1.000000e+00 : f32
    %290 = vector.broadcast %cst_113 : f32 to vector<8x32xf32>
    %291 = arith.maximumf %290, %289 : vector<8x32xf32>
    %292 = vector.broadcast %cst_114 : f32 to vector<8x32xf32>
    %293 = arith.minimumf %292, %291 : vector<8x32xf32>
    %294 = vector.extract_strided_slice %275 {offsets = [0, 64], sizes = [8, 32], strides = [1, 1]} : vector<8x128xf32> to vector<8x32xf32>
    %cst_115 = arith.constant 2.000000e-01 : f32
    %295 = vector.broadcast %cst_115 : f32 to vector<8x32xf32>
    %296 = arith.mulf %295, %294 : vector<8x32xf32>
    %cst_116 = arith.constant 5.000000e-01 : f32
    %297 = vector.broadcast %cst_116 : f32 to vector<8x32xf32>
    %298 = arith.addf %296, %297 : vector<8x32xf32>
    %cst_117 = arith.constant 0.000000e+00 : f32
    %cst_118 = arith.constant 1.000000e+00 : f32
    %299 = vector.broadcast %cst_117 : f32 to vector<8x32xf32>
    %300 = arith.maximumf %299, %298 : vector<8x32xf32>
    %301 = vector.broadcast %cst_118 : f32 to vector<8x32xf32>
    %302 = arith.minimumf %301, %300 : vector<8x32xf32>
    %303 = vector.extract_strided_slice %275 {offsets = [0, 96], sizes = [8, 32], strides = [1, 1]} : vector<8x128xf32> to vector<8x32xf32>
    %304 = math.absf %303 : vector<8x32xf32>
    %cst_119 = arith.constant 1.000000e+00 : f32
    %305 = vector.broadcast %cst_119 : f32 to vector<8x32xf32>
    %306 = arith.addf %305, %304 : vector<8x32xf32>
    %307 = arith.divf %303, %306 : vector<8x32xf32>
    %308 = arith.mulf %293, %267 : vector<8x32xf32>
    %309 = arith.mulf %284, %307 : vector<8x32xf32>
    %310 = arith.addf %308, %309 : vector<8x32xf32>
    %311 = math.absf %310 : vector<8x32xf32>
    %cst_120 = arith.constant 1.000000e+00 : f32
    %312 = vector.broadcast %cst_120 : f32 to vector<8x32xf32>
    %313 = arith.addf %312, %311 : vector<8x32xf32>
    %314 = arith.divf %310, %313 : vector<8x32xf32>
    %315 = arith.mulf %302, %314 : vector<8x32xf32>
    %316 = vector.extract_strided_slice %5 {offsets = [56, 0], sizes = [8, 128], strides = [1, 1]} : vector<64x128xf32> to vector<8x128xf32>
    %cst_121 = arith.constant dense<0.000000e+00> : vector<8x128xf32>
    %317 = tpu.matmul %315, %11, %cst_121 {dimension_numbers = #tpu.dot_dimension_numbers<[1], [0], [0], [1], [0, 0, 1, 1], [], []>} : vector<8x32xf32>, vector<32x128xf32>, vector<8x128xf32> -> vector<8x128xf32>
    %318 = arith.addf %316, %317 : vector<8x128xf32>
    %319 = vector.extract_strided_slice %318 {offsets = [0, 0], sizes = [8, 32], strides = [1, 1]} : vector<8x128xf32> to vector<8x32xf32>
    %cst_122 = arith.constant 2.000000e-01 : f32
    %320 = vector.broadcast %cst_122 : f32 to vector<8x32xf32>
    %321 = arith.mulf %320, %319 : vector<8x32xf32>
    %cst_123 = arith.constant 5.000000e-01 : f32
    %322 = vector.broadcast %cst_123 : f32 to vector<8x32xf32>
    %323 = arith.addf %321, %322 : vector<8x32xf32>
    %cst_124 = arith.constant 0.000000e+00 : f32
    %cst_125 = arith.constant 1.000000e+00 : f32
    %324 = vector.broadcast %cst_124 : f32 to vector<8x32xf32>
    %325 = arith.maximumf %324, %323 : vector<8x32xf32>
    %326 = vector.broadcast %cst_125 : f32 to vector<8x32xf32>
    %327 = arith.minimumf %326, %325 : vector<8x32xf32>
    %328 = vector.extract_strided_slice %318 {offsets = [0, 32], sizes = [8, 32], strides = [1, 1]} : vector<8x128xf32> to vector<8x32xf32>
    %cst_126 = arith.constant 2.000000e-01 : f32
    %329 = vector.broadcast %cst_126 : f32 to vector<8x32xf32>
    %330 = arith.mulf %329, %328 : vector<8x32xf32>
    %cst_127 = arith.constant 5.000000e-01 : f32
    %331 = vector.broadcast %cst_127 : f32 to vector<8x32xf32>
    %332 = arith.addf %330, %331 : vector<8x32xf32>
    %cst_128 = arith.constant 0.000000e+00 : f32
    %cst_129 = arith.constant 1.000000e+00 : f32
    %333 = vector.broadcast %cst_128 : f32 to vector<8x32xf32>
    %334 = arith.maximumf %333, %332 : vector<8x32xf32>
    %335 = vector.broadcast %cst_129 : f32 to vector<8x32xf32>
    %336 = arith.minimumf %335, %334 : vector<8x32xf32>
    %337 = vector.extract_strided_slice %318 {offsets = [0, 64], sizes = [8, 32], strides = [1, 1]} : vector<8x128xf32> to vector<8x32xf32>
    %cst_130 = arith.constant 2.000000e-01 : f32
    %338 = vector.broadcast %cst_130 : f32 to vector<8x32xf32>
    %339 = arith.mulf %338, %337 : vector<8x32xf32>
    %cst_131 = arith.constant 5.000000e-01 : f32
    %340 = vector.broadcast %cst_131 : f32 to vector<8x32xf32>
    %341 = arith.addf %339, %340 : vector<8x32xf32>
    %cst_132 = arith.constant 0.000000e+00 : f32
    %cst_133 = arith.constant 1.000000e+00 : f32
    %342 = vector.broadcast %cst_132 : f32 to vector<8x32xf32>
    %343 = arith.maximumf %342, %341 : vector<8x32xf32>
    %344 = vector.broadcast %cst_133 : f32 to vector<8x32xf32>
    %345 = arith.minimumf %344, %343 : vector<8x32xf32>
    %346 = vector.extract_strided_slice %318 {offsets = [0, 96], sizes = [8, 32], strides = [1, 1]} : vector<8x128xf32> to vector<8x32xf32>
    %347 = math.absf %346 : vector<8x32xf32>
    %cst_134 = arith.constant 1.000000e+00 : f32
    %348 = vector.broadcast %cst_134 : f32 to vector<8x32xf32>
    %349 = arith.addf %348, %347 : vector<8x32xf32>
    %350 = arith.divf %346, %349 : vector<8x32xf32>
    %351 = arith.mulf %336, %310 : vector<8x32xf32>
    %352 = arith.mulf %327, %350 : vector<8x32xf32>
    %353 = arith.addf %351, %352 : vector<8x32xf32>
    %354 = math.absf %353 : vector<8x32xf32>
    %cst_135 = arith.constant 1.000000e+00 : f32
    %355 = vector.broadcast %cst_135 : f32 to vector<8x32xf32>
    %356 = arith.addf %355, %354 : vector<8x32xf32>
    %357 = arith.divf %353, %356 : vector<8x32xf32>
    %358 = arith.mulf %345, %357 : vector<8x32xf32>
    %cst_136 = arith.constant 0.000000e+00 : f32
    %359 = vector.broadcast %cst_136 : f32 to vector<8x32xf32>
    %cst_137 = arith.constant 0.000000e+00 : f32
    %360 = vector.broadcast %cst_137 : f32 to vector<8x32xf32>
    %361 = vector.extract_strided_slice %10 {offsets = [56, 0], sizes = [8, 128], strides = [1, 1]} : vector<64x128xf32> to vector<8x128xf32>
    %cst_138 = arith.constant dense<0.000000e+00> : vector<8x128xf32>
    %362 = tpu.matmul %359, %12, %cst_138 {dimension_numbers = #tpu.dot_dimension_numbers<[1], [0], [0], [1], [0, 0, 1, 1], [], []>} : vector<8x32xf32>, vector<32x128xf32>, vector<8x128xf32> -> vector<8x128xf32>
    %363 = arith.addf %361, %362 : vector<8x128xf32>
    %364 = vector.extract_strided_slice %363 {offsets = [0, 0], sizes = [8, 32], strides = [1, 1]} : vector<8x128xf32> to vector<8x32xf32>
    %cst_139 = arith.constant 2.000000e-01 : f32
    %365 = vector.broadcast %cst_139 : f32 to vector<8x32xf32>
    %366 = arith.mulf %365, %364 : vector<8x32xf32>
    %cst_140 = arith.constant 5.000000e-01 : f32
    %367 = vector.broadcast %cst_140 : f32 to vector<8x32xf32>
    %368 = arith.addf %366, %367 : vector<8x32xf32>
    %cst_141 = arith.constant 0.000000e+00 : f32
    %cst_142 = arith.constant 1.000000e+00 : f32
    %369 = vector.broadcast %cst_141 : f32 to vector<8x32xf32>
    %370 = arith.maximumf %369, %368 : vector<8x32xf32>
    %371 = vector.broadcast %cst_142 : f32 to vector<8x32xf32>
    %372 = arith.minimumf %371, %370 : vector<8x32xf32>
    %373 = vector.extract_strided_slice %363 {offsets = [0, 32], sizes = [8, 32], strides = [1, 1]} : vector<8x128xf32> to vector<8x32xf32>
    %cst_143 = arith.constant 2.000000e-01 : f32
    %374 = vector.broadcast %cst_143 : f32 to vector<8x32xf32>
    %375 = arith.mulf %374, %373 : vector<8x32xf32>
    %cst_144 = arith.constant 5.000000e-01 : f32
    %376 = vector.broadcast %cst_144 : f32 to vector<8x32xf32>
    %377 = arith.addf %375, %376 : vector<8x32xf32>
    %cst_145 = arith.constant 0.000000e+00 : f32
    %cst_146 = arith.constant 1.000000e+00 : f32
    %378 = vector.broadcast %cst_145 : f32 to vector<8x32xf32>
    %379 = arith.maximumf %378, %377 : vector<8x32xf32>
    %380 = vector.broadcast %cst_146 : f32 to vector<8x32xf32>
    %381 = arith.minimumf %380, %379 : vector<8x32xf32>
    %382 = vector.extract_strided_slice %363 {offsets = [0, 64], sizes = [8, 32], strides = [1, 1]} : vector<8x128xf32> to vector<8x32xf32>
    %cst_147 = arith.constant 2.000000e-01 : f32
    %383 = vector.broadcast %cst_147 : f32 to vector<8x32xf32>
    %384 = arith.mulf %383, %382 : vector<8x32xf32>
    %cst_148 = arith.constant 5.000000e-01 : f32
    %385 = vector.broadcast %cst_148 : f32 to vector<8x32xf32>
    %386 = arith.addf %384, %385 : vector<8x32xf32>
    %cst_149 = arith.constant 0.000000e+00 : f32
    %cst_150 = arith.constant 1.000000e+00 : f32
    %387 = vector.broadcast %cst_149 : f32 to vector<8x32xf32>
    %388 = arith.maximumf %387, %386 : vector<8x32xf32>
    %389 = vector.broadcast %cst_150 : f32 to vector<8x32xf32>
    %390 = arith.minimumf %389, %388 : vector<8x32xf32>
    %391 = vector.extract_strided_slice %363 {offsets = [0, 96], sizes = [8, 32], strides = [1, 1]} : vector<8x128xf32> to vector<8x32xf32>
    %392 = math.absf %391 : vector<8x32xf32>
    %cst_151 = arith.constant 1.000000e+00 : f32
    %393 = vector.broadcast %cst_151 : f32 to vector<8x32xf32>
    %394 = arith.addf %393, %392 : vector<8x32xf32>
    %395 = arith.divf %391, %394 : vector<8x32xf32>
    %396 = arith.mulf %381, %360 : vector<8x32xf32>
    %397 = arith.mulf %372, %395 : vector<8x32xf32>
    %398 = arith.addf %396, %397 : vector<8x32xf32>
    %399 = math.absf %398 : vector<8x32xf32>
    %cst_152 = arith.constant 1.000000e+00 : f32
    %400 = vector.broadcast %cst_152 : f32 to vector<8x32xf32>
    %401 = arith.addf %400, %399 : vector<8x32xf32>
    %402 = arith.divf %398, %401 : vector<8x32xf32>
    %403 = arith.mulf %390, %402 : vector<8x32xf32>
    %404 = arith.addf %358, %403 : vector<8x32xf32>
    %cst_153 = arith.constant 2.000000e-01 : f32
    %405 = vector.broadcast %cst_153 : f32 to vector<8x32xf32>
    %406 = arith.mulf %405, %404 : vector<8x32xf32>
    %cst_154 = arith.constant 5.000000e-01 : f32
    %407 = vector.broadcast %cst_154 : f32 to vector<8x32xf32>
    %408 = arith.addf %406, %407 : vector<8x32xf32>
    %cst_155 = arith.constant 0.000000e+00 : f32
    %cst_156 = arith.constant 1.000000e+00 : f32
    %409 = vector.broadcast %cst_155 : f32 to vector<8x32xf32>
    %410 = arith.maximumf %409, %408 : vector<8x32xf32>
    %411 = vector.broadcast %cst_156 : f32 to vector<8x32xf32>
    %412 = arith.minimumf %411, %410 : vector<8x32xf32>
    %c56 = arith.constant 56 : index
    %c0_157 = arith.constant 0 : index
    %413 = vector.load %arg19[%c56, %c0_157] : memref<64x32xf32, #tpu.memory_space<vmem>>, vector<8x32xf32>
    tpu.vector_store %arg19[%c56, %c0_157], %412 {strides = array<i32>} : memref<64x32xf32, #tpu.memory_space<vmem>>, vector<8x32xf32>,
    %414 = vector.extract_strided_slice %10 {offsets = [48, 0], sizes = [8, 128], strides = [1, 1]} : vector<64x128xf32> to vector<8x128xf32>
    %cst_158 = arith.constant dense<0.000000e+00> : vector<8x128xf32>
    %415 = tpu.matmul %403, %12, %cst_158 {dimension_numbers = #tpu.dot_dimension_numbers<[1], [0], [0], [1], [0, 0, 1, 1], [], []>} : vector<8x32xf32>, vector<32x128xf32>, vector<8x128xf32> -> vector<8x128xf32>
    %416 = arith.addf %414, %415 : vector<8x128xf32>
    %417 = vector.extract_strided_slice %416 {offsets = [0, 0], sizes = [8, 32], strides = [1, 1]} : vector<8x128xf32> to vector<8x32xf32>
    %cst_159 = arith.constant 2.000000e-01 : f32
    %418 = vector.broadcast %cst_159 : f32 to vector<8x32xf32>
    %419 = arith.mulf %418, %417 : vector<8x32xf32>
    %cst_160 = arith.constant 5.000000e-01 : f32
    %420 = vector.broadcast %cst_160 : f32 to vector<8x32xf32>
    %421 = arith.addf %419, %420 : vector<8x32xf32>
    %cst_161 = arith.constant 0.000000e+00 : f32
    %cst_162 = arith.constant 1.000000e+00 : f32
    %422 = vector.broadcast %cst_161 : f32 to vector<8x32xf32>
    %423 = arith.maximumf %422, %421 : vector<8x32xf32>
    %424 = vector.broadcast %cst_162 : f32 to vector<8x32xf32>
    %425 = arith.minimumf %424, %423 : vector<8x32xf32>
    %426 = vector.extract_strided_slice %416 {offsets = [0, 32], sizes = [8, 32], strides = [1, 1]} : vector<8x128xf32> to vector<8x32xf32>
    %cst_163 = arith.constant 2.000000e-01 : f32
    %427 = vector.broadcast %cst_163 : f32 to vector<8x32xf32>
    %428 = arith.mulf %427, %426 : vector<8x32xf32>
    %cst_164 = arith.constant 5.000000e-01 : f32
    %429 = vector.broadcast %cst_164 : f32 to vector<8x32xf32>
    %430 = arith.addf %428, %429 : vector<8x32xf32>
    %cst_165 = arith.constant 0.000000e+00 : f32
    %cst_166 = arith.constant 1.000000e+00 : f32
    %431 = vector.broadcast %cst_165 : f32 to vector<8x32xf32>
    %432 = arith.maximumf %431, %430 : vector<8x32xf32>
    %433 = vector.broadcast %cst_166 : f32 to vector<8x32xf32>
    %434 = arith.minimumf %433, %432 : vector<8x32xf32>
    %435 = vector.extract_strided_slice %416 {offsets = [0, 64], sizes = [8, 32], strides = [1, 1]} : vector<8x128xf32> to vector<8x32xf32>
    %cst_167 = arith.constant 2.000000e-01 : f32
    %436 = vector.broadcast %cst_167 : f32 to vector<8x32xf32>
    %437 = arith.mulf %436, %435 : vector<8x32xf32>
    %cst_168 = arith.constant 5.000000e-01 : f32
    %438 = vector.broadcast %cst_168 : f32 to vector<8x32xf32>
    %439 = arith.addf %437, %438 : vector<8x32xf32>
    %cst_169 = arith.constant 0.000000e+00 : f32
    %cst_170 = arith.constant 1.000000e+00 : f32
    %440 = vector.broadcast %cst_169 : f32 to vector<8x32xf32>
    %441 = arith.maximumf %440, %439 : vector<8x32xf32>
    %442 = vector.broadcast %cst_170 : f32 to vector<8x32xf32>
    %443 = arith.minimumf %442, %441 : vector<8x32xf32>
    %444 = vector.extract_strided_slice %416 {offsets = [0, 96], sizes = [8, 32], strides = [1, 1]} : vector<8x128xf32> to vector<8x32xf32>
    %445 = math.absf %444 : vector<8x32xf32>
    %cst_171 = arith.constant 1.000000e+00 : f32
    %446 = vector.broadcast %cst_171 : f32 to vector<8x32xf32>
    %447 = arith.addf %446, %445 : vector<8x32xf32>
    %448 = arith.divf %444, %447 : vector<8x32xf32>
    %449 = arith.mulf %434, %398 : vector<8x32xf32>
    %450 = arith.mulf %425, %448 : vector<8x32xf32>
    %451 = arith.addf %449, %450 : vector<8x32xf32>
    %452 = math.absf %451 : vector<8x32xf32>
    %cst_172 = arith.constant 1.000000e+00 : f32
    %453 = vector.broadcast %cst_172 : f32 to vector<8x32xf32>
    %454 = arith.addf %453, %452 : vector<8x32xf32>
    %455 = arith.divf %451, %454 : vector<8x32xf32>
    %456 = arith.mulf %443, %455 : vector<8x32xf32>
    %457 = arith.addf %315, %456 : vector<8x32xf32>
    %cst_173 = arith.constant 2.000000e-01 : f32
    %458 = vector.broadcast %cst_173 : f32 to vector<8x32xf32>
    %459 = arith.mulf %458, %457 : vector<8x32xf32>
    %cst_174 = arith.constant 5.000000e-01 : f32
    %460 = vector.broadcast %cst_174 : f32 to vector<8x32xf32>
    %461 = arith.addf %459, %460 : vector<8x32xf32>
    %cst_175 = arith.constant 0.000000e+00 : f32
    %cst_176 = arith.constant 1.000000e+00 : f32
    %462 = vector.broadcast %cst_175 : f32 to vector<8x32xf32>
    %463 = arith.maximumf %462, %461 : vector<8x32xf32>
    %464 = vector.broadcast %cst_176 : f32 to vector<8x32xf32>
    %465 = arith.minimumf %464, %463 : vector<8x32xf32>
    %c48 = arith.constant 48 : index
    %c0_177 = arith.constant 0 : index
    %466 = vector.load %arg19[%c48, %c0_177] : memref<64x32xf32, #tpu.memory_space<vmem>>, vector<8x32xf32>
    tpu.vector_store %arg19[%c48, %c0_177], %465 {strides = array<i32>} : memref<64x32xf32, #tpu.memory_space<vmem>>, vector<8x32xf32>,
    %467 = vector.extract_strided_slice %10 {offsets = [40, 0], sizes = [8, 128], strides = [1, 1]} : vector<64x128xf32> to vector<8x128xf32>
    %cst_178 = arith.constant dense<0.000000e+00> : vector<8x128xf32>
    %468 = tpu.matmul %456, %12, %cst_178 {dimension_numbers = #tpu.dot_dimension_numbers<[1], [0], [0], [1], [0, 0, 1, 1], [], []>} : vector<8x32xf32>, vector<32x128xf32>, vector<8x128xf32> -> vector<8x128xf32>
    %469 = arith.addf %467, %468 : vector<8x128xf32>
    %470 = vector.extract_strided_slice %469 {offsets = [0, 0], sizes = [8, 32], strides = [1, 1]} : vector<8x128xf32> to vector<8x32xf32>
    %cst_179 = arith.constant 2.000000e-01 : f32
    %471 = vector.broadcast %cst_179 : f32 to vector<8x32xf32>
    %472 = arith.mulf %471, %470 : vector<8x32xf32>
    %cst_180 = arith.constant 5.000000e-01 : f32
    %473 = vector.broadcast %cst_180 : f32 to vector<8x32xf32>
    %474 = arith.addf %472, %473 : vector<8x32xf32>
    %cst_181 = arith.constant 0.000000e+00 : f32
    %cst_182 = arith.constant 1.000000e+00 : f32
    %475 = vector.broadcast %cst_181 : f32 to vector<8x32xf32>
    %476 = arith.maximumf %475, %474 : vector<8x32xf32>
    %477 = vector.broadcast %cst_182 : f32 to vector<8x32xf32>
    %478 = arith.minimumf %477, %476 : vector<8x32xf32>
    %479 = vector.extract_strided_slice %469 {offsets = [0, 32], sizes = [8, 32], strides = [1, 1]} : vector<8x128xf32> to vector<8x32xf32>
    %cst_183 = arith.constant 2.000000e-01 : f32
    %480 = vector.broadcast %cst_183 : f32 to vector<8x32xf32>
    %481 = arith.mulf %480, %479 : vector<8x32xf32>
    %cst_184 = arith.constant 5.000000e-01 : f32
    %482 = vector.broadcast %cst_184 : f32 to vector<8x32xf32>
    %483 = arith.addf %481, %482 : vector<8x32xf32>
    %cst_185 = arith.constant 0.000000e+00 : f32
    %cst_186 = arith.constant 1.000000e+00 : f32
    %484 = vector.broadcast %cst_185 : f32 to vector<8x32xf32>
    %485 = arith.maximumf %484, %483 : vector<8x32xf32>
    %486 = vector.broadcast %cst_186 : f32 to vector<8x32xf32>
    %487 = arith.minimumf %486, %485 : vector<8x32xf32>
    %488 = vector.extract_strided_slice %469 {offsets = [0, 64], sizes = [8, 32], strides = [1, 1]} : vector<8x128xf32> to vector<8x32xf32>
    %cst_187 = arith.constant 2.000000e-01 : f32
    %489 = vector.broadcast %cst_187 : f32 to vector<8x32xf32>
    %490 = arith.mulf %489, %488 : vector<8x32xf32>
    %cst_188 = arith.constant 5.000000e-01 : f32
    %491 = vector.broadcast %cst_188 : f32 to vector<8x32xf32>
    %492 = arith.addf %490, %491 : vector<8x32xf32>
    %cst_189 = arith.constant 0.000000e+00 : f32
    %cst_190 = arith.constant 1.000000e+00 : f32
    %493 = vector.broadcast %cst_189 : f32 to vector<8x32xf32>
    %494 = arith.maximumf %493, %492 : vector<8x32xf32>
    %495 = vector.broadcast %cst_190 : f32 to vector<8x32xf32>
    %496 = arith.minimumf %495, %494 : vector<8x32xf32>
    %497 = vector.extract_strided_slice %469 {offsets = [0, 96], sizes = [8, 32], strides = [1, 1]} : vector<8x128xf32> to vector<8x32xf32>
    %498 = math.absf %497 : vector<8x32xf32>
    %cst_191 = arith.constant 1.000000e+00 : f32
    %499 = vector.broadcast %cst_191 : f32 to vector<8x32xf32>
    %500 = arith.addf %499, %498 : vector<8x32xf32>
    %501 = arith.divf %497, %500 : vector<8x32xf32>
    %502 = arith.mulf %487, %451 : vector<8x32xf32>
    %503 = arith.mulf %478, %501 : vector<8x32xf32>
    %504 = arith.addf %502, %503 : vector<8x32xf32>
    %505 = math.absf %504 : vector<8x32xf32>
    %cst_192 = arith.constant 1.000000e+00 : f32
    %506 = vector.broadcast %cst_192 : f32 to vector<8x32xf32>
    %507 = arith.addf %506, %505 : vector<8x32xf32>
    %508 = arith.divf %504, %507 : vector<8x32xf32>
    %509 = arith.mulf %496, %508 : vector<8x32xf32>
    %510 = arith.addf %272, %509 : vector<8x32xf32>
    %cst_193 = arith.constant 2.000000e-01 : f32
    %511 = vector.broadcast %cst_193 : f32 to vector<8x32xf32>
    %512 = arith.mulf %511, %510 : vector<8x32xf32>
    %cst_194 = arith.constant 5.000000e-01 : f32
    %513 = vector.broadcast %cst_194 : f32 to vector<8x32xf32>
    %514 = arith.addf %512, %513 : vector<8x32xf32>
    %cst_195 = arith.constant 0.000000e+00 : f32
    %cst_196 = arith.constant 1.000000e+00 : f32
    %515 = vector.broadcast %cst_195 : f32 to vector<8x32xf32>
    %516 = arith.maximumf %515, %514 : vector<8x32xf32>
    %517 = vector.broadcast %cst_196 : f32 to vector<8x32xf32>
    %518 = arith.minimumf %517, %516 : vector<8x32xf32>
    %c40 = arith.constant 40 : index
    %c0_197 = arith.constant 0 : index
    %519 = vector.load %arg19[%c40, %c0_197] : memref<64x32xf32, #tpu.memory_space<vmem>>, vector<8x32xf32>
    tpu.vector_store %arg19[%c40, %c0_197], %518 {strides = array<i32>} : memref<64x32xf32, #tpu.memory_space<vmem>>, vector<8x32xf32>,
    %520 = vector.extract_strided_slice %10 {offsets = [32, 0], sizes = [8, 128], strides = [1, 1]} : vector<64x128xf32> to vector<8x128xf32>
    %cst_198 = arith.constant dense<0.000000e+00> : vector<8x128xf32>
    %521 = tpu.matmul %509, %12, %cst_198 {dimension_numbers = #tpu.dot_dimension_numbers<[1], [0], [0], [1], [0, 0, 1, 1], [], []>} : vector<8x32xf32>, vector<32x128xf32>, vector<8x128xf32> -> vector<8x128xf32>
    %522 = arith.addf %520, %521 : vector<8x128xf32>
    %523 = vector.extract_strided_slice %522 {offsets = [0, 0], sizes = [8, 32], strides = [1, 1]} : vector<8x128xf32> to vector<8x32xf32>
    %cst_199 = arith.constant 2.000000e-01 : f32
    %524 = vector.broadcast %cst_199 : f32 to vector<8x32xf32>
    %525 = arith.mulf %524, %523 : vector<8x32xf32>
    %cst_200 = arith.constant 5.000000e-01 : f32
    %526 = vector.broadcast %cst_200 : f32 to vector<8x32xf32>
    %527 = arith.addf %525, %526 : vector<8x32xf32>
    %cst_201 = arith.constant 0.000000e+00 : f32
    %cst_202 = arith.constant 1.000000e+00 : f32
    %528 = vector.broadcast %cst_201 : f32 to vector<8x32xf32>
    %529 = arith.maximumf %528, %527 : vector<8x32xf32>
    %530 = vector.broadcast %cst_202 : f32 to vector<8x32xf32>
    %531 = arith.minimumf %530, %529 : vector<8x32xf32>
    %532 = vector.extract_strided_slice %522 {offsets = [0, 32], sizes = [8, 32], strides = [1, 1]} : vector<8x128xf32> to vector<8x32xf32>
    %cst_203 = arith.constant 2.000000e-01 : f32
    %533 = vector.broadcast %cst_203 : f32 to vector<8x32xf32>
    %534 = arith.mulf %533, %532 : vector<8x32xf32>
    %cst_204 = arith.constant 5.000000e-01 : f32
    %535 = vector.broadcast %cst_204 : f32 to vector<8x32xf32>
    %536 = arith.addf %534, %535 : vector<8x32xf32>
    %cst_205 = arith.constant 0.000000e+00 : f32
    %cst_206 = arith.constant 1.000000e+00 : f32
    %537 = vector.broadcast %cst_205 : f32 to vector<8x32xf32>
    %538 = arith.maximumf %537, %536 : vector<8x32xf32>
    %539 = vector.broadcast %cst_206 : f32 to vector<8x32xf32>
    %540 = arith.minimumf %539, %538 : vector<8x32xf32>
    %541 = vector.extract_strided_slice %522 {offsets = [0, 64], sizes = [8, 32], strides = [1, 1]} : vector<8x128xf32> to vector<8x32xf32>
    %cst_207 = arith.constant 2.000000e-01 : f32
    %542 = vector.broadcast %cst_207 : f32 to vector<8x32xf32>
    %543 = arith.mulf %542, %541 : vector<8x32xf32>
    %cst_208 = arith.constant 5.000000e-01 : f32
    %544 = vector.broadcast %cst_208 : f32 to vector<8x32xf32>
    %545 = arith.addf %543, %544 : vector<8x32xf32>
    %cst_209 = arith.constant 0.000000e+00 : f32
    %cst_210 = arith.constant 1.000000e+00 : f32
    %546 = vector.broadcast %cst_209 : f32 to vector<8x32xf32>
    %547 = arith.maximumf %546, %545 : vector<8x32xf32>
    %548 = vector.broadcast %cst_210 : f32 to vector<8x32xf32>
    %549 = arith.minimumf %548, %547 : vector<8x32xf32>
    %550 = vector.extract_strided_slice %522 {offsets = [0, 96], sizes = [8, 32], strides = [1, 1]} : vector<8x128xf32> to vector<8x32xf32>
    %551 = math.absf %550 : vector<8x32xf32>
    %cst_211 = arith.constant 1.000000e+00 : f32
    %552 = vector.broadcast %cst_211 : f32 to vector<8x32xf32>
    %553 = arith.addf %552, %551 : vector<8x32xf32>
    %554 = arith.divf %550, %553 : vector<8x32xf32>
    %555 = arith.mulf %540, %504 : vector<8x32xf32>
    %556 = arith.mulf %531, %554 : vector<8x32xf32>
    %557 = arith.addf %555, %556 : vector<8x32xf32>
    %558 = math.absf %557 : vector<8x32xf32>
    %cst_212 = arith.constant 1.000000e+00 : f32
    %559 = vector.broadcast %cst_212 : f32 to vector<8x32xf32>
    %560 = arith.addf %559, %558 : vector<8x32xf32>
    %561 = arith.divf %557, %560 : vector<8x32xf32>
    %562 = arith.mulf %549, %561 : vector<8x32xf32>
    %563 = arith.addf %229, %562 : vector<8x32xf32>
    %cst_213 = arith.constant 2.000000e-01 : f32
    %564 = vector.broadcast %cst_213 : f32 to vector<8x32xf32>
    %565 = arith.mulf %564, %563 : vector<8x32xf32>
    %cst_214 = arith.constant 5.000000e-01 : f32
    %566 = vector.broadcast %cst_214 : f32 to vector<8x32xf32>
    %567 = arith.addf %565, %566 : vector<8x32xf32>
    %cst_215 = arith.constant 0.000000e+00 : f32
    %cst_216 = arith.constant 1.000000e+00 : f32
    %568 = vector.broadcast %cst_215 : f32 to vector<8x32xf32>
    %569 = arith.maximumf %568, %567 : vector<8x32xf32>
    %570 = vector.broadcast %cst_216 : f32 to vector<8x32xf32>
    %571 = arith.minimumf %570, %569 : vector<8x32xf32>
    %c32 = arith.constant 32 : index
    %c0_217 = arith.constant 0 : index
    %572 = vector.load %arg19[%c32, %c0_217] : memref<64x32xf32, #tpu.memory_space<vmem>>, vector<8x32xf32>
    tpu.vector_store %arg19[%c32, %c0_217], %571 {strides = array<i32>} : memref<64x32xf32, #tpu.memory_space<vmem>>, vector<8x32xf32>,
    %573 = vector.extract_strided_slice %10 {offsets = [24, 0], sizes = [8, 128], strides = [1, 1]} : vector<64x128xf32> to vector<8x128xf32>
    %cst_218 = arith.constant dense<0.000000e+00> : vector<8x128xf32>
    %574 = tpu.matmul %562, %12, %cst_218 {dimension_numbers = #tpu.dot_dimension_numbers<[1], [0], [0], [1], [0, 0, 1, 1], [], []>} : vector<8x32xf32>, vector<32x128xf32>, vector<8x128xf32> -> vector<8x128xf32>
    %575 = arith.addf %573, %574 : vector<8x128xf32>
    %576 = vector.extract_strided_slice %575 {offsets = [0, 0], sizes = [8, 32], strides = [1, 1]} : vector<8x128xf32> to vector<8x32xf32>
    %cst_219 = arith.constant 2.000000e-01 : f32
    %577 = vector.broadcast %cst_219 : f32 to vector<8x32xf32>
    %578 = arith.mulf %577, %576 : vector<8x32xf32>
    %cst_220 = arith.constant 5.000000e-01 : f32
    %579 = vector.broadcast %cst_220 : f32 to vector<8x32xf32>
    %580 = arith.addf %578, %579 : vector<8x32xf32>
    %cst_221 = arith.constant 0.000000e+00 : f32
    %cst_222 = arith.constant 1.000000e+00 : f32
    %581 = vector.broadcast %cst_221 : f32 to vector<8x32xf32>
    %582 = arith.maximumf %581, %580 : vector<8x32xf32>
    %583 = vector.broadcast %cst_222 : f32 to vector<8x32xf32>
    %584 = arith.minimumf %583, %582 : vector<8x32xf32>
    %585 = vector.extract_strided_slice %575 {offsets = [0, 32], sizes = [8, 32], strides = [1, 1]} : vector<8x128xf32> to vector<8x32xf32>
    %cst_223 = arith.constant 2.000000e-01 : f32
    %586 = vector.broadcast %cst_223 : f32 to vector<8x32xf32>
    %587 = arith.mulf %586, %585 : vector<8x32xf32>
    %cst_224 = arith.constant 5.000000e-01 : f32
    %588 = vector.broadcast %cst_224 : f32 to vector<8x32xf32>
    %589 = arith.addf %587, %588 : vector<8x32xf32>
    %cst_225 = arith.constant 0.000000e+00 : f32
    %cst_226 = arith.constant 1.000000e+00 : f32
    %590 = vector.broadcast %cst_225 : f32 to vector<8x32xf32>
    %591 = arith.maximumf %590, %589 : vector<8x32xf32>
    %592 = vector.broadcast %cst_226 : f32 to vector<8x32xf32>
    %593 = arith.minimumf %592, %591 : vector<8x32xf32>
    %594 = vector.extract_strided_slice %575 {offsets = [0, 64], sizes = [8, 32], strides = [1, 1]} : vector<8x128xf32> to vector<8x32xf32>
    %cst_227 = arith.constant 2.000000e-01 : f32
    %595 = vector.broadcast %cst_227 : f32 to vector<8x32xf32>
    %596 = arith.mulf %595, %594 : vector<8x32xf32>
    %cst_228 = arith.constant 5.000000e-01 : f32
    %597 = vector.broadcast %cst_228 : f32 to vector<8x32xf32>
    %598 = arith.addf %596, %597 : vector<8x32xf32>
    %cst_229 = arith.constant 0.000000e+00 : f32
    %cst_230 = arith.constant 1.000000e+00 : f32
    %599 = vector.broadcast %cst_229 : f32 to vector<8x32xf32>
    %600 = arith.maximumf %599, %598 : vector<8x32xf32>
    %601 = vector.broadcast %cst_230 : f32 to vector<8x32xf32>
    %602 = arith.minimumf %601, %600 : vector<8x32xf32>
    %603 = vector.extract_strided_slice %575 {offsets = [0, 96], sizes = [8, 32], strides = [1, 1]} : vector<8x128xf32> to vector<8x32xf32>
    %604 = math.absf %603 : vector<8x32xf32>
    %cst_231 = arith.constant 1.000000e+00 : f32
    %605 = vector.broadcast %cst_231 : f32 to vector<8x32xf32>
    %606 = arith.addf %605, %604 : vector<8x32xf32>
    %607 = arith.divf %603, %606 : vector<8x32xf32>
    %608 = arith.mulf %593, %557 : vector<8x32xf32>
    %609 = arith.mulf %584, %607 : vector<8x32xf32>
    %610 = arith.addf %608, %609 : vector<8x32xf32>
    %611 = math.absf %610 : vector<8x32xf32>
    %cst_232 = arith.constant 1.000000e+00 : f32
    %612 = vector.broadcast %cst_232 : f32 to vector<8x32xf32>
    %613 = arith.addf %612, %611 : vector<8x32xf32>
    %614 = arith.divf %610, %613 : vector<8x32xf32>
    %615 = arith.mulf %602, %614 : vector<8x32xf32>
    %616 = arith.addf %186, %615 : vector<8x32xf32>
    %cst_233 = arith.constant 2.000000e-01 : f32
    %617 = vector.broadcast %cst_233 : f32 to vector<8x32xf32>
    %618 = arith.mulf %617, %616 : vector<8x32xf32>
    %cst_234 = arith.constant 5.000000e-01 : f32
    %619 = vector.broadcast %cst_234 : f32 to vector<8x32xf32>
    %620 = arith.addf %618, %619 : vector<8x32xf32>
    %cst_235 = arith.constant 0.000000e+00 : f32
    %cst_236 = arith.constant 1.000000e+00 : f32
    %621 = vector.broadcast %cst_235 : f32 to vector<8x32xf32>
    %622 = arith.maximumf %621, %620 : vector<8x32xf32>
    %623 = vector.broadcast %cst_236 : f32 to vector<8x32xf32>
    %624 = arith.minimumf %623, %622 : vector<8x32xf32>
    %c24 = arith.constant 24 : index
    %c0_237 = arith.constant 0 : index
    %625 = vector.load %arg19[%c24, %c0_237] : memref<64x32xf32, #tpu.memory_space<vmem>>, vector<8x32xf32>
    tpu.vector_store %arg19[%c24, %c0_237], %624 {strides = array<i32>} : memref<64x32xf32, #tpu.memory_space<vmem>>, vector<8x32xf32>,
    %626 = vector.extract_strided_slice %10 {offsets = [16, 0], sizes = [8, 128], strides = [1, 1]} : vector<64x128xf32> to vector<8x128xf32>
    %cst_238 = arith.constant dense<0.000000e+00> : vector<8x128xf32>
    %627 = tpu.matmul %615, %12, %cst_238 {dimension_numbers = #tpu.dot_dimension_numbers<[1], [0], [0], [1], [0, 0, 1, 1], [], []>} : vector<8x32xf32>, vector<32x128xf32>, vector<8x128xf32> -> vector<8x128xf32>
    %628 = arith.addf %626, %627 : vector<8x128xf32>
    %629 = vector.extract_strided_slice %628 {offsets = [0, 0], sizes = [8, 32], strides = [1, 1]} : vector<8x128xf32> to vector<8x32xf32>
    %cst_239 = arith.constant 2.000000e-01 : f32
    %630 = vector.broadcast %cst_239 : f32 to vector<8x32xf32>
    %631 = arith.mulf %630, %629 : vector<8x32xf32>
    %cst_240 = arith.constant 5.000000e-01 : f32
    %632 = vector.broadcast %cst_240 : f32 to vector<8x32xf32>
    %633 = arith.addf %631, %632 : vector<8x32xf32>
    %cst_241 = arith.constant 0.000000e+00 : f32
    %cst_242 = arith.constant 1.000000e+00 : f32
    %634 = vector.broadcast %cst_241 : f32 to vector<8x32xf32>
    %635 = arith.maximumf %634, %633 : vector<8x32xf32>
    %636 = vector.broadcast %cst_242 : f32 to vector<8x32xf32>
    %637 = arith.minimumf %636, %635 : vector<8x32xf32>
    %638 = vector.extract_strided_slice %628 {offsets = [0, 32], sizes = [8, 32], strides = [1, 1]} : vector<8x128xf32> to vector<8x32xf32>
    %cst_243 = arith.constant 2.000000e-01 : f32
    %639 = vector.broadcast %cst_243 : f32 to vector<8x32xf32>
    %640 = arith.mulf %639, %638 : vector<8x32xf32>
    %cst_244 = arith.constant 5.000000e-01 : f32
    %641 = vector.broadcast %cst_244 : f32 to vector<8x32xf32>
    %642 = arith.addf %640, %641 : vector<8x32xf32>
    %cst_245 = arith.constant 0.000000e+00 : f32
    %cst_246 = arith.constant 1.000000e+00 : f32
    %643 = vector.broadcast %cst_245 : f32 to vector<8x32xf32>
    %644 = arith.maximumf %643, %642 : vector<8x32xf32>
    %645 = vector.broadcast %cst_246 : f32 to vector<8x32xf32>
    %646 = arith.minimumf %645, %644 : vector<8x32xf32>
    %647 = vector.extract_strided_slice %628 {offsets = [0, 64], sizes = [8, 32], strides = [1, 1]} : vector<8x128xf32> to vector<8x32xf32>
    %cst_247 = arith.constant 2.000000e-01 : f32
    %648 = vector.broadcast %cst_247 : f32 to vector<8x32xf32>
    %649 = arith.mulf %648, %647 : vector<8x32xf32>
    %cst_248 = arith.constant 5.000000e-01 : f32
    %650 = vector.broadcast %cst_248 : f32 to vector<8x32xf32>
    %651 = arith.addf %649, %650 : vector<8x32xf32>
    %cst_249 = arith.constant 0.000000e+00 : f32
    %cst_250 = arith.constant 1.000000e+00 : f32
    %652 = vector.broadcast %cst_249 : f32 to vector<8x32xf32>
    %653 = arith.maximumf %652, %651 : vector<8x32xf32>
    %654 = vector.broadcast %cst_250 : f32 to vector<8x32xf32>
    %655 = arith.minimumf %654, %653 : vector<8x32xf32>
    %656 = vector.extract_strided_slice %628 {offsets = [0, 96], sizes = [8, 32], strides = [1, 1]} : vector<8x128xf32> to vector<8x32xf32>
    %657 = math.absf %656 : vector<8x32xf32>
    %cst_251 = arith.constant 1.000000e+00 : f32
    %658 = vector.broadcast %cst_251 : f32 to vector<8x32xf32>
    %659 = arith.addf %658, %657 : vector<8x32xf32>
    %660 = arith.divf %656, %659 : vector<8x32xf32>
    %661 = arith.mulf %646, %610 : vector<8x32xf32>
    %662 = arith.mulf %637, %660 : vector<8x32xf32>
    %663 = arith.addf %661, %662 : vector<8x32xf32>
    %664 = math.absf %663 : vector<8x32xf32>
    %cst_252 = arith.constant 1.000000e+00 : f32
    %665 = vector.broadcast %cst_252 : f32 to vector<8x32xf32>
    %666 = arith.addf %665, %664 : vector<8x32xf32>
    %667 = arith.divf %663, %666 : vector<8x32xf32>
    %668 = arith.mulf %655, %667 : vector<8x32xf32>
    %669 = arith.addf %143, %668 : vector<8x32xf32>
    %cst_253 = arith.constant 2.000000e-01 : f32
    %670 = vector.broadcast %cst_253 : f32 to vector<8x32xf32>
    %671 = arith.mulf %670, %669 : vector<8x32xf32>
    %cst_254 = arith.constant 5.000000e-01 : f32
    %672 = vector.broadcast %cst_254 : f32 to vector<8x32xf32>
    %673 = arith.addf %671, %672 : vector<8x32xf32>
    %cst_255 = arith.constant 0.000000e+00 : f32
    %cst_256 = arith.constant 1.000000e+00 : f32
    %674 = vector.broadcast %cst_255 : f32 to vector<8x32xf32>
    %675 = arith.maximumf %674, %673 : vector<8x32xf32>
    %676 = vector.broadcast %cst_256 : f32 to vector<8x32xf32>
    %677 = arith.minimumf %676, %675 : vector<8x32xf32>
    %c16 = arith.constant 16 : index
    %c0_257 = arith.constant 0 : index
    %678 = vector.load %arg19[%c16, %c0_257] : memref<64x32xf32, #tpu.memory_space<vmem>>, vector<8x32xf32>
    tpu.vector_store %arg19[%c16, %c0_257], %677 {strides = array<i32>} : memref<64x32xf32, #tpu.memory_space<vmem>>, vector<8x32xf32>,
    %679 = vector.extract_strided_slice %10 {offsets = [8, 0], sizes = [8, 128], strides = [1, 1]} : vector<64x128xf32> to vector<8x128xf32>
    %cst_258 = arith.constant dense<0.000000e+00> : vector<8x128xf32>
    %680 = tpu.matmul %668, %12, %cst_258 {dimension_numbers = #tpu.dot_dimension_numbers<[1], [0], [0], [1], [0, 0, 1, 1], [], []>} : vector<8x32xf32>, vector<32x128xf32>, vector<8x128xf32> -> vector<8x128xf32>
    %681 = arith.addf %679, %680 : vector<8x128xf32>
    %682 = vector.extract_strided_slice %681 {offsets = [0, 0], sizes = [8, 32], strides = [1, 1]} : vector<8x128xf32> to vector<8x32xf32>
    %cst_259 = arith.constant 2.000000e-01 : f32
    %683 = vector.broadcast %cst_259 : f32 to vector<8x32xf32>
    %684 = arith.mulf %683, %682 : vector<8x32xf32>
    %cst_260 = arith.constant 5.000000e-01 : f32
    %685 = vector.broadcast %cst_260 : f32 to vector<8x32xf32>
    %686 = arith.addf %684, %685 : vector<8x32xf32>
    %cst_261 = arith.constant 0.000000e+00 : f32
    %cst_262 = arith.constant 1.000000e+00 : f32
    %687 = vector.broadcast %cst_261 : f32 to vector<8x32xf32>
    %688 = arith.maximumf %687, %686 : vector<8x32xf32>
    %689 = vector.broadcast %cst_262 : f32 to vector<8x32xf32>
    %690 = arith.minimumf %689, %688 : vector<8x32xf32>
    %691 = vector.extract_strided_slice %681 {offsets = [0, 32], sizes = [8, 32], strides = [1, 1]} : vector<8x128xf32> to vector<8x32xf32>
    %cst_263 = arith.constant 2.000000e-01 : f32
    %692 = vector.broadcast %cst_263 : f32 to vector<8x32xf32>
    %693 = arith.mulf %692, %691 : vector<8x32xf32>
    %cst_264 = arith.constant 5.000000e-01 : f32
    %694 = vector.broadcast %cst_264 : f32 to vector<8x32xf32>
    %695 = arith.addf %693, %694 : vector<8x32xf32>
    %cst_265 = arith.constant 0.000000e+00 : f32
    %cst_266 = arith.constant 1.000000e+00 : f32
    %696 = vector.broadcast %cst_265 : f32 to vector<8x32xf32>
    %697 = arith.maximumf %696, %695 : vector<8x32xf32>
    %698 = vector.broadcast %cst_266 : f32 to vector<8x32xf32>
    %699 = arith.minimumf %698, %697 : vector<8x32xf32>
    %700 = vector.extract_strided_slice %681 {offsets = [0, 64], sizes = [8, 32], strides = [1, 1]} : vector<8x128xf32> to vector<8x32xf32>
    %cst_267 = arith.constant 2.000000e-01 : f32
    %701 = vector.broadcast %cst_267 : f32 to vector<8x32xf32>
    %702 = arith.mulf %701, %700 : vector<8x32xf32>
    %cst_268 = arith.constant 5.000000e-01 : f32
    %703 = vector.broadcast %cst_268 : f32 to vector<8x32xf32>
    %704 = arith.addf %702, %703 : vector<8x32xf32>
    %cst_269 = arith.constant 0.000000e+00 : f32
    %cst_270 = arith.constant 1.000000e+00 : f32
    %705 = vector.broadcast %cst_269 : f32 to vector<8x32xf32>
    %706 = arith.maximumf %705, %704 : vector<8x32xf32>
    %707 = vector.broadcast %cst_270 : f32 to vector<8x32xf32>
    %708 = arith.minimumf %707, %706 : vector<8x32xf32>
    %709 = vector.extract_strided_slice %681 {offsets = [0, 96], sizes = [8, 32], strides = [1, 1]} : vector<8x128xf32> to vector<8x32xf32>
    %710 = math.absf %709 : vector<8x32xf32>
    %cst_271 = arith.constant 1.000000e+00 : f32
    %711 = vector.broadcast %cst_271 : f32 to vector<8x32xf32>
    %712 = arith.addf %711, %710 : vector<8x32xf32>
    %713 = arith.divf %709, %712 : vector<8x32xf32>
    %714 = arith.mulf %699, %663 : vector<8x32xf32>
    %715 = arith.mulf %690, %713 : vector<8x32xf32>
    %716 = arith.addf %714, %715 : vector<8x32xf32>
    %717 = math.absf %716 : vector<8x32xf32>
    %cst_272 = arith.constant 1.000000e+00 : f32
    %718 = vector.broadcast %cst_272 : f32 to vector<8x32xf32>
    %719 = arith.addf %718, %717 : vector<8x32xf32>
    %720 = arith.divf %716, %719 : vector<8x32xf32>
    %721 = arith.mulf %708, %720 : vector<8x32xf32>
    %722 = arith.addf %100, %721 : vector<8x32xf32>
    %cst_273 = arith.constant 2.000000e-01 : f32
    %723 = vector.broadcast %cst_273 : f32 to vector<8x32xf32>
    %724 = arith.mulf %723, %722 : vector<8x32xf32>
    %cst_274 = arith.constant 5.000000e-01 : f32
    %725 = vector.broadcast %cst_274 : f32 to vector<8x32xf32>
    %726 = arith.addf %724, %725 : vector<8x32xf32>
    %cst_275 = arith.constant 0.000000e+00 : f32
    %cst_276 = arith.constant 1.000000e+00 : f32
    %727 = vector.broadcast %cst_275 : f32 to vector<8x32xf32>
    %728 = arith.maximumf %727, %726 : vector<8x32xf32>
    %729 = vector.broadcast %cst_276 : f32 to vector<8x32xf32>
    %730 = arith.minimumf %729, %728 : vector<8x32xf32>
    %c8 = arith.constant 8 : index
    %c0_277 = arith.constant 0 : index
    %731 = vector.load %arg19[%c8, %c0_277] : memref<64x32xf32, #tpu.memory_space<vmem>>, vector<8x32xf32>
    tpu.vector_store %arg19[%c8, %c0_277], %730 {strides = array<i32>} : memref<64x32xf32, #tpu.memory_space<vmem>>, vector<8x32xf32>,
    %732 = vector.extract_strided_slice %10 {offsets = [0, 0], sizes = [8, 128], strides = [1, 1]} : vector<64x128xf32> to vector<8x128xf32>
    %cst_278 = arith.constant dense<0.000000e+00> : vector<8x128xf32>
    %733 = tpu.matmul %721, %12, %cst_278 {dimension_numbers = #tpu.dot_dimension_numbers<[1], [0], [0], [1], [0, 0, 1, 1], [], []>} : vector<8x32xf32>, vector<32x128xf32>, vector<8x128xf32> -> vector<8x128xf32>
    %734 = arith.addf %732, %733 : vector<8x128xf32>
    %735 = vector.extract_strided_slice %734 {offsets = [0, 0], sizes = [8, 32], strides = [1, 1]} : vector<8x128xf32> to vector<8x32xf32>
    %cst_279 = arith.constant 2.000000e-01 : f32
    %736 = vector.broadcast %cst_279 : f32 to vector<8x32xf32>
    %737 = arith.mulf %736, %735 : vector<8x32xf32>
    %cst_280 = arith.constant 5.000000e-01 : f32
    %738 = vector.broadcast %cst_280 : f32 to vector<8x32xf32>
    %739 = arith.addf %737, %738 : vector<8x32xf32>
    %cst_281 = arith.constant 0.000000e+00 : f32
    %cst_282 = arith.constant 1.000000e+00 : f32
    %740 = vector.broadcast %cst_281 : f32 to vector<8x32xf32>
    %741 = arith.maximumf %740, %739 : vector<8x32xf32>
    %742 = vector.broadcast %cst_282 : f32 to vector<8x32xf32>
    %743 = arith.minimumf %742, %741 : vector<8x32xf32>
    %744 = vector.extract_strided_slice %734 {offsets = [0, 32], sizes = [8, 32], strides = [1, 1]} : vector<8x128xf32> to vector<8x32xf32>
    %cst_283 = arith.constant 2.000000e-01 : f32
    %745 = vector.broadcast %cst_283 : f32 to vector<8x32xf32>
    %746 = arith.mulf %745, %744 : vector<8x32xf32>
    %cst_284 = arith.constant 5.000000e-01 : f32
    %747 = vector.broadcast %cst_284 : f32 to vector<8x32xf32>
    %748 = arith.addf %746, %747 : vector<8x32xf32>
    %cst_285 = arith.constant 0.000000e+00 : f32
    %cst_286 = arith.constant 1.000000e+00 : f32
    %749 = vector.broadcast %cst_285 : f32 to vector<8x32xf32>
    %750 = arith.maximumf %749, %748 : vector<8x32xf32>
    %751 = vector.broadcast %cst_286 : f32 to vector<8x32xf32>
    %752 = arith.minimumf %751, %750 : vector<8x32xf32>
    %753 = vector.extract_strided_slice %734 {offsets = [0, 64], sizes = [8, 32], strides = [1, 1]} : vector<8x128xf32> to vector<8x32xf32>
    %cst_287 = arith.constant 2.000000e-01 : f32
    %754 = vector.broadcast %cst_287 : f32 to vector<8x32xf32>
    %755 = arith.mulf %754, %753 : vector<8x32xf32>
    %cst_288 = arith.constant 5.000000e-01 : f32
    %756 = vector.broadcast %cst_288 : f32 to vector<8x32xf32>
    %757 = arith.addf %755, %756 : vector<8x32xf32>
    %cst_289 = arith.constant 0.000000e+00 : f32
    %cst_290 = arith.constant 1.000000e+00 : f32
    %758 = vector.broadcast %cst_289 : f32 to vector<8x32xf32>
    %759 = arith.maximumf %758, %757 : vector<8x32xf32>
    %760 = vector.broadcast %cst_290 : f32 to vector<8x32xf32>
    %761 = arith.minimumf %760, %759 : vector<8x32xf32>
    %762 = vector.extract_strided_slice %734 {offsets = [0, 96], sizes = [8, 32], strides = [1, 1]} : vector<8x128xf32> to vector<8x32xf32>
    %763 = math.absf %762 : vector<8x32xf32>
    %cst_291 = arith.constant 1.000000e+00 : f32
    %764 = vector.broadcast %cst_291 : f32 to vector<8x32xf32>
    %765 = arith.addf %764, %763 : vector<8x32xf32>
    %766 = arith.divf %762, %765 : vector<8x32xf32>
    %767 = arith.mulf %752, %716 : vector<8x32xf32>
    %768 = arith.mulf %743, %766 : vector<8x32xf32>
    %769 = arith.addf %767, %768 : vector<8x32xf32>
    %770 = math.absf %769 : vector<8x32xf32>
    %cst_292 = arith.constant 1.000000e+00 : f32
    %771 = vector.broadcast %cst_292 : f32 to vector<8x32xf32>
    %772 = arith.addf %771, %770 : vector<8x32xf32>
    %773 = arith.divf %769, %772 : vector<8x32xf32>
    %774 = arith.mulf %761, %773 : vector<8x32xf32>
    %775 = arith.addf %57, %774 : vector<8x32xf32>
    %cst_293 = arith.constant 2.000000e-01 : f32
    %776 = vector.broadcast %cst_293 : f32 to vector<8x32xf32>
    %777 = arith.mulf %776, %775 : vector<8x32xf32>
    %cst_294 = arith.constant 5.000000e-01 : f32
    %778 = vector.broadcast %cst_294 : f32 to vector<8x32xf32>
    %779 = arith.addf %777, %778 : vector<8x32xf32>
    %cst_295 = arith.constant 0.000000e+00 : f32
    %cst_296 = arith.constant 1.000000e+00 : f32
    %780 = vector.broadcast %cst_295 : f32 to vector<8x32xf32>
    %781 = arith.maximumf %780, %779 : vector<8x32xf32>
    %782 = vector.broadcast %cst_296 : f32 to vector<8x32xf32>
    %783 = arith.minimumf %782, %781 : vector<8x32xf32>
    %c0_297 = arith.constant 0 : index
    %c0_298 = arith.constant 0 : index
    %784 = vector.load %arg19[%c0_297, %c0_298] : memref<64x32xf32, #tpu.memory_space<vmem>>, vector<8x32xf32>
    tpu.vector_store %arg19[%c0_297, %c0_298], %783 {strides = array<i32>} : memref<64x32xf32, #tpu.memory_space<vmem>>, vector<8x32xf32>,
    %c0_299 = arith.constant 0 : index
    %c0_300 = arith.constant 0 : index
    %785 = vector.load %arg19[%c0_299, %c0_300] : memref<64x32xf32, #tpu.memory_space<vmem>>, vector<64x32xf32>
    %c0_301 = arith.constant 0 : index
    %c0_302 = arith.constant 0 : index
    %786 = vector.load %arg7[%c0_301, %c0_302] : memref<32x128xf32, #tpu.memory_space<vmem>>, vector<32x128xf32>
    %cst_303 = arith.constant dense<0.000000e+00> : vector<64x128xf32>
    %787 = tpu.matmul %785, %786, %cst_303 {dimension_numbers = #tpu.dot_dimension_numbers<[1], [0], [0], [1], [0, 0, 1, 1], [], []>} : vector<64x32xf32>, vector<32x128xf32>, vector<64x128xf32> -> vector<64x128xf32>
    %c0_304 = arith.constant 0 : index
    %c0_305 = arith.constant 0 : index
    %788 = vector.load %arg9[%c0_304, %c0_305] : memref<1x128xf32, #tpu.memory_space<vmem>>, vector<1x128xf32>
    %789 = vector.broadcast %788 : vector<1x128xf32> to vector<64x128xf32>
    %790 = arith.addf %787, %789 : vector<64x128xf32>
    %c0_306 = arith.constant 0 : index
    %c0_307 = arith.constant 0 : index
    %791 = vector.load %arg10[%c0_306, %c0_307] : memref<32x128xf32, #tpu.memory_space<vmem>>, vector<32x128xf32>
    %cst_308 = arith.constant dense<0.000000e+00> : vector<64x128xf32>
    %792 = tpu.matmul %785, %791, %cst_308 {dimension_numbers = #tpu.dot_dimension_numbers<[1], [0], [0], [1], [0, 0, 1, 1], [], []>} : vector<64x32xf32>, vector<32x128xf32>, vector<64x128xf32> -> vector<64x128xf32>
    %c0_309 = arith.constant 0 : index
    %c0_310 = arith.constant 0 : index
    %793 = vector.load %arg12[%c0_309, %c0_310] : memref<1x128xf32, #tpu.memory_space<vmem>>, vector<1x128xf32>
    %794 = vector.broadcast %793 : vector<1x128xf32> to vector<64x128xf32>
    %795 = arith.addf %792, %794 : vector<64x128xf32>
    %c0_311 = arith.constant 0 : index
    %c0_312 = arith.constant 0 : index
    %796 = vector.load %arg8[%c0_311, %c0_312] : memref<32x128xf32, #tpu.memory_space<vmem>>, vector<32x128xf32>
    %c0_313 = arith.constant 0 : index
    %c0_314 = arith.constant 0 : index
    %797 = vector.load %arg11[%c0_313, %c0_314] : memref<32x128xf32, #tpu.memory_space<vmem>>, vector<32x128xf32>
    %cst_315 = arith.constant 0.000000e+00 : f32
    %798 = vector.broadcast %cst_315 : f32 to vector<8x32xf32>
    %cst_316 = arith.constant 0.000000e+00 : f32
    %799 = vector.broadcast %cst_316 : f32 to vector<8x32xf32>
    %800 = vector.extract_strided_slice %790 {offsets = [0, 0], sizes = [8, 128], strides = [1, 1]} : vector<64x128xf32> to vector<8x128xf32>
    %cst_317 = arith.constant dense<0.000000e+00> : vector<8x128xf32>
    %801 = tpu.matmul %798, %796, %cst_317 {dimension_numbers = #tpu.dot_dimension_numbers<[1], [0], [0], [1], [0, 0, 1, 1], [], []>} : vector<8x32xf32>, vector<32x128xf32>, vector<8x128xf32> -> vector<8x128xf32>
    %802 = arith.addf %800, %801 : vector<8x128xf32>
    %803 = vector.extract_strided_slice %802 {offsets = [0, 0], sizes = [8, 32], strides = [1, 1]} : vector<8x128xf32> to vector<8x32xf32>
    %cst_318 = arith.constant 2.000000e-01 : f32
    %804 = vector.broadcast %cst_318 : f32 to vector<8x32xf32>
    %805 = arith.mulf %804, %803 : vector<8x32xf32>
    %cst_319 = arith.constant 5.000000e-01 : f32
    %806 = vector.broadcast %cst_319 : f32 to vector<8x32xf32>
    %807 = arith.addf %805, %806 : vector<8x32xf32>
    %cst_320 = arith.constant 0.000000e+00 : f32
    %cst_321 = arith.constant 1.000000e+00 : f32
    %808 = vector.broadcast %cst_320 : f32 to vector<8x32xf32>
    %809 = arith.maximumf %808, %807 : vector<8x32xf32>
    %810 = vector.broadcast %cst_321 : f32 to vector<8x32xf32>
    %811 = arith.minimumf %810, %809 : vector<8x32xf32>
    %812 = vector.extract_strided_slice %802 {offsets = [0, 32], sizes = [8, 32], strides = [1, 1]} : vector<8x128xf32> to vector<8x32xf32>
    %cst_322 = arith.constant 2.000000e-01 : f32
    %813 = vector.broadcast %cst_322 : f32 to vector<8x32xf32>
    %814 = arith.mulf %813, %812 : vector<8x32xf32>
    %cst_323 = arith.constant 5.000000e-01 : f32
    %815 = vector.broadcast %cst_323 : f32 to vector<8x32xf32>
    %816 = arith.addf %814, %815 : vector<8x32xf32>
    %cst_324 = arith.constant 0.000000e+00 : f32
    %cst_325 = arith.constant 1.000000e+00 : f32
    %817 = vector.broadcast %cst_324 : f32 to vector<8x32xf32>
    %818 = arith.maximumf %817, %816 : vector<8x32xf32>
    %819 = vector.broadcast %cst_325 : f32 to vector<8x32xf32>
    %820 = arith.minimumf %819, %818 : vector<8x32xf32>
    %821 = vector.extract_strided_slice %802 {offsets = [0, 64], sizes = [8, 32], strides = [1, 1]} : vector<8x128xf32> to vector<8x32xf32>
    %cst_326 = arith.constant 2.000000e-01 : f32
    %822 = vector.broadcast %cst_326 : f32 to vector<8x32xf32>
    %823 = arith.mulf %822, %821 : vector<8x32xf32>
    %cst_327 = arith.constant 5.000000e-01 : f32
    %824 = vector.broadcast %cst_327 : f32 to vector<8x32xf32>
    %825 = arith.addf %823, %824 : vector<8x32xf32>
    %cst_328 = arith.constant 0.000000e+00 : f32
    %cst_329 = arith.constant 1.000000e+00 : f32
    %826 = vector.broadcast %cst_328 : f32 to vector<8x32xf32>
    %827 = arith.maximumf %826, %825 : vector<8x32xf32>
    %828 = vector.broadcast %cst_329 : f32 to vector<8x32xf32>
    %829 = arith.minimumf %828, %827 : vector<8x32xf32>
    %830 = vector.extract_strided_slice %802 {offsets = [0, 96], sizes = [8, 32], strides = [1, 1]} : vector<8x128xf32> to vector<8x32xf32>
    %831 = math.absf %830 : vector<8x32xf32>
    %cst_330 = arith.constant 1.000000e+00 : f32
    %832 = vector.broadcast %cst_330 : f32 to vector<8x32xf32>
    %833 = arith.addf %832, %831 : vector<8x32xf32>
    %834 = arith.divf %830, %833 : vector<8x32xf32>
    %835 = arith.mulf %820, %799 : vector<8x32xf32>
    %836 = arith.mulf %811, %834 : vector<8x32xf32>
    %837 = arith.addf %835, %836 : vector<8x32xf32>
    %838 = math.absf %837 : vector<8x32xf32>
    %cst_331 = arith.constant 1.000000e+00 : f32
    %839 = vector.broadcast %cst_331 : f32 to vector<8x32xf32>
    %840 = arith.addf %839, %838 : vector<8x32xf32>
    %841 = arith.divf %837, %840 : vector<8x32xf32>
    %842 = arith.mulf %829, %841 : vector<8x32xf32>
    %843 = vector.extract_strided_slice %790 {offsets = [8, 0], sizes = [8, 128], strides = [1, 1]} : vector<64x128xf32> to vector<8x128xf32>
    %cst_332 = arith.constant dense<0.000000e+00> : vector<8x128xf32>
    %844 = tpu.matmul %842, %796, %cst_332 {dimension_numbers = #tpu.dot_dimension_numbers<[1], [0], [0], [1], [0, 0, 1, 1], [], []>} : vector<8x32xf32>, vector<32x128xf32>, vector<8x128xf32> -> vector<8x128xf32>
    %845 = arith.addf %843, %844 : vector<8x128xf32>
    %846 = vector.extract_strided_slice %845 {offsets = [0, 0], sizes = [8, 32], strides = [1, 1]} : vector<8x128xf32> to vector<8x32xf32>
    %cst_333 = arith.constant 2.000000e-01 : f32
    %847 = vector.broadcast %cst_333 : f32 to vector<8x32xf32>
    %848 = arith.mulf %847, %846 : vector<8x32xf32>
    %cst_334 = arith.constant 5.000000e-01 : f32
    %849 = vector.broadcast %cst_334 : f32 to vector<8x32xf32>
    %850 = arith.addf %848, %849 : vector<8x32xf32>
    %cst_335 = arith.constant 0.000000e+00 : f32
    %cst_336 = arith.constant 1.000000e+00 : f32
    %851 = vector.broadcast %cst_335 : f32 to vector<8x32xf32>
    %852 = arith.maximumf %851, %850 : vector<8x32xf32>
    %853 = vector.broadcast %cst_336 : f32 to vector<8x32xf32>
    %854 = arith.minimumf %853, %852 : vector<8x32xf32>
    %855 = vector.extract_strided_slice %845 {offsets = [0, 32], sizes = [8, 32], strides = [1, 1]} : vector<8x128xf32> to vector<8x32xf32>
    %cst_337 = arith.constant 2.000000e-01 : f32
    %856 = vector.broadcast %cst_337 : f32 to vector<8x32xf32>
    %857 = arith.mulf %856, %855 : vector<8x32xf32>
    %cst_338 = arith.constant 5.000000e-01 : f32
    %858 = vector.broadcast %cst_338 : f32 to vector<8x32xf32>
    %859 = arith.addf %857, %858 : vector<8x32xf32>
    %cst_339 = arith.constant 0.000000e+00 : f32
    %cst_340 = arith.constant 1.000000e+00 : f32
    %860 = vector.broadcast %cst_339 : f32 to vector<8x32xf32>
    %861 = arith.maximumf %860, %859 : vector<8x32xf32>
    %862 = vector.broadcast %cst_340 : f32 to vector<8x32xf32>
    %863 = arith.minimumf %862, %861 : vector<8x32xf32>
    %864 = vector.extract_strided_slice %845 {offsets = [0, 64], sizes = [8, 32], strides = [1, 1]} : vector<8x128xf32> to vector<8x32xf32>
    %cst_341 = arith.constant 2.000000e-01 : f32
    %865 = vector.broadcast %cst_341 : f32 to vector<8x32xf32>
    %866 = arith.mulf %865, %864 : vector<8x32xf32>
    %cst_342 = arith.constant 5.000000e-01 : f32
    %867 = vector.broadcast %cst_342 : f32 to vector<8x32xf32>
    %868 = arith.addf %866, %867 : vector<8x32xf32>
    %cst_343 = arith.constant 0.000000e+00 : f32
    %cst_344 = arith.constant 1.000000e+00 : f32
    %869 = vector.broadcast %cst_343 : f32 to vector<8x32xf32>
    %870 = arith.maximumf %869, %868 : vector<8x32xf32>
    %871 = vector.broadcast %cst_344 : f32 to vector<8x32xf32>
    %872 = arith.minimumf %871, %870 : vector<8x32xf32>
    %873 = vector.extract_strided_slice %845 {offsets = [0, 96], sizes = [8, 32], strides = [1, 1]} : vector<8x128xf32> to vector<8x32xf32>
    %874 = math.absf %873 : vector<8x32xf32>
    %cst_345 = arith.constant 1.000000e+00 : f32
    %875 = vector.broadcast %cst_345 : f32 to vector<8x32xf32>
    %876 = arith.addf %875, %874 : vector<8x32xf32>
    %877 = arith.divf %873, %876 : vector<8x32xf32>
    %878 = arith.mulf %863, %837 : vector<8x32xf32>
    %879 = arith.mulf %854, %877 : vector<8x32xf32>
    %880 = arith.addf %878, %879 : vector<8x32xf32>
    %881 = math.absf %880 : vector<8x32xf32>
    %cst_346 = arith.constant 1.000000e+00 : f32
    %882 = vector.broadcast %cst_346 : f32 to vector<8x32xf32>
    %883 = arith.addf %882, %881 : vector<8x32xf32>
    %884 = arith.divf %880, %883 : vector<8x32xf32>
    %885 = arith.mulf %872, %884 : vector<8x32xf32>
    %886 = vector.extract_strided_slice %790 {offsets = [16, 0], sizes = [8, 128], strides = [1, 1]} : vector<64x128xf32> to vector<8x128xf32>
    %cst_347 = arith.constant dense<0.000000e+00> : vector<8x128xf32>
    %887 = tpu.matmul %885, %796, %cst_347 {dimension_numbers = #tpu.dot_dimension_numbers<[1], [0], [0], [1], [0, 0, 1, 1], [], []>} : vector<8x32xf32>, vector<32x128xf32>, vector<8x128xf32> -> vector<8x128xf32>
    %888 = arith.addf %886, %887 : vector<8x128xf32>
    %889 = vector.extract_strided_slice %888 {offsets = [0, 0], sizes = [8, 32], strides = [1, 1]} : vector<8x128xf32> to vector<8x32xf32>
    %cst_348 = arith.constant 2.000000e-01 : f32
    %890 = vector.broadcast %cst_348 : f32 to vector<8x32xf32>
    %891 = arith.mulf %890, %889 : vector<8x32xf32>
    %cst_349 = arith.constant 5.000000e-01 : f32
    %892 = vector.broadcast %cst_349 : f32 to vector<8x32xf32>
    %893 = arith.addf %891, %892 : vector<8x32xf32>
    %cst_350 = arith.constant 0.000000e+00 : f32
    %cst_351 = arith.constant 1.000000e+00 : f32
    %894 = vector.broadcast %cst_350 : f32 to vector<8x32xf32>
    %895 = arith.maximumf %894, %893 : vector<8x32xf32>
    %896 = vector.broadcast %cst_351 : f32 to vector<8x32xf32>
    %897 = arith.minimumf %896, %895 : vector<8x32xf32>
    %898 = vector.extract_strided_slice %888 {offsets = [0, 32], sizes = [8, 32], strides = [1, 1]} : vector<8x128xf32> to vector<8x32xf32>
    %cst_352 = arith.constant 2.000000e-01 : f32
    %899 = vector.broadcast %cst_352 : f32 to vector<8x32xf32>
    %900 = arith.mulf %899, %898 : vector<8x32xf32>
    %cst_353 = arith.constant 5.000000e-01 : f32
    %901 = vector.broadcast %cst_353 : f32 to vector<8x32xf32>
    %902 = arith.addf %900, %901 : vector<8x32xf32>
    %cst_354 = arith.constant 0.000000e+00 : f32
    %cst_355 = arith.constant 1.000000e+00 : f32
    %903 = vector.broadcast %cst_354 : f32 to vector<8x32xf32>
    %904 = arith.maximumf %903, %902 : vector<8x32xf32>
    %905 = vector.broadcast %cst_355 : f32 to vector<8x32xf32>
    %906 = arith.minimumf %905, %904 : vector<8x32xf32>
    %907 = vector.extract_strided_slice %888 {offsets = [0, 64], sizes = [8, 32], strides = [1, 1]} : vector<8x128xf32> to vector<8x32xf32>
    %cst_356 = arith.constant 2.000000e-01 : f32
    %908 = vector.broadcast %cst_356 : f32 to vector<8x32xf32>
    %909 = arith.mulf %908, %907 : vector<8x32xf32>
    %cst_357 = arith.constant 5.000000e-01 : f32
    %910 = vector.broadcast %cst_357 : f32 to vector<8x32xf32>
    %911 = arith.addf %909, %910 : vector<8x32xf32>
    %cst_358 = arith.constant 0.000000e+00 : f32
    %cst_359 = arith.constant 1.000000e+00 : f32
    %912 = vector.broadcast %cst_358 : f32 to vector<8x32xf32>
    %913 = arith.maximumf %912, %911 : vector<8x32xf32>
    %914 = vector.broadcast %cst_359 : f32 to vector<8x32xf32>
    %915 = arith.minimumf %914, %913 : vector<8x32xf32>
    %916 = vector.extract_strided_slice %888 {offsets = [0, 96], sizes = [8, 32], strides = [1, 1]} : vector<8x128xf32> to vector<8x32xf32>
    %917 = math.absf %916 : vector<8x32xf32>
    %cst_360 = arith.constant 1.000000e+00 : f32
    %918 = vector.broadcast %cst_360 : f32 to vector<8x32xf32>
    %919 = arith.addf %918, %917 : vector<8x32xf32>
    %920 = arith.divf %916, %919 : vector<8x32xf32>
    %921 = arith.mulf %906, %880 : vector<8x32xf32>
    %922 = arith.mulf %897, %920 : vector<8x32xf32>
    %923 = arith.addf %921, %922 : vector<8x32xf32>
    %924 = math.absf %923 : vector<8x32xf32>
    %cst_361 = arith.constant 1.000000e+00 : f32
    %925 = vector.broadcast %cst_361 : f32 to vector<8x32xf32>
    %926 = arith.addf %925, %924 : vector<8x32xf32>
    %927 = arith.divf %923, %926 : vector<8x32xf32>
    %928 = arith.mulf %915, %927 : vector<8x32xf32>
    %929 = vector.extract_strided_slice %790 {offsets = [24, 0], sizes = [8, 128], strides = [1, 1]} : vector<64x128xf32> to vector<8x128xf32>
    %cst_362 = arith.constant dense<0.000000e+00> : vector<8x128xf32>
    %930 = tpu.matmul %928, %796, %cst_362 {dimension_numbers = #tpu.dot_dimension_numbers<[1], [0], [0], [1], [0, 0, 1, 1], [], []>} : vector<8x32xf32>, vector<32x128xf32>, vector<8x128xf32> -> vector<8x128xf32>
    %931 = arith.addf %929, %930 : vector<8x128xf32>
    %932 = vector.extract_strided_slice %931 {offsets = [0, 0], sizes = [8, 32], strides = [1, 1]} : vector<8x128xf32> to vector<8x32xf32>
    %cst_363 = arith.constant 2.000000e-01 : f32
    %933 = vector.broadcast %cst_363 : f32 to vector<8x32xf32>
    %934 = arith.mulf %933, %932 : vector<8x32xf32>
    %cst_364 = arith.constant 5.000000e-01 : f32
    %935 = vector.broadcast %cst_364 : f32 to vector<8x32xf32>
    %936 = arith.addf %934, %935 : vector<8x32xf32>
    %cst_365 = arith.constant 0.000000e+00 : f32
    %cst_366 = arith.constant 1.000000e+00 : f32
    %937 = vector.broadcast %cst_365 : f32 to vector<8x32xf32>
    %938 = arith.maximumf %937, %936 : vector<8x32xf32>
    %939 = vector.broadcast %cst_366 : f32 to vector<8x32xf32>
    %940 = arith.minimumf %939, %938 : vector<8x32xf32>
    %941 = vector.extract_strided_slice %931 {offsets = [0, 32], sizes = [8, 32], strides = [1, 1]} : vector<8x128xf32> to vector<8x32xf32>
    %cst_367 = arith.constant 2.000000e-01 : f32
    %942 = vector.broadcast %cst_367 : f32 to vector<8x32xf32>
    %943 = arith.mulf %942, %941 : vector<8x32xf32>
    %cst_368 = arith.constant 5.000000e-01 : f32
    %944 = vector.broadcast %cst_368 : f32 to vector<8x32xf32>
    %945 = arith.addf %943, %944 : vector<8x32xf32>
    %cst_369 = arith.constant 0.000000e+00 : f32
    %cst_370 = arith.constant 1.000000e+00 : f32
    %946 = vector.broadcast %cst_369 : f32 to vector<8x32xf32>
    %947 = arith.maximumf %946, %945 : vector<8x32xf32>
    %948 = vector.broadcast %cst_370 : f32 to vector<8x32xf32>
    %949 = arith.minimumf %948, %947 : vector<8x32xf32>
    %950 = vector.extract_strided_slice %931 {offsets = [0, 64], sizes = [8, 32], strides = [1, 1]} : vector<8x128xf32> to vector<8x32xf32>
    %cst_371 = arith.constant 2.000000e-01 : f32
    %951 = vector.broadcast %cst_371 : f32 to vector<8x32xf32>
    %952 = arith.mulf %951, %950 : vector<8x32xf32>
    %cst_372 = arith.constant 5.000000e-01 : f32
    %953 = vector.broadcast %cst_372 : f32 to vector<8x32xf32>
    %954 = arith.addf %952, %953 : vector<8x32xf32>
    %cst_373 = arith.constant 0.000000e+00 : f32
    %cst_374 = arith.constant 1.000000e+00 : f32
    %955 = vector.broadcast %cst_373 : f32 to vector<8x32xf32>
    %956 = arith.maximumf %955, %954 : vector<8x32xf32>
    %957 = vector.broadcast %cst_374 : f32 to vector<8x32xf32>
    %958 = arith.minimumf %957, %956 : vector<8x32xf32>
    %959 = vector.extract_strided_slice %931 {offsets = [0, 96], sizes = [8, 32], strides = [1, 1]} : vector<8x128xf32> to vector<8x32xf32>
    %960 = math.absf %959 : vector<8x32xf32>
    %cst_375 = arith.constant 1.000000e+00 : f32
    %961 = vector.broadcast %cst_375 : f32 to vector<8x32xf32>
    %962 = arith.addf %961, %960 : vector<8x32xf32>
    %963 = arith.divf %959, %962 : vector<8x32xf32>
    %964 = arith.mulf %949, %923 : vector<8x32xf32>
    %965 = arith.mulf %940, %963 : vector<8x32xf32>
    %966 = arith.addf %964, %965 : vector<8x32xf32>
    %967 = math.absf %966 : vector<8x32xf32>
    %cst_376 = arith.constant 1.000000e+00 : f32
    %968 = vector.broadcast %cst_376 : f32 to vector<8x32xf32>
    %969 = arith.addf %968, %967 : vector<8x32xf32>
    %970 = arith.divf %966, %969 : vector<8x32xf32>
    %971 = arith.mulf %958, %970 : vector<8x32xf32>
    %972 = vector.extract_strided_slice %790 {offsets = [32, 0], sizes = [8, 128], strides = [1, 1]} : vector<64x128xf32> to vector<8x128xf32>
    %cst_377 = arith.constant dense<0.000000e+00> : vector<8x128xf32>
    %973 = tpu.matmul %971, %796, %cst_377 {dimension_numbers = #tpu.dot_dimension_numbers<[1], [0], [0], [1], [0, 0, 1, 1], [], []>} : vector<8x32xf32>, vector<32x128xf32>, vector<8x128xf32> -> vector<8x128xf32>
    %974 = arith.addf %972, %973 : vector<8x128xf32>
    %975 = vector.extract_strided_slice %974 {offsets = [0, 0], sizes = [8, 32], strides = [1, 1]} : vector<8x128xf32> to vector<8x32xf32>
    %cst_378 = arith.constant 2.000000e-01 : f32
    %976 = vector.broadcast %cst_378 : f32 to vector<8x32xf32>
    %977 = arith.mulf %976, %975 : vector<8x32xf32>
    %cst_379 = arith.constant 5.000000e-01 : f32
    %978 = vector.broadcast %cst_379 : f32 to vector<8x32xf32>
    %979 = arith.addf %977, %978 : vector<8x32xf32>
    %cst_380 = arith.constant 0.000000e+00 : f32
    %cst_381 = arith.constant 1.000000e+00 : f32
    %980 = vector.broadcast %cst_380 : f32 to vector<8x32xf32>
    %981 = arith.maximumf %980, %979 : vector<8x32xf32>
    %982 = vector.broadcast %cst_381 : f32 to vector<8x32xf32>
    %983 = arith.minimumf %982, %981 : vector<8x32xf32>
    %984 = vector.extract_strided_slice %974 {offsets = [0, 32], sizes = [8, 32], strides = [1, 1]} : vector<8x128xf32> to vector<8x32xf32>
    %cst_382 = arith.constant 2.000000e-01 : f32
    %985 = vector.broadcast %cst_382 : f32 to vector<8x32xf32>
    %986 = arith.mulf %985, %984 : vector<8x32xf32>
    %cst_383 = arith.constant 5.000000e-01 : f32
    %987 = vector.broadcast %cst_383 : f32 to vector<8x32xf32>
    %988 = arith.addf %986, %987 : vector<8x32xf32>
    %cst_384 = arith.constant 0.000000e+00 : f32
    %cst_385 = arith.constant 1.000000e+00 : f32
    %989 = vector.broadcast %cst_384 : f32 to vector<8x32xf32>
    %990 = arith.maximumf %989, %988 : vector<8x32xf32>
    %991 = vector.broadcast %cst_385 : f32 to vector<8x32xf32>
    %992 = arith.minimumf %991, %990 : vector<8x32xf32>
    %993 = vector.extract_strided_slice %974 {offsets = [0, 64], sizes = [8, 32], strides = [1, 1]} : vector<8x128xf32> to vector<8x32xf32>
    %cst_386 = arith.constant 2.000000e-01 : f32
    %994 = vector.broadcast %cst_386 : f32 to vector<8x32xf32>
    %995 = arith.mulf %994, %993 : vector<8x32xf32>
    %cst_387 = arith.constant 5.000000e-01 : f32
    %996 = vector.broadcast %cst_387 : f32 to vector<8x32xf32>
    %997 = arith.addf %995, %996 : vector<8x32xf32>
    %cst_388 = arith.constant 0.000000e+00 : f32
    %cst_389 = arith.constant 1.000000e+00 : f32
    %998 = vector.broadcast %cst_388 : f32 to vector<8x32xf32>
    %999 = arith.maximumf %998, %997 : vector<8x32xf32>
    %1000 = vector.broadcast %cst_389 : f32 to vector<8x32xf32>
    %1001 = arith.minimumf %1000, %999 : vector<8x32xf32>
    %1002 = vector.extract_strided_slice %974 {offsets = [0, 96], sizes = [8, 32], strides = [1, 1]} : vector<8x128xf32> to vector<8x32xf32>
    %1003 = math.absf %1002 : vector<8x32xf32>
    %cst_390 = arith.constant 1.000000e+00 : f32
    %1004 = vector.broadcast %cst_390 : f32 to vector<8x32xf32>
    %1005 = arith.addf %1004, %1003 : vector<8x32xf32>
    %1006 = arith.divf %1002, %1005 : vector<8x32xf32>
    %1007 = arith.mulf %992, %966 : vector<8x32xf32>
    %1008 = arith.mulf %983, %1006 : vector<8x32xf32>
    %1009 = arith.addf %1007, %1008 : vector<8x32xf32>
    %1010 = math.absf %1009 : vector<8x32xf32>
    %cst_391 = arith.constant 1.000000e+00 : f32
    %1011 = vector.broadcast %cst_391 : f32 to vector<8x32xf32>
    %1012 = arith.addf %1011, %1010 : vector<8x32xf32>
    %1013 = arith.divf %1009, %1012 : vector<8x32xf32>
    %1014 = arith.mulf %1001, %1013 : vector<8x32xf32>
    %1015 = vector.extract_strided_slice %790 {offsets = [40, 0], sizes = [8, 128], strides = [1, 1]} : vector<64x128xf32> to vector<8x128xf32>
    %cst_392 = arith.constant dense<0.000000e+00> : vector<8x128xf32>
    %1016 = tpu.matmul %1014, %796, %cst_392 {dimension_numbers = #tpu.dot_dimension_numbers<[1], [0], [0], [1], [0, 0, 1, 1], [], []>} : vector<8x32xf32>, vector<32x128xf32>, vector<8x128xf32> -> vector<8x128xf32>
    %1017 = arith.addf %1015, %1016 : vector<8x128xf32>
    %1018 = vector.extract_strided_slice %1017 {offsets = [0, 0], sizes = [8, 32], strides = [1, 1]} : vector<8x128xf32> to vector<8x32xf32>
    %cst_393 = arith.constant 2.000000e-01 : f32
    %1019 = vector.broadcast %cst_393 : f32 to vector<8x32xf32>
    %1020 = arith.mulf %1019, %1018 : vector<8x32xf32>
    %cst_394 = arith.constant 5.000000e-01 : f32
    %1021 = vector.broadcast %cst_394 : f32 to vector<8x32xf32>
    %1022 = arith.addf %1020, %1021 : vector<8x32xf32>
    %cst_395 = arith.constant 0.000000e+00 : f32
    %cst_396 = arith.constant 1.000000e+00 : f32
    %1023 = vector.broadcast %cst_395 : f32 to vector<8x32xf32>
    %1024 = arith.maximumf %1023, %1022 : vector<8x32xf32>
    %1025 = vector.broadcast %cst_396 : f32 to vector<8x32xf32>
    %1026 = arith.minimumf %1025, %1024 : vector<8x32xf32>
    %1027 = vector.extract_strided_slice %1017 {offsets = [0, 32], sizes = [8, 32], strides = [1, 1]} : vector<8x128xf32> to vector<8x32xf32>
    %cst_397 = arith.constant 2.000000e-01 : f32
    %1028 = vector.broadcast %cst_397 : f32 to vector<8x32xf32>
    %1029 = arith.mulf %1028, %1027 : vector<8x32xf32>
    %cst_398 = arith.constant 5.000000e-01 : f32
    %1030 = vector.broadcast %cst_398 : f32 to vector<8x32xf32>
    %1031 = arith.addf %1029, %1030 : vector<8x32xf32>
    %cst_399 = arith.constant 0.000000e+00 : f32
    %cst_400 = arith.constant 1.000000e+00 : f32
    %1032 = vector.broadcast %cst_399 : f32 to vector<8x32xf32>
    %1033 = arith.maximumf %1032, %1031 : vector<8x32xf32>
    %1034 = vector.broadcast %cst_400 : f32 to vector<8x32xf32>
    %1035 = arith.minimumf %1034, %1033 : vector<8x32xf32>
    %1036 = vector.extract_strided_slice %1017 {offsets = [0, 64], sizes = [8, 32], strides = [1, 1]} : vector<8x128xf32> to vector<8x32xf32>
    %cst_401 = arith.constant 2.000000e-01 : f32
    %1037 = vector.broadcast %cst_401 : f32 to vector<8x32xf32>
    %1038 = arith.mulf %1037, %1036 : vector<8x32xf32>
    %cst_402 = arith.constant 5.000000e-01 : f32
    %1039 = vector.broadcast %cst_402 : f32 to vector<8x32xf32>
    %1040 = arith.addf %1038, %1039 : vector<8x32xf32>
    %cst_403 = arith.constant 0.000000e+00 : f32
    %cst_404 = arith.constant 1.000000e+00 : f32
    %1041 = vector.broadcast %cst_403 : f32 to vector<8x32xf32>
    %1042 = arith.maximumf %1041, %1040 : vector<8x32xf32>
    %1043 = vector.broadcast %cst_404 : f32 to vector<8x32xf32>
    %1044 = arith.minimumf %1043, %1042 : vector<8x32xf32>
    %1045 = vector.extract_strided_slice %1017 {offsets = [0, 96], sizes = [8, 32], strides = [1, 1]} : vector<8x128xf32> to vector<8x32xf32>
    %1046 = math.absf %1045 : vector<8x32xf32>
    %cst_405 = arith.constant 1.000000e+00 : f32
    %1047 = vector.broadcast %cst_405 : f32 to vector<8x32xf32>
    %1048 = arith.addf %1047, %1046 : vector<8x32xf32>
    %1049 = arith.divf %1045, %1048 : vector<8x32xf32>
    %1050 = arith.mulf %1035, %1009 : vector<8x32xf32>
    %1051 = arith.mulf %1026, %1049 : vector<8x32xf32>
    %1052 = arith.addf %1050, %1051 : vector<8x32xf32>
    %1053 = math.absf %1052 : vector<8x32xf32>
    %cst_406 = arith.constant 1.000000e+00 : f32
    %1054 = vector.broadcast %cst_406 : f32 to vector<8x32xf32>
    %1055 = arith.addf %1054, %1053 : vector<8x32xf32>
    %1056 = arith.divf %1052, %1055 : vector<8x32xf32>
    %1057 = arith.mulf %1044, %1056 : vector<8x32xf32>
    %1058 = vector.extract_strided_slice %790 {offsets = [48, 0], sizes = [8, 128], strides = [1, 1]} : vector<64x128xf32> to vector<8x128xf32>
    %cst_407 = arith.constant dense<0.000000e+00> : vector<8x128xf32>
    %1059 = tpu.matmul %1057, %796, %cst_407 {dimension_numbers = #tpu.dot_dimension_numbers<[1], [0], [0], [1], [0, 0, 1, 1], [], []>} : vector<8x32xf32>, vector<32x128xf32>, vector<8x128xf32> -> vector<8x128xf32>
    %1060 = arith.addf %1058, %1059 : vector<8x128xf32>
    %1061 = vector.extract_strided_slice %1060 {offsets = [0, 0], sizes = [8, 32], strides = [1, 1]} : vector<8x128xf32> to vector<8x32xf32>
    %cst_408 = arith.constant 2.000000e-01 : f32
    %1062 = vector.broadcast %cst_408 : f32 to vector<8x32xf32>
    %1063 = arith.mulf %1062, %1061 : vector<8x32xf32>
    %cst_409 = arith.constant 5.000000e-01 : f32
    %1064 = vector.broadcast %cst_409 : f32 to vector<8x32xf32>
    %1065 = arith.addf %1063, %1064 : vector<8x32xf32>
    %cst_410 = arith.constant 0.000000e+00 : f32
    %cst_411 = arith.constant 1.000000e+00 : f32
    %1066 = vector.broadcast %cst_410 : f32 to vector<8x32xf32>
    %1067 = arith.maximumf %1066, %1065 : vector<8x32xf32>
    %1068 = vector.broadcast %cst_411 : f32 to vector<8x32xf32>
    %1069 = arith.minimumf %1068, %1067 : vector<8x32xf32>
    %1070 = vector.extract_strided_slice %1060 {offsets = [0, 32], sizes = [8, 32], strides = [1, 1]} : vector<8x128xf32> to vector<8x32xf32>
    %cst_412 = arith.constant 2.000000e-01 : f32
    %1071 = vector.broadcast %cst_412 : f32 to vector<8x32xf32>
    %1072 = arith.mulf %1071, %1070 : vector<8x32xf32>
    %cst_413 = arith.constant 5.000000e-01 : f32
    %1073 = vector.broadcast %cst_413 : f32 to vector<8x32xf32>
    %1074 = arith.addf %1072, %1073 : vector<8x32xf32>
    %cst_414 = arith.constant 0.000000e+00 : f32
    %cst_415 = arith.constant 1.000000e+00 : f32
    %1075 = vector.broadcast %cst_414 : f32 to vector<8x32xf32>
    %1076 = arith.maximumf %1075, %1074 : vector<8x32xf32>
    %1077 = vector.broadcast %cst_415 : f32 to vector<8x32xf32>
    %1078 = arith.minimumf %1077, %1076 : vector<8x32xf32>
    %1079 = vector.extract_strided_slice %1060 {offsets = [0, 64], sizes = [8, 32], strides = [1, 1]} : vector<8x128xf32> to vector<8x32xf32>
    %cst_416 = arith.constant 2.000000e-01 : f32
    %1080 = vector.broadcast %cst_416 : f32 to vector<8x32xf32>
    %1081 = arith.mulf %1080, %1079 : vector<8x32xf32>
    %cst_417 = arith.constant 5.000000e-01 : f32
    %1082 = vector.broadcast %cst_417 : f32 to vector<8x32xf32>
    %1083 = arith.addf %1081, %1082 : vector<8x32xf32>
    %cst_418 = arith.constant 0.000000e+00 : f32
    %cst_419 = arith.constant 1.000000e+00 : f32
    %1084 = vector.broadcast %cst_418 : f32 to vector<8x32xf32>
    %1085 = arith.maximumf %1084, %1083 : vector<8x32xf32>
    %1086 = vector.broadcast %cst_419 : f32 to vector<8x32xf32>
    %1087 = arith.minimumf %1086, %1085 : vector<8x32xf32>
    %1088 = vector.extract_strided_slice %1060 {offsets = [0, 96], sizes = [8, 32], strides = [1, 1]} : vector<8x128xf32> to vector<8x32xf32>
    %1089 = math.absf %1088 : vector<8x32xf32>
    %cst_420 = arith.constant 1.000000e+00 : f32
    %1090 = vector.broadcast %cst_420 : f32 to vector<8x32xf32>
    %1091 = arith.addf %1090, %1089 : vector<8x32xf32>
    %1092 = arith.divf %1088, %1091 : vector<8x32xf32>
    %1093 = arith.mulf %1078, %1052 : vector<8x32xf32>
    %1094 = arith.mulf %1069, %1092 : vector<8x32xf32>
    %1095 = arith.addf %1093, %1094 : vector<8x32xf32>
    %1096 = math.absf %1095 : vector<8x32xf32>
    %cst_421 = arith.constant 1.000000e+00 : f32
    %1097 = vector.broadcast %cst_421 : f32 to vector<8x32xf32>
    %1098 = arith.addf %1097, %1096 : vector<8x32xf32>
    %1099 = arith.divf %1095, %1098 : vector<8x32xf32>
    %1100 = arith.mulf %1087, %1099 : vector<8x32xf32>
    %1101 = vector.extract_strided_slice %790 {offsets = [56, 0], sizes = [8, 128], strides = [1, 1]} : vector<64x128xf32> to vector<8x128xf32>
    %cst_422 = arith.constant dense<0.000000e+00> : vector<8x128xf32>
    %1102 = tpu.matmul %1100, %796, %cst_422 {dimension_numbers = #tpu.dot_dimension_numbers<[1], [0], [0], [1], [0, 0, 1, 1], [], []>} : vector<8x32xf32>, vector<32x128xf32>, vector<8x128xf32> -> vector<8x128xf32>
    %1103 = arith.addf %1101, %1102 : vector<8x128xf32>
    %1104 = vector.extract_strided_slice %1103 {offsets = [0, 0], sizes = [8, 32], strides = [1, 1]} : vector<8x128xf32> to vector<8x32xf32>
    %cst_423 = arith.constant 2.000000e-01 : f32
    %1105 = vector.broadcast %cst_423 : f32 to vector<8x32xf32>
    %1106 = arith.mulf %1105, %1104 : vector<8x32xf32>
    %cst_424 = arith.constant 5.000000e-01 : f32
    %1107 = vector.broadcast %cst_424 : f32 to vector<8x32xf32>
    %1108 = arith.addf %1106, %1107 : vector<8x32xf32>
    %cst_425 = arith.constant 0.000000e+00 : f32
    %cst_426 = arith.constant 1.000000e+00 : f32
    %1109 = vector.broadcast %cst_425 : f32 to vector<8x32xf32>
    %1110 = arith.maximumf %1109, %1108 : vector<8x32xf32>
    %1111 = vector.broadcast %cst_426 : f32 to vector<8x32xf32>
    %1112 = arith.minimumf %1111, %1110 : vector<8x32xf32>
    %1113 = vector.extract_strided_slice %1103 {offsets = [0, 32], sizes = [8, 32], strides = [1, 1]} : vector<8x128xf32> to vector<8x32xf32>
    %cst_427 = arith.constant 2.000000e-01 : f32
    %1114 = vector.broadcast %cst_427 : f32 to vector<8x32xf32>
    %1115 = arith.mulf %1114, %1113 : vector<8x32xf32>
    %cst_428 = arith.constant 5.000000e-01 : f32
    %1116 = vector.broadcast %cst_428 : f32 to vector<8x32xf32>
    %1117 = arith.addf %1115, %1116 : vector<8x32xf32>
    %cst_429 = arith.constant 0.000000e+00 : f32
    %cst_430 = arith.constant 1.000000e+00 : f32
    %1118 = vector.broadcast %cst_429 : f32 to vector<8x32xf32>
    %1119 = arith.maximumf %1118, %1117 : vector<8x32xf32>
    %1120 = vector.broadcast %cst_430 : f32 to vector<8x32xf32>
    %1121 = arith.minimumf %1120, %1119 : vector<8x32xf32>
    %1122 = vector.extract_strided_slice %1103 {offsets = [0, 64], sizes = [8, 32], strides = [1, 1]} : vector<8x128xf32> to vector<8x32xf32>
    %cst_431 = arith.constant 2.000000e-01 : f32
    %1123 = vector.broadcast %cst_431 : f32 to vector<8x32xf32>
    %1124 = arith.mulf %1123, %1122 : vector<8x32xf32>
    %cst_432 = arith.constant 5.000000e-01 : f32
    %1125 = vector.broadcast %cst_432 : f32 to vector<8x32xf32>
    %1126 = arith.addf %1124, %1125 : vector<8x32xf32>
    %cst_433 = arith.constant 0.000000e+00 : f32
    %cst_434 = arith.constant 1.000000e+00 : f32
    %1127 = vector.broadcast %cst_433 : f32 to vector<8x32xf32>
    %1128 = arith.maximumf %1127, %1126 : vector<8x32xf32>
    %1129 = vector.broadcast %cst_434 : f32 to vector<8x32xf32>
    %1130 = arith.minimumf %1129, %1128 : vector<8x32xf32>
    %1131 = vector.extract_strided_slice %1103 {offsets = [0, 96], sizes = [8, 32], strides = [1, 1]} : vector<8x128xf32> to vector<8x32xf32>
    %1132 = math.absf %1131 : vector<8x32xf32>
    %cst_435 = arith.constant 1.000000e+00 : f32
    %1133 = vector.broadcast %cst_435 : f32 to vector<8x32xf32>
    %1134 = arith.addf %1133, %1132 : vector<8x32xf32>
    %1135 = arith.divf %1131, %1134 : vector<8x32xf32>
    %1136 = arith.mulf %1121, %1095 : vector<8x32xf32>
    %1137 = arith.mulf %1112, %1135 : vector<8x32xf32>
    %1138 = arith.addf %1136, %1137 : vector<8x32xf32>
    %1139 = math.absf %1138 : vector<8x32xf32>
    %cst_436 = arith.constant 1.000000e+00 : f32
    %1140 = vector.broadcast %cst_436 : f32 to vector<8x32xf32>
    %1141 = arith.addf %1140, %1139 : vector<8x32xf32>
    %1142 = arith.divf %1138, %1141 : vector<8x32xf32>
    %1143 = arith.mulf %1130, %1142 : vector<8x32xf32>
    %cst_437 = arith.constant 0.000000e+00 : f32
    %1144 = vector.broadcast %cst_437 : f32 to vector<8x32xf32>
    %cst_438 = arith.constant 0.000000e+00 : f32
    %1145 = vector.broadcast %cst_438 : f32 to vector<8x32xf32>
    %1146 = vector.extract_strided_slice %795 {offsets = [56, 0], sizes = [8, 128], strides = [1, 1]} : vector<64x128xf32> to vector<8x128xf32>
    %cst_439 = arith.constant dense<0.000000e+00> : vector<8x128xf32>
    %1147 = tpu.matmul %1144, %797, %cst_439 {dimension_numbers = #tpu.dot_dimension_numbers<[1], [0], [0], [1], [0, 0, 1, 1], [], []>} : vector<8x32xf32>, vector<32x128xf32>, vector<8x128xf32> -> vector<8x128xf32>
    %1148 = arith.addf %1146, %1147 : vector<8x128xf32>
    %1149 = vector.extract_strided_slice %1148 {offsets = [0, 0], sizes = [8, 32], strides = [1, 1]} : vector<8x128xf32> to vector<8x32xf32>
    %cst_440 = arith.constant 2.000000e-01 : f32
    %1150 = vector.broadcast %cst_440 : f32 to vector<8x32xf32>
    %1151 = arith.mulf %1150, %1149 : vector<8x32xf32>
    %cst_441 = arith.constant 5.000000e-01 : f32
    %1152 = vector.broadcast %cst_441 : f32 to vector<8x32xf32>
    %1153 = arith.addf %1151, %1152 : vector<8x32xf32>
    %cst_442 = arith.constant 0.000000e+00 : f32
    %cst_443 = arith.constant 1.000000e+00 : f32
    %1154 = vector.broadcast %cst_442 : f32 to vector<8x32xf32>
    %1155 = arith.maximumf %1154, %1153 : vector<8x32xf32>
    %1156 = vector.broadcast %cst_443 : f32 to vector<8x32xf32>
    %1157 = arith.minimumf %1156, %1155 : vector<8x32xf32>
    %1158 = vector.extract_strided_slice %1148 {offsets = [0, 32], sizes = [8, 32], strides = [1, 1]} : vector<8x128xf32> to vector<8x32xf32>
    %cst_444 = arith.constant 2.000000e-01 : f32
    %1159 = vector.broadcast %cst_444 : f32 to vector<8x32xf32>
    %1160 = arith.mulf %1159, %1158 : vector<8x32xf32>
    %cst_445 = arith.constant 5.000000e-01 : f32
    %1161 = vector.broadcast %cst_445 : f32 to vector<8x32xf32>
    %1162 = arith.addf %1160, %1161 : vector<8x32xf32>
    %cst_446 = arith.constant 0.000000e+00 : f32
    %cst_447 = arith.constant 1.000000e+00 : f32
    %1163 = vector.broadcast %cst_446 : f32 to vector<8x32xf32>
    %1164 = arith.maximumf %1163, %1162 : vector<8x32xf32>
    %1165 = vector.broadcast %cst_447 : f32 to vector<8x32xf32>
    %1166 = arith.minimumf %1165, %1164 : vector<8x32xf32>
    %1167 = vector.extract_strided_slice %1148 {offsets = [0, 64], sizes = [8, 32], strides = [1, 1]} : vector<8x128xf32> to vector<8x32xf32>
    %cst_448 = arith.constant 2.000000e-01 : f32
    %1168 = vector.broadcast %cst_448 : f32 to vector<8x32xf32>
    %1169 = arith.mulf %1168, %1167 : vector<8x32xf32>
    %cst_449 = arith.constant 5.000000e-01 : f32
    %1170 = vector.broadcast %cst_449 : f32 to vector<8x32xf32>
    %1171 = arith.addf %1169, %1170 : vector<8x32xf32>
    %cst_450 = arith.constant 0.000000e+00 : f32
    %cst_451 = arith.constant 1.000000e+00 : f32
    %1172 = vector.broadcast %cst_450 : f32 to vector<8x32xf32>
    %1173 = arith.maximumf %1172, %1171 : vector<8x32xf32>
    %1174 = vector.broadcast %cst_451 : f32 to vector<8x32xf32>
    %1175 = arith.minimumf %1174, %1173 : vector<8x32xf32>
    %1176 = vector.extract_strided_slice %1148 {offsets = [0, 96], sizes = [8, 32], strides = [1, 1]} : vector<8x128xf32> to vector<8x32xf32>
    %1177 = math.absf %1176 : vector<8x32xf32>
    %cst_452 = arith.constant 1.000000e+00 : f32
    %1178 = vector.broadcast %cst_452 : f32 to vector<8x32xf32>
    %1179 = arith.addf %1178, %1177 : vector<8x32xf32>
    %1180 = arith.divf %1176, %1179 : vector<8x32xf32>
    %1181 = arith.mulf %1166, %1145 : vector<8x32xf32>
    %1182 = arith.mulf %1157, %1180 : vector<8x32xf32>
    %1183 = arith.addf %1181, %1182 : vector<8x32xf32>
    %1184 = math.absf %1183 : vector<8x32xf32>
    %cst_453 = arith.constant 1.000000e+00 : f32
    %1185 = vector.broadcast %cst_453 : f32 to vector<8x32xf32>
    %1186 = arith.addf %1185, %1184 : vector<8x32xf32>
    %1187 = arith.divf %1183, %1186 : vector<8x32xf32>
    %1188 = arith.mulf %1175, %1187 : vector<8x32xf32>
    %1189 = arith.addf %1143, %1188 : vector<8x32xf32>
    %cst_454 = arith.constant 2.000000e-01 : f32
    %1190 = vector.broadcast %cst_454 : f32 to vector<8x32xf32>
    %1191 = arith.mulf %1190, %1189 : vector<8x32xf32>
    %cst_455 = arith.constant 5.000000e-01 : f32
    %1192 = vector.broadcast %cst_455 : f32 to vector<8x32xf32>
    %1193 = arith.addf %1191, %1192 : vector<8x32xf32>
    %cst_456 = arith.constant 0.000000e+00 : f32
    %cst_457 = arith.constant 1.000000e+00 : f32
    %1194 = vector.broadcast %cst_456 : f32 to vector<8x32xf32>
    %1195 = arith.maximumf %1194, %1193 : vector<8x32xf32>
    %1196 = vector.broadcast %cst_457 : f32 to vector<8x32xf32>
    %1197 = arith.minimumf %1196, %1195 : vector<8x32xf32>
    %c56_458 = arith.constant 56 : index
    %c0_459 = arith.constant 0 : index
    %1198 = vector.load %arg20[%c56_458, %c0_459] : memref<64x32xf32, #tpu.memory_space<vmem>>, vector<8x32xf32>
    tpu.vector_store %arg20[%c56_458, %c0_459], %1197 {strides = array<i32>} : memref<64x32xf32, #tpu.memory_space<vmem>>, vector<8x32xf32>,
    %1199 = vector.extract_strided_slice %795 {offsets = [48, 0], sizes = [8, 128], strides = [1, 1]} : vector<64x128xf32> to vector<8x128xf32>
    %cst_460 = arith.constant dense<0.000000e+00> : vector<8x128xf32>
    %1200 = tpu.matmul %1188, %797, %cst_460 {dimension_numbers = #tpu.dot_dimension_numbers<[1], [0], [0], [1], [0, 0, 1, 1], [], []>} : vector<8x32xf32>, vector<32x128xf32>, vector<8x128xf32> -> vector<8x128xf32>
    %1201 = arith.addf %1199, %1200 : vector<8x128xf32>
    %1202 = vector.extract_strided_slice %1201 {offsets = [0, 0], sizes = [8, 32], strides = [1, 1]} : vector<8x128xf32> to vector<8x32xf32>
    %cst_461 = arith.constant 2.000000e-01 : f32
    %1203 = vector.broadcast %cst_461 : f32 to vector<8x32xf32>
    %1204 = arith.mulf %1203, %1202 : vector<8x32xf32>
    %cst_462 = arith.constant 5.000000e-01 : f32
    %1205 = vector.broadcast %cst_462 : f32 to vector<8x32xf32>
    %1206 = arith.addf %1204, %1205 : vector<8x32xf32>
    %cst_463 = arith.constant 0.000000e+00 : f32
    %cst_464 = arith.constant 1.000000e+00 : f32
    %1207 = vector.broadcast %cst_463 : f32 to vector<8x32xf32>
    %1208 = arith.maximumf %1207, %1206 : vector<8x32xf32>
    %1209 = vector.broadcast %cst_464 : f32 to vector<8x32xf32>
    %1210 = arith.minimumf %1209, %1208 : vector<8x32xf32>
    %1211 = vector.extract_strided_slice %1201 {offsets = [0, 32], sizes = [8, 32], strides = [1, 1]} : vector<8x128xf32> to vector<8x32xf32>
    %cst_465 = arith.constant 2.000000e-01 : f32
    %1212 = vector.broadcast %cst_465 : f32 to vector<8x32xf32>
    %1213 = arith.mulf %1212, %1211 : vector<8x32xf32>
    %cst_466 = arith.constant 5.000000e-01 : f32
    %1214 = vector.broadcast %cst_466 : f32 to vector<8x32xf32>
    %1215 = arith.addf %1213, %1214 : vector<8x32xf32>
    %cst_467 = arith.constant 0.000000e+00 : f32
    %cst_468 = arith.constant 1.000000e+00 : f32
    %1216 = vector.broadcast %cst_467 : f32 to vector<8x32xf32>
    %1217 = arith.maximumf %1216, %1215 : vector<8x32xf32>
    %1218 = vector.broadcast %cst_468 : f32 to vector<8x32xf32>
    %1219 = arith.minimumf %1218, %1217 : vector<8x32xf32>
    %1220 = vector.extract_strided_slice %1201 {offsets = [0, 64], sizes = [8, 32], strides = [1, 1]} : vector<8x128xf32> to vector<8x32xf32>
    %cst_469 = arith.constant 2.000000e-01 : f32
    %1221 = vector.broadcast %cst_469 : f32 to vector<8x32xf32>
    %1222 = arith.mulf %1221, %1220 : vector<8x32xf32>
    %cst_470 = arith.constant 5.000000e-01 : f32
    %1223 = vector.broadcast %cst_470 : f32 to vector<8x32xf32>
    %1224 = arith.addf %1222, %1223 : vector<8x32xf32>
    %cst_471 = arith.constant 0.000000e+00 : f32
    %cst_472 = arith.constant 1.000000e+00 : f32
    %1225 = vector.broadcast %cst_471 : f32 to vector<8x32xf32>
    %1226 = arith.maximumf %1225, %1224 : vector<8x32xf32>
    %1227 = vector.broadcast %cst_472 : f32 to vector<8x32xf32>
    %1228 = arith.minimumf %1227, %1226 : vector<8x32xf32>
    %1229 = vector.extract_strided_slice %1201 {offsets = [0, 96], sizes = [8, 32], strides = [1, 1]} : vector<8x128xf32> to vector<8x32xf32>
    %1230 = math.absf %1229 : vector<8x32xf32>
    %cst_473 = arith.constant 1.000000e+00 : f32
    %1231 = vector.broadcast %cst_473 : f32 to vector<8x32xf32>
    %1232 = arith.addf %1231, %1230 : vector<8x32xf32>
    %1233 = arith.divf %1229, %1232 : vector<8x32xf32>
    %1234 = arith.mulf %1219, %1183 : vector<8x32xf32>
    %1235 = arith.mulf %1210, %1233 : vector<8x32xf32>
    %1236 = arith.addf %1234, %1235 : vector<8x32xf32>
    %1237 = math.absf %1236 : vector<8x32xf32>
    %cst_474 = arith.constant 1.000000e+00 : f32
    %1238 = vector.broadcast %cst_474 : f32 to vector<8x32xf32>
    %1239 = arith.addf %1238, %1237 : vector<8x32xf32>
    %1240 = arith.divf %1236, %1239 : vector<8x32xf32>
    %1241 = arith.mulf %1228, %1240 : vector<8x32xf32>
    %1242 = arith.addf %1100, %1241 : vector<8x32xf32>
    %cst_475 = arith.constant 2.000000e-01 : f32
    %1243 = vector.broadcast %cst_475 : f32 to vector<8x32xf32>
    %1244 = arith.mulf %1243, %1242 : vector<8x32xf32>
    %cst_476 = arith.constant 5.000000e-01 : f32
    %1245 = vector.broadcast %cst_476 : f32 to vector<8x32xf32>
    %1246 = arith.addf %1244, %1245 : vector<8x32xf32>
    %cst_477 = arith.constant 0.000000e+00 : f32
    %cst_478 = arith.constant 1.000000e+00 : f32
    %1247 = vector.broadcast %cst_477 : f32 to vector<8x32xf32>
    %1248 = arith.maximumf %1247, %1246 : vector<8x32xf32>
    %1249 = vector.broadcast %cst_478 : f32 to vector<8x32xf32>
    %1250 = arith.minimumf %1249, %1248 : vector<8x32xf32>
    %c48_479 = arith.constant 48 : index
    %c0_480 = arith.constant 0 : index
    %1251 = vector.load %arg20[%c48_479, %c0_480] : memref<64x32xf32, #tpu.memory_space<vmem>>, vector<8x32xf32>
    tpu.vector_store %arg20[%c48_479, %c0_480], %1250 {strides = array<i32>} : memref<64x32xf32, #tpu.memory_space<vmem>>, vector<8x32xf32>,
    %1252 = vector.extract_strided_slice %795 {offsets = [40, 0], sizes = [8, 128], strides = [1, 1]} : vector<64x128xf32> to vector<8x128xf32>
    %cst_481 = arith.constant dense<0.000000e+00> : vector<8x128xf32>
    %1253 = tpu.matmul %1241, %797, %cst_481 {dimension_numbers = #tpu.dot_dimension_numbers<[1], [0], [0], [1], [0, 0, 1, 1], [], []>} : vector<8x32xf32>, vector<32x128xf32>, vector<8x128xf32> -> vector<8x128xf32>
    %1254 = arith.addf %1252, %1253 : vector<8x128xf32>
    %1255 = vector.extract_strided_slice %1254 {offsets = [0, 0], sizes = [8, 32], strides = [1, 1]} : vector<8x128xf32> to vector<8x32xf32>
    %cst_482 = arith.constant 2.000000e-01 : f32
    %1256 = vector.broadcast %cst_482 : f32 to vector<8x32xf32>
    %1257 = arith.mulf %1256, %1255 : vector<8x32xf32>
    %cst_483 = arith.constant 5.000000e-01 : f32
    %1258 = vector.broadcast %cst_483 : f32 to vector<8x32xf32>
    %1259 = arith.addf %1257, %1258 : vector<8x32xf32>
    %cst_484 = arith.constant 0.000000e+00 : f32
    %cst_485 = arith.constant 1.000000e+00 : f32
    %1260 = vector.broadcast %cst_484 : f32 to vector<8x32xf32>
    %1261 = arith.maximumf %1260, %1259 : vector<8x32xf32>
    %1262 = vector.broadcast %cst_485 : f32 to vector<8x32xf32>
    %1263 = arith.minimumf %1262, %1261 : vector<8x32xf32>
    %1264 = vector.extract_strided_slice %1254 {offsets = [0, 32], sizes = [8, 32], strides = [1, 1]} : vector<8x128xf32> to vector<8x32xf32>
    %cst_486 = arith.constant 2.000000e-01 : f32
    %1265 = vector.broadcast %cst_486 : f32 to vector<8x32xf32>
    %1266 = arith.mulf %1265, %1264 : vector<8x32xf32>
    %cst_487 = arith.constant 5.000000e-01 : f32
    %1267 = vector.broadcast %cst_487 : f32 to vector<8x32xf32>
    %1268 = arith.addf %1266, %1267 : vector<8x32xf32>
    %cst_488 = arith.constant 0.000000e+00 : f32
    %cst_489 = arith.constant 1.000000e+00 : f32
    %1269 = vector.broadcast %cst_488 : f32 to vector<8x32xf32>
    %1270 = arith.maximumf %1269, %1268 : vector<8x32xf32>
    %1271 = vector.broadcast %cst_489 : f32 to vector<8x32xf32>
    %1272 = arith.minimumf %1271, %1270 : vector<8x32xf32>
    %1273 = vector.extract_strided_slice %1254 {offsets = [0, 64], sizes = [8, 32], strides = [1, 1]} : vector<8x128xf32> to vector<8x32xf32>
    %cst_490 = arith.constant 2.000000e-01 : f32
    %1274 = vector.broadcast %cst_490 : f32 to vector<8x32xf32>
    %1275 = arith.mulf %1274, %1273 : vector<8x32xf32>
    %cst_491 = arith.constant 5.000000e-01 : f32
    %1276 = vector.broadcast %cst_491 : f32 to vector<8x32xf32>
    %1277 = arith.addf %1275, %1276 : vector<8x32xf32>
    %cst_492 = arith.constant 0.000000e+00 : f32
    %cst_493 = arith.constant 1.000000e+00 : f32
    %1278 = vector.broadcast %cst_492 : f32 to vector<8x32xf32>
    %1279 = arith.maximumf %1278, %1277 : vector<8x32xf32>
    %1280 = vector.broadcast %cst_493 : f32 to vector<8x32xf32>
    %1281 = arith.minimumf %1280, %1279 : vector<8x32xf32>
    %1282 = vector.extract_strided_slice %1254 {offsets = [0, 96], sizes = [8, 32], strides = [1, 1]} : vector<8x128xf32> to vector<8x32xf32>
    %1283 = math.absf %1282 : vector<8x32xf32>
    %cst_494 = arith.constant 1.000000e+00 : f32
    %1284 = vector.broadcast %cst_494 : f32 to vector<8x32xf32>
    %1285 = arith.addf %1284, %1283 : vector<8x32xf32>
    %1286 = arith.divf %1282, %1285 : vector<8x32xf32>
    %1287 = arith.mulf %1272, %1236 : vector<8x32xf32>
    %1288 = arith.mulf %1263, %1286 : vector<8x32xf32>
    %1289 = arith.addf %1287, %1288 : vector<8x32xf32>
    %1290 = math.absf %1289 : vector<8x32xf32>
    %cst_495 = arith.constant 1.000000e+00 : f32
    %1291 = vector.broadcast %cst_495 : f32 to vector<8x32xf32>
    %1292 = arith.addf %1291, %1290 : vector<8x32xf32>
    %1293 = arith.divf %1289, %1292 : vector<8x32xf32>
    %1294 = arith.mulf %1281, %1293 : vector<8x32xf32>
    %1295 = arith.addf %1057, %1294 : vector<8x32xf32>
    %cst_496 = arith.constant 2.000000e-01 : f32
    %1296 = vector.broadcast %cst_496 : f32 to vector<8x32xf32>
    %1297 = arith.mulf %1296, %1295 : vector<8x32xf32>
    %cst_497 = arith.constant 5.000000e-01 : f32
    %1298 = vector.broadcast %cst_497 : f32 to vector<8x32xf32>
    %1299 = arith.addf %1297, %1298 : vector<8x32xf32>
    %cst_498 = arith.constant 0.000000e+00 : f32
    %cst_499 = arith.constant 1.000000e+00 : f32
    %1300 = vector.broadcast %cst_498 : f32 to vector<8x32xf32>
    %1301 = arith.maximumf %1300, %1299 : vector<8x32xf32>
    %1302 = vector.broadcast %cst_499 : f32 to vector<8x32xf32>
    %1303 = arith.minimumf %1302, %1301 : vector<8x32xf32>
    %c40_500 = arith.constant 40 : index
    %c0_501 = arith.constant 0 : index
    %1304 = vector.load %arg20[%c40_500, %c0_501] : memref<64x32xf32, #tpu.memory_space<vmem>>, vector<8x32xf32>
    tpu.vector_store %arg20[%c40_500, %c0_501], %1303 {strides = array<i32>} : memref<64x32xf32, #tpu.memory_space<vmem>>, vector<8x32xf32>,
    %1305 = vector.extract_strided_slice %795 {offsets = [32, 0], sizes = [8, 128], strides = [1, 1]} : vector<64x128xf32> to vector<8x128xf32>
    %cst_502 = arith.constant dense<0.000000e+00> : vector<8x128xf32>
    %1306 = tpu.matmul %1294, %797, %cst_502 {dimension_numbers = #tpu.dot_dimension_numbers<[1], [0], [0], [1], [0, 0, 1, 1], [], []>} : vector<8x32xf32>, vector<32x128xf32>, vector<8x128xf32> -> vector<8x128xf32>
    %1307 = arith.addf %1305, %1306 : vector<8x128xf32>
    %1308 = vector.extract_strided_slice %1307 {offsets = [0, 0], sizes = [8, 32], strides = [1, 1]} : vector<8x128xf32> to vector<8x32xf32>
    %cst_503 = arith.constant 2.000000e-01 : f32
    %1309 = vector.broadcast %cst_503 : f32 to vector<8x32xf32>
    %1310 = arith.mulf %1309, %1308 : vector<8x32xf32>
    %cst_504 = arith.constant 5.000000e-01 : f32
    %1311 = vector.broadcast %cst_504 : f32 to vector<8x32xf32>
    %1312 = arith.addf %1310, %1311 : vector<8x32xf32>
    %cst_505 = arith.constant 0.000000e+00 : f32
    %cst_506 = arith.constant 1.000000e+00 : f32
    %1313 = vector.broadcast %cst_505 : f32 to vector<8x32xf32>
    %1314 = arith.maximumf %1313, %1312 : vector<8x32xf32>
    %1315 = vector.broadcast %cst_506 : f32 to vector<8x32xf32>
    %1316 = arith.minimumf %1315, %1314 : vector<8x32xf32>
    %1317 = vector.extract_strided_slice %1307 {offsets = [0, 32], sizes = [8, 32], strides = [1, 1]} : vector<8x128xf32> to vector<8x32xf32>
    %cst_507 = arith.constant 2.000000e-01 : f32
    %1318 = vector.broadcast %cst_507 : f32 to vector<8x32xf32>
    %1319 = arith.mulf %1318, %1317 : vector<8x32xf32>
    %cst_508 = arith.constant 5.000000e-01 : f32
    %1320 = vector.broadcast %cst_508 : f32 to vector<8x32xf32>
    %1321 = arith.addf %1319, %1320 : vector<8x32xf32>
    %cst_509 = arith.constant 0.000000e+00 : f32
    %cst_510 = arith.constant 1.000000e+00 : f32
    %1322 = vector.broadcast %cst_509 : f32 to vector<8x32xf32>
    %1323 = arith.maximumf %1322, %1321 : vector<8x32xf32>
    %1324 = vector.broadcast %cst_510 : f32 to vector<8x32xf32>
    %1325 = arith.minimumf %1324, %1323 : vector<8x32xf32>
    %1326 = vector.extract_strided_slice %1307 {offsets = [0, 64], sizes = [8, 32], strides = [1, 1]} : vector<8x128xf32> to vector<8x32xf32>
    %cst_511 = arith.constant 2.000000e-01 : f32
    %1327 = vector.broadcast %cst_511 : f32 to vector<8x32xf32>
    %1328 = arith.mulf %1327, %1326 : vector<8x32xf32>
    %cst_512 = arith.constant 5.000000e-01 : f32
    %1329 = vector.broadcast %cst_512 : f32 to vector<8x32xf32>
    %1330 = arith.addf %1328, %1329 : vector<8x32xf32>
    %cst_513 = arith.constant 0.000000e+00 : f32
    %cst_514 = arith.constant 1.000000e+00 : f32
    %1331 = vector.broadcast %cst_513 : f32 to vector<8x32xf32>
    %1332 = arith.maximumf %1331, %1330 : vector<8x32xf32>
    %1333 = vector.broadcast %cst_514 : f32 to vector<8x32xf32>
    %1334 = arith.minimumf %1333, %1332 : vector<8x32xf32>
    %1335 = vector.extract_strided_slice %1307 {offsets = [0, 96], sizes = [8, 32], strides = [1, 1]} : vector<8x128xf32> to vector<8x32xf32>
    %1336 = math.absf %1335 : vector<8x32xf32>
    %cst_515 = arith.constant 1.000000e+00 : f32
    %1337 = vector.broadcast %cst_515 : f32 to vector<8x32xf32>
    %1338 = arith.addf %1337, %1336 : vector<8x32xf32>
    %1339 = arith.divf %1335, %1338 : vector<8x32xf32>
    %1340 = arith.mulf %1325, %1289 : vector<8x32xf32>
    %1341 = arith.mulf %1316, %1339 : vector<8x32xf32>
    %1342 = arith.addf %1340, %1341 : vector<8x32xf32>
    %1343 = math.absf %1342 : vector<8x32xf32>
    %cst_516 = arith.constant 1.000000e+00 : f32
    %1344 = vector.broadcast %cst_516 : f32 to vector<8x32xf32>
    %1345 = arith.addf %1344, %1343 : vector<8x32xf32>
    %1346 = arith.divf %1342, %1345 : vector<8x32xf32>
    %1347 = arith.mulf %1334, %1346 : vector<8x32xf32>
    %1348 = arith.addf %1014, %1347 : vector<8x32xf32>
    %cst_517 = arith.constant 2.000000e-01 : f32
    %1349 = vector.broadcast %cst_517 : f32 to vector<8x32xf32>
    %1350 = arith.mulf %1349, %1348 : vector<8x32xf32>
    %cst_518 = arith.constant 5.000000e-01 : f32
    %1351 = vector.broadcast %cst_518 : f32 to vector<8x32xf32>
    %1352 = arith.addf %1350, %1351 : vector<8x32xf32>
    %cst_519 = arith.constant 0.000000e+00 : f32
    %cst_520 = arith.constant 1.000000e+00 : f32
    %1353 = vector.broadcast %cst_519 : f32 to vector<8x32xf32>
    %1354 = arith.maximumf %1353, %1352 : vector<8x32xf32>
    %1355 = vector.broadcast %cst_520 : f32 to vector<8x32xf32>
    %1356 = arith.minimumf %1355, %1354 : vector<8x32xf32>
    %c32_521 = arith.constant 32 : index
    %c0_522 = arith.constant 0 : index
    %1357 = vector.load %arg20[%c32_521, %c0_522] : memref<64x32xf32, #tpu.memory_space<vmem>>, vector<8x32xf32>
    tpu.vector_store %arg20[%c32_521, %c0_522], %1356 {strides = array<i32>} : memref<64x32xf32, #tpu.memory_space<vmem>>, vector<8x32xf32>,
    %1358 = vector.extract_strided_slice %795 {offsets = [24, 0], sizes = [8, 128], strides = [1, 1]} : vector<64x128xf32> to vector<8x128xf32>
    %cst_523 = arith.constant dense<0.000000e+00> : vector<8x128xf32>
    %1359 = tpu.matmul %1347, %797, %cst_523 {dimension_numbers = #tpu.dot_dimension_numbers<[1], [0], [0], [1], [0, 0, 1, 1], [], []>} : vector<8x32xf32>, vector<32x128xf32>, vector<8x128xf32> -> vector<8x128xf32>
    %1360 = arith.addf %1358, %1359 : vector<8x128xf32>
    %1361 = vector.extract_strided_slice %1360 {offsets = [0, 0], sizes = [8, 32], strides = [1, 1]} : vector<8x128xf32> to vector<8x32xf32>
    %cst_524 = arith.constant 2.000000e-01 : f32
    %1362 = vector.broadcast %cst_524 : f32 to vector<8x32xf32>
    %1363 = arith.mulf %1362, %1361 : vector<8x32xf32>
    %cst_525 = arith.constant 5.000000e-01 : f32
    %1364 = vector.broadcast %cst_525 : f32 to vector<8x32xf32>
    %1365 = arith.addf %1363, %1364 : vector<8x32xf32>
    %cst_526 = arith.constant 0.000000e+00 : f32
    %cst_527 = arith.constant 1.000000e+00 : f32
    %1366 = vector.broadcast %cst_526 : f32 to vector<8x32xf32>
    %1367 = arith.maximumf %1366, %1365 : vector<8x32xf32>
    %1368 = vector.broadcast %cst_527 : f32 to vector<8x32xf32>
    %1369 = arith.minimumf %1368, %1367 : vector<8x32xf32>
    %1370 = vector.extract_strided_slice %1360 {offsets = [0, 32], sizes = [8, 32], strides = [1, 1]} : vector<8x128xf32> to vector<8x32xf32>
    %cst_528 = arith.constant 2.000000e-01 : f32
    %1371 = vector.broadcast %cst_528 : f32 to vector<8x32xf32>
    %1372 = arith.mulf %1371, %1370 : vector<8x32xf32>
    %cst_529 = arith.constant 5.000000e-01 : f32
    %1373 = vector.broadcast %cst_529 : f32 to vector<8x32xf32>
    %1374 = arith.addf %1372, %1373 : vector<8x32xf32>
    %cst_530 = arith.constant 0.000000e+00 : f32
    %cst_531 = arith.constant 1.000000e+00 : f32
    %1375 = vector.broadcast %cst_530 : f32 to vector<8x32xf32>
    %1376 = arith.maximumf %1375, %1374 : vector<8x32xf32>
    %1377 = vector.broadcast %cst_531 : f32 to vector<8x32xf32>
    %1378 = arith.minimumf %1377, %1376 : vector<8x32xf32>
    %1379 = vector.extract_strided_slice %1360 {offsets = [0, 64], sizes = [8, 32], strides = [1, 1]} : vector<8x128xf32> to vector<8x32xf32>
    %cst_532 = arith.constant 2.000000e-01 : f32
    %1380 = vector.broadcast %cst_532 : f32 to vector<8x32xf32>
    %1381 = arith.mulf %1380, %1379 : vector<8x32xf32>
    %cst_533 = arith.constant 5.000000e-01 : f32
    %1382 = vector.broadcast %cst_533 : f32 to vector<8x32xf32>
    %1383 = arith.addf %1381, %1382 : vector<8x32xf32>
    %cst_534 = arith.constant 0.000000e+00 : f32
    %cst_535 = arith.constant 1.000000e+00 : f32
    %1384 = vector.broadcast %cst_534 : f32 to vector<8x32xf32>
    %1385 = arith.maximumf %1384, %1383 : vector<8x32xf32>
    %1386 = vector.broadcast %cst_535 : f32 to vector<8x32xf32>
    %1387 = arith.minimumf %1386, %1385 : vector<8x32xf32>
    %1388 = vector.extract_strided_slice %1360 {offsets = [0, 96], sizes = [8, 32], strides = [1, 1]} : vector<8x128xf32> to vector<8x32xf32>
    %1389 = math.absf %1388 : vector<8x32xf32>
    %cst_536 = arith.constant 1.000000e+00 : f32
    %1390 = vector.broadcast %cst_536 : f32 to vector<8x32xf32>
    %1391 = arith.addf %1390, %1389 : vector<8x32xf32>
    %1392 = arith.divf %1388, %1391 : vector<8x32xf32>
    %1393 = arith.mulf %1378, %1342 : vector<8x32xf32>
    %1394 = arith.mulf %1369, %1392 : vector<8x32xf32>
    %1395 = arith.addf %1393, %1394 : vector<8x32xf32>
    %1396 = math.absf %1395 : vector<8x32xf32>
    %cst_537 = arith.constant 1.000000e+00 : f32
    %1397 = vector.broadcast %cst_537 : f32 to vector<8x32xf32>
    %1398 = arith.addf %1397, %1396 : vector<8x32xf32>
    %1399 = arith.divf %1395, %1398 : vector<8x32xf32>
    %1400 = arith.mulf %1387, %1399 : vector<8x32xf32>
    %1401 = arith.addf %971, %1400 : vector<8x32xf32>
    %cst_538 = arith.constant 2.000000e-01 : f32
    %1402 = vector.broadcast %cst_538 : f32 to vector<8x32xf32>
    %1403 = arith.mulf %1402, %1401 : vector<8x32xf32>
    %cst_539 = arith.constant 5.000000e-01 : f32
    %1404 = vector.broadcast %cst_539 : f32 to vector<8x32xf32>
    %1405 = arith.addf %1403, %1404 : vector<8x32xf32>
    %cst_540 = arith.constant 0.000000e+00 : f32
    %cst_541 = arith.constant 1.000000e+00 : f32
    %1406 = vector.broadcast %cst_540 : f32 to vector<8x32xf32>
    %1407 = arith.maximumf %1406, %1405 : vector<8x32xf32>
    %1408 = vector.broadcast %cst_541 : f32 to vector<8x32xf32>
    %1409 = arith.minimumf %1408, %1407 : vector<8x32xf32>
    %c24_542 = arith.constant 24 : index
    %c0_543 = arith.constant 0 : index
    %1410 = vector.load %arg20[%c24_542, %c0_543] : memref<64x32xf32, #tpu.memory_space<vmem>>, vector<8x32xf32>
    tpu.vector_store %arg20[%c24_542, %c0_543], %1409 {strides = array<i32>} : memref<64x32xf32, #tpu.memory_space<vmem>>, vector<8x32xf32>,
    %1411 = vector.extract_strided_slice %795 {offsets = [16, 0], sizes = [8, 128], strides = [1, 1]} : vector<64x128xf32> to vector<8x128xf32>
    %cst_544 = arith.constant dense<0.000000e+00> : vector<8x128xf32>
    %1412 = tpu.matmul %1400, %797, %cst_544 {dimension_numbers = #tpu.dot_dimension_numbers<[1], [0], [0], [1], [0, 0, 1, 1], [], []>} : vector<8x32xf32>, vector<32x128xf32>, vector<8x128xf32> -> vector<8x128xf32>
    %1413 = arith.addf %1411, %1412 : vector<8x128xf32>
    %1414 = vector.extract_strided_slice %1413 {offsets = [0, 0], sizes = [8, 32], strides = [1, 1]} : vector<8x128xf32> to vector<8x32xf32>
    %cst_545 = arith.constant 2.000000e-01 : f32
    %1415 = vector.broadcast %cst_545 : f32 to vector<8x32xf32>
    %1416 = arith.mulf %1415, %1414 : vector<8x32xf32>
    %cst_546 = arith.constant 5.000000e-01 : f32
    %1417 = vector.broadcast %cst_546 : f32 to vector<8x32xf32>
    %1418 = arith.addf %1416, %1417 : vector<8x32xf32>
    %cst_547 = arith.constant 0.000000e+00 : f32
    %cst_548 = arith.constant 1.000000e+00 : f32
    %1419 = vector.broadcast %cst_547 : f32 to vector<8x32xf32>
    %1420 = arith.maximumf %1419, %1418 : vector<8x32xf32>
    %1421 = vector.broadcast %cst_548 : f32 to vector<8x32xf32>
    %1422 = arith.minimumf %1421, %1420 : vector<8x32xf32>
    %1423 = vector.extract_strided_slice %1413 {offsets = [0, 32], sizes = [8, 32], strides = [1, 1]} : vector<8x128xf32> to vector<8x32xf32>
    %cst_549 = arith.constant 2.000000e-01 : f32
    %1424 = vector.broadcast %cst_549 : f32 to vector<8x32xf32>
    %1425 = arith.mulf %1424, %1423 : vector<8x32xf32>
    %cst_550 = arith.constant 5.000000e-01 : f32
    %1426 = vector.broadcast %cst_550 : f32 to vector<8x32xf32>
    %1427 = arith.addf %1425, %1426 : vector<8x32xf32>
    %cst_551 = arith.constant 0.000000e+00 : f32
    %cst_552 = arith.constant 1.000000e+00 : f32
    %1428 = vector.broadcast %cst_551 : f32 to vector<8x32xf32>
    %1429 = arith.maximumf %1428, %1427 : vector<8x32xf32>
    %1430 = vector.broadcast %cst_552 : f32 to vector<8x32xf32>
    %1431 = arith.minimumf %1430, %1429 : vector<8x32xf32>
    %1432 = vector.extract_strided_slice %1413 {offsets = [0, 64], sizes = [8, 32], strides = [1, 1]} : vector<8x128xf32> to vector<8x32xf32>
    %cst_553 = arith.constant 2.000000e-01 : f32
    %1433 = vector.broadcast %cst_553 : f32 to vector<8x32xf32>
    %1434 = arith.mulf %1433, %1432 : vector<8x32xf32>
    %cst_554 = arith.constant 5.000000e-01 : f32
    %1435 = vector.broadcast %cst_554 : f32 to vector<8x32xf32>
    %1436 = arith.addf %1434, %1435 : vector<8x32xf32>
    %cst_555 = arith.constant 0.000000e+00 : f32
    %cst_556 = arith.constant 1.000000e+00 : f32
    %1437 = vector.broadcast %cst_555 : f32 to vector<8x32xf32>
    %1438 = arith.maximumf %1437, %1436 : vector<8x32xf32>
    %1439 = vector.broadcast %cst_556 : f32 to vector<8x32xf32>
    %1440 = arith.minimumf %1439, %1438 : vector<8x32xf32>
    %1441 = vector.extract_strided_slice %1413 {offsets = [0, 96], sizes = [8, 32], strides = [1, 1]} : vector<8x128xf32> to vector<8x32xf32>
    %1442 = math.absf %1441 : vector<8x32xf32>
    %cst_557 = arith.constant 1.000000e+00 : f32
    %1443 = vector.broadcast %cst_557 : f32 to vector<8x32xf32>
    %1444 = arith.addf %1443, %1442 : vector<8x32xf32>
    %1445 = arith.divf %1441, %1444 : vector<8x32xf32>
    %1446 = arith.mulf %1431, %1395 : vector<8x32xf32>
    %1447 = arith.mulf %1422, %1445 : vector<8x32xf32>
    %1448 = arith.addf %1446, %1447 : vector<8x32xf32>
    %1449 = math.absf %1448 : vector<8x32xf32>
    %cst_558 = arith.constant 1.000000e+00 : f32
    %1450 = vector.broadcast %cst_558 : f32 to vector<8x32xf32>
    %1451 = arith.addf %1450, %1449 : vector<8x32xf32>
    %1452 = arith.divf %1448, %1451 : vector<8x32xf32>
    %1453 = arith.mulf %1440, %1452 : vector<8x32xf32>
    %1454 = arith.addf %928, %1453 : vector<8x32xf32>
    %cst_559 = arith.constant 2.000000e-01 : f32
    %1455 = vector.broadcast %cst_559 : f32 to vector<8x32xf32>
    %1456 = arith.mulf %1455, %1454 : vector<8x32xf32>
    %cst_560 = arith.constant 5.000000e-01 : f32
    %1457 = vector.broadcast %cst_560 : f32 to vector<8x32xf32>
    %1458 = arith.addf %1456, %1457 : vector<8x32xf32>
    %cst_561 = arith.constant 0.000000e+00 : f32
    %cst_562 = arith.constant 1.000000e+00 : f32
    %1459 = vector.broadcast %cst_561 : f32 to vector<8x32xf32>
    %1460 = arith.maximumf %1459, %1458 : vector<8x32xf32>
    %1461 = vector.broadcast %cst_562 : f32 to vector<8x32xf32>
    %1462 = arith.minimumf %1461, %1460 : vector<8x32xf32>
    %c16_563 = arith.constant 16 : index
    %c0_564 = arith.constant 0 : index
    %1463 = vector.load %arg20[%c16_563, %c0_564] : memref<64x32xf32, #tpu.memory_space<vmem>>, vector<8x32xf32>
    tpu.vector_store %arg20[%c16_563, %c0_564], %1462 {strides = array<i32>} : memref<64x32xf32, #tpu.memory_space<vmem>>, vector<8x32xf32>,
    %1464 = vector.extract_strided_slice %795 {offsets = [8, 0], sizes = [8, 128], strides = [1, 1]} : vector<64x128xf32> to vector<8x128xf32>
    %cst_565 = arith.constant dense<0.000000e+00> : vector<8x128xf32>
    %1465 = tpu.matmul %1453, %797, %cst_565 {dimension_numbers = #tpu.dot_dimension_numbers<[1], [0], [0], [1], [0, 0, 1, 1], [], []>} : vector<8x32xf32>, vector<32x128xf32>, vector<8x128xf32> -> vector<8x128xf32>
    %1466 = arith.addf %1464, %1465 : vector<8x128xf32>
    %1467 = vector.extract_strided_slice %1466 {offsets = [0, 0], sizes = [8, 32], strides = [1, 1]} : vector<8x128xf32> to vector<8x32xf32>
    %cst_566 = arith.constant 2.000000e-01 : f32
    %1468 = vector.broadcast %cst_566 : f32 to vector<8x32xf32>
    %1469 = arith.mulf %1468, %1467 : vector<8x32xf32>
    %cst_567 = arith.constant 5.000000e-01 : f32
    %1470 = vector.broadcast %cst_567 : f32 to vector<8x32xf32>
    %1471 = arith.addf %1469, %1470 : vector<8x32xf32>
    %cst_568 = arith.constant 0.000000e+00 : f32
    %cst_569 = arith.constant 1.000000e+00 : f32
    %1472 = vector.broadcast %cst_568 : f32 to vector<8x32xf32>
    %1473 = arith.maximumf %1472, %1471 : vector<8x32xf32>
    %1474 = vector.broadcast %cst_569 : f32 to vector<8x32xf32>
    %1475 = arith.minimumf %1474, %1473 : vector<8x32xf32>
    %1476 = vector.extract_strided_slice %1466 {offsets = [0, 32], sizes = [8, 32], strides = [1, 1]} : vector<8x128xf32> to vector<8x32xf32>
    %cst_570 = arith.constant 2.000000e-01 : f32
    %1477 = vector.broadcast %cst_570 : f32 to vector<8x32xf32>
    %1478 = arith.mulf %1477, %1476 : vector<8x32xf32>
    %cst_571 = arith.constant 5.000000e-01 : f32
    %1479 = vector.broadcast %cst_571 : f32 to vector<8x32xf32>
    %1480 = arith.addf %1478, %1479 : vector<8x32xf32>
    %cst_572 = arith.constant 0.000000e+00 : f32
    %cst_573 = arith.constant 1.000000e+00 : f32
    %1481 = vector.broadcast %cst_572 : f32 to vector<8x32xf32>
    %1482 = arith.maximumf %1481, %1480 : vector<8x32xf32>
    %1483 = vector.broadcast %cst_573 : f32 to vector<8x32xf32>
    %1484 = arith.minimumf %1483, %1482 : vector<8x32xf32>
    %1485 = vector.extract_strided_slice %1466 {offsets = [0, 64], sizes = [8, 32], strides = [1, 1]} : vector<8x128xf32> to vector<8x32xf32>
    %cst_574 = arith.constant 2.000000e-01 : f32
    %1486 = vector.broadcast %cst_574 : f32 to vector<8x32xf32>
    %1487 = arith.mulf %1486, %1485 : vector<8x32xf32>
    %cst_575 = arith.constant 5.000000e-01 : f32
    %1488 = vector.broadcast %cst_575 : f32 to vector<8x32xf32>
    %1489 = arith.addf %1487, %1488 : vector<8x32xf32>
    %cst_576 = arith.constant 0.000000e+00 : f32
    %cst_577 = arith.constant 1.000000e+00 : f32
    %1490 = vector.broadcast %cst_576 : f32 to vector<8x32xf32>
    %1491 = arith.maximumf %1490, %1489 : vector<8x32xf32>
    %1492 = vector.broadcast %cst_577 : f32 to vector<8x32xf32>
    %1493 = arith.minimumf %1492, %1491 : vector<8x32xf32>
    %1494 = vector.extract_strided_slice %1466 {offsets = [0, 96], sizes = [8, 32], strides = [1, 1]} : vector<8x128xf32> to vector<8x32xf32>
    %1495 = math.absf %1494 : vector<8x32xf32>
    %cst_578 = arith.constant 1.000000e+00 : f32
    %1496 = vector.broadcast %cst_578 : f32 to vector<8x32xf32>
    %1497 = arith.addf %1496, %1495 : vector<8x32xf32>
    %1498 = arith.divf %1494, %1497 : vector<8x32xf32>
    %1499 = arith.mulf %1484, %1448 : vector<8x32xf32>
    %1500 = arith.mulf %1475, %1498 : vector<8x32xf32>
    %1501 = arith.addf %1499, %1500 : vector<8x32xf32>
    %1502 = math.absf %1501 : vector<8x32xf32>
    %cst_579 = arith.constant 1.000000e+00 : f32
    %1503 = vector.broadcast %cst_579 : f32 to vector<8x32xf32>
    %1504 = arith.addf %1503, %1502 : vector<8x32xf32>
    %1505 = arith.divf %1501, %1504 : vector<8x32xf32>
    %1506 = arith.mulf %1493, %1505 : vector<8x32xf32>
    %1507 = arith.addf %885, %1506 : vector<8x32xf32>
    %cst_580 = arith.constant 2.000000e-01 : f32
    %1508 = vector.broadcast %cst_580 : f32 to vector<8x32xf32>
    %1509 = arith.mulf %1508, %1507 : vector<8x32xf32>
    %cst_581 = arith.constant 5.000000e-01 : f32
    %1510 = vector.broadcast %cst_581 : f32 to vector<8x32xf32>
    %1511 = arith.addf %1509, %1510 : vector<8x32xf32>
    %cst_582 = arith.constant 0.000000e+00 : f32
    %cst_583 = arith.constant 1.000000e+00 : f32
    %1512 = vector.broadcast %cst_582 : f32 to vector<8x32xf32>
    %1513 = arith.maximumf %1512, %1511 : vector<8x32xf32>
    %1514 = vector.broadcast %cst_583 : f32 to vector<8x32xf32>
    %1515 = arith.minimumf %1514, %1513 : vector<8x32xf32>
    %c8_584 = arith.constant 8 : index
    %c0_585 = arith.constant 0 : index
    %1516 = vector.load %arg20[%c8_584, %c0_585] : memref<64x32xf32, #tpu.memory_space<vmem>>, vector<8x32xf32>
    tpu.vector_store %arg20[%c8_584, %c0_585], %1515 {strides = array<i32>} : memref<64x32xf32, #tpu.memory_space<vmem>>, vector<8x32xf32>,
    %1517 = vector.extract_strided_slice %795 {offsets = [0, 0], sizes = [8, 128], strides = [1, 1]} : vector<64x128xf32> to vector<8x128xf32>
    %cst_586 = arith.constant dense<0.000000e+00> : vector<8x128xf32>
    %1518 = tpu.matmul %1506, %797, %cst_586 {dimension_numbers = #tpu.dot_dimension_numbers<[1], [0], [0], [1], [0, 0, 1, 1], [], []>} : vector<8x32xf32>, vector<32x128xf32>, vector<8x128xf32> -> vector<8x128xf32>
    %1519 = arith.addf %1517, %1518 : vector<8x128xf32>
    %1520 = vector.extract_strided_slice %1519 {offsets = [0, 0], sizes = [8, 32], strides = [1, 1]} : vector<8x128xf32> to vector<8x32xf32>
    %cst_587 = arith.constant 2.000000e-01 : f32
    %1521 = vector.broadcast %cst_587 : f32 to vector<8x32xf32>
    %1522 = arith.mulf %1521, %1520 : vector<8x32xf32>
    %cst_588 = arith.constant 5.000000e-01 : f32
    %1523 = vector.broadcast %cst_588 : f32 to vector<8x32xf32>
    %1524 = arith.addf %1522, %1523 : vector<8x32xf32>
    %cst_589 = arith.constant 0.000000e+00 : f32
    %cst_590 = arith.constant 1.000000e+00 : f32
    %1525 = vector.broadcast %cst_589 : f32 to vector<8x32xf32>
    %1526 = arith.maximumf %1525, %1524 : vector<8x32xf32>
    %1527 = vector.broadcast %cst_590 : f32 to vector<8x32xf32>
    %1528 = arith.minimumf %1527, %1526 : vector<8x32xf32>
    %1529 = vector.extract_strided_slice %1519 {offsets = [0, 32], sizes = [8, 32], strides = [1, 1]} : vector<8x128xf32> to vector<8x32xf32>
    %cst_591 = arith.constant 2.000000e-01 : f32
    %1530 = vector.broadcast %cst_591 : f32 to vector<8x32xf32>
    %1531 = arith.mulf %1530, %1529 : vector<8x32xf32>
    %cst_592 = arith.constant 5.000000e-01 : f32
    %1532 = vector.broadcast %cst_592 : f32 to vector<8x32xf32>
    %1533 = arith.addf %1531, %1532 : vector<8x32xf32>
    %cst_593 = arith.constant 0.000000e+00 : f32
    %cst_594 = arith.constant 1.000000e+00 : f32
    %1534 = vector.broadcast %cst_593 : f32 to vector<8x32xf32>
    %1535 = arith.maximumf %1534, %1533 : vector<8x32xf32>
    %1536 = vector.broadcast %cst_594 : f32 to vector<8x32xf32>
    %1537 = arith.minimumf %1536, %1535 : vector<8x32xf32>
    %1538 = vector.extract_strided_slice %1519 {offsets = [0, 64], sizes = [8, 32], strides = [1, 1]} : vector<8x128xf32> to vector<8x32xf32>
    %cst_595 = arith.constant 2.000000e-01 : f32
    %1539 = vector.broadcast %cst_595 : f32 to vector<8x32xf32>
    %1540 = arith.mulf %1539, %1538 : vector<8x32xf32>
    %cst_596 = arith.constant 5.000000e-01 : f32
    %1541 = vector.broadcast %cst_596 : f32 to vector<8x32xf32>
    %1542 = arith.addf %1540, %1541 : vector<8x32xf32>
    %cst_597 = arith.constant 0.000000e+00 : f32
    %cst_598 = arith.constant 1.000000e+00 : f32
    %1543 = vector.broadcast %cst_597 : f32 to vector<8x32xf32>
    %1544 = arith.maximumf %1543, %1542 : vector<8x32xf32>
    %1545 = vector.broadcast %cst_598 : f32 to vector<8x32xf32>
    %1546 = arith.minimumf %1545, %1544 : vector<8x32xf32>
    %1547 = vector.extract_strided_slice %1519 {offsets = [0, 96], sizes = [8, 32], strides = [1, 1]} : vector<8x128xf32> to vector<8x32xf32>
    %1548 = math.absf %1547 : vector<8x32xf32>
    %cst_599 = arith.constant 1.000000e+00 : f32
    %1549 = vector.broadcast %cst_599 : f32 to vector<8x32xf32>
    %1550 = arith.addf %1549, %1548 : vector<8x32xf32>
    %1551 = arith.divf %1547, %1550 : vector<8x32xf32>
    %1552 = arith.mulf %1537, %1501 : vector<8x32xf32>
    %1553 = arith.mulf %1528, %1551 : vector<8x32xf32>
    %1554 = arith.addf %1552, %1553 : vector<8x32xf32>
    %1555 = math.absf %1554 : vector<8x32xf32>
    %cst_600 = arith.constant 1.000000e+00 : f32
    %1556 = vector.broadcast %cst_600 : f32 to vector<8x32xf32>
    %1557 = arith.addf %1556, %1555 : vector<8x32xf32>
    %1558 = arith.divf %1554, %1557 : vector<8x32xf32>
    %1559 = arith.mulf %1546, %1558 : vector<8x32xf32>
    %1560 = arith.addf %842, %1559 : vector<8x32xf32>
    %cst_601 = arith.constant 2.000000e-01 : f32
    %1561 = vector.broadcast %cst_601 : f32 to vector<8x32xf32>
    %1562 = arith.mulf %1561, %1560 : vector<8x32xf32>
    %cst_602 = arith.constant 5.000000e-01 : f32
    %1563 = vector.broadcast %cst_602 : f32 to vector<8x32xf32>
    %1564 = arith.addf %1562, %1563 : vector<8x32xf32>
    %cst_603 = arith.constant 0.000000e+00 : f32
    %cst_604 = arith.constant 1.000000e+00 : f32
    %1565 = vector.broadcast %cst_603 : f32 to vector<8x32xf32>
    %1566 = arith.maximumf %1565, %1564 : vector<8x32xf32>
    %1567 = vector.broadcast %cst_604 : f32 to vector<8x32xf32>
    %1568 = arith.minimumf %1567, %1566 : vector<8x32xf32>
    %c0_605 = arith.constant 0 : index
    %c0_606 = arith.constant 0 : index
    %1569 = vector.load %arg20[%c0_605, %c0_606] : memref<64x32xf32, #tpu.memory_space<vmem>>, vector<8x32xf32>
    tpu.vector_store %arg20[%c0_605, %c0_606], %1568 {strides = array<i32>} : memref<64x32xf32, #tpu.memory_space<vmem>>, vector<8x32xf32>,
    %c0_607 = arith.constant 0 : index
    %c0_608 = arith.constant 0 : index
    %1570 = vector.load %arg20[%c0_607, %c0_608] : memref<64x32xf32, #tpu.memory_space<vmem>>, vector<64x32xf32>
    %c0_609 = arith.constant 0 : index
    %c0_610 = arith.constant 0 : index
    %1571 = vector.load %arg13[%c0_609, %c0_610] : memref<32x128xf32, #tpu.memory_space<vmem>>, vector<32x128xf32>
    %cst_611 = arith.constant dense<0.000000e+00> : vector<64x128xf32>
    %1572 = tpu.matmul %1570, %1571, %cst_611 {dimension_numbers = #tpu.dot_dimension_numbers<[1], [0], [0], [1], [0, 0, 1, 1], [], []>} : vector<64x32xf32>, vector<32x128xf32>, vector<64x128xf32> -> vector<64x128xf32>
    %c0_612 = arith.constant 0 : index
    %c0_613 = arith.constant 0 : index
    %1573 = vector.load %arg15[%c0_612, %c0_613] : memref<1x128xf32, #tpu.memory_space<vmem>>, vector<1x128xf32>
    %1574 = vector.broadcast %1573 : vector<1x128xf32> to vector<64x128xf32>
    %1575 = arith.addf %1572, %1574 : vector<64x128xf32>
    %c0_614 = arith.constant 0 : index
    %c0_615 = arith.constant 0 : index
    %1576 = vector.load %arg14[%c0_614, %c0_615] : memref<32x128xf32, #tpu.memory_space<vmem>>, vector<32x128xf32>
    %cst_616 = arith.constant 0.000000e+00 : f32
    %1577 = vector.broadcast %cst_616 : f32 to vector<8x32xf32>
    %cst_617 = arith.constant 0.000000e+00 : f32
    %1578 = vector.broadcast %cst_617 : f32 to vector<8x32xf32>
    %1579 = vector.extract_strided_slice %1575 {offsets = [0, 0], sizes = [8, 128], strides = [1, 1]} : vector<64x128xf32> to vector<8x128xf32>
    %cst_618 = arith.constant dense<0.000000e+00> : vector<8x128xf32>
    %1580 = tpu.matmul %1577, %1576, %cst_618 {dimension_numbers = #tpu.dot_dimension_numbers<[1], [0], [0], [1], [0, 0, 1, 1], [], []>} : vector<8x32xf32>, vector<32x128xf32>, vector<8x128xf32> -> vector<8x128xf32>
    %1581 = arith.addf %1579, %1580 : vector<8x128xf32>
    %1582 = vector.extract_strided_slice %1581 {offsets = [0, 0], sizes = [8, 32], strides = [1, 1]} : vector<8x128xf32> to vector<8x32xf32>
    %cst_619 = arith.constant 2.000000e-01 : f32
    %1583 = vector.broadcast %cst_619 : f32 to vector<8x32xf32>
    %1584 = arith.mulf %1583, %1582 : vector<8x32xf32>
    %cst_620 = arith.constant 5.000000e-01 : f32
    %1585 = vector.broadcast %cst_620 : f32 to vector<8x32xf32>
    %1586 = arith.addf %1584, %1585 : vector<8x32xf32>
    %cst_621 = arith.constant 0.000000e+00 : f32
    %cst_622 = arith.constant 1.000000e+00 : f32
    %1587 = vector.broadcast %cst_621 : f32 to vector<8x32xf32>
    %1588 = arith.maximumf %1587, %1586 : vector<8x32xf32>
    %1589 = vector.broadcast %cst_622 : f32 to vector<8x32xf32>
    %1590 = arith.minimumf %1589, %1588 : vector<8x32xf32>
    %1591 = vector.extract_strided_slice %1581 {offsets = [0, 32], sizes = [8, 32], strides = [1, 1]} : vector<8x128xf32> to vector<8x32xf32>
    %cst_623 = arith.constant 2.000000e-01 : f32
    %1592 = vector.broadcast %cst_623 : f32 to vector<8x32xf32>
    %1593 = arith.mulf %1592, %1591 : vector<8x32xf32>
    %cst_624 = arith.constant 5.000000e-01 : f32
    %1594 = vector.broadcast %cst_624 : f32 to vector<8x32xf32>
    %1595 = arith.addf %1593, %1594 : vector<8x32xf32>
    %cst_625 = arith.constant 0.000000e+00 : f32
    %cst_626 = arith.constant 1.000000e+00 : f32
    %1596 = vector.broadcast %cst_625 : f32 to vector<8x32xf32>
    %1597 = arith.maximumf %1596, %1595 : vector<8x32xf32>
    %1598 = vector.broadcast %cst_626 : f32 to vector<8x32xf32>
    %1599 = arith.minimumf %1598, %1597 : vector<8x32xf32>
    %1600 = vector.extract_strided_slice %1581 {offsets = [0, 64], sizes = [8, 32], strides = [1, 1]} : vector<8x128xf32> to vector<8x32xf32>
    %cst_627 = arith.constant 2.000000e-01 : f32
    %1601 = vector.broadcast %cst_627 : f32 to vector<8x32xf32>
    %1602 = arith.mulf %1601, %1600 : vector<8x32xf32>
    %cst_628 = arith.constant 5.000000e-01 : f32
    %1603 = vector.broadcast %cst_628 : f32 to vector<8x32xf32>
    %1604 = arith.addf %1602, %1603 : vector<8x32xf32>
    %cst_629 = arith.constant 0.000000e+00 : f32
    %cst_630 = arith.constant 1.000000e+00 : f32
    %1605 = vector.broadcast %cst_629 : f32 to vector<8x32xf32>
    %1606 = arith.maximumf %1605, %1604 : vector<8x32xf32>
    %1607 = vector.broadcast %cst_630 : f32 to vector<8x32xf32>
    %1608 = arith.minimumf %1607, %1606 : vector<8x32xf32>
    %1609 = vector.extract_strided_slice %1581 {offsets = [0, 96], sizes = [8, 32], strides = [1, 1]} : vector<8x128xf32> to vector<8x32xf32>
    %1610 = math.absf %1609 : vector<8x32xf32>
    %cst_631 = arith.constant 1.000000e+00 : f32
    %1611 = vector.broadcast %cst_631 : f32 to vector<8x32xf32>
    %1612 = arith.addf %1611, %1610 : vector<8x32xf32>
    %1613 = arith.divf %1609, %1612 : vector<8x32xf32>
    %1614 = arith.mulf %1599, %1578 : vector<8x32xf32>
    %1615 = arith.mulf %1590, %1613 : vector<8x32xf32>
    %1616 = arith.addf %1614, %1615 : vector<8x32xf32>
    %1617 = math.absf %1616 : vector<8x32xf32>
    %cst_632 = arith.constant 1.000000e+00 : f32
    %1618 = vector.broadcast %cst_632 : f32 to vector<8x32xf32>
    %1619 = arith.addf %1618, %1617 : vector<8x32xf32>
    %1620 = arith.divf %1616, %1619 : vector<8x32xf32>
    %1621 = arith.mulf %1608, %1620 : vector<8x32xf32>
    %c0_633 = arith.constant 0 : index
    %c0_634 = arith.constant 0 : index
    %1622 = vector.load %arg19[%c0_633, %c0_634] : memref<64x32xf32, #tpu.memory_space<vmem>>, vector<8x32xf32>
    tpu.vector_store %arg19[%c0_633, %c0_634], %1621 {strides = array<i32>} : memref<64x32xf32, #tpu.memory_space<vmem>>, vector<8x32xf32>,
    %1623 = vector.extract_strided_slice %1575 {offsets = [8, 0], sizes = [8, 128], strides = [1, 1]} : vector<64x128xf32> to vector<8x128xf32>
    %cst_635 = arith.constant dense<0.000000e+00> : vector<8x128xf32>
    %1624 = tpu.matmul %1621, %1576, %cst_635 {dimension_numbers = #tpu.dot_dimension_numbers<[1], [0], [0], [1], [0, 0, 1, 1], [], []>} : vector<8x32xf32>, vector<32x128xf32>, vector<8x128xf32> -> vector<8x128xf32>
    %1625 = arith.addf %1623, %1624 : vector<8x128xf32>
    %1626 = vector.extract_strided_slice %1625 {offsets = [0, 0], sizes = [8, 32], strides = [1, 1]} : vector<8x128xf32> to vector<8x32xf32>
    %cst_636 = arith.constant 2.000000e-01 : f32
    %1627 = vector.broadcast %cst_636 : f32 to vector<8x32xf32>
    %1628 = arith.mulf %1627, %1626 : vector<8x32xf32>
    %cst_637 = arith.constant 5.000000e-01 : f32
    %1629 = vector.broadcast %cst_637 : f32 to vector<8x32xf32>
    %1630 = arith.addf %1628, %1629 : vector<8x32xf32>
    %cst_638 = arith.constant 0.000000e+00 : f32
    %cst_639 = arith.constant 1.000000e+00 : f32
    %1631 = vector.broadcast %cst_638 : f32 to vector<8x32xf32>
    %1632 = arith.maximumf %1631, %1630 : vector<8x32xf32>
    %1633 = vector.broadcast %cst_639 : f32 to vector<8x32xf32>
    %1634 = arith.minimumf %1633, %1632 : vector<8x32xf32>
    %1635 = vector.extract_strided_slice %1625 {offsets = [0, 32], sizes = [8, 32], strides = [1, 1]} : vector<8x128xf32> to vector<8x32xf32>
    %cst_640 = arith.constant 2.000000e-01 : f32
    %1636 = vector.broadcast %cst_640 : f32 to vector<8x32xf32>
    %1637 = arith.mulf %1636, %1635 : vector<8x32xf32>
    %cst_641 = arith.constant 5.000000e-01 : f32
    %1638 = vector.broadcast %cst_641 : f32 to vector<8x32xf32>
    %1639 = arith.addf %1637, %1638 : vector<8x32xf32>
    %cst_642 = arith.constant 0.000000e+00 : f32
    %cst_643 = arith.constant 1.000000e+00 : f32
    %1640 = vector.broadcast %cst_642 : f32 to vector<8x32xf32>
    %1641 = arith.maximumf %1640, %1639 : vector<8x32xf32>
    %1642 = vector.broadcast %cst_643 : f32 to vector<8x32xf32>
    %1643 = arith.minimumf %1642, %1641 : vector<8x32xf32>
    %1644 = vector.extract_strided_slice %1625 {offsets = [0, 64], sizes = [8, 32], strides = [1, 1]} : vector<8x128xf32> to vector<8x32xf32>
    %cst_644 = arith.constant 2.000000e-01 : f32
    %1645 = vector.broadcast %cst_644 : f32 to vector<8x32xf32>
    %1646 = arith.mulf %1645, %1644 : vector<8x32xf32>
    %cst_645 = arith.constant 5.000000e-01 : f32
    %1647 = vector.broadcast %cst_645 : f32 to vector<8x32xf32>
    %1648 = arith.addf %1646, %1647 : vector<8x32xf32>
    %cst_646 = arith.constant 0.000000e+00 : f32
    %cst_647 = arith.constant 1.000000e+00 : f32
    %1649 = vector.broadcast %cst_646 : f32 to vector<8x32xf32>
    %1650 = arith.maximumf %1649, %1648 : vector<8x32xf32>
    %1651 = vector.broadcast %cst_647 : f32 to vector<8x32xf32>
    %1652 = arith.minimumf %1651, %1650 : vector<8x32xf32>
    %1653 = vector.extract_strided_slice %1625 {offsets = [0, 96], sizes = [8, 32], strides = [1, 1]} : vector<8x128xf32> to vector<8x32xf32>
    %1654 = math.absf %1653 : vector<8x32xf32>
    %cst_648 = arith.constant 1.000000e+00 : f32
    %1655 = vector.broadcast %cst_648 : f32 to vector<8x32xf32>
    %1656 = arith.addf %1655, %1654 : vector<8x32xf32>
    %1657 = arith.divf %1653, %1656 : vector<8x32xf32>
    %1658 = arith.mulf %1643, %1616 : vector<8x32xf32>
    %1659 = arith.mulf %1634, %1657 : vector<8x32xf32>
    %1660 = arith.addf %1658, %1659 : vector<8x32xf32>
    %1661 = math.absf %1660 : vector<8x32xf32>
    %cst_649 = arith.constant 1.000000e+00 : f32
    %1662 = vector.broadcast %cst_649 : f32 to vector<8x32xf32>
    %1663 = arith.addf %1662, %1661 : vector<8x32xf32>
    %1664 = arith.divf %1660, %1663 : vector<8x32xf32>
    %1665 = arith.mulf %1652, %1664 : vector<8x32xf32>
    %c8_650 = arith.constant 8 : index
    %c0_651 = arith.constant 0 : index
    %1666 = vector.load %arg19[%c8_650, %c0_651] : memref<64x32xf32, #tpu.memory_space<vmem>>, vector<8x32xf32>
    tpu.vector_store %arg19[%c8_650, %c0_651], %1665 {strides = array<i32>} : memref<64x32xf32, #tpu.memory_space<vmem>>, vector<8x32xf32>,
    %1667 = vector.extract_strided_slice %1575 {offsets = [16, 0], sizes = [8, 128], strides = [1, 1]} : vector<64x128xf32> to vector<8x128xf32>
    %cst_652 = arith.constant dense<0.000000e+00> : vector<8x128xf32>
    %1668 = tpu.matmul %1665, %1576, %cst_652 {dimension_numbers = #tpu.dot_dimension_numbers<[1], [0], [0], [1], [0, 0, 1, 1], [], []>} : vector<8x32xf32>, vector<32x128xf32>, vector<8x128xf32> -> vector<8x128xf32>
    %1669 = arith.addf %1667, %1668 : vector<8x128xf32>
    %1670 = vector.extract_strided_slice %1669 {offsets = [0, 0], sizes = [8, 32], strides = [1, 1]} : vector<8x128xf32> to vector<8x32xf32>
    %cst_653 = arith.constant 2.000000e-01 : f32
    %1671 = vector.broadcast %cst_653 : f32 to vector<8x32xf32>
    %1672 = arith.mulf %1671, %1670 : vector<8x32xf32>
    %cst_654 = arith.constant 5.000000e-01 : f32
    %1673 = vector.broadcast %cst_654 : f32 to vector<8x32xf32>
    %1674 = arith.addf %1672, %1673 : vector<8x32xf32>
    %cst_655 = arith.constant 0.000000e+00 : f32
    %cst_656 = arith.constant 1.000000e+00 : f32
    %1675 = vector.broadcast %cst_655 : f32 to vector<8x32xf32>
    %1676 = arith.maximumf %1675, %1674 : vector<8x32xf32>
    %1677 = vector.broadcast %cst_656 : f32 to vector<8x32xf32>
    %1678 = arith.minimumf %1677, %1676 : vector<8x32xf32>
    %1679 = vector.extract_strided_slice %1669 {offsets = [0, 32], sizes = [8, 32], strides = [1, 1]} : vector<8x128xf32> to vector<8x32xf32>
    %cst_657 = arith.constant 2.000000e-01 : f32
    %1680 = vector.broadcast %cst_657 : f32 to vector<8x32xf32>
    %1681 = arith.mulf %1680, %1679 : vector<8x32xf32>
    %cst_658 = arith.constant 5.000000e-01 : f32
    %1682 = vector.broadcast %cst_658 : f32 to vector<8x32xf32>
    %1683 = arith.addf %1681, %1682 : vector<8x32xf32>
    %cst_659 = arith.constant 0.000000e+00 : f32
    %cst_660 = arith.constant 1.000000e+00 : f32
    %1684 = vector.broadcast %cst_659 : f32 to vector<8x32xf32>
    %1685 = arith.maximumf %1684, %1683 : vector<8x32xf32>
    %1686 = vector.broadcast %cst_660 : f32 to vector<8x32xf32>
    %1687 = arith.minimumf %1686, %1685 : vector<8x32xf32>
    %1688 = vector.extract_strided_slice %1669 {offsets = [0, 64], sizes = [8, 32], strides = [1, 1]} : vector<8x128xf32> to vector<8x32xf32>
    %cst_661 = arith.constant 2.000000e-01 : f32
    %1689 = vector.broadcast %cst_661 : f32 to vector<8x32xf32>
    %1690 = arith.mulf %1689, %1688 : vector<8x32xf32>
    %cst_662 = arith.constant 5.000000e-01 : f32
    %1691 = vector.broadcast %cst_662 : f32 to vector<8x32xf32>
    %1692 = arith.addf %1690, %1691 : vector<8x32xf32>
    %cst_663 = arith.constant 0.000000e+00 : f32
    %cst_664 = arith.constant 1.000000e+00 : f32
    %1693 = vector.broadcast %cst_663 : f32 to vector<8x32xf32>
    %1694 = arith.maximumf %1693, %1692 : vector<8x32xf32>
    %1695 = vector.broadcast %cst_664 : f32 to vector<8x32xf32>
    %1696 = arith.minimumf %1695, %1694 : vector<8x32xf32>
    %1697 = vector.extract_strided_slice %1669 {offsets = [0, 96], sizes = [8, 32], strides = [1, 1]} : vector<8x128xf32> to vector<8x32xf32>
    %1698 = math.absf %1697 : vector<8x32xf32>
    %cst_665 = arith.constant 1.000000e+00 : f32
    %1699 = vector.broadcast %cst_665 : f32 to vector<8x32xf32>
    %1700 = arith.addf %1699, %1698 : vector<8x32xf32>
    %1701 = arith.divf %1697, %1700 : vector<8x32xf32>
    %1702 = arith.mulf %1687, %1660 : vector<8x32xf32>
    %1703 = arith.mulf %1678, %1701 : vector<8x32xf32>
    %1704 = arith.addf %1702, %1703 : vector<8x32xf32>
    %1705 = math.absf %1704 : vector<8x32xf32>
    %cst_666 = arith.constant 1.000000e+00 : f32
    %1706 = vector.broadcast %cst_666 : f32 to vector<8x32xf32>
    %1707 = arith.addf %1706, %1705 : vector<8x32xf32>
    %1708 = arith.divf %1704, %1707 : vector<8x32xf32>
    %1709 = arith.mulf %1696, %1708 : vector<8x32xf32>
    %c16_667 = arith.constant 16 : index
    %c0_668 = arith.constant 0 : index
    %1710 = vector.load %arg19[%c16_667, %c0_668] : memref<64x32xf32, #tpu.memory_space<vmem>>, vector<8x32xf32>
    tpu.vector_store %arg19[%c16_667, %c0_668], %1709 {strides = array<i32>} : memref<64x32xf32, #tpu.memory_space<vmem>>, vector<8x32xf32>,
    %1711 = vector.extract_strided_slice %1575 {offsets = [24, 0], sizes = [8, 128], strides = [1, 1]} : vector<64x128xf32> to vector<8x128xf32>
    %cst_669 = arith.constant dense<0.000000e+00> : vector<8x128xf32>
    %1712 = tpu.matmul %1709, %1576, %cst_669 {dimension_numbers = #tpu.dot_dimension_numbers<[1], [0], [0], [1], [0, 0, 1, 1], [], []>} : vector<8x32xf32>, vector<32x128xf32>, vector<8x128xf32> -> vector<8x128xf32>
    %1713 = arith.addf %1711, %1712 : vector<8x128xf32>
    %1714 = vector.extract_strided_slice %1713 {offsets = [0, 0], sizes = [8, 32], strides = [1, 1]} : vector<8x128xf32> to vector<8x32xf32>
    %cst_670 = arith.constant 2.000000e-01 : f32
    %1715 = vector.broadcast %cst_670 : f32 to vector<8x32xf32>
    %1716 = arith.mulf %1715, %1714 : vector<8x32xf32>
    %cst_671 = arith.constant 5.000000e-01 : f32
    %1717 = vector.broadcast %cst_671 : f32 to vector<8x32xf32>
    %1718 = arith.addf %1716, %1717 : vector<8x32xf32>
    %cst_672 = arith.constant 0.000000e+00 : f32
    %cst_673 = arith.constant 1.000000e+00 : f32
    %1719 = vector.broadcast %cst_672 : f32 to vector<8x32xf32>
    %1720 = arith.maximumf %1719, %1718 : vector<8x32xf32>
    %1721 = vector.broadcast %cst_673 : f32 to vector<8x32xf32>
    %1722 = arith.minimumf %1721, %1720 : vector<8x32xf32>
    %1723 = vector.extract_strided_slice %1713 {offsets = [0, 32], sizes = [8, 32], strides = [1, 1]} : vector<8x128xf32> to vector<8x32xf32>
    %cst_674 = arith.constant 2.000000e-01 : f32
    %1724 = vector.broadcast %cst_674 : f32 to vector<8x32xf32>
    %1725 = arith.mulf %1724, %1723 : vector<8x32xf32>
    %cst_675 = arith.constant 5.000000e-01 : f32
    %1726 = vector.broadcast %cst_675 : f32 to vector<8x32xf32>
    %1727 = arith.addf %1725, %1726 : vector<8x32xf32>
    %cst_676 = arith.constant 0.000000e+00 : f32
    %cst_677 = arith.constant 1.000000e+00 : f32
    %1728 = vector.broadcast %cst_676 : f32 to vector<8x32xf32>
    %1729 = arith.maximumf %1728, %1727 : vector<8x32xf32>
    %1730 = vector.broadcast %cst_677 : f32 to vector<8x32xf32>
    %1731 = arith.minimumf %1730, %1729 : vector<8x32xf32>
    %1732 = vector.extract_strided_slice %1713 {offsets = [0, 64], sizes = [8, 32], strides = [1, 1]} : vector<8x128xf32> to vector<8x32xf32>
    %cst_678 = arith.constant 2.000000e-01 : f32
    %1733 = vector.broadcast %cst_678 : f32 to vector<8x32xf32>
    %1734 = arith.mulf %1733, %1732 : vector<8x32xf32>
    %cst_679 = arith.constant 5.000000e-01 : f32
    %1735 = vector.broadcast %cst_679 : f32 to vector<8x32xf32>
    %1736 = arith.addf %1734, %1735 : vector<8x32xf32>
    %cst_680 = arith.constant 0.000000e+00 : f32
    %cst_681 = arith.constant 1.000000e+00 : f32
    %1737 = vector.broadcast %cst_680 : f32 to vector<8x32xf32>
    %1738 = arith.maximumf %1737, %1736 : vector<8x32xf32>
    %1739 = vector.broadcast %cst_681 : f32 to vector<8x32xf32>
    %1740 = arith.minimumf %1739, %1738 : vector<8x32xf32>
    %1741 = vector.extract_strided_slice %1713 {offsets = [0, 96], sizes = [8, 32], strides = [1, 1]} : vector<8x128xf32> to vector<8x32xf32>
    %1742 = math.absf %1741 : vector<8x32xf32>
    %cst_682 = arith.constant 1.000000e+00 : f32
    %1743 = vector.broadcast %cst_682 : f32 to vector<8x32xf32>
    %1744 = arith.addf %1743, %1742 : vector<8x32xf32>
    %1745 = arith.divf %1741, %1744 : vector<8x32xf32>
    %1746 = arith.mulf %1731, %1704 : vector<8x32xf32>
    %1747 = arith.mulf %1722, %1745 : vector<8x32xf32>
    %1748 = arith.addf %1746, %1747 : vector<8x32xf32>
    %1749 = math.absf %1748 : vector<8x32xf32>
    %cst_683 = arith.constant 1.000000e+00 : f32
    %1750 = vector.broadcast %cst_683 : f32 to vector<8x32xf32>
    %1751 = arith.addf %1750, %1749 : vector<8x32xf32>
    %1752 = arith.divf %1748, %1751 : vector<8x32xf32>
    %1753 = arith.mulf %1740, %1752 : vector<8x32xf32>
    %c24_684 = arith.constant 24 : index
    %c0_685 = arith.constant 0 : index
    %1754 = vector.load %arg19[%c24_684, %c0_685] : memref<64x32xf32, #tpu.memory_space<vmem>>, vector<8x32xf32>
    tpu.vector_store %arg19[%c24_684, %c0_685], %1753 {strides = array<i32>} : memref<64x32xf32, #tpu.memory_space<vmem>>, vector<8x32xf32>,
    %1755 = vector.extract_strided_slice %1575 {offsets = [32, 0], sizes = [8, 128], strides = [1, 1]} : vector<64x128xf32> to vector<8x128xf32>
    %cst_686 = arith.constant dense<0.000000e+00> : vector<8x128xf32>
    %1756 = tpu.matmul %1753, %1576, %cst_686 {dimension_numbers = #tpu.dot_dimension_numbers<[1], [0], [0], [1], [0, 0, 1, 1], [], []>} : vector<8x32xf32>, vector<32x128xf32>, vector<8x128xf32> -> vector<8x128xf32>
    %1757 = arith.addf %1755, %1756 : vector<8x128xf32>
    %1758 = vector.extract_strided_slice %1757 {offsets = [0, 0], sizes = [8, 32], strides = [1, 1]} : vector<8x128xf32> to vector<8x32xf32>
    %cst_687 = arith.constant 2.000000e-01 : f32
    %1759 = vector.broadcast %cst_687 : f32 to vector<8x32xf32>
    %1760 = arith.mulf %1759, %1758 : vector<8x32xf32>
    %cst_688 = arith.constant 5.000000e-01 : f32
    %1761 = vector.broadcast %cst_688 : f32 to vector<8x32xf32>
    %1762 = arith.addf %1760, %1761 : vector<8x32xf32>
    %cst_689 = arith.constant 0.000000e+00 : f32
    %cst_690 = arith.constant 1.000000e+00 : f32
    %1763 = vector.broadcast %cst_689 : f32 to vector<8x32xf32>
    %1764 = arith.maximumf %1763, %1762 : vector<8x32xf32>
    %1765 = vector.broadcast %cst_690 : f32 to vector<8x32xf32>
    %1766 = arith.minimumf %1765, %1764 : vector<8x32xf32>
    %1767 = vector.extract_strided_slice %1757 {offsets = [0, 32], sizes = [8, 32], strides = [1, 1]} : vector<8x128xf32> to vector<8x32xf32>
    %cst_691 = arith.constant 2.000000e-01 : f32
    %1768 = vector.broadcast %cst_691 : f32 to vector<8x32xf32>
    %1769 = arith.mulf %1768, %1767 : vector<8x32xf32>
    %cst_692 = arith.constant 5.000000e-01 : f32
    %1770 = vector.broadcast %cst_692 : f32 to vector<8x32xf32>
    %1771 = arith.addf %1769, %1770 : vector<8x32xf32>
    %cst_693 = arith.constant 0.000000e+00 : f32
    %cst_694 = arith.constant 1.000000e+00 : f32
    %1772 = vector.broadcast %cst_693 : f32 to vector<8x32xf32>
    %1773 = arith.maximumf %1772, %1771 : vector<8x32xf32>
    %1774 = vector.broadcast %cst_694 : f32 to vector<8x32xf32>
    %1775 = arith.minimumf %1774, %1773 : vector<8x32xf32>
    %1776 = vector.extract_strided_slice %1757 {offsets = [0, 64], sizes = [8, 32], strides = [1, 1]} : vector<8x128xf32> to vector<8x32xf32>
    %cst_695 = arith.constant 2.000000e-01 : f32
    %1777 = vector.broadcast %cst_695 : f32 to vector<8x32xf32>
    %1778 = arith.mulf %1777, %1776 : vector<8x32xf32>
    %cst_696 = arith.constant 5.000000e-01 : f32
    %1779 = vector.broadcast %cst_696 : f32 to vector<8x32xf32>
    %1780 = arith.addf %1778, %1779 : vector<8x32xf32>
    %cst_697 = arith.constant 0.000000e+00 : f32
    %cst_698 = arith.constant 1.000000e+00 : f32
    %1781 = vector.broadcast %cst_697 : f32 to vector<8x32xf32>
    %1782 = arith.maximumf %1781, %1780 : vector<8x32xf32>
    %1783 = vector.broadcast %cst_698 : f32 to vector<8x32xf32>
    %1784 = arith.minimumf %1783, %1782 : vector<8x32xf32>
    %1785 = vector.extract_strided_slice %1757 {offsets = [0, 96], sizes = [8, 32], strides = [1, 1]} : vector<8x128xf32> to vector<8x32xf32>
    %1786 = math.absf %1785 : vector<8x32xf32>
    %cst_699 = arith.constant 1.000000e+00 : f32
    %1787 = vector.broadcast %cst_699 : f32 to vector<8x32xf32>
    %1788 = arith.addf %1787, %1786 : vector<8x32xf32>
    %1789 = arith.divf %1785, %1788 : vector<8x32xf32>
    %1790 = arith.mulf %1775, %1748 : vector<8x32xf32>
    %1791 = arith.mulf %1766, %1789 : vector<8x32xf32>
    %1792 = arith.addf %1790, %1791 : vector<8x32xf32>
    %1793 = math.absf %1792 : vector<8x32xf32>
    %cst_700 = arith.constant 1.000000e+00 : f32
    %1794 = vector.broadcast %cst_700 : f32 to vector<8x32xf32>
    %1795 = arith.addf %1794, %1793 : vector<8x32xf32>
    %1796 = arith.divf %1792, %1795 : vector<8x32xf32>
    %1797 = arith.mulf %1784, %1796 : vector<8x32xf32>
    %c32_701 = arith.constant 32 : index
    %c0_702 = arith.constant 0 : index
    %1798 = vector.load %arg19[%c32_701, %c0_702] : memref<64x32xf32, #tpu.memory_space<vmem>>, vector<8x32xf32>
    tpu.vector_store %arg19[%c32_701, %c0_702], %1797 {strides = array<i32>} : memref<64x32xf32, #tpu.memory_space<vmem>>, vector<8x32xf32>,
    %1799 = vector.extract_strided_slice %1575 {offsets = [40, 0], sizes = [8, 128], strides = [1, 1]} : vector<64x128xf32> to vector<8x128xf32>
    %cst_703 = arith.constant dense<0.000000e+00> : vector<8x128xf32>
    %1800 = tpu.matmul %1797, %1576, %cst_703 {dimension_numbers = #tpu.dot_dimension_numbers<[1], [0], [0], [1], [0, 0, 1, 1], [], []>} : vector<8x32xf32>, vector<32x128xf32>, vector<8x128xf32> -> vector<8x128xf32>
    %1801 = arith.addf %1799, %1800 : vector<8x128xf32>
    %1802 = vector.extract_strided_slice %1801 {offsets = [0, 0], sizes = [8, 32], strides = [1, 1]} : vector<8x128xf32> to vector<8x32xf32>
    %cst_704 = arith.constant 2.000000e-01 : f32
    %1803 = vector.broadcast %cst_704 : f32 to vector<8x32xf32>
    %1804 = arith.mulf %1803, %1802 : vector<8x32xf32>
    %cst_705 = arith.constant 5.000000e-01 : f32
    %1805 = vector.broadcast %cst_705 : f32 to vector<8x32xf32>
    %1806 = arith.addf %1804, %1805 : vector<8x32xf32>
    %cst_706 = arith.constant 0.000000e+00 : f32
    %cst_707 = arith.constant 1.000000e+00 : f32
    %1807 = vector.broadcast %cst_706 : f32 to vector<8x32xf32>
    %1808 = arith.maximumf %1807, %1806 : vector<8x32xf32>
    %1809 = vector.broadcast %cst_707 : f32 to vector<8x32xf32>
    %1810 = arith.minimumf %1809, %1808 : vector<8x32xf32>
    %1811 = vector.extract_strided_slice %1801 {offsets = [0, 32], sizes = [8, 32], strides = [1, 1]} : vector<8x128xf32> to vector<8x32xf32>
    %cst_708 = arith.constant 2.000000e-01 : f32
    %1812 = vector.broadcast %cst_708 : f32 to vector<8x32xf32>
    %1813 = arith.mulf %1812, %1811 : vector<8x32xf32>
    %cst_709 = arith.constant 5.000000e-01 : f32
    %1814 = vector.broadcast %cst_709 : f32 to vector<8x32xf32>
    %1815 = arith.addf %1813, %1814 : vector<8x32xf32>
    %cst_710 = arith.constant 0.000000e+00 : f32
    %cst_711 = arith.constant 1.000000e+00 : f32
    %1816 = vector.broadcast %cst_710 : f32 to vector<8x32xf32>
    %1817 = arith.maximumf %1816, %1815 : vector<8x32xf32>
    %1818 = vector.broadcast %cst_711 : f32 to vector<8x32xf32>
    %1819 = arith.minimumf %1818, %1817 : vector<8x32xf32>
    %1820 = vector.extract_strided_slice %1801 {offsets = [0, 64], sizes = [8, 32], strides = [1, 1]} : vector<8x128xf32> to vector<8x32xf32>
    %cst_712 = arith.constant 2.000000e-01 : f32
    %1821 = vector.broadcast %cst_712 : f32 to vector<8x32xf32>
    %1822 = arith.mulf %1821, %1820 : vector<8x32xf32>
    %cst_713 = arith.constant 5.000000e-01 : f32
    %1823 = vector.broadcast %cst_713 : f32 to vector<8x32xf32>
    %1824 = arith.addf %1822, %1823 : vector<8x32xf32>
    %cst_714 = arith.constant 0.000000e+00 : f32
    %cst_715 = arith.constant 1.000000e+00 : f32
    %1825 = vector.broadcast %cst_714 : f32 to vector<8x32xf32>
    %1826 = arith.maximumf %1825, %1824 : vector<8x32xf32>
    %1827 = vector.broadcast %cst_715 : f32 to vector<8x32xf32>
    %1828 = arith.minimumf %1827, %1826 : vector<8x32xf32>
    %1829 = vector.extract_strided_slice %1801 {offsets = [0, 96], sizes = [8, 32], strides = [1, 1]} : vector<8x128xf32> to vector<8x32xf32>
    %1830 = math.absf %1829 : vector<8x32xf32>
    %cst_716 = arith.constant 1.000000e+00 : f32
    %1831 = vector.broadcast %cst_716 : f32 to vector<8x32xf32>
    %1832 = arith.addf %1831, %1830 : vector<8x32xf32>
    %1833 = arith.divf %1829, %1832 : vector<8x32xf32>
    %1834 = arith.mulf %1819, %1792 : vector<8x32xf32>
    %1835 = arith.mulf %1810, %1833 : vector<8x32xf32>
    %1836 = arith.addf %1834, %1835 : vector<8x32xf32>
    %1837 = math.absf %1836 : vector<8x32xf32>
    %cst_717 = arith.constant 1.000000e+00 : f32
    %1838 = vector.broadcast %cst_717 : f32 to vector<8x32xf32>
    %1839 = arith.addf %1838, %1837 : vector<8x32xf32>
    %1840 = arith.divf %1836, %1839 : vector<8x32xf32>
    %1841 = arith.mulf %1828, %1840 : vector<8x32xf32>
    %c40_718 = arith.constant 40 : index
    %c0_719 = arith.constant 0 : index
    %1842 = vector.load %arg19[%c40_718, %c0_719] : memref<64x32xf32, #tpu.memory_space<vmem>>, vector<8x32xf32>
    tpu.vector_store %arg19[%c40_718, %c0_719], %1841 {strides = array<i32>} : memref<64x32xf32, #tpu.memory_space<vmem>>, vector<8x32xf32>,
    %1843 = vector.extract_strided_slice %1575 {offsets = [48, 0], sizes = [8, 128], strides = [1, 1]} : vector<64x128xf32> to vector<8x128xf32>
    %cst_720 = arith.constant dense<0.000000e+00> : vector<8x128xf32>
    %1844 = tpu.matmul %1841, %1576, %cst_720 {dimension_numbers = #tpu.dot_dimension_numbers<[1], [0], [0], [1], [0, 0, 1, 1], [], []>} : vector<8x32xf32>, vector<32x128xf32>, vector<8x128xf32> -> vector<8x128xf32>
    %1845 = arith.addf %1843, %1844 : vector<8x128xf32>
    %1846 = vector.extract_strided_slice %1845 {offsets = [0, 0], sizes = [8, 32], strides = [1, 1]} : vector<8x128xf32> to vector<8x32xf32>
    %cst_721 = arith.constant 2.000000e-01 : f32
    %1847 = vector.broadcast %cst_721 : f32 to vector<8x32xf32>
    %1848 = arith.mulf %1847, %1846 : vector<8x32xf32>
    %cst_722 = arith.constant 5.000000e-01 : f32
    %1849 = vector.broadcast %cst_722 : f32 to vector<8x32xf32>
    %1850 = arith.addf %1848, %1849 : vector<8x32xf32>
    %cst_723 = arith.constant 0.000000e+00 : f32
    %cst_724 = arith.constant 1.000000e+00 : f32
    %1851 = vector.broadcast %cst_723 : f32 to vector<8x32xf32>
    %1852 = arith.maximumf %1851, %1850 : vector<8x32xf32>
    %1853 = vector.broadcast %cst_724 : f32 to vector<8x32xf32>
    %1854 = arith.minimumf %1853, %1852 : vector<8x32xf32>
    %1855 = vector.extract_strided_slice %1845 {offsets = [0, 32], sizes = [8, 32], strides = [1, 1]} : vector<8x128xf32> to vector<8x32xf32>
    %cst_725 = arith.constant 2.000000e-01 : f32
    %1856 = vector.broadcast %cst_725 : f32 to vector<8x32xf32>
    %1857 = arith.mulf %1856, %1855 : vector<8x32xf32>
    %cst_726 = arith.constant 5.000000e-01 : f32
    %1858 = vector.broadcast %cst_726 : f32 to vector<8x32xf32>
    %1859 = arith.addf %1857, %1858 : vector<8x32xf32>
    %cst_727 = arith.constant 0.000000e+00 : f32
    %cst_728 = arith.constant 1.000000e+00 : f32
    %1860 = vector.broadcast %cst_727 : f32 to vector<8x32xf32>
    %1861 = arith.maximumf %1860, %1859 : vector<8x32xf32>
    %1862 = vector.broadcast %cst_728 : f32 to vector<8x32xf32>
    %1863 = arith.minimumf %1862, %1861 : vector<8x32xf32>
    %1864 = vector.extract_strided_slice %1845 {offsets = [0, 64], sizes = [8, 32], strides = [1, 1]} : vector<8x128xf32> to vector<8x32xf32>
    %cst_729 = arith.constant 2.000000e-01 : f32
    %1865 = vector.broadcast %cst_729 : f32 to vector<8x32xf32>
    %1866 = arith.mulf %1865, %1864 : vector<8x32xf32>
    %cst_730 = arith.constant 5.000000e-01 : f32
    %1867 = vector.broadcast %cst_730 : f32 to vector<8x32xf32>
    %1868 = arith.addf %1866, %1867 : vector<8x32xf32>
    %cst_731 = arith.constant 0.000000e+00 : f32
    %cst_732 = arith.constant 1.000000e+00 : f32
    %1869 = vector.broadcast %cst_731 : f32 to vector<8x32xf32>
    %1870 = arith.maximumf %1869, %1868 : vector<8x32xf32>
    %1871 = vector.broadcast %cst_732 : f32 to vector<8x32xf32>
    %1872 = arith.minimumf %1871, %1870 : vector<8x32xf32>
    %1873 = vector.extract_strided_slice %1845 {offsets = [0, 96], sizes = [8, 32], strides = [1, 1]} : vector<8x128xf32> to vector<8x32xf32>
    %1874 = math.absf %1873 : vector<8x32xf32>
    %cst_733 = arith.constant 1.000000e+00 : f32
    %1875 = vector.broadcast %cst_733 : f32 to vector<8x32xf32>
    %1876 = arith.addf %1875, %1874 : vector<8x32xf32>
    %1877 = arith.divf %1873, %1876 : vector<8x32xf32>
    %1878 = arith.mulf %1863, %1836 : vector<8x32xf32>
    %1879 = arith.mulf %1854, %1877 : vector<8x32xf32>
    %1880 = arith.addf %1878, %1879 : vector<8x32xf32>
    %1881 = math.absf %1880 : vector<8x32xf32>
    %cst_734 = arith.constant 1.000000e+00 : f32
    %1882 = vector.broadcast %cst_734 : f32 to vector<8x32xf32>
    %1883 = arith.addf %1882, %1881 : vector<8x32xf32>
    %1884 = arith.divf %1880, %1883 : vector<8x32xf32>
    %1885 = arith.mulf %1872, %1884 : vector<8x32xf32>
    %c48_735 = arith.constant 48 : index
    %c0_736 = arith.constant 0 : index
    %1886 = vector.load %arg19[%c48_735, %c0_736] : memref<64x32xf32, #tpu.memory_space<vmem>>, vector<8x32xf32>
    tpu.vector_store %arg19[%c48_735, %c0_736], %1885 {strides = array<i32>} : memref<64x32xf32, #tpu.memory_space<vmem>>, vector<8x32xf32>,
    %1887 = vector.extract_strided_slice %1575 {offsets = [56, 0], sizes = [8, 128], strides = [1, 1]} : vector<64x128xf32> to vector<8x128xf32>
    %cst_737 = arith.constant dense<0.000000e+00> : vector<8x128xf32>
    %1888 = tpu.matmul %1885, %1576, %cst_737 {dimension_numbers = #tpu.dot_dimension_numbers<[1], [0], [0], [1], [0, 0, 1, 1], [], []>} : vector<8x32xf32>, vector<32x128xf32>, vector<8x128xf32> -> vector<8x128xf32>
    %1889 = arith.addf %1887, %1888 : vector<8x128xf32>
    %1890 = vector.extract_strided_slice %1889 {offsets = [0, 0], sizes = [8, 32], strides = [1, 1]} : vector<8x128xf32> to vector<8x32xf32>
    %cst_738 = arith.constant 2.000000e-01 : f32
    %1891 = vector.broadcast %cst_738 : f32 to vector<8x32xf32>
    %1892 = arith.mulf %1891, %1890 : vector<8x32xf32>
    %cst_739 = arith.constant 5.000000e-01 : f32
    %1893 = vector.broadcast %cst_739 : f32 to vector<8x32xf32>
    %1894 = arith.addf %1892, %1893 : vector<8x32xf32>
    %cst_740 = arith.constant 0.000000e+00 : f32
    %cst_741 = arith.constant 1.000000e+00 : f32
    %1895 = vector.broadcast %cst_740 : f32 to vector<8x32xf32>
    %1896 = arith.maximumf %1895, %1894 : vector<8x32xf32>
    %1897 = vector.broadcast %cst_741 : f32 to vector<8x32xf32>
    %1898 = arith.minimumf %1897, %1896 : vector<8x32xf32>
    %1899 = vector.extract_strided_slice %1889 {offsets = [0, 32], sizes = [8, 32], strides = [1, 1]} : vector<8x128xf32> to vector<8x32xf32>
    %cst_742 = arith.constant 2.000000e-01 : f32
    %1900 = vector.broadcast %cst_742 : f32 to vector<8x32xf32>
    %1901 = arith.mulf %1900, %1899 : vector<8x32xf32>
    %cst_743 = arith.constant 5.000000e-01 : f32
    %1902 = vector.broadcast %cst_743 : f32 to vector<8x32xf32>
    %1903 = arith.addf %1901, %1902 : vector<8x32xf32>
    %cst_744 = arith.constant 0.000000e+00 : f32
    %cst_745 = arith.constant 1.000000e+00 : f32
    %1904 = vector.broadcast %cst_744 : f32 to vector<8x32xf32>
    %1905 = arith.maximumf %1904, %1903 : vector<8x32xf32>
    %1906 = vector.broadcast %cst_745 : f32 to vector<8x32xf32>
    %1907 = arith.minimumf %1906, %1905 : vector<8x32xf32>
    %1908 = vector.extract_strided_slice %1889 {offsets = [0, 64], sizes = [8, 32], strides = [1, 1]} : vector<8x128xf32> to vector<8x32xf32>
    %cst_746 = arith.constant 2.000000e-01 : f32
    %1909 = vector.broadcast %cst_746 : f32 to vector<8x32xf32>
    %1910 = arith.mulf %1909, %1908 : vector<8x32xf32>
    %cst_747 = arith.constant 5.000000e-01 : f32
    %1911 = vector.broadcast %cst_747 : f32 to vector<8x32xf32>
    %1912 = arith.addf %1910, %1911 : vector<8x32xf32>
    %cst_748 = arith.constant 0.000000e+00 : f32
    %cst_749 = arith.constant 1.000000e+00 : f32
    %1913 = vector.broadcast %cst_748 : f32 to vector<8x32xf32>
    %1914 = arith.maximumf %1913, %1912 : vector<8x32xf32>
    %1915 = vector.broadcast %cst_749 : f32 to vector<8x32xf32>
    %1916 = arith.minimumf %1915, %1914 : vector<8x32xf32>
    %1917 = vector.extract_strided_slice %1889 {offsets = [0, 96], sizes = [8, 32], strides = [1, 1]} : vector<8x128xf32> to vector<8x32xf32>
    %1918 = math.absf %1917 : vector<8x32xf32>
    %cst_750 = arith.constant 1.000000e+00 : f32
    %1919 = vector.broadcast %cst_750 : f32 to vector<8x32xf32>
    %1920 = arith.addf %1919, %1918 : vector<8x32xf32>
    %1921 = arith.divf %1917, %1920 : vector<8x32xf32>
    %1922 = arith.mulf %1907, %1880 : vector<8x32xf32>
    %1923 = arith.mulf %1898, %1921 : vector<8x32xf32>
    %1924 = arith.addf %1922, %1923 : vector<8x32xf32>
    %1925 = math.absf %1924 : vector<8x32xf32>
    %cst_751 = arith.constant 1.000000e+00 : f32
    %1926 = vector.broadcast %cst_751 : f32 to vector<8x32xf32>
    %1927 = arith.addf %1926, %1925 : vector<8x32xf32>
    %1928 = arith.divf %1924, %1927 : vector<8x32xf32>
    %1929 = arith.mulf %1916, %1928 : vector<8x32xf32>
    %c56_752 = arith.constant 56 : index
    %c0_753 = arith.constant 0 : index
    %1930 = vector.load %arg19[%c56_752, %c0_753] : memref<64x32xf32, #tpu.memory_space<vmem>>, vector<8x32xf32>
    tpu.vector_store %arg19[%c56_752, %c0_753], %1929 {strides = array<i32>} : memref<64x32xf32, #tpu.memory_space<vmem>>, vector<8x32xf32>,
    %c0_754 = arith.constant 0 : index
    %c0_755 = arith.constant 0 : index
    %1931 = vector.load %arg19[%c0_754, %c0_755] : memref<64x32xf32, #tpu.memory_space<vmem>>, vector<64x32xf32>
    %c0_756 = arith.constant 0 : index
    %c0_757 = arith.constant 0 : index
    %1932 = vector.load %arg16[%c0_756, %c0_757] : memref<32x8xf32, #tpu.memory_space<vmem>>, vector<32x8xf32>
    %cst_758 = arith.constant dense<0.000000e+00> : vector<64x8xf32>
    %1933 = tpu.matmul %1931, %1932, %cst_758 {dimension_numbers = #tpu.dot_dimension_numbers<[1], [0], [0], [1], [0, 0, 1, 1], [], []>} : vector<64x32xf32>, vector<32x8xf32>, vector<64x8xf32> -> vector<64x8xf32>
    %c0_759 = arith.constant 0 : index
    %c0_760 = arith.constant 0 : index
    %1934 = vector.load %arg17[%c0_759, %c0_760] : memref<1x8xf32, #tpu.memory_space<vmem>>, vector<1x8xf32>
    %1935 = vector.broadcast %1934 : vector<1x8xf32> to vector<64x8xf32>
    %1936 = arith.addf %1933, %1935 : vector<64x8xf32>
    %c0_761 = arith.constant 0 : index
    %c0_762 = arith.constant 0 : index
    %1937 = vector.load %arg18[%c0_761, %c0_762] : memref<64x8xf32, #tpu.memory_space<vmem>>, vector<64x8xf32>
    tpu.vector_store %arg18[%c0_761, %c0_762], %1936 {strides = array<i32>} : memref<64x8xf32, #tpu.memory_space<vmem>>, vector<64x8xf32>,
    return
  }
}

</mosaic_0001>

<bundles_post_ra>
// kernel: hybrid_rnn_forward.1
= control target key start
LH: loop header
LB: loop body
LE: loop exit
PB: predicated region body
PF: predicated region fallthrough
CT: control target
= control target key end

     0   :  { %s8053_s0 = inlined_call_operand.vmem [shape: f32[64,8], index: 0, kind: input, shape index: {}]   ;;  %s8054_s1 = inlined_call_operand.hbm [shape: f32[8,128], index: 1, kind: input, shape index: {}]   ;;  %s8055_s2 = inlined_call_operand.vmem [shape: f32[32,128], index: 2, kind: input, shape index: {}]   ;;  %s8056_s3 = inlined_call_operand.vmem [shape: f32[1,128], index: 3, kind: input, shape index: {}]   ;;  %s8057_s4 = inlined_call_operand.hbm [shape: f32[8,128], index: 4, kind: input, shape index: {}]   ;;  %s8058_s5 = inlined_call_operand.vmem [shape: f32[32,128], index: 5, kind: input, shape index: {}]   ;;  %s8059_s6 = inlined_call_operand.hbm [shape: f32[1,128], index: 6, kind: input, shape index: {}]   ;;  %s8060_s7 = inlined_call_operand.vmem [shape: f32[32,128], index: 7, kind: input, shape index: {}]   ;;  %s8061_s8 = inlined_call_operand.vmem [shape: f32[32,128], index: 8, kind: input, shape index: {}]   ;;  %s8062_s9 = inlined_call_operand.hbm [shape: f32[1,128], index: 9, kind: input, shape index: {}]   ;;  %s8063_s10 = inlined_call_operand.vmem [shape: f32[32,128], index: 10, kind: input, shape index: {}]   ;;  %s8064_s11 = inlined_call_operand.hbm [shape: f32[32,128], index: 11, kind: input, shape index: {}]   ;;  %s8065_s12 = inlined_call_operand.hbm [shape: f32[1,128], index: 12, kind: input, shape index: {}]   ;;  %s8066_s13 = inlined_call_operand.vmem [shape: f32[32,128], index: 13, kind: input, shape index: {}]   ;;  %s8067_s14 = inlined_call_operand.hbm [shape: f32[32,128], index: 14, kind: input, shape index: {}]   ;;  %s8068_s15 = inlined_call_operand.vmem [shape: f32[1,128], index: 15, kind: input, shape index: {}]   ;;  %s8069_s16 = inlined_call_operand.vmem [shape: f32[32,8], index: 16, kind: input, shape index: {}]   ;;  %s8070_s17 = inlined_call_operand.vmem [shape: f32[1,8], index: 17, kind: input, shape index: {}]   ;;  %s8071_s18 = inlined_call_operand.vmem [shape: f32[64,8], index: 18, kind: output, shape index: {}]  }
   0x1   :  { %8075 = sst [smem:[#allocation19_spill]] %s8053_s0 }
   0x2   :  { %8076 = sst [smem:[#allocation20_spill]] %s8054_s1 }
   0x3   :  { %8077 = sst [smem:[#allocation21_spill]] %s8055_s2 }
   0x4   :  { %23 = vsyncpa [#allocation5], 0 }
   0x5   :  { %24 = vsyncpa [#allocation7], 0 }
   0x6   :  { %25 = vsyncpa [#allocation10], 0 }
   0x7   :  { %26 = vsyncpa [#allocation13], 0  ;;  %s6830_s27 = smov [#allocation6]   ;;  %s6831_s29 = smov [#allocation9]  }
   0x8   :  { %s49_s28 = sshll.u32 %s6830_s27, 4  ;;  %s75_s30 = sshll.u32 %s6831_s29, 4  ;;  %s50_s28 = int_to_ptr.vmem [resolvable:$true] %s49_s28  ;;  %s76_s30 = int_to_ptr.vmem [resolvable:$true] %s75_s30 }
   0x9   :  { %s6668_s1 = scalar_lea.hbm %s8057_s4, 128 }
   0xa   :  { %p6669_p0 = scmp.ne.s32.totalorder %s8057_s4, %s6668_s1  ;;  %p6672_p1 = scmp.lt.u32.totalorder %s6668_s1, %s8057_s4 }
   0xc   :  { %p6674_p2 = pnand %p6672_p1, %p6669_p0 }
   0xe   :  { %6677 = shalt.err (!%p6674_p2)
}
   0xf   :  { %s6678_s23 = scalar_lea.vmem %s50_s28, 128  ;;  %p6683_p4 = scmp.lt.s32.totalorder %s50_s28, %s50_s28 }
  0x10   :  { %p6679_p3 = scmp.ne.s32.totalorder %s50_s28, %s6678_s23  ;;  %p6684_p5 = scmp.lt.s32.totalorder %s6678_s23, %s6678_s23 }
  0x12   :  { %p6685_p6 = por %p6684_p5, %p6683_p4 }
  0x14   :  { %p6686_p7 = pnand %p6685_p6, %p6679_p3 }
  0x16   :  { %6689 = shalt.err (!%p6686_p7)
}
  0x17   :  { %52 = dma.hbm_to_vmem [thread:$0]  %s8057_s4, 128, %s50_s28, [#allocation7]  }
  0x18   :  { %s6690_s29 = scalar_lea.hbm %s8062_s9, 16 }
  0x19   :  { %p6691_p8 = scmp.ne.s32.totalorder %s8062_s9, %s6690_s29  ;;  %p6694_p9 = scmp.lt.u32.totalorder %s6690_s29, %s8062_s9 }
  0x1b   :  { %p6696_p10 = pnand %p6694_p9, %p6691_p8 }
  0x1d   :  { %6699 = shalt.err (!%p6696_p10)
}
  0x1e   :  { %s6700_s21 = scalar_lea.vmem %s76_s30, 16  ;;  %s6704_s22 = scalar_lea.vmem %s76_s30, 32 }
  0x1f   :  { %p6701_p11 = scmp.ne.s32.totalorder %s76_s30, %s6700_s21  ;;  %p6705_p12 = scmp.lt.s32.totalorder %s76_s30, %s76_s30 }
  0x20   :  { %p6706_p13 = scmp.lt.s32.totalorder %s6704_s22, %s6700_s21 }
  0x22   :  { %p6707_p0 = por %p6706_p13, %p6705_p12 }
  0x24   :  { %p6708_p1 = pnand %p6707_p0, %p6701_p11 }
  0x26   :  { %6711 = shalt.err (!%p6708_p1)
}
  0x27   :  { %78 = dma.hbm_to_vmem [thread:$0]  %s8062_s9, 16, %s76_s30, [#allocation10]  }
  0x28   :  { %s6832_s2 = smov [#allocation12]   ;;  %s6833_s24 = smov [#allocation4]  }
  0x29   :  { %s99_s23 = sshll.u32 %s6832_s2, 4  ;;  %s35_s25 = sshll.u32 %s6833_s24, 4  ;;  %s100_s23 = int_to_ptr.vmem [resolvable:$true] %s99_s23  ;;  %s36_s25 = int_to_ptr.vmem [resolvable:$true] %s35_s25 }
  0x2a   :  { %s6712_s29 = scalar_lea.hbm %s8065_s12, 16 }
  0x2b   :  { %p6713_p2 = scmp.ne.s32.totalorder %s8065_s12, %s6712_s29  ;;  %p6716_p3 = scmp.lt.u32.totalorder %s6712_s29, %s8065_s12 }
  0x2d   :  { %p6718_p4 = pnand %p6716_p3, %p6713_p2 }
  0x2f   :  { %6721 = shalt.err (!%p6718_p4)
}
  0x30   :  { %s6722_s9 = scalar_lea.vmem %s100_s23, 16  ;;  %s6726_s30 = scalar_lea.vmem %s100_s23, 32 }
  0x31   :  { %p6723_p5 = scmp.ne.s32.totalorder %s100_s23, %s6722_s9  ;;  %p6727_p6 = scmp.lt.s32.totalorder %s100_s23, %s100_s23 }
  0x32   :  { %p6728_p7 = scmp.lt.s32.totalorder %s6726_s30, %s6722_s9 }
  0x34   :  { %p6729_p8 = por %p6728_p7, %p6727_p6 }
  0x36   :  { %p6730_p9 = pnand %p6729_p8, %p6723_p5 }
  0x38   :  { %6733 = shalt.err (!%p6730_p9)
}
  0x39   :  { %102 = dma.hbm_to_vmem [thread:$0]  %s8065_s12, 16, %s100_s23, [#allocation13]  }
  0x3a   :  { %s8078_s2 = sld [smem:[#allocation20_spill]] }
  0x40   :  { %s6734_s24 = scalar_lea.hbm %s8078_s2, 128 }
  0x41   :  { %p6735_p10 = scmp.ne.s32.totalorder %s8078_s2, %s6734_s24  ;;  %p6738_p11 = scmp.lt.u32.totalorder %s6734_s24, %s8078_s2 }
  0x43   :  { %p6740_p12 = pnand %p6738_p11, %p6735_p10 }
  0x45   :  { %6743 = shalt.err (!%p6740_p12)
}
  0x46   :  { %s6744_s19 = scalar_lea.vmem %s36_s25, 128  ;;  %p6749_p0 = scmp.lt.s32.totalorder %s36_s25, %s36_s25 }
  0x47   :  { %p6745_p13 = scmp.ne.s32.totalorder %s36_s25, %s6744_s19  ;;  %p6750_p1 = scmp.lt.s32.totalorder %s6744_s19, %s6744_s19 }
  0x49   :  { %p6751_p2 = por %p6750_p1, %p6749_p0 }
  0x4b   :  { %p6752_p3 = pnand %p6751_p2, %p6745_p13 }
  0x4d   :  { %6755 = shalt.err (!%p6752_p3)
}
  0x4e   :  { %38 = dma.hbm_to_vmem [thread:$0]  %s8078_s2, 128, %s36_s25, [#allocation5]  }
  0x4f   :  { %s6834_s1 = smov [#allocation8]   ;;  %s6835_s9 = smov [#allocation11]  }
  0x50   :  { %s61_s20 = sshll.u32 %s6834_s1, 4  ;;  %s86_s30 = sshll.u32 %s6835_s9, 4  ;;  %s62_s20 = int_to_ptr.vmem [resolvable:$true] %s61_s20  ;;  %s6987_s30 = int_to_ptr.vmem [resolvable:$true] %s86_s30 }
  0x51   :  { %s6756_s4 = scalar_lea.hbm %s8059_s6, 16 }
  0x52   :  { %p6757_p4 = scmp.ne.s32.totalorder %s8059_s6, %s6756_s4  ;;  %p6760_p5 = scmp.lt.u32.totalorder %s6756_s4, %s8059_s6 }
  0x54   :  { %p6762_p6 = pnand %p6760_p5, %p6757_p4 }
  0x56   :  { %6765 = shalt.err (!%p6762_p6)
}
  0x57   :  { %s6766_s25 = scalar_lea.vmem %s62_s20, 16  ;;  %s6770_s2 = scalar_lea.vmem %s62_s20, 32 }
  0x58   :  { %p6767_p7 = scmp.ne.s32.totalorder %s62_s20, %s6766_s25  ;;  %p6771_p8 = scmp.lt.s32.totalorder %s62_s20, %s62_s20 }
  0x59   :  { %p6772_p9 = scmp.lt.s32.totalorder %s6770_s2, %s6766_s25 }
  0x5b   :  { %p6773_p10 = por %p6772_p9, %p6771_p8 }
  0x5d   :  { %p6774_p11 = pnand %p6773_p10, %p6767_p7 }
  0x5f   :  { %6777 = shalt.err (!%p6774_p11)
}
  0x60   :  { %64 = dma.hbm_to_vmem [thread:$0]  %s8059_s6, 16, %s62_s20, [#allocation7]  }
  0x61   :  { %s6778_s23 = scalar_lea.hbm %s8064_s11, 512 }
  0x62   :  { %p6779_p12 = scmp.ne.s32.totalorder %s8064_s11, %s6778_s23  ;;  %p6782_p13 = scmp.lt.u32.totalorder %s6778_s23, %s8064_s11 }
  0x64   :  { %p6784_p0 = pnand %p6782_p13, %p6779_p12 }
  0x66   :  { %6787 = shalt.err (!%p6784_p0)
}
  0x67   :  { %s6788_s4 = scalar_lea.vmem %s6987_s30, 512  ;;  %p6793_p2 = scmp.lt.s32.totalorder %s6987_s30, %s6987_s30 }
  0x68   :  { %p6789_p1 = scmp.ne.s32.totalorder %s6987_s30, %s6788_s4  ;;  %p6794_p3 = scmp.lt.s32.totalorder %s6788_s4, %s6788_s4 }
  0x6a   :  { %p6795_p4 = por %p6794_p3, %p6793_p2 }
  0x6c   :  { %p6796_p5 = pnand %p6795_p4, %p6789_p1 }
  0x6e   :  { %6799 = shalt.err (!%p6796_p5)
}
  0x6f   :  { %s6836_s6 = smov 128   ;;  %s6837_s20 = smov 8  }
  0x70   :  { %92 = dma.hbm_to_vmem [thread:$0]  %s8064_s11, 512, %s6987_s30, [#allocation10], %s6836_s6, %s6836_s6, %s6837_s20  }
  0x71   :  { %s6838_s26 = smov [#allocation14]   ;;  %s6800_s29 = scalar_lea.hbm %s8067_s14, 512 }
  0x72   :  { %s110_s27 = sshll.u32 %s6838_s26, 4  ;;  %p6801_p6 = scmp.ne.s32.totalorder %s8067_s14, %s6800_s29  ;;  %s111_s27 = int_to_ptr.vmem [resolvable:$true] %s110_s27 }
  0x73   :  { %p6804_p7 = scmp.lt.u32.totalorder %s6800_s29, %s8067_s14 }
  0x75   :  { %p6806_p8 = pnand %p6804_p7, %p6801_p6 }
  0x77   :  { %6809 = shalt.err (!%p6806_p8)
}
  0x78   :  { %s6810_s1 = scalar_lea.vmem %s111_s27, 512  ;;  %p6815_p10 = scmp.lt.s32.totalorder %s111_s27, %s111_s27 }
  0x79   :  { %p6811_p9 = scmp.ne.s32.totalorder %s111_s27, %s6810_s1  ;;  %p6816_p11 = scmp.lt.s32.totalorder %s6810_s1, %s6810_s1 }
  0x7b   :  { %p6817_p12 = por %p6816_p11, %p6815_p10 }
  0x7d   :  { %p6818_p13 = pnand %p6817_p12, %p6811_p9 }
  0x7f   :  { %6821 = shalt.err (!%p6818_p13)
}
  0x80   :  { %116 = dma.hbm_to_vmem [thread:$0]  %s8067_s14, 512, %s111_s27, [#allocation13], %s6836_s6, %s6836_s6, %s6837_s20  }
  0x81   :  { %6822 = dma.done.wait [#allocation5], 128  }
  0x82   :  { %6823 = vsyncadd [#allocation5], 4294967168 }
  0x83   :  { %6824 = dma.done.wait [#allocation7], 144  }
  0x84   :  { %6825 = vsyncadd [#allocation7], 4294967152 }
  0x85   :  { %6826 = dma.done.wait [#allocation10], 528  }
  0x86   :  { %6827 = vsyncadd [#allocation10], 4294966768 }
  0x87   :  { %6828 = dma.done.wait [#allocation13], 528  }
  0x88   :  { %6829 = vsyncadd [#allocation13], 4294966768  ;;  %vm160_vm0 = vcmask 64512   ;;  %v152_v0 = vld [vmem:[#allocation4] sm:$0xff]  ;;  %s8079_s22 = sld [smem:[#allocation19_spill]]  ;;  %s8080_s20 = sld [smem:[#allocation21_spill]] }
  0x89   :  { %5672 = vmatprep.subr.mxu0 %v152_v0  ;;  %6492 = vmatprep.subr.mxu1 %v152_v0  ;;  %v6839_v9 = vmov 0.0|0.0   ;;  %vm6840_vm1 = vmmov 0   ;;  %v6841_v12 = vmov 0.0   ;;  %v7093_v15 = vld [vmem:[%s8056_s3] ss:$0 sm:$0xff]  ;;  %s6842_s30 = smov 32  }
  0x8a   :  { %5673 = vmatpush3.msra.mxu0 %v152_v0  ;;  %6493 = vmatpush3.msra.mxu1 %v152_v0  ;;  %v290_v39 = vld [vmem:[#allocation6] sm:$0xff]  ;;  %v7154_v50 = vld [vmem:[#allocation8] ss:$0 sm:$0xff]  ;;  %vm411_vm2 = vcmask 261120  }
  0x8b   :  { %6220 = vmatprep.subr.bf16.mxu0 %v6839_v9  ;;  %5686 = vmatprep.subr.mxu1 %v290_v39 }
  0x8e   :  { %v7033_v1 = vld [vmem:[%s8079_s22] sm:$0xff]  ;;  %v7038_v2 = vld [vmem:[%s8079_s22 + $0x8] sm:$0xff]  ;;  %v7051_v5 = vld [vmem:[%s8079_s22 + $0x10] sm:$0xff] }
  0x8f   :  { %5674 = vmatprep.mubr.msk.f32.mxu0 %vm160_vm0, %v7033_v1  ;;  %v403_v3 = vld [vmem:[%s8080_s20] sm:$0xff]  ;;  %v404_v4 = vld [vmem:[%s8080_s20 + $0x8] sm:$0xff]  ;;  %v405_v7 = vld [vmem:[%s8080_s20 + $0x10] sm:$0xff] }
  0x90   :  { %v7053_v6 = vpack.c.bf16 %v404_v4, %v403_v3  ;;  %v406_v8 = vld [vmem:[%s8080_s20 + $0x18] sm:$0xff]  ;;  %5675 = vmatmul.mubr.msk.f32.vlgmr.msra.gmra.mrb[0].mxu0 %vm160_vm0, %v7038_v2  ;;  %v148_v37 = vld [vmem:[%s8079_s22 + $0x20] sm:$0xff]  ;;  %v149_v38 = vld [vmem:[%s8079_s22 + $0x28] sm:$0xff] }
  0x91   :  { %5677 = vmatprep.mubr.msk.f32.mxu0 %vm160_vm0, %v7051_v5  ;;  %v7070_v10 = vld [vmem:[%s8079_s22 + $0x18] sm:$0xff]  ;;  %v7072_v11 = vpack.c.bf16 %v406_v8, %v405_v7  ;;  %5680 = vmatprep.mubr.msk.f32.mxu1 %vm160_vm0, %v148_v37  ;;  %v150_v40 = vld [vmem:[%s8079_s22 + $0x30] sm:$0xff] }
  0x92   :  { %6222 = vmatpush3.bf16.msra.mxu0 %v7053_v6  ;;  %5681 = vmatmul.mubr.msk.f32.vlgmr.msra.gmra.mrb[0].mxu1 %vm160_vm0, %v149_v38  ;;  %v151_v41 = vld [vmem:[%s8079_s22 + $0x38] sm:$0xff]  ;;  %s6843_s22 = smov 64  }
  0x93   :  { %6223 = vmatprep.subr.bf16.mxu0 %v6839_v9  ;;  %5687 = vmatpush3.msra.mxu1 %v290_v39 }
  0x94   :  { %5678 = vmatmul.mubr.msk.f32.gmra.mrb[2].mxu0 %vm160_vm0, %v7070_v10  ;;  %5683 = vmatprep.mubr.msk.f32.mxu1 %vm160_vm0, %v150_v40 }
  0x95   :  { %5708 = vmatprep.mubr.msk.f32.mxu0 %vm6840_vm1, %v6841_v12  ;;  %6226 = vmatprep.subr.bf16.mxu1 %v6839_v9 }
  0x96   :  { %6225 = vmatpush3.bf16.msra.mxu0 %v7072_v11  ;;  %5684 = vmatmul.mubr.msk.f32.gmra.mrb[2].mxu1 %vm160_vm0, %v151_v41 }
  0x97   :  { %6232 = vmatprep.subr.bf16.mxu0 %v6839_v9  ;;  %5688 = vmatprep.mubr.msk.f32.mxu1 %vm160_vm0, %v7033_v1 }
  0x99   :  { %5709 = vmatmul.mubr.f32.vlgmr.msra.gmra.mrb[4].mxu0 %v6841_v12 }
  0x9a   :  { %6234 = vmatpush3.bf16.msra.mxu0 %v7053_v6  ;;  %5730 = vmatprep.mubr.msk.f32.mxu0 %vm6840_vm1, %v6841_v12 }
  0x9b   :  { %6235 = vmatprep.subr.bf16.mxu0 %v6839_v9  ;;  %5689 = vmatmul.mubr.msk.f32.vlgmr.msra.gmra.mrb[4].mxu1 %vm160_vm0, %v7038_v2 }
  0x9c   :  { %6228 = vmatpush3.bf16.msra.mxu1 %v7053_v6  ;;  %5691 = vmatprep.mubr.msk.f32.mxu1 %vm160_vm0, %v7051_v5 }
  0x9d   :  { %6229 = vmatprep.subr.bf16.mxu1 %v6839_v9 }
  0x9e   :  { %6237 = vmatpush3.bf16.msra.mxu0 %v7072_v11 }
  0x9f   :  { %6244 = vmatprep.subr.bf16.mxu0 %v6839_v9  ;;  %5692 = vmatmul.mubr.msk.f32.gmra.mrb[6].mxu1 %vm160_vm0, %v7070_v10 }
  0xa0   :  { %5694 = vmatprep.mubr.msk.f32.mxu1 %vm160_vm0, %v148_v37  ;;  %6231 = vmatpush3.bf16.msra.mxu1 %v7072_v11 }
  0xa1   :  { %6238 = vmatprep.subr.bf16.mxu1 %v6839_v9 }
  0xa3   :  { %5695 = vmatmul.mubr.msk.f32.gmra.mrb[8].mxu1 %vm160_vm0, %v149_v38 }
  0xa4   :  { %5697 = vmatprep.mubr.msk.f32.mxu1 %vm160_vm0, %v150_v40 }
  0xa7   :  { %5698 = vmatmul.mubr.msk.f32.gmra.mrb[10].mxu1 %vm160_vm0, %v151_v41 }
  0xa8   :  { %5719 = vmatprep.mubr.msk.f32.mxu1 %vm6840_vm1, %v6841_v12 }
 0x163   :  { %v7088_v13 = vpop.f32.mrb[0].mxu0 }
 0x164   :  { %v251_v14 = vpop.f32.mrb[1].mxu0  ;;  %v257_v3 = vadd.f32 %v7088_v13, %v7093_v15 }
 0x165   :  { %v252_v18 = vadd.f32 %v7093_v15, %v251_v14  ;;  %v7146_v46 = vpop.f32.mrb[0].mxu1 }
 0x166   :  { %v7148_v47 = vpop.f32.mrb[1].mxu1 }
 0x167   :  { %v7095_v16 = vpop.f32.mrb[2].mxu0 }
 0x168   :  { %v7097_v17 = vpop.f32.mrb[3].mxu0 }
 0x169   :  { %v7150_v48 = vpop.f32.mrb[2].mxu1 }
 0x16a   :  { %v7152_v49 = vpop.f32.mrb[3].mxu1 }
 0x16c   :  { %v481_v19 = vpop.f32.mrb[4].mxu0 }
 0x16d   :  { %v485_v20 = vadd.f32 %v481_v19, %v252_v18  ;;  %v5710_v21 = vpop.f32.mrb[5].mxu0 }
 0x16e   :  { %v5690_v51 = vpop.f32.mrb[4].mxu1 }
 0x16f   :  { %v490_v22 = vand.u32 2147483647, %v485_v20  ;;  %v486_v26 = vmul.f32 0.2, %v485_v20  ;;  %v7157_v52 = vadd.f32 %v5690_v51, %v7154_v50  ;;  %v364_v53 = vpop.f32.mrb[5].mxu1 }
 0x170   :  { %v7160_v54 = vadd.f32 %v7154_v50, %v364_v53 }
 0x171   :  { %v491_v23 = vadd.f32 1.0, %v490_v22  ;;  %v487_v27 = vadd.f32 0.5, %v486_v26 }
 0x172   :  { %v5693_v55 = vpop.f32.mrb[6].mxu1 }
 0x173   :  { %6508 = vrcp.f32 %v491_v23  ;;  %v488_v28 = vmax.f32 %v487_v27, 0.0  ;;  %v7163_v56 = vadd.f32 %v5693_v55, %v7154_v50  ;;  %v374_v57 = vpop.f32.mrb[7].mxu1 }
 0x174   :  { %v7166_v58 = vadd.f32 %v7154_v50, %v374_v57 }
 0x175   :  { %v489_v29 = vmin.f32 %v488_v28, 1.0 }
 0x176   :  { %v5696_v59 = vpop.f32.mrb[8].mxu1 }
 0x177   :  { %v494_v32 = vmul.f32 0.0, %v489_v29  ;;  %v7169_v60 = vadd.f32 %v5696_v59, %v7154_v50  ;;  %v384_v61 = vpop.f32.mrb[9].mxu1 }
 0x178   :  { %v7172_v62 = vadd.f32 %v7154_v50, %v384_v61 }
 0x17a   :  { %v7174_v63 = vpop.f32.mrb[10].mxu1 }
 0x17b   :  { %v394_v0 = vpop.f32.mrb[11].mxu1 }
 0x17c   :  { %v7177_v1 = vadd.f32 %v7154_v50, %v394_v0 }
 0x17d   :  { %v6509_v24 = vpop.eup %6508 }
 0x17e   :  { %v493_v25 = vmul.f32 %v6509_v24, %v485_v20 }
 0x180   :  { %496 = vrot.lane.b32.xlu0 %v493_v25, %s6842_s30 }
 0x1f2   :  { %v497_v30 = vpop.permute.xlu0 %496 }
 0x1f3   :  { %v499_v31 = vmul.f32 %v497_v30, %v489_v29 }
 0x1f5   :  { %501 = vrot.lane.b32.xlu0 %v499_v31, %s6842_s30 }
 0x267   :  { %v502_v33 = vpop.permute.xlu0 %501 }
 0x268   :  { %v7102_v34 = vadd.f32 %v502_v33, %v494_v32 }
 0x26a   :  { %v505_v35 = vand.u32 2147483647, %v7102_v34 }
 0x26c   :  { %v506_v36 = vadd.f32 1.0, %v505_v35 }
 0x26e   :  { %6510 = vrcp.f32 %v506_v36 }
 0x278   :  { %v6511_v42 = vpop.eup %6510 }
 0x279   :  { %v508_v43 = vmul.f32 %v6511_v42, %v7102_v34 }
 0x27b   :  { %510 = vrot.lane.b32.xlu1 %v508_v43, %s6842_s30 }
 0x2ed   :  { %v511_v44 = vpop.permute.xlu1 %510 }
 0x2ee   :  { %v7142_v45 = vmul.f32 %v511_v44, %v489_v29 }
 0x2f0   :  { %515 = vrot.lane.b32.xlu1 %v7142_v45, %s6843_s22 }
 0x362   :  { %v516_v2 = vpop.permute.xlu1 %515 }
 0x363   :  { %5720 = vmatmul.mubr.msk.f32.vlgmr.msra.gmra.mrb[12].mxu1 %vm411_vm2, %v516_v2 }
 0x364   :  { %6240 = vmatpush3.bf16.msra.mxu1 %v7053_v6  ;;  %5741 = vmatprep.mubr.msk.f32.mxu1 %vm6840_vm1, %v6841_v12 }
 0x365   :  { %6241 = vmatprep.subr.bf16.mxu1 %v6839_v9 }
 0x368   :  { %6243 = vmatpush3.bf16.msra.mxu1 %v7072_v11 }
 0x369   :  { %6250 = vmatprep.subr.bf16.mxu1 %v6839_v9 }
 0x436   :  { %v585_v4 = vpop.f32.mrb[12].mxu1 }
 0x437   :  { %v589_v5 = vadd.f32 %v585_v4, %v257_v3  ;;  %v5721_v7 = vpop.f32.mrb[13].mxu1 }
 0x439   :  { %v594_v8 = vand.u32 2147483647, %v589_v5  ;;  %v590_v19 = vmul.f32 0.2, %v589_v5 }
 0x43b   :  { %v595_v10 = vadd.f32 1.0, %v594_v8  ;;  %v591_v20 = vadd.f32 0.5, %v590_v19  ;;  %v267_v8 = vadd.f32 %v7095_v16, %v7093_v15 }
 0x43d   :  { %6512 = vrcp.f32 %v595_v10  ;;  %v592_v21 = vmax.f32 %v591_v20, 0.0 }
 0x43f   :  { %v593_v22 = vmin.f32 %v592_v21, 1.0 }
 0x441   :  { %v598_v13 = vmul.f32 %v593_v22, %v7102_v34  ;;  %v262_v34 = vadd.f32 %v7093_v15, %v7097_v17 }
 0x447   :  { %v6513_v14 = vpop.eup %6512 }
 0x448   :  { %v597_v18 = vmul.f32 %v6513_v14, %v589_v5 }
 0x44a   :  { %600 = vrot.lane.b32.xlu0 %v597_v18, %s6842_s30 }
 0x4bc   :  { %v601_v23 = vpop.permute.xlu0 %600 }
 0x4bd   :  { %v603_v24 = vmul.f32 %v601_v23, %v593_v22 }
 0x4bf   :  { %605 = vrot.lane.b32.xlu1 %v603_v24, %s6842_s30 }
 0x531   :  { %v606_v25 = vpop.permute.xlu1 %605 }
 0x532   :  { %v608_v26 = vadd.f32 %v606_v25, %v598_v13 }
 0x534   :  { %v609_v27 = vand.u32 2147483647, %v608_v26 }
 0x536   :  { %v610_v28 = vadd.f32 1.0, %v609_v27 }
 0x538   :  { %6514 = vrcp.f32 %v610_v28 }
 0x542   :  { %v6515_v29 = vpop.eup %6514 }
 0x543   :  { %v612_v30 = vmul.f32 %v6515_v29, %v608_v26 }
 0x545   :  { %614 = vrot.lane.b32.xlu0 %v612_v30, %s6842_s30 }
 0x5b7   :  { %v615_v31 = vpop.permute.xlu0 %614 }
 0x5b8   :  { %v7192_v32 = vmul.f32 %v615_v31, %v593_v22 }
 0x5ba   :  { %619 = vrot.lane.b32.xlu1 %v7192_v32, %s6843_s22 }
 0x62c   :  { %v620_v33 = vpop.permute.xlu1 %619 }
 0x62d   :  { %5731 = vmatmul.mubr.msk.f32.vlgmr.msra.gmra.mrb[6].mxu0 %vm411_vm2, %v620_v33 }
 0x62e   :  { %6246 = vmatpush3.bf16.msra.mxu0 %v7053_v6  ;;  %5752 = vmatprep.mubr.msk.f32.mxu0 %vm6840_vm1, %v6841_v12 }
 0x62f   :  { %6247 = vmatprep.subr.bf16.mxu0 %v6839_v9 }
 0x632   :  { %6249 = vmatpush3.bf16.msra.mxu0 %v7072_v11 }
 0x633   :  { %6256 = vmatprep.subr.bf16.mxu0 %v6839_v9 }
 0x700   :  { %v689_v35 = vpop.f32.mrb[6].mxu0 }
 0x701   :  { %v693_v36 = vadd.f32 %v689_v35, %v262_v34  ;;  %v5732_v37 = vpop.f32.mrb[7].mxu0 }
 0x703   :  { %v698_v38 = vand.u32 2147483647, %v693_v36  ;;  %v694_v42 = vmul.f32 0.2, %v693_v36 }
 0x705   :  { %v699_v39 = vadd.f32 1.0, %v698_v38  ;;  %v695_v43 = vadd.f32 0.5, %v694_v42  ;;  %v272_v38 = vadd.f32 %v7093_v15, %v7148_v47 }
 0x707   :  { %6516 = vrcp.f32 %v699_v39  ;;  %v696_v44 = vmax.f32 %v695_v43, 0.0 }
 0x709   :  { %v697_v51 = vmin.f32 %v696_v44, 1.0 }
 0x70b   :  { %v702_v57 = vmul.f32 %v697_v51, %v608_v26 }
 0x711   :  { %v6517_v40 = vpop.eup %6516 }
 0x712   :  { %v701_v41 = vmul.f32 %v6517_v40, %v693_v36 }
 0x714   :  { %704 = vrot.lane.b32.xlu0 %v701_v41, %s6842_s30 }
 0x786   :  { %v705_v53 = vpop.permute.xlu0 %704 }
 0x787   :  { %v707_v55 = vmul.f32 %v705_v53, %v697_v51 }
 0x789   :  { %709 = vrot.lane.b32.xlu1 %v707_v55, %s6842_s30 }
 0x7fb   :  { %v710_v17 = vpop.permute.xlu1 %709 }
 0x7fc   :  { %v712_v59 = vadd.f32 %v710_v17, %v702_v57 }
 0x7fe   :  { %v713_v61 = vand.u32 2147483647, %v712_v59 }
 0x800   :  { %v714_v0 = vadd.f32 1.0, %v713_v61 }
 0x802   :  { %6518 = vrcp.f32 %v714_v0 }
 0x80c   :  { %v6519_v2 = vpop.eup %6518 }
 0x80d   :  { %v716_v3 = vmul.f32 %v6519_v2, %v712_v59 }
 0x80f   :  { %718 = vrot.lane.b32.xlu0 %v716_v3, %s6842_s30 }
 0x881   :  { %v719_v4 = vpop.permute.xlu0 %718 }
 0x882   :  { %v7208_v5 = vmul.f32 %v719_v4, %v697_v51 }
 0x884   :  { %723 = vrot.lane.b32.xlu1 %v7208_v5, %s6843_s22 }
 0x8f6   :  { %v724_v7 = vpop.permute.xlu1 %723 }
 0x8f7   :  { %5742 = vmatmul.mubr.msk.f32.vlgmr.msra.gmra.mrb[14].mxu1 %vm411_vm2, %v724_v7 }
 0x8f8   :  { %6252 = vmatpush3.bf16.msra.mxu1 %v7053_v6  ;;  %5763 = vmatprep.mubr.msk.f32.mxu1 %vm6840_vm1, %v6841_v12 }
 0x8f9   :  { %6253 = vmatprep.subr.bf16.mxu1 %v6839_v9 }
 0x8fc   :  { %6255 = vmatpush3.bf16.msra.mxu1 %v7072_v11 }
 0x8fd   :  { %6262 = vmatprep.subr.bf16.mxu1 %v6839_v9 }
 0x9ca   :  { %v793_v10 = vpop.f32.mrb[14].mxu1 }
 0x9cb   :  { %v797_v14 = vadd.f32 %v793_v10, %v267_v8  ;;  %v5743_v18 = vpop.f32.mrb[15].mxu1 }
 0x9cd   :  { %v802_v19 = vand.u32 2147483647, %v797_v14  ;;  %v798_v23 = vmul.f32 0.2, %v797_v14 }
 0x9cf   :  { %v803_v20 = vadd.f32 1.0, %v802_v19  ;;  %v799_v24 = vadd.f32 0.5, %v798_v23  ;;  %v277_v19 = vadd.f32 %v7146_v46, %v7093_v15 }
 0x9d1   :  { %6520 = vrcp.f32 %v803_v20  ;;  %v800_v13 = vmax.f32 %v799_v24, 0.0 }
 0x9d3   :  { %v801_v25 = vmin.f32 %v800_v13, 1.0 }
 0x9d5   :  { %v806_v28 = vmul.f32 %v801_v25, %v712_v59 }
 0x9db   :  { %v6521_v21 = vpop.eup %6520 }
 0x9dc   :  { %v805_v22 = vmul.f32 %v6521_v21, %v797_v14 }
 0x9de   :  { %808 = vrot.lane.b32.xlu0 %v805_v22, %s6842_s30 }
 0xa50   :  { %v809_v26 = vpop.permute.xlu0 %808 }
 0xa51   :  { %v811_v27 = vmul.f32 %v809_v26, %v801_v25 }
 0xa53   :  { %813 = vrot.lane.b32.xlu1 %v811_v27, %s6842_s30 }
 0xac5   :  { %v814_v16 = vpop.permute.xlu1 %813 }
 0xac6   :  { %v816_v29 = vadd.f32 %v814_v16, %v806_v28 }
 0xac8   :  { %v817_v30 = vand.u32 2147483647, %v816_v29 }
 0xaca   :  { %v818_v31 = vadd.f32 1.0, %v817_v30 }
 0xacc   :  { %6522 = vrcp.f32 %v818_v31 }
 0xad6   :  { %v6523_v33 = vpop.eup %6522 }
 0xad7   :  { %v820_v34 = vmul.f32 %v6523_v33, %v816_v29 }
 0xad9   :  { %822 = vrot.lane.b32.xlu0 %v820_v34, %s6842_s30 }
 0xb4b   :  { %v823_v35 = vpop.permute.xlu0 %822 }
 0xb4c   :  { %v7224_v36 = vmul.f32 %v823_v35, %v801_v25 }
 0xb4e   :  { %827 = vrot.lane.b32.xlu1 %v7224_v36, %s6843_s22 }
 0xbc0   :  { %v828_v37 = vpop.permute.xlu1 %827 }
 0xbc1   :  { %5753 = vmatmul.mubr.msk.f32.vlgmr.msra.gmra.mrb[8].mxu0 %vm411_vm2, %v828_v37 }
 0xbc2   :  { %6258 = vmatpush3.bf16.msra.mxu0 %v7053_v6  ;;  %5774 = vmatprep.mubr.msk.f32.mxu0 %vm6840_vm1, %v6841_v12 }
 0xbc3   :  { %6259 = vmatprep.subr.bf16.mxu0 %v6839_v9 }
 0xbc6   :  { %6261 = vmatpush3.bf16.msra.mxu0 %v7072_v11 }
 0xbc7   :  { %6268 = vmatprep.subr.bf16.mxu0 %v6839_v9 }
 0xc94   :  { %v897_v39 = vpop.f32.mrb[8].mxu0 }
 0xc95   :  { %v901_v40 = vadd.f32 %v897_v39, %v272_v38  ;;  %v5754_v41 = vpop.f32.mrb[9].mxu0  ;;  %v407_v39 = vld [vmem:[%s8058_s5] sm:$0xff] }
 0xc97   :  { %v906_v42 = vand.u32 2147483647, %v901_v40  ;;  %v902_v53 = vmul.f32 0.2, %v901_v40 }
 0xc99   :  { %v907_v43 = vadd.f32 1.0, %v906_v42  ;;  %v903_v55 = vadd.f32 0.5, %v902_v53  ;;  %v409_v42 = vld [vmem:[%s8058_s5 + $0x10] sm:$0xff]  ;;  %v282_v53 = vadd.f32 %v7093_v15, %v7152_v49 }
 0xc9b   :  { %6524 = vrcp.f32 %v907_v43  ;;  %v904_v57 = vmax.f32 %v903_v55, 0.0  ;;  %v410_v43 = vld [vmem:[%s8058_s5 + $0x18] sm:$0xff] }
 0xc9d   :  { %v905_v17 = vmin.f32 %v904_v57, 1.0 }
 0xc9f   :  { %v910_v0 = vmul.f32 %v905_v17, %v816_v29 }
 0xca5   :  { %v6525_v44 = vpop.eup %6524 }
 0xca6   :  { %v909_v51 = vmul.f32 %v6525_v44, %v901_v40  ;;  %v408_v40 = vld [vmem:[%s8058_s5 + $0x8] sm:$0xff] }
 0xca7   :  { %v7270_v41 = vpack.c.bf16 %v408_v40, %v407_v39 }
 0xca8   :  { %912 = vrot.lane.b32.xlu0 %v909_v51, %s6842_s30  ;;  %v7280_v51 = vpack.c.bf16 %v410_v43, %v409_v42 }
 0xd1a   :  { %v913_v59 = vpop.permute.xlu0 %912 }
 0xd1b   :  { %v915_v61 = vmul.f32 %v913_v59, %v905_v17 }
 0xd1d   :  { %917 = vrot.lane.b32.xlu1 %v915_v61, %s6842_s30 }
 0xd8f   :  { %v918_v47 = vpop.permute.xlu1 %917 }
 0xd90   :  { %v920_v2 = vadd.f32 %v918_v47, %v910_v0  ;;  %v400_v0 = vadd.f32 %v7174_v63, %v7154_v50 }
 0xd92   :  { %v921_v3 = vand.u32 2147483647, %v920_v2 }
 0xd94   :  { %v922_v4 = vadd.f32 1.0, %v921_v3 }
 0xd96   :  { %6526 = vrcp.f32 %v922_v4 }
 0xda0   :  { %v6527_v7 = vpop.eup %6526 }
 0xda1   :  { %v924_v8 = vmul.f32 %v6527_v7, %v920_v2 }
 0xda3   :  { %926 = vrot.lane.b32.xlu0 %v924_v8, %s6842_s30 }
 0xe15   :  { %v927_v10 = vpop.permute.xlu0 %926 }
 0xe16   :  { %v7240_v14 = vmul.f32 %v927_v10, %v905_v17 }
 0xe18   :  { %931 = vrot.lane.b32.xlu1 %v7240_v14, %s6843_s22 }
 0xe8a   :  { %v932_v18 = vpop.permute.xlu1 %931 }
 0xe8b   :  { %5764 = vmatmul.mubr.msk.f32.vlgmr.msra.gmra.mrb[16].mxu1 %vm411_vm2, %v932_v18 }
 0xe8c   :  { %6264 = vmatpush3.bf16.msra.mxu1 %v7053_v6  ;;  %5785 = vmatprep.mubr.msk.f32.mxu1 %vm6840_vm1, %v6841_v12 }
 0xe8d   :  { %6265 = vmatprep.subr.bf16.mxu1 %v6839_v9 }
 0xe90   :  { %6267 = vmatpush3.bf16.msra.mxu1 %v7072_v11 }
 0xe91   :  { %6274 = vmatprep.subr.bf16.mxu1 %v6839_v9 }
 0xf5e   :  { %v1001_v20 = vpop.f32.mrb[16].mxu1 }
 0xf5f   :  { %v1005_v21 = vadd.f32 %v1001_v20, %v277_v19  ;;  %v5765_v22 = vpop.f32.mrb[17].mxu1 }
 0xf61   :  { %v1010_v23 = vand.u32 2147483647, %v1005_v21  ;;  %v1006_v25 = vmul.f32 0.2, %v1005_v21 }
 0xf63   :  { %v1011_v24 = vadd.f32 1.0, %v1010_v23  ;;  %v1007_v26 = vadd.f32 0.5, %v1006_v25 }
 0xf65   :  { %6528 = vrcp.f32 %v1011_v24  ;;  %v1008_v27 = vmax.f32 %v1007_v26, 0.0 }
 0xf67   :  { %v1009_v28 = vmin.f32 %v1008_v27, 1.0 }
 0xf69   :  { %v1014_v29 = vmul.f32 %v1009_v28, %v920_v2 }
 0xf6f   :  { %v6529_v13 = vpop.eup %6528 }
 0xf70   :  { %v1013_v6 = vmul.f32 %v6529_v13, %v1005_v21 }
 0xf72   :  { %1016 = vrot.lane.b32.xlu0 %v1013_v6, %s6842_s30 }
 0xfe4   :  { %v1017_v11 = vpop.permute.xlu0 %1016 }
 0xfe5   :  { %v1019_v16 = vmul.f32 %v1017_v11, %v1009_v28 }
 0xfe7   :  { %1021 = vrot.lane.b32.xlu1 %v1019_v16, %s6842_s30 }
0x1059   :  { %v1022_v46 = vpop.permute.xlu1 %1021 }
0x105a   :  { %v7255_v30 = vadd.f32 %v1022_v46, %v1014_v29 }
0x105c   :  { %v1025_v31 = vand.u32 2147483647, %v7255_v30 }
0x105e   :  { %v1026_v33 = vadd.f32 1.0, %v1025_v31 }
0x1060   :  { %6530 = vrcp.f32 %v1026_v33 }
0x106a   :  { %v6531_v34 = vpop.eup %6530 }
0x106b   :  { %v1028_v35 = vmul.f32 %v6531_v34, %v7255_v30 }
0x106d   :  { %1030 = vrot.lane.b32.xlu0 %v1028_v35, %s6842_s30 }
0x10df   :  { %v1031_v37 = vpop.permute.xlu0 %1030 }
0x10e0   :  { %v7260_v38 = vmul.f32 %v1031_v37, %v1009_v28 }
0x10e2   :  { %1035 = vrot.lane.b32.xlu1 %v7260_v38, %s6843_s22 }
0x1154   :  { %v1036_v44 = vpop.permute.xlu1 %1035 }
0x1155   :  { %5775 = vmatmul.mubr.msk.f32.vlgmr.msra.gmra.mrb[10].mxu0 %vm411_vm2, %v1036_v44 }
0x1156   :  { %6270 = vmatpush3.bf16.msra.mxu0 %v7270_v41  ;;  %5796 = vmatprep.mubr.msk.f32.mxu0 %vm6840_vm1, %v6841_v12 }
0x1157   :  { %6271 = vmatprep.subr.bf16.mxu0 %v6839_v9 }
0x115a   :  { %6273 = vmatpush3.bf16.msra.mxu0 %v7280_v51 }
0x115b   :  { %6280 = vmatprep.subr.bf16.mxu0 %v6839_v9 }
0x115d   :  { %5797 = vmatmul.mubr.f32.vlgmr.msra.gmra.mrb[12].mxu0 %v6841_v12 }
0x115e   :  { %6282 = vmatpush3.bf16.msra.mxu0 %v7270_v41  ;;  %5818 = vmatprep.mubr.msk.f32.mxu0 %vm6840_vm1, %v6841_v12 }
0x115f   :  { %6283 = vmatprep.subr.bf16.mxu0 %v6839_v9 }
0x1162   :  { %6285 = vmatpush3.bf16.msra.mxu0 %v7280_v51 }
0x1163   :  { %6292 = vmatprep.subr.bf16.mxu0 %v6839_v9 }
0x1228   :  { %v1105_v55 = vpop.f32.mrb[10].mxu0 }
0x1229   :  { %v1109_v57 = vadd.f32 %v1105_v55, %v282_v53  ;;  %v5776_v17 = vpop.f32.mrb[11].mxu0 }
0x122a   :  { %v287_v17 = vadd.f32 %v7150_v48, %v7093_v15 }
0x122b   :  { %v1114_v59 = vand.u32 2147483647, %v1109_v57  ;;  %v1110_v19 = vmul.f32 0.2, %v1109_v57 }
0x122d   :  { %v1115_v61 = vadd.f32 1.0, %v1114_v59  ;;  %v1111_v20 = vadd.f32 0.5, %v1110_v19 }
0x122f   :  { %6532 = vrcp.f32 %v1115_v61  ;;  %v1112_v21 = vmax.f32 %v1111_v20, 0.0 }
0x1230   :  { %v1308_v47 = vpop.f32.mrb[12].mxu0 }
0x1231   :  { %v1312_v2 = vadd.f32 %v1308_v47, %v400_v0  ;;  %v5798_v3 = vpop.f32.mrb[13].mxu0  ;;  %v1113_v63 = vmin.f32 %v1112_v21, 1.0 }
0x1233   :  { %v1317_v4 = vand.u32 2147483647, %v1312_v2  ;;  %v1313_v22 = vmul.f32 0.2, %v1312_v2  ;;  %v1118_v27 = vmul.f32 %v1113_v63, %v7255_v30 }
0x1235   :  { %v1318_v7 = vadd.f32 1.0, %v1317_v4  ;;  %v1314_v50 = vadd.f32 0.5, %v1313_v22 }
0x1237   :  { %6534 = vrcp.f32 %v1318_v7  ;;  %v1315_v13 = vmax.f32 %v1314_v50, 0.0 }
0x1239   :  { %v6533_v8 = vpop.eup %6532  ;;  %v1316_v6 = vmin.f32 %v1315_v13, 1.0 }
0x123a   :  { %v1117_v10 = vmul.f32 %v6533_v8, %v1109_v57 }
0x123b   :  { %v1321_v46 = vmul.f32 0.0, %v1316_v6 }
0x123c   :  { %1120 = vrot.lane.b32.xlu0 %v1117_v10, %s6842_s30 }
0x1241   :  { %v6535_v49 = vpop.eup %6534 }
0x1242   :  { %v1320_v18 = vmul.f32 %v6535_v49, %v1312_v2 }
0x1244   :  { %1323 = vrot.lane.b32.xlu1 %v1320_v18, %s6842_s30 }
0x12ae   :  { %v1121_v23 = vpop.permute.xlu0 %1120 }
0x12af   :  { %v1123_v24 = vmul.f32 %v1121_v23, %v1113_v63 }
0x12b1   :  { %1125 = vrot.lane.b32.xlu0 %v1123_v24, %s6842_s30 }
0x12b6   :  { %v1324_v25 = vpop.permute.xlu1 %1323 }
0x12b7   :  { %v1326_v26 = vmul.f32 %v1324_v25, %v1316_v6 }
0x12b9   :  { %1328 = vrot.lane.b32.xlu1 %v1326_v26, %s6842_s30 }
0x1323   :  { %v1126_v28 = vpop.permute.xlu0 %1125 }
0x1324   :  { %v7303_v11 = vadd.f32 %v1126_v28, %v1118_v27 }
0x1326   :  { %v1129_v16 = vand.u32 2147483647, %v7303_v11 }
0x1328   :  { %v1130_v29 = vadd.f32 1.0, %v1129_v16 }
0x132a   :  { %6536 = vrcp.f32 %v1130_v29 }
0x132b   :  { %v1329_v31 = vpop.permute.xlu1 %1328 }
0x132c   :  { %v1331_v33 = vadd.f32 %v1329_v31, %v1321_v46 }
0x132e   :  { %v1332_v34 = vand.u32 2147483647, %v1331_v33 }
0x1330   :  { %v1333_v35 = vadd.f32 1.0, %v1332_v34 }
0x1332   :  { %6538 = vrcp.f32 %v1333_v35 }
0x1334   :  { %v6537_v37 = vpop.eup %6536 }
0x1335   :  { %v1132_v39 = vmul.f32 %v6537_v37, %v7303_v11 }
0x1337   :  { %1134 = vrot.lane.b32.xlu0 %v1132_v39, %s6842_s30 }
0x133c   :  { %v6539_v40 = vpop.eup %6538 }
0x133d   :  { %v1335_v30 = vmul.f32 %v6539_v40, %v1331_v33 }
0x133f   :  { %1337 = vrot.lane.b32.xlu1 %v1335_v30, %s6842_s30 }
0x13a9   :  { %v1135_v42 = vpop.permute.xlu0 %1134 }
0x13aa   :  { %v7309_v43 = vmul.f32 %v1135_v42, %v1113_v63 }
0x13ac   :  { %1139 = vrot.lane.b32.xlu0 %v7309_v43, %s6843_s22 }
0x13b1   :  { %v1338_v44 = vpop.permute.xlu1 %1337 }
0x13b2   :  { %v7313_v53 = vmul.f32 %v1338_v44, %v1316_v6 }
0x13b4   :  { %1352 = vrot.lane.b32.xlu1 %v7313_v53, %s6843_s22 }
0x141e   :  { %v1140_v55 = vpop.permute.xlu0 %1139 }
0x141f   :  { %5786 = vmatmul.mubr.msk.f32.vlgmr.msra.gmra.mrb[18].mxu1 %vm411_vm2, %v1140_v55 }
0x1420   :  { %6276 = vmatpush3.bf16.msra.mxu1 %v7270_v41  ;;  %5807 = vmatprep.mubr.msk.f32.mxu1 %vm6840_vm1, %v6841_v12 }
0x1421   :  { %6277 = vmatprep.subr.bf16.mxu1 %v6839_v9 }
0x1424   :  { %6279 = vmatpush3.bf16.msra.mxu1 %v7280_v51 }
0x1425   :  { %6286 = vmatprep.subr.bf16.mxu1 %v6839_v9 }
0x1426   :  { %v1353_v57 = vpop.permute.xlu1 %1352 }
0x1427   :  { %5808 = vmatmul.mubr.msk.f32.vlgmr.msra.gmra.mrb[20].mxu1 %vm411_vm2, %v1353_v57 }
0x1428   :  { %6288 = vmatpush3.bf16.msra.mxu1 %v7270_v41  ;;  %5829 = vmatprep.mubr.msk.f32.mxu1 %vm6840_vm1, %v6841_v12 }
0x1429   :  { %6289 = vmatprep.subr.bf16.mxu1 %v6839_v9 }
0x142c   :  { %6291 = vmatpush3.bf16.msra.mxu1 %v7280_v51 }
0x142d   :  { %6298 = vmatprep.subr.bf16.mxu1 %v6839_v9 }
0x14f2   :  { %v1209_v59 = vpop.f32.mrb[18].mxu1 }
0x14f3   :  { %v7333_v61 = vadd.f32 %v1209_v59, %v287_v17  ;;  %v5787_v0 = vpop.f32.mrb[19].mxu1 }
0x14fa   :  { %v1422_v47 = vpop.f32.mrb[20].mxu1 }
0x14fb   :  { %v1426_v2 = vadd.f32 %v1422_v47, %v7177_v1  ;;  %v5809_v3 = vpop.f32.mrb[21].mxu1 }
0x14fd   :  { %v1431_v4 = vand.u32 2147483647, %v1426_v2  ;;  %v1427_v49 = vmul.f32 0.2, %v1426_v2 }
0x14ff   :  { %v1432_v7 = vadd.f32 1.0, %v1431_v4  ;;  %v1428_v18 = vadd.f32 0.5, %v1427_v49 }
0x1501   :  { %6540 = vrcp.f32 %v1432_v7  ;;  %v1429_v19 = vmax.f32 %v1428_v18, 0.0 }
0x1503   :  { %v1430_v20 = vmin.f32 %v1429_v19, 1.0 }
0x1505   :  { %v1435_v21 = vmul.f32 %v1430_v20, %v1331_v33 }
0x150b   :  { %v6541_v8 = vpop.eup %6540 }
0x150c   :  { %v1434_v10 = vmul.f32 %v6541_v8, %v1426_v2 }
0x150e   :  { %1437 = vrot.lane.b32.xlu0 %v1434_v10, %s6842_s30 }
0x1580   :  { %v1438_v15 = vpop.permute.xlu0 %1437 }
0x1581   :  { %v1440_v48 = vmul.f32 %v1438_v15, %v1430_v20 }
0x1583   :  { %1442 = vrot.lane.b32.xlu1 %v1440_v48, %s6842_s30 }
0x15f5   :  { %v1443_v22 = vpop.permute.xlu1 %1442 }
0x15f6   :  { %v1445_v50 = vadd.f32 %v1443_v22, %v1435_v21 }
0x15f8   :  { %v1446_v1 = vand.u32 2147483647, %v1445_v50 }
0x15fa   :  { %v1447_v63 = vadd.f32 1.0, %v1446_v1 }
0x15fc   :  { %6542 = vrcp.f32 %v1447_v63 }
0x1606   :  { %v6543_v23 = vpop.eup %6542 }
0x1607   :  { %v1449_v24 = vmul.f32 %v6543_v23, %v1445_v50 }
0x1609   :  { %1451 = vrot.lane.b32.xlu0 %v1449_v24, %s6842_s30 }
0x167b   :  { %v1452_v13 = vpop.permute.xlu0 %1451 }
0x167c   :  { %v7339_v6 = vmul.f32 %v1452_v13, %v1430_v20 }
0x167e   :  { %1466 = vrot.lane.b32.xlu1 %v7339_v6, %s6843_s22 }
0x16f0   :  { %v1467_v25 = vpop.permute.xlu1 %1466 }
0x16f1   :  { %5819 = vmatmul.mubr.msk.f32.vlgmr.msra.gmra.mrb[14].mxu0 %vm411_vm2, %v1467_v25 }
0x16f2   :  { %6294 = vmatpush3.bf16.msra.mxu0 %v7270_v41  ;;  %5840 = vmatprep.mubr.msk.f32.mxu0 %vm6840_vm1, %v6841_v12 }
0x16f3   :  { %6295 = vmatprep.subr.bf16.mxu0 %v6839_v9 }
0x16f6   :  { %6297 = vmatpush3.bf16.msra.mxu0 %v7280_v51 }
0x16f7   :  { %6304 = vmatprep.subr.bf16.mxu0 %v6839_v9 }
0x17c4   :  { %v1536_v26 = vpop.f32.mrb[14].mxu0 }
0x17c5   :  { %v1540_v27 = vadd.f32 %v1536_v26, %v7169_v60  ;;  %v5820_v28 = vpop.f32.mrb[15].mxu0 }
0x17c7   :  { %v1545_v16 = vand.u32 2147483647, %v1540_v27  ;;  %v1541_v33 = vmul.f32 0.2, %v1540_v27 }
0x17c9   :  { %v1546_v29 = vadd.f32 1.0, %v1545_v16  ;;  %v1542_v34 = vadd.f32 0.5, %v1541_v33 }
0x17cb   :  { %6544 = vrcp.f32 %v1546_v29  ;;  %v1543_v35 = vmax.f32 %v1542_v34, 0.0 }
0x17cd   :  { %v1544_v37 = vmin.f32 %v1543_v35, 1.0 }
0x17cf   :  { %v1549_v30 = vmul.f32 %v1544_v37, %v1445_v50 }
0x17d5   :  { %v6545_v46 = vpop.eup %6544 }
0x17d6   :  { %v1548_v31 = vmul.f32 %v6545_v46, %v1540_v27 }
0x17d8   :  { %1551 = vrot.lane.b32.xlu0 %v1548_v31, %s6842_s30 }
0x184a   :  { %v1552_v39 = vpop.permute.xlu0 %1551 }
0x184b   :  { %v1554_v40 = vmul.f32 %v1552_v39, %v1544_v37 }
0x184d   :  { %1556 = vrot.lane.b32.xlu1 %v1554_v40, %s6842_s30 }
0x18bf   :  { %v1557_v42 = vpop.permute.xlu1 %1556 }
0x18c0   :  { %v1559_v44 = vadd.f32 %v1557_v42, %v1549_v30 }
0x18c2   :  { %v1560_v60 = vand.u32 2147483647, %v1559_v44 }
0x18c4   :  { %v1561_v55 = vadd.f32 1.0, %v1560_v60 }
0x18c6   :  { %6546 = vrcp.f32 %v1561_v55 }
0x18d0   :  { %v6547_v57 = vpop.eup %6546 }
0x18d1   :  { %v1563_v17 = vmul.f32 %v6547_v57, %v1559_v44 }
0x18d3   :  { %1565 = vrot.lane.b32.xlu0 %v1563_v17, %s6842_s30 }
0x1945   :  { %v1566_v59 = vpop.permute.xlu0 %1565 }
0x1946   :  { %v7354_v0 = vmul.f32 %v1566_v59, %v1544_v37 }
0x1948   :  { %1580 = vrot.lane.b32.xlu1 %v7354_v0, %s6843_s22 }
0x19ba   :  { %v1581_v47 = vpop.permute.xlu1 %1580 }
0x19bb   :  { %5830 = vmatmul.mubr.msk.f32.vlgmr.msra.gmra.mrb[22].mxu1 %vm411_vm2, %v1581_v47 }
0x19bc   :  { %6300 = vmatpush3.bf16.msra.mxu1 %v7270_v41  ;;  %5851 = vmatprep.mubr.msk.f32.mxu1 %vm6840_vm1, %v6841_v12 }
0x19bd   :  { %6301 = vmatprep.subr.bf16.mxu1 %v6839_v9 }
0x19c0   :  { %6303 = vmatpush3.bf16.msra.mxu1 %v7280_v51 }
0x19c1   :  { %6310 = vmatprep.subr.bf16.mxu1 %v6839_v9 }
0x1a8e   :  { %v1650_v2 = vpop.f32.mrb[22].mxu1 }
0x1a8f   :  { %v1654_v3 = vadd.f32 %v1650_v2, %v7172_v62  ;;  %v5831_v4 = vpop.f32.mrb[23].mxu1 }
0x1a91   :  { %v1659_v7 = vand.u32 2147483647, %v1654_v3  ;;  %v1655_v18 = vmul.f32 0.2, %v1654_v3 }
0x1a93   :  { %v1660_v8 = vadd.f32 1.0, %v1659_v7  ;;  %v1656_v19 = vadd.f32 0.5, %v1655_v18 }
0x1a95   :  { %6548 = vrcp.f32 %v1660_v8  ;;  %v1657_v20 = vmax.f32 %v1656_v19, 0.0 }
0x1a97   :  { %v1658_v15 = vmin.f32 %v1657_v20, 1.0 }
0x1a99   :  { %v1663_v22 = vmul.f32 %v1658_v15, %v1559_v44 }
0x1a9f   :  { %v6549_v10 = vpop.eup %6548 }
0x1aa0   :  { %v1662_v49 = vmul.f32 %v6549_v10, %v1654_v3 }
0x1aa2   :  { %1665 = vrot.lane.b32.xlu0 %v1662_v49, %s6842_s30 }
0x1b14   :  { %v1666_v48 = vpop.permute.xlu0 %1665 }
0x1b15   :  { %v1668_v21 = vmul.f32 %v1666_v48, %v1658_v15 }
0x1b17   :  { %1670 = vrot.lane.b32.xlu1 %v1668_v21, %s6842_s30 }
0x1b89   :  { %v1671_v50 = vpop.permute.xlu1 %1670 }
0x1b8a   :  { %v1673_v1 = vadd.f32 %v1671_v50, %v1663_v22 }
0x1b8c   :  { %v1674_v62 = vand.u32 2147483647, %v1673_v1 }
0x1b8e   :  { %v1675_v63 = vadd.f32 1.0, %v1674_v62 }
0x1b90   :  { %6550 = vrcp.f32 %v1675_v63 }
0x1b9a   :  { %v6551_v23 = vpop.eup %6550 }
0x1b9b   :  { %v1677_v24 = vmul.f32 %v6551_v23, %v1673_v1 }
0x1b9d   :  { %1679 = vrot.lane.b32.xlu0 %v1677_v24, %s6842_s30 }
0x1c0f   :  { %v1680_v13 = vpop.permute.xlu0 %1679 }
0x1c10   :  { %v7369_v25 = vmul.f32 %v1680_v13, %v1658_v15 }
0x1c12   :  { %1694 = vrot.lane.b32.xlu1 %v7369_v25, %s6843_s22 }
0x1c84   :  { %v1695_v26 = vpop.permute.xlu1 %1694 }
0x1c85   :  { %5841 = vmatmul.mubr.msk.f32.vlgmr.msra.gmra.mrb[16].mxu0 %vm411_vm2, %v1695_v26 }
0x1c86   :  { %6306 = vmatpush3.bf16.msra.mxu0 %v7270_v41  ;;  %5862 = vmatprep.mubr.msk.f32.mxu0 %vm6840_vm1, %v6841_v12 }
0x1c87   :  { %6307 = vmatprep.subr.bf16.mxu0 %v6839_v9 }
0x1c8a   :  { %6309 = vmatpush3.bf16.msra.mxu0 %v7280_v51 }
0x1d58   :  { %v1764_v27 = vpop.f32.mrb[16].mxu0 }
0x1d59   :  { %v1768_v28 = vadd.f32 %v1764_v27, %v7163_v56  ;;  %v5842_v16 = vpop.f32.mrb[17].mxu0 }
0x1d5b   :  { %v1773_v29 = vand.u32 2147483647, %v1768_v28  ;;  %v1769_v34 = vmul.f32 0.2, %v1768_v28 }
0x1d5d   :  { %v1774_v46 = vadd.f32 1.0, %v1773_v29  ;;  %v1770_v35 = vadd.f32 0.5, %v1769_v34 }
0x1d5f   :  { %6552 = vrcp.f32 %v1774_v46  ;;  %v1771_v37 = vmax.f32 %v1770_v35, 0.0 }
0x1d61   :  { %v1772_v39 = vmin.f32 %v1771_v37, 1.0 }
0x1d63   :  { %v1777_v42 = vmul.f32 %v1772_v39, %v1673_v1 }
0x1d69   :  { %v6553_v31 = vpop.eup %6552 }
0x1d6a   :  { %v1776_v33 = vmul.f32 %v6553_v31, %v1768_v28 }
0x1d6c   :  { %1779 = vrot.lane.b32.xlu0 %v1776_v33, %s6842_s30 }
0x1dde   :  { %v1780_v40 = vpop.permute.xlu0 %1779 }
0x1ddf   :  { %v1782_v30 = vmul.f32 %v1780_v40, %v1772_v39 }
0x1de1   :  { %1784 = vrot.lane.b32.xlu1 %v1782_v30, %s6842_s30 }
0x1e53   :  { %v1785_v44 = vpop.permute.xlu1 %1784 }
0x1e54   :  { %v1787_v60 = vadd.f32 %v1785_v44, %v1777_v42 }
0x1e56   :  { %v1788_v56 = vand.u32 2147483647, %v1787_v60 }
0x1e58   :  { %v1789_v55 = vadd.f32 1.0, %v1788_v56 }
0x1e5a   :  { %6554 = vrcp.f32 %v1789_v55 }
0x1e64   :  { %v6555_v57 = vpop.eup %6554 }
0x1e65   :  { %v1791_v17 = vmul.f32 %v6555_v57, %v1787_v60  ;;  %v1218_v57 = vand.u32 2147483647, %v7333_v61 }
0x1e67   :  { %1793 = vrot.lane.b32.xlu0 %v1791_v17, %s6842_s30  ;;  %v1219_v17 = vadd.f32 1.0, %v1218_v57 }
0x1ed9   :  { %v1794_v59 = vpop.permute.xlu0 %1793 }
0x1eda   :  { %v7383_v47 = vmul.f32 %v1794_v59, %v1772_v39 }
0x1edc   :  { %1808 = vrot.lane.b32.xlu1 %v7383_v47, %s6843_s22 }
0x1f4e   :  { %v1809_v2 = vpop.permute.xlu1 %1808 }
0x1f4f   :  { %5852 = vmatmul.mubr.msk.f32.vlgmr.msra.gmra.mrb[24].mxu1 %vm411_vm2, %v1809_v2 }
0x1f50   :  { %6312 = vmatpush3.bf16.msra.mxu1 %v7270_v41  ;;  %5873 = vmatprep.mubr.msk.f32.mxu1 %vm6840_vm1, %v6841_v12 }
0x1f51   :  { %6313 = vmatprep.subr.bf16.mxu1 %v6839_v9 }
0x1f54   :  { %6315 = vmatpush3.bf16.msra.mxu1 %v7280_v51 }
0x2022   :  { %v1878_v3 = vpop.f32.mrb[24].mxu1 }
0x2023   :  { %v1882_v4 = vadd.f32 %v1878_v3, %v7166_v58  ;;  %v5853_v7 = vpop.f32.mrb[25].mxu1 }
0x2024   :  { %v1214_v7 = vmul.f32 0.2, %v7333_v61 }
0x2025   :  { %v1887_v8 = vand.u32 2147483647, %v1882_v4  ;;  %v1883_v19 = vmul.f32 0.2, %v1882_v4 }
0x2027   :  { %v1888_v10 = vadd.f32 1.0, %v1887_v8  ;;  %v1884_v41 = vadd.f32 0.5, %v1883_v19  ;;  %v1215_v8 = vadd.f32 0.5, %v1214_v7 }
0x2029   :  { %6556 = vrcp.f32 %v1888_v10  ;;  %v1885_v20 = vmax.f32 %v1884_v41, 0.0  ;;  %v1216_v10 = vmax.f32 %v1215_v8, 0.0 }
0x202b   :  { %v1886_v15 = vmin.f32 %v1885_v20, 1.0 }
0x202d   :  { %v1891_v51 = vmul.f32 %v1886_v15, %v1787_v60 }
0x2033   :  { %v6557_v49 = vpop.eup %6556 }
0x2034   :  { %v1890_v18 = vmul.f32 %v6557_v49, %v1882_v4 }
0x2036   :  { %1893 = vrot.lane.b32.xlu0 %v1890_v18, %s6842_s30  ;;  %v1217_v18 = vmin.f32 %v1216_v10, 1.0 }
0x2038   :  { %v1222_v20 = vmul.f32 %v1217_v18, %v7303_v11 }
0x20a8   :  { %v1894_v48 = vpop.permute.xlu0 %1893 }
0x20a9   :  { %v1896_v21 = vmul.f32 %v1894_v48, %v1886_v15 }
0x20ab   :  { %1898 = vrot.lane.b32.xlu1 %v1896_v21, %s6842_s30 }
0x211d   :  { %v1899_v22 = vpop.permute.xlu1 %1898 }
0x211e   :  { %v1901_v50 = vadd.f32 %v1899_v22, %v1891_v51 }
0x2120   :  { %v1902_v58 = vand.u32 2147483647, %v1901_v50 }
0x2122   :  { %v1903_v1 = vadd.f32 1.0, %v1902_v58  ;;  %v1569_v58 = vadd.f32 %v7354_v0, %v7260_v38 }
0x2124   :  { %6558 = vrcp.f32 %v1903_v1 }
0x212e   :  { %v6559_v62 = vpop.eup %6558 }
0x212f   :  { %v1905_v63 = vmul.f32 %v6559_v62, %v1901_v50 }
0x2131   :  { %1907 = vrot.lane.b32.xlu0 %v1905_v63, %s6842_s30 }
0x21a3   :  { %v1908_v23 = vpop.permute.xlu0 %1907 }
0x21a4   :  { %v7397_v24 = vmul.f32 %v1908_v23, %v1886_v15  ;;  %v1570_v23 = vmul.f32 0.2, %v1569_v58  ;;  %v2160_v58 = vld [vmem:[%s8060_s7 + $0x18] sm:$0xff] }
0x21a6   :  { %1922 = vrot.lane.b32.xlu1 %v7397_v24, %s6843_s22 }
0x2218   :  { %v1923_v13 = vpop.permute.xlu1 %1922 }
0x2219   :  { %5863 = vmatmul.mubr.msk.f32.vlgmr.msra.gmra.mrb[18].mxu0 %vm411_vm2, %v1923_v13 }
0x22ec   :  { %v1992_v26 = vpop.f32.mrb[18].mxu0 }
0x22ed   :  { %v1996_v27 = vadd.f32 %v1992_v26, %v7157_v52  ;;  %v5864_v28 = vpop.f32.mrb[19].mxu0 }
0x22ef   :  { %v2001_v16 = vand.u32 2147483647, %v1996_v27  ;;  %v1997_v33 = vmul.f32 0.2, %v1996_v27 }
0x22f1   :  { %v2002_v29 = vadd.f32 1.0, %v2001_v16  ;;  %v1998_v34 = vadd.f32 0.5, %v1997_v33 }
0x22f3   :  { %6560 = vrcp.f32 %v2002_v29  ;;  %v1999_v35 = vmax.f32 %v1998_v34, 0.0 }
0x22f5   :  { %v2000_v37 = vmin.f32 %v1999_v35, 1.0 }
0x22f7   :  { %v2005_v30 = vmul.f32 %v2000_v37, %v1901_v50 }
0x22fd   :  { %v6561_v46 = vpop.eup %6560 }
0x22fe   :  { %v2004_v31 = vmul.f32 %v6561_v46, %v1996_v27  ;;  %v1571_v27 = vadd.f32 0.5, %v1570_v23  ;;  %v2300_v23 = vld [vmem:[%s8063_s10 + $0x18] sm:$0xff] }
0x2300   :  { %2007 = vrot.lane.b32.xlu0 %v2004_v31, %s6842_s30 }
0x2372   :  { %v2008_v39 = vpop.permute.xlu0 %2007 }
0x2373   :  { %v2010_v40 = vmul.f32 %v2008_v39, %v2000_v37 }
0x2375   :  { %2012 = vrot.lane.b32.xlu1 %v2010_v40, %s6842_s30 }
0x23e7   :  { %v2013_v42 = vpop.permute.xlu1 %2012 }
0x23e8   :  { %v7405_v44 = vadd.f32 %v2013_v42, %v2005_v30 }
0x23ea   :  { %v2016_v52 = vand.u32 2147483647, %v7405_v44 }
0x23ec   :  { %v2017_v60 = vadd.f32 1.0, %v2016_v52 }
0x23ee   :  { %6562 = vrcp.f32 %v2017_v60 }
0x23ef   :  { %6564 = vrcp.f32 %v1219_v17 }
0x23f8   :  { %v6563_v56 = vpop.eup %6562 }
0x23f9   :  { %v2019_v55 = vmul.f32 %v6563_v56, %v7405_v44  ;;  %v6565_v3 = vpop.eup %6564 }
0x23fa   :  { %v1221_v4 = vmul.f32 %v6565_v3, %v7333_v61  ;;  %v1797_v61 = vadd.f32 %v7383_v47, %v7224_v36  ;;  %v1572_v36 = vmax.f32 %v1571_v27, 0.0 }
0x23fb   :  { %2021 = vrot.lane.b32.xlu0 %v2019_v55, %s6842_s30 }
0x23fc   :  { %v1798_v1 = vmul.f32 0.2, %v1797_v61  ;;  %v1573_v47 = vmin.f32 %v1572_v36, 1.0 }
0x23fe   :  { %v1799_v13 = vadd.f32 0.5, %v1798_v1 }
0x246d   :  { %v2022_v59 = vpop.permute.xlu0 %2021 }
0x246e   :  { %v2024_v2 = vmul.f32 %v2022_v59, %v2000_v37 }
0x2470   :  { %2036 = vrot.lane.b32.xlu1 %v2024_v2, %s6843_s22  ;;  %v2025_v22 = vadd.f32 %v2024_v2, %v7192_v32  ;;  %v1800_v32 = vmax.f32 %v1799_v13, 0.0 }
0x2472   :  { %v2026_v50 = vmul.f32 0.2, %v2025_v22  ;;  %v1801_v16 = vmin.f32 %v1800_v32, 1.0 }
0x2474   :  { %1224 = vrot.lane.b32.xlu1 %v1221_v4, %s6842_s30  ;;  %v2027_v62 = vadd.f32 0.5, %v2026_v50  ;;  %v2159_v50 = vld [vmem:[%s8060_s7 + $0x10] sm:$0xff] }
0x2476   :  { %v2028_v26 = vmax.f32 %v2027_v62, 0.0 }
0x2478   :  { %v2029_v28 = vmin.f32 %v2028_v26, 1.0  ;;  %v1455_v26 = vadd.f32 %v7339_v6, %v7309_v43 }
0x24e2   :  { %v2037_v49 = vpop.permute.xlu1 %2036 }
0x24e3   :  { %5874 = vmatmul.mubr.msk.f32.vlgmr.msra.gmra.mrb[26].mxu1 %vm411_vm2, %v2037_v49 }
0x24e6   :  { %v1225_v19 = vpop.permute.xlu1 %1224 }
0x24e7   :  { %v1227_v41 = vmul.f32 %v1225_v19, %v1217_v18 }
0x24e9   :  { %1229 = vrot.lane.b32.xlu1 %v1227_v41, %s6842_s30  ;;  %v2157_v41 = vld [vmem:[%s8060_s7] sm:$0xff] }
0x255b   :  { %v1230_v15 = vpop.permute.xlu1 %1229 }
0x255c   :  { %v1232_v48 = vadd.f32 %v1230_v15, %v1222_v20  ;;  %v2158_v20 = vld [vmem:[%s8060_s7 + $0x8] sm:$0xff]  ;;  %v1911_v15 = vadd.f32 %v7397_v24, %v7208_v5  ;;  %v2299_v5 = vld [vmem:[%s8063_s10 + $0x10] sm:$0xff]  ;;  %v1683_v24 = vadd.f32 %v7369_v25, %v7240_v14  ;;  %v1456_v25 = vmul.f32 0.2, %v1455_v26 }
0x255d   :  { %v6328_v13 = vpack.c.bf16 %v2300_v23, %v2299_v5 }
0x255e   :  { %v1233_v21 = vand.u32 2147483647, %v1232_v48  ;;  %v1912_v1 = vmul.f32 0.2, %v1911_v15  ;;  %v1684_v27 = vmul.f32 0.2, %v1683_v24 }
0x2560   :  { %v1234_v51 = vadd.f32 1.0, %v1233_v21  ;;  %v2298_v21 = vld [vmem:[%s8063_s10 + $0x8] sm:$0xff]  ;;  %v1685_v32 = vadd.f32 0.5, %v1684_v27 }
0x2562   :  { %6566 = vrcp.f32 %v1234_v51 }
0x256c   :  { %v6567_v63 = vpop.eup %6566 }
0x256d   :  { %v1236_v11 = vmul.f32 %v6567_v63, %v1232_v48  ;;  %v6316_v48 = vpack.c.bf16 %v2158_v20, %v2157_v41  ;;  %v6320_v63 = vpack.c.bf16 %v2160_v58, %v2159_v50 }
0x256f   :  { %1238 = vrot.lane.b32.xlu1 %v1236_v11, %s6842_s30  ;;  %6317 = vmatprep.subr.bf16.mxu0 %v6316_v48 }
0x2570   :  { %6319 = vmatpush3.bf16.msra.mxu0 %v6316_v48 }
0x2571   :  { %6321 = vmatprep.subr.bf16.mxu0 %v6320_v63 }
0x2573   :  { %2031 = vrot.lane.b32.xlu1 %v2029_v28, %s6843_s22  ;;  %v1913_v28 = vadd.f32 0.5, %v1912_v1 }
0x2574   :  { %6323 = vmatpush3.bf16.msra.mxu0 %v6320_v63 }
0x2575   :  { %6332 = vmatprep.subr.bf16.mxu0 %v6839_v9  ;;  %v1914_v36 = vmax.f32 %v1913_v28, 0.0 }
0x2577   :  { %1803 = vrot.lane.b32.xlu1 %v1801_v16, %s6843_s22 }
0x257b   :  { %1575 = vrot.lane.b32.xlu1 %v1573_v47, %s6843_s22  ;;  %v1457_v47 = vadd.f32 0.5, %v1456_v25 }
0x257d   :  { %v1458_v6 = vmax.f32 %v1457_v47, 0.0 }
0x25b6   :  { %v2106_v38 = vpop.f32.mrb[26].mxu1 }
0x25b7   :  { %v2110_v0 = vadd.f32 %v2106_v38, %v7160_v54  ;;  %v5875_v29 = vpop.f32.mrb[27].mxu1  ;;  %v1915_v38 = vmin.f32 %v1914_v36, 1.0 }
0x25b8   :  { %v1459_v29 = vmin.f32 %v1458_v6, 1.0 }
0x25b9   :  { %v2115_v46 = vand.u32 2147483647, %v2110_v0  ;;  %v2111_v55 = vmul.f32 0.2, %v2110_v0 }
0x25bb   :  { %v2116_v31 = vadd.f32 1.0, %v2115_v46  ;;  %v2112_v57 = vadd.f32 0.5, %v2111_v55 }
0x25bd   :  { %6568 = vrcp.f32 %v2116_v31  ;;  %v2113_v17 = vmax.f32 %v2112_v57, 0.0 }
0x25bf   :  { %v2114_v59 = vmin.f32 %v2113_v17, 1.0 }
0x25c1   :  { %v2119_v4 = vmul.f32 %v2114_v59, %v7405_v44  ;;  %v2297_v44 = vld [vmem:[%s8063_s10] sm:$0xff] }
0x25c2   :  { %v6324_v22 = vpack.c.bf16 %v2298_v21, %v2297_v44 }
0x25c4   :  { %6325 = vmatprep.subr.bf16.mxu1 %v6324_v22 }
0x25c5   :  { %6327 = vmatpush3.bf16.msra.mxu1 %v6324_v22 }
0x25c6   :  { %6329 = vmatprep.subr.bf16.mxu1 %v6328_v13 }
0x25c7   :  { %v6569_v33 = vpop.eup %6568 }
0x25c8   :  { %v2118_v34 = vmul.f32 %v6569_v33, %v2110_v0  ;;  %v1686_v0 = vmax.f32 %v1685_v32, 0.0  ;;  %v2413_v33 = vld [vmem:[%s8061_s8] sm:$0xff] }
0x25c9   :  { %6331 = vmatpush3.bf16.msra.mxu1 %v6328_v13 }
0x25ca   :  { %2121 = vrot.lane.b32.xlu0 %v2118_v34, %s6842_s30  ;;  %6338 = vmatprep.subr.bf16.mxu1 %v6839_v9  ;;  %v1687_v43 = vmin.f32 %v1686_v0, 1.0  ;;  %v2414_v34 = vld [vmem:[%s8061_s8 + $0x8] sm:$0xff] }
0x25e1   :  { %v1239_v35 = vpop.permute.xlu1 %1238 }
0x25e2   :  { %v1241_v37 = vmul.f32 %v1239_v35, %v1217_v18  ;;  %v7483_v35 = vpack.c.bf16 %v2414_v34, %v2413_v33 }
0x25e4   :  { %v1341_v39 = vadd.f32 %v7313_v53, %v1241_v37 }
0x25e5   :  { %v2032_v40 = vpop.permute.xlu1 %2031 }
0x25e6   :  { %v1342_v30 = vmul.f32 0.2, %v1341_v39  ;;  %2034 = vst.msk [vmem:[#allocation2 + $0x8] sm:$0xff] %vm411_vm2, %v2032_v40  ;;  %v2415_v40 = vld [vmem:[%s8061_s8 + $0x10] sm:$0xff] }
0x25e8   :  { %v1343_v42 = vadd.f32 0.5, %v1342_v30  ;;  %v2416_v30 = vld [vmem:[%s8061_s8 + $0x18] sm:$0xff] }
0x25e9   :  { %v1804_v52 = vpop.permute.xlu1 %1803 }
0x25ea   :  { %1806 = vst.msk [vmem:[#allocation2 + $0x18] sm:$0xff] %vm411_vm2, %v1804_v52  ;;  %v1344_v54 = vmax.f32 %v1343_v42, 0.0  ;;  %v7497_v52 = vpack.c.bf16 %v2416_v30, %v2415_v40 }
0x25ec   :  { %v1345_v60 = vmin.f32 %v1344_v54, 1.0 }
0x25ed   :  { %v1576_v56 = vpop.permute.xlu1 %1575  ;;  %v2150_v42 = vld [vmem:[#allocation2 + $0x8] sm:$0xff] }
0x25ee   :  { %1578 = vst.msk [vmem:[#allocation2 + $0x28] sm:$0xff] %vm411_vm2, %v1576_v56  ;;  %1347 = vrot.lane.b32.xlu1 %v1345_v60, %s6843_s22 }
0x25f1   :  { %v2152_v56 = vld [vmem:[#allocation2 + $0x18] sm:$0xff] }
0x25f5   :  { %v2154_v57 = vld [vmem:[#allocation2 + $0x28] sm:$0xff] }
0x263c   :  { %v2122_v53 = vpop.permute.xlu0 %2121 }
0x263d   :  { %v2124_v2 = vmul.f32 %v2122_v53, %v2114_v59  ;;  %v5349_v53 = vld [vmem:[#allocation9] ss:$0 sm:$0xff] }
0x263f   :  { %2126 = vrot.lane.b32.xlu0 %v2124_v2, %s6842_s30  ;;  %v7530_v2 = vld [vmem:[#allocation12] ss:$0 sm:$0xff] }
0x2660   :  { %v1348_v3 = vpop.permute.xlu1 %1347 }
0x2661   :  { %1350 = vst.msk [vmem:[#allocation2 + $0x38] sm:$0xff] %vm411_vm2, %v1348_v3 }
0x26b1   :  { %v2127_v7 = vpop.permute.xlu0 %2126 }
0x26b2   :  { %v2129_v8 = vadd.f32 %v2127_v7, %v2119_v4 }
0x26b4   :  { %v2130_v10 = vand.u32 2147483647, %v2129_v8 }
0x26b6   :  { %v2131_v49 = vadd.f32 1.0, %v2130_v10 }
0x26b8   :  { %6570 = vrcp.f32 %v2131_v49 }
0x26c2   :  { %v6571_v18 = vpop.eup %6570 }
0x26c3   :  { %v2133_v19 = vmul.f32 %v6571_v18, %v2129_v8 }
0x26c5   :  { %2135 = vrot.lane.b32.xlu0 %v2133_v19, %s6842_s30 }
0x2737   :  { %v2136_v51 = vpop.permute.xlu0 %2135 }
0x2738   :  { %v2138_v61 = vmul.f32 %v2136_v51, %v2114_v59  ;;  %v2156_v59 = vld [vmem:[#allocation2 + $0x38] sm:$0xff] }
0x273a   :  { %v2139_v62 = vadd.f32 %v2138_v61, %v7142_v45 }
0x273c   :  { %v2140_v11 = vmul.f32 0.2, %v2139_v62 }
0x273e   :  { %v2141_v14 = vadd.f32 0.5, %v2140_v11 }
0x2740   :  { %v2142_v45 = vmax.f32 %v2141_v14, 0.0 }
0x2742   :  { %v2143_v16 = vmin.f32 %v2142_v45, 1.0 }
0x2744   :  { %2145 = vrot.lane.b32.xlu0 %v2143_v16, %s6843_s22 }
0x2748   :  { %1917 = vrot.lane.b32.xlu0 %v1915_v38, %s6843_s22 }
0x274c   :  { %1689 = vrot.lane.b32.xlu0 %v1687_v43, %s6843_s22 }
0x2750   :  { %1461 = vrot.lane.b32.xlu0 %v1459_v29, %s6843_s22 }
0x27b6   :  { %v2146_v46 = vpop.permute.xlu0 %2145 }
0x27b7   :  { %2148 = vst.msk [vmem:[#allocation2] sm:$0xff] %vm411_vm2, %v2146_v46 }
0x27ba   :  { %v1918_v31 = vpop.permute.xlu0 %1917 }
0x27bb   :  { %1920 = vst.msk [vmem:[#allocation2 + $0x10] sm:$0xff] %vm411_vm2, %v1918_v31 }
0x27be   :  { %v1690_v37 = vpop.permute.xlu0 %1689  ;;  %v2149_v39 = vld [vmem:[#allocation2] sm:$0xff] }
0x27bf   :  { %1692 = vst.msk [vmem:[#allocation2 + $0x20] sm:$0xff] %vm411_vm2, %v1690_v37  ;;  %5884 = vmatprep.mubr.msk.f32.mxu0 %vm411_vm2, %v2149_v39  ;;  %5904 = vmatprep.mubr.msk.f32.mxu1 %vm411_vm2, %v2149_v39 }
0x27c0   :  { %5885 = vmatmul.mubr.msk.f32.vlgmr.msra.gmra.mrb[20].mxu0 %vm411_vm2, %v2150_v42  ;;  %5905 = vmatmul.mubr.msk.f32.vlgmr.msra.gmra.mrb[28].mxu1 %vm411_vm2, %v2150_v42 }
0x27c1   :  { %6334 = vmatpush3.bf16.msra.mxu0 %v7483_v35  ;;  %6340 = vmatpush3.bf16.msra.mxu1 %v7483_v35 }
0x27c2   :  { %v1462_v54 = vpop.permute.xlu0 %1461  ;;  %v2151_v60 = vld [vmem:[#allocation2 + $0x10] sm:$0xff]  ;;  %6335 = vmatprep.subr.bf16.mxu0 %v6839_v9  ;;  %6341 = vmatprep.subr.bf16.mxu1 %v6839_v9 }
0x27c3   :  { %1464 = vst.msk [vmem:[#allocation2 + $0x30] sm:$0xff] %vm411_vm2, %v1462_v54  ;;  %5887 = vmatprep.mubr.msk.f32.mxu0 %vm411_vm2, %v2151_v60  ;;  %5907 = vmatprep.mubr.msk.f32.mxu1 %vm411_vm2, %v2151_v60 }
0x27c4   :  { %5888 = vmatmul.mubr.msk.f32.gmra.mrb[22].mxu0 %vm411_vm2, %v2152_v56  ;;  %5908 = vmatmul.mubr.msk.f32.gmra.mrb[30].mxu1 %vm411_vm2, %v2152_v56 }
0x27c5   :  { %6337 = vmatpush3.bf16.msra.mxu0 %v7497_v52  ;;  %6343 = vmatpush3.bf16.msra.mxu1 %v7497_v52 }
0x27c6   :  { %v2153_v55 = vld [vmem:[#allocation2 + $0x20] sm:$0xff]  ;;  %6344 = vmatprep.subr.bf16.mxu0 %v6839_v9  ;;  %6350 = vmatprep.subr.bf16.mxu1 %v6839_v9 }
0x27c7   :  { %5890 = vmatprep.mubr.msk.f32.mxu0 %vm411_vm2, %v2153_v55  ;;  %5910 = vmatprep.mubr.msk.f32.mxu1 %vm411_vm2, %v2153_v55 }
0x27c8   :  { %5891 = vmatmul.mubr.msk.f32.gmra.mrb[24].mxu0 %vm411_vm2, %v2154_v57  ;;  %5911 = vmatmul.mubr.msk.f32.gmra.mrb[32].mxu1 %vm411_vm2, %v2154_v57 }
0x27ca   :  { %v2155_v17 = vld [vmem:[#allocation2 + $0x30] sm:$0xff] }
0x27cb   :  { %5893 = vmatprep.mubr.msk.f32.mxu0 %vm411_vm2, %v2155_v17  ;;  %5913 = vmatprep.mubr.msk.f32.mxu1 %vm411_vm2, %v2155_v17 }
0x27cc   :  { %5894 = vmatmul.mubr.msk.f32.gmra.mrb[26].mxu0 %vm411_vm2, %v2156_v59  ;;  %5914 = vmatmul.mubr.msk.f32.gmra.mrb[34].mxu1 %vm411_vm2, %v2156_v59 }
0x27cd   :  { %5924 = vmatprep.mubr.msk.f32.mxu0 %vm6840_vm1, %v6841_v12  ;;  %5935 = vmatprep.mubr.msk.f32.mxu1 %vm6840_vm1, %v6841_v12 }
0x27d0   :  { %5925 = vmatmul.mubr.f32.vlgmr.msra.gmra.mrb[28].mxu0 %v6841_v12 }
0x27d1   :  { %6346 = vmatpush3.bf16.msra.mxu0 %v7483_v35  ;;  %5946 = vmatprep.mubr.msk.f32.mxu0 %vm6840_vm1, %v6841_v12 }
0x27d2   :  { %6347 = vmatprep.subr.bf16.mxu0 %v6839_v9 }
0x27d5   :  { %6349 = vmatpush3.bf16.msra.mxu0 %v7497_v52 }
0x27d6   :  { %6356 = vmatprep.subr.bf16.mxu0 %v6839_v9 }
0x2893   :  { %v5886_v3 = vpop.f32.mrb[20].mxu0  ;;  %v5906_v4 = vpop.f32.mrb[28].mxu1 }
0x2894   :  { %v7532_v7 = vadd.f32 %v5886_v3, %v5349_v53  ;;  %v7535_v8 = vadd.f32 %v5906_v4, %v7530_v2  ;;  %v2258_v10 = vpop.f32.mrb[21].mxu0  ;;  %v2374_v49 = vpop.f32.mrb[29].mxu1 }
0x2895   :  { %v7538_v18 = vadd.f32 %v7530_v2, %v2374_v49  ;;  %v2259_v14 = vadd.f32 %v5349_v53, %v2258_v10 }
0x2897   :  { %v5889_v19 = vpop.f32.mrb[22].mxu0  ;;  %v5909_v41 = vpop.f32.mrb[30].mxu1 }
0x2898   :  { %v7540_v20 = vadd.f32 %v5889_v19, %v5349_v53  ;;  %v7543_v44 = vadd.f32 %v5909_v41, %v7530_v2  ;;  %v2268_v15 = vpop.f32.mrb[23].mxu0  ;;  %v2384_v48 = vpop.f32.mrb[31].mxu1 }
0x2899   :  { %v7545_v21 = vadd.f32 %v5349_v53, %v2268_v15  ;;  %v7548_v51 = vadd.f32 %v7530_v2, %v2384_v48 }
0x289b   :  { %v5892_v22 = vpop.f32.mrb[24].mxu0  ;;  %v5912_v61 = vpop.f32.mrb[32].mxu1 }
0x289c   :  { %v7550_v50 = vadd.f32 %v5892_v22, %v5349_v53  ;;  %v7553_v58 = vadd.f32 %v5912_v61, %v7530_v2  ;;  %v2278_v5 = vpop.f32.mrb[25].mxu0  ;;  %v2394_v24 = vpop.f32.mrb[33].mxu1 }
0x289d   :  { %v7555_v1 = vadd.f32 %v5349_v53, %v2278_v5  ;;  %v7558_v62 = vadd.f32 %v7530_v2, %v2394_v24 }
0x289f   :  { %v5895_v63 = vpop.f32.mrb[26].mxu0  ;;  %v7560_v23 = vpop.f32.mrb[34].mxu1 }
0x28a0   :  { %v7562_v13 = vadd.f32 %v5895_v63, %v5349_v53  ;;  %v2288_v11 = vpop.f32.mrb[27].mxu0  ;;  %v2404_v26 = vpop.f32.mrb[35].mxu1 }
0x28a1   :  { %v7564_v27 = vadd.f32 %v5349_v53, %v2288_v11  ;;  %v7567_v28 = vadd.f32 %v7530_v2, %v2404_v26 }
0x28a3   :  { %v2487_v45 = vpop.f32.mrb[28].mxu0 }
0x28a4   :  { %v2491_v25 = vadd.f32 %v2487_v45, %v2259_v14  ;;  %v5926_v32 = vpop.f32.mrb[29].mxu0 }
0x28a6   :  { %v2496_v16 = vand.u32 2147483647, %v2491_v25  ;;  %v2492_v0 = vmul.f32 0.2, %v2491_v25 }
0x28a8   :  { %v2497_v36 = vadd.f32 1.0, %v2496_v16  ;;  %v2493_v43 = vadd.f32 0.5, %v2492_v0 }
0x28aa   :  { %6572 = vrcp.f32 %v2497_v36  ;;  %v2494_v6 = vmax.f32 %v2493_v43, 0.0 }
0x28ac   :  { %v2495_v29 = vmin.f32 %v2494_v6, 1.0 }
0x28ae   :  { %v2500_v33 = vmul.f32 0.0, %v2495_v29 }
0x28b4   :  { %v6573_v47 = vpop.eup %6572 }
0x28b5   :  { %v2499_v38 = vmul.f32 %v6573_v47, %v2491_v25 }
0x28b7   :  { %2502 = vrot.lane.b32.xlu0 %v2499_v38, %s6842_s30 }
0x2929   :  { %v2503_v46 = vpop.permute.xlu0 %2502 }
0x292a   :  { %v2505_v31 = vmul.f32 %v2503_v46, %v2495_v29 }
0x292c   :  { %2507 = vrot.lane.b32.xlu1 %v2505_v31, %s6842_s30 }
0x299e   :  { %v2508_v34 = vpop.permute.xlu1 %2507 }
0x299f   :  { %v2510_v37 = vadd.f32 %v2508_v34, %v2500_v33 }
0x29a1   :  { %v2511_v39 = vand.u32 2147483647, %v2510_v37 }
0x29a3   :  { %v2512_v40 = vadd.f32 1.0, %v2511_v39 }
0x29a5   :  { %6574 = vrcp.f32 %v2512_v40 }
0x29af   :  { %v6575_v30 = vpop.eup %6574 }
0x29b0   :  { %v2514_v42 = vmul.f32 %v6575_v30, %v2510_v37 }
0x29b2   :  { %2516 = vrot.lane.b32.xlu0 %v2514_v42, %s6842_s30 }
0x2a24   :  { %v2517_v54 = vpop.permute.xlu0 %2516 }
0x2a25   :  { %v7572_v60 = vmul.f32 %v2517_v54, %v2495_v29 }
0x2a27   :  { %2521 = vrot.lane.b32.xlu1 %v7572_v60, %s6843_s22 }
0x2a99   :  { %v2522_v56 = vpop.permute.xlu1 %2521 }
0x2a9a   :  { %5936 = vmatmul.mubr.msk.f32.vlgmr.msra.gmra.mrb[36].mxu1 %vm411_vm2, %v2522_v56 }
0x2a9b   :  { %6352 = vmatpush3.bf16.msra.mxu1 %v7483_v35  ;;  %5957 = vmatprep.mubr.msk.f32.mxu1 %vm6840_vm1, %v6841_v12 }
0x2a9c   :  { %6353 = vmatprep.subr.bf16.mxu1 %v6839_v9 }
0x2a9f   :  { %6355 = vmatpush3.bf16.msra.mxu1 %v7497_v52 }
0x2aa0   :  { %6362 = vmatprep.subr.bf16.mxu1 %v6839_v9 }
0x2b6d   :  { %v2591_v55 = vpop.f32.mrb[36].mxu1 }
0x2b6e   :  { %v2595_v57 = vadd.f32 %v2591_v55, %v7532_v7  ;;  %v5937_v17 = vpop.f32.mrb[37].mxu1 }
0x2b70   :  { %v2600_v59 = vand.u32 2147483647, %v2595_v57  ;;  %v2596_v10 = vmul.f32 0.2, %v2595_v57 }
0x2b72   :  { %v2601_v53 = vadd.f32 1.0, %v2600_v59  ;;  %v2597_v49 = vadd.f32 0.5, %v2596_v10 }
0x2b74   :  { %6576 = vrcp.f32 %v2601_v53  ;;  %v2598_v19 = vmax.f32 %v2597_v49, 0.0 }
0x2b76   :  { %v2599_v41 = vmin.f32 %v2598_v19, 1.0 }
0x2b78   :  { %v2604_v22 = vmul.f32 %v2599_v41, %v2510_v37 }
0x2b7e   :  { %v6577_v3 = vpop.eup %6576 }
0x2b7f   :  { %v2603_v4 = vmul.f32 %v6577_v3, %v2595_v57 }
0x2b81   :  { %2606 = vrot.lane.b32.xlu0 %v2603_v4, %s6842_s30 }
0x2bf3   :  { %v2607_v15 = vpop.permute.xlu0 %2606 }
0x2bf4   :  { %v2609_v48 = vmul.f32 %v2607_v15, %v2599_v41 }
0x2bf6   :  { %2611 = vrot.lane.b32.xlu1 %v2609_v48, %s6842_s30 }
0x2c68   :  { %v2612_v61 = vpop.permute.xlu1 %2611 }
0x2c69   :  { %v2614_v5 = vadd.f32 %v2612_v61, %v2604_v22 }
0x2c6b   :  { %v2615_v7 = vand.u32 2147483647, %v2614_v5 }
0x2c6d   :  { %v2616_v24 = vadd.f32 1.0, %v2615_v7 }
0x2c6f   :  { %6578 = vrcp.f32 %v2616_v24 }
0x2c79   :  { %v6579_v63 = vpop.eup %6578 }
0x2c7a   :  { %v2618_v11 = vmul.f32 %v6579_v63, %v2614_v5 }
0x2c7c   :  { %2620 = vrot.lane.b32.xlu0 %v2618_v11, %s6842_s30 }
0x2cee   :  { %v2621_v26 = vpop.permute.xlu0 %2620 }
0x2cef   :  { %v7587_v14 = vmul.f32 %v2621_v26, %v2599_v41 }
0x2cf1   :  { %2625 = vrot.lane.b32.xlu1 %v7587_v14, %s6843_s22 }
0x2d63   :  { %v2626_v45 = vpop.permute.xlu1 %2625 }
0x2d64   :  { %5947 = vmatmul.mubr.msk.f32.vlgmr.msra.gmra.mrb[30].mxu0 %vm411_vm2, %v2626_v45 }
0x2d65   :  { %6358 = vmatpush3.bf16.msra.mxu0 %v7483_v35  ;;  %5968 = vmatprep.mubr.msk.f32.mxu0 %vm6840_vm1, %v6841_v12 }
0x2d66   :  { %6359 = vmatprep.subr.bf16.mxu0 %v6839_v9 }
0x2d69   :  { %6361 = vmatpush3.bf16.msra.mxu0 %v7497_v52 }
0x2d6a   :  { %6368 = vmatprep.subr.bf16.mxu0 %v6839_v9 }
0x2e37   :  { %v2695_v25 = vpop.f32.mrb[30].mxu0 }
0x2e38   :  { %v2699_v32 = vadd.f32 %v2695_v25, %v7545_v21  ;;  %v5948_v16 = vpop.f32.mrb[31].mxu0 }
0x2e3a   :  { %v2704_v36 = vand.u32 2147483647, %v2699_v32  ;;  %v2700_v43 = vmul.f32 0.2, %v2699_v32 }
0x2e3c   :  { %v2705_v47 = vadd.f32 1.0, %v2704_v36  ;;  %v2701_v6 = vadd.f32 0.5, %v2700_v43 }
0x2e3e   :  { %6580 = vrcp.f32 %v2705_v47  ;;  %v2702_v29 = vmax.f32 %v2701_v6, 0.0 }
0x2e40   :  { %v2703_v46 = vmin.f32 %v2702_v29, 1.0 }
0x2e42   :  { %v2708_v34 = vmul.f32 %v2703_v46, %v2614_v5 }
0x2e48   :  { %v6581_v38 = vpop.eup %6580 }
0x2e49   :  { %v2707_v0 = vmul.f32 %v6581_v38, %v2699_v32 }
0x2e4b   :  { %2710 = vrot.lane.b32.xlu0 %v2707_v0, %s6842_s30 }
0x2ebd   :  { %v2711_v31 = vpop.permute.xlu0 %2710 }
0x2ebe   :  { %v2713_v33 = vmul.f32 %v2711_v31, %v2703_v46 }
0x2ec0   :  { %2715 = vrot.lane.b32.xlu1 %v2713_v33, %s6842_s30 }
0x2f32   :  { %v2716_v37 = vpop.permute.xlu1 %2715 }
0x2f33   :  { %v2718_v39 = vadd.f32 %v2716_v37, %v2708_v34 }
0x2f35   :  { %v2719_v21 = vand.u32 2147483647, %v2718_v39 }
0x2f37   :  { %v2720_v40 = vadd.f32 1.0, %v2719_v21 }
0x2f39   :  { %6582 = vrcp.f32 %v2720_v40 }
0x2f43   :  { %v6583_v30 = vpop.eup %6582 }
0x2f44   :  { %v2722_v42 = vmul.f32 %v6583_v30, %v2718_v39 }
0x2f46   :  { %2724 = vrot.lane.b32.xlu0 %v2722_v42, %s6842_s30 }
0x2fb8   :  { %v2725_v54 = vpop.permute.xlu0 %2724 }
0x2fb9   :  { %v7602_v56 = vmul.f32 %v2725_v54, %v2703_v46 }
0x2fbb   :  { %2729 = vrot.lane.b32.xlu1 %v7602_v56, %s6843_s22 }
0x302d   :  { %v2730_v55 = vpop.permute.xlu1 %2729 }
0x302e   :  { %5958 = vmatmul.mubr.msk.f32.vlgmr.msra.gmra.mrb[38].mxu1 %vm411_vm2, %v2730_v55 }
0x302f   :  { %6364 = vmatpush3.bf16.msra.mxu1 %v7483_v35  ;;  %5979 = vmatprep.mubr.msk.f32.mxu1 %vm6840_vm1, %v6841_v12 }
0x3030   :  { %6365 = vmatprep.subr.bf16.mxu1 %v6839_v9 }
0x3033   :  { %6367 = vmatpush3.bf16.msra.mxu1 %v7497_v52 }
0x3034   :  { %6374 = vmatprep.subr.bf16.mxu1 %v6839_v9 }
0x3101   :  { %v2799_v57 = vpop.f32.mrb[38].mxu1 }
0x3102   :  { %v2803_v17 = vadd.f32 %v2799_v57, %v7540_v20  ;;  %v5959_v59 = vpop.f32.mrb[39].mxu1 }
0x3104   :  { %v2808_v53 = vand.u32 2147483647, %v2803_v17  ;;  %v2804_v49 = vmul.f32 0.2, %v2803_v17 }
0x3106   :  { %v2809_v3 = vadd.f32 1.0, %v2808_v53  ;;  %v2805_v19 = vadd.f32 0.5, %v2804_v49 }
0x3108   :  { %6584 = vrcp.f32 %v2809_v3  ;;  %v2806_v41 = vmax.f32 %v2805_v19, 0.0 }
0x310a   :  { %v2807_v15 = vmin.f32 %v2806_v41, 1.0 }
0x310c   :  { %v2812_v61 = vmul.f32 %v2807_v15, %v2718_v39 }
0x3112   :  { %v6585_v4 = vpop.eup %6584 }
0x3113   :  { %v2811_v10 = vmul.f32 %v6585_v4, %v2803_v17 }
0x3115   :  { %2814 = vrot.lane.b32.xlu0 %v2811_v10, %s6842_s30 }
0x3187   :  { %v2815_v48 = vpop.permute.xlu0 %2814 }
0x3188   :  { %v2817_v22 = vmul.f32 %v2815_v48, %v2807_v15 }
0x318a   :  { %2819 = vrot.lane.b32.xlu1 %v2817_v22, %s6842_s30 }
0x31fc   :  { %v2820_v5 = vpop.permute.xlu1 %2819 }
0x31fd   :  { %v2822_v7 = vadd.f32 %v2820_v5, %v2812_v61 }
0x31ff   :  { %v2823_v20 = vand.u32 2147483647, %v2822_v7 }
0x3201   :  { %v2824_v24 = vadd.f32 1.0, %v2823_v20 }
0x3203   :  { %6586 = vrcp.f32 %v2824_v24 }
0x320d   :  { %v6587_v63 = vpop.eup %6586 }
0x320e   :  { %v2826_v11 = vmul.f32 %v6587_v63, %v2822_v7 }
0x3210   :  { %2828 = vrot.lane.b32.xlu0 %v2826_v11, %s6842_s30 }
0x3282   :  { %v2829_v26 = vpop.permute.xlu0 %2828 }
0x3283   :  { %v7617_v45 = vmul.f32 %v2829_v26, %v2807_v15  ;;  %v2417_v26 = vld [vmem:[#allocation11] sm:$0xff] }
0x3285   :  { %2833 = vrot.lane.b32.xlu1 %v7617_v45, %s6843_s22 }
0x32f7   :  { %v2834_v25 = vpop.permute.xlu1 %2833 }
0x32f8   :  { %5969 = vmatmul.mubr.msk.f32.vlgmr.msra.gmra.mrb[32].mxu0 %vm411_vm2, %v2834_v25  ;;  %v2418_v25 = vld [vmem:[#allocation11 + $0x8] sm:$0xff] }
0x32f9   :  { %6370 = vmatpush3.bf16.msra.mxu0 %v7483_v35  ;;  %5990 = vmatprep.mubr.msk.f32.mxu0 %vm6840_vm1, %v6841_v12 }
0x32fa   :  { %6371 = vmatprep.subr.bf16.mxu0 %v6839_v9 }
0x32fd   :  { %6373 = vmatpush3.bf16.msra.mxu0 %v7497_v52 }
0x32fe   :  { %6380 = vmatprep.subr.bf16.mxu0 %v6839_v9 }
0x33cb   :  { %v2903_v32 = vpop.f32.mrb[32].mxu0 }
0x33cc   :  { %v2907_v16 = vadd.f32 %v2903_v32, %v7555_v1  ;;  %v5970_v36 = vpop.f32.mrb[33].mxu0  ;;  %v7651_v32 = vpack.c.bf16 %v2418_v25, %v2417_v26 }
0x33cd   :  { %v2420_v36 = vld [vmem:[#allocation11 + $0x18] sm:$0xff] }
0x33ce   :  { %v2912_v47 = vand.u32 2147483647, %v2907_v16  ;;  %v2908_v6 = vmul.f32 0.2, %v2907_v16 }
0x33d0   :  { %v2913_v38 = vadd.f32 1.0, %v2912_v47  ;;  %v2909_v29 = vadd.f32 0.5, %v2908_v6 }
0x33d2   :  { %6588 = vrcp.f32 %v2913_v38  ;;  %v2910_v46 = vmax.f32 %v2909_v29, 0.0 }
0x33d4   :  { %v2911_v31 = vmin.f32 %v2910_v46, 1.0 }
0x33d6   :  { %v2916_v37 = vmul.f32 %v2911_v31, %v2822_v7 }
0x33dc   :  { %v6589_v0 = vpop.eup %6588 }
0x33dd   :  { %v2915_v43 = vmul.f32 %v6589_v0, %v2907_v16  ;;  %v2419_v16 = vld [vmem:[#allocation11 + $0x10] sm:$0xff] }
0x33de   :  { %v7655_v38 = vpack.c.bf16 %v2420_v36, %v2419_v16 }
0x33df   :  { %2918 = vrot.lane.b32.xlu0 %v2915_v43, %s6842_s30 }
0x3451   :  { %v2919_v33 = vpop.permute.xlu0 %2918 }
0x3452   :  { %v2921_v34 = vmul.f32 %v2919_v33, %v2911_v31 }
0x3454   :  { %2923 = vrot.lane.b32.xlu1 %v2921_v34, %s6842_s30 }
0x34c6   :  { %v2924_v39 = vpop.permute.xlu1 %2923 }
0x34c7   :  { %v2926_v21 = vadd.f32 %v2924_v39, %v2916_v37 }
0x34c9   :  { %v2927_v1 = vand.u32 2147483647, %v2926_v21 }
0x34cb   :  { %v2928_v40 = vadd.f32 1.0, %v2927_v1 }
0x34cd   :  { %6590 = vrcp.f32 %v2928_v40 }
0x34d7   :  { %v6591_v30 = vpop.eup %6590 }
0x34d8   :  { %v2930_v42 = vmul.f32 %v6591_v30, %v2926_v21 }
0x34da   :  { %2932 = vrot.lane.b32.xlu0 %v2930_v42, %s6842_s30 }
0x354c   :  { %v2933_v54 = vpop.permute.xlu0 %2932 }
0x354d   :  { %v7632_v55 = vmul.f32 %v2933_v54, %v2911_v31  ;;  %v2410_v31 = vadd.f32 %v7560_v23, %v7530_v2 }
0x354f   :  { %2937 = vrot.lane.b32.xlu1 %v7632_v55, %s6843_s22 }
0x35c1   :  { %v2938_v57 = vpop.permute.xlu1 %2937 }
0x35c2   :  { %5980 = vmatmul.mubr.msk.f32.vlgmr.msra.gmra.mrb[40].mxu1 %vm411_vm2, %v2938_v57 }
0x35c3   :  { %6376 = vmatpush3.bf16.msra.mxu1 %v7483_v35  ;;  %6001 = vmatprep.mubr.msk.f32.mxu1 %vm6840_vm1, %v6841_v12 }
0x35c4   :  { %6377 = vmatprep.subr.bf16.mxu1 %v6839_v9 }
0x35c7   :  { %6379 = vmatpush3.bf16.msra.mxu1 %v7497_v52 }
0x35c8   :  { %6386 = vmatprep.subr.bf16.mxu1 %v6839_v9 }
0x3695   :  { %v3007_v17 = vpop.f32.mrb[40].mxu1 }
0x3696   :  { %v3011_v59 = vadd.f32 %v3007_v17, %v7550_v50  ;;  %v5981_v53 = vpop.f32.mrb[41].mxu1 }
0x3698   :  { %v3016_v3 = vand.u32 2147483647, %v3011_v59  ;;  %v3012_v35 = vmul.f32 0.2, %v3011_v59 }
0x369a   :  { %v3017_v4 = vadd.f32 1.0, %v3016_v3  ;;  %v3013_v19 = vadd.f32 0.5, %v3012_v35 }
0x369c   :  { %6592 = vrcp.f32 %v3017_v4  ;;  %v3014_v41 = vmax.f32 %v3013_v19, 0.0 }
0x369e   :  { %v3015_v15 = vmin.f32 %v3014_v41, 1.0 }
0x36a0   :  { %v3020_v52 = vmul.f32 %v3015_v15, %v2926_v21 }
0x36a6   :  { %v6593_v10 = vpop.eup %6592 }
0x36a7   :  { %v3019_v49 = vmul.f32 %v6593_v10, %v3011_v59 }
0x36a9   :  { %3022 = vrot.lane.b32.xlu0 %v3019_v49, %s6842_s30 }
0x371b   :  { %v3023_v48 = vpop.permute.xlu0 %3022 }
0x371c   :  { %v3025_v22 = vmul.f32 %v3023_v48, %v3015_v15 }
0x371e   :  { %3027 = vrot.lane.b32.xlu1 %v3025_v22, %s6842_s30 }
0x3790   :  { %v3028_v61 = vpop.permute.xlu1 %3027 }
0x3791   :  { %v3030_v5 = vadd.f32 %v3028_v61, %v3020_v52 }
0x3793   :  { %v3031_v50 = vand.u32 2147483647, %v3030_v5 }
0x3795   :  { %v3032_v7 = vadd.f32 1.0, %v3031_v50 }
0x3797   :  { %6594 = vrcp.f32 %v3032_v7 }
0x37a1   :  { %v6595_v20 = vpop.eup %6594 }
0x37a2   :  { %v3034_v24 = vmul.f32 %v6595_v20, %v3030_v5 }
0x37a4   :  { %3036 = vrot.lane.b32.xlu0 %v3034_v24, %s6842_s30 }
0x3816   :  { %v3037_v63 = vpop.permute.xlu0 %3036 }
0x3817   :  { %v7647_v11 = vmul.f32 %v3037_v63, %v3015_v15 }
0x3819   :  { %3041 = vrot.lane.b32.xlu1 %v7647_v11, %s6843_s22 }
0x388b   :  { %v3042_v47 = vpop.permute.xlu1 %3041 }
0x388c   :  { %5991 = vmatmul.mubr.msk.f32.vlgmr.msra.gmra.mrb[34].mxu0 %vm411_vm2, %v3042_v47 }
0x388d   :  { %6382 = vmatpush3.bf16.msra.mxu0 %v7651_v32  ;;  %6012 = vmatprep.mubr.msk.f32.mxu0 %vm6840_vm1, %v6841_v12 }
0x388e   :  { %6383 = vmatprep.subr.bf16.mxu0 %v6839_v9 }
0x3891   :  { %6385 = vmatpush3.bf16.msra.mxu0 %v7655_v38 }
0x3892   :  { %6392 = vmatprep.subr.bf16.mxu0 %v6839_v9 }
0x3894   :  { %6013 = vmatmul.mubr.f32.vlgmr.msra.gmra.mrb[36].mxu0 %v6841_v12 }
0x3895   :  { %6394 = vmatpush3.bf16.msra.mxu0 %v7651_v32  ;;  %6034 = vmatprep.mubr.msk.f32.mxu0 %vm6840_vm1, %v6841_v12 }
0x3896   :  { %6395 = vmatprep.subr.bf16.mxu0 %v6839_v9 }
0x3899   :  { %6397 = vmatpush3.bf16.msra.mxu0 %v7655_v38 }
0x389a   :  { %6404 = vmatprep.subr.bf16.mxu0 %v6839_v9 }
0x395f   :  { %v3111_v0 = vpop.f32.mrb[34].mxu0 }
0x3960   :  { %v3115_v43 = vadd.f32 %v3111_v0, %v7564_v27  ;;  %v5992_v6 = vpop.f32.mrb[35].mxu0 }
0x3962   :  { %v3120_v29 = vand.u32 2147483647, %v3115_v43  ;;  %v3116_v27 = vmul.f32 0.2, %v3115_v43 }
0x3964   :  { %v3121_v46 = vadd.f32 1.0, %v3120_v29  ;;  %v3117_v54 = vadd.f32 0.5, %v3116_v27 }
0x3966   :  { %6596 = vrcp.f32 %v3121_v46  ;;  %v3118_v17 = vmax.f32 %v3117_v54, 0.0 }
0x3967   :  { %v3314_v33 = vpop.f32.mrb[36].mxu0 }
0x3968   :  { %v3318_v34 = vadd.f32 %v3314_v33, %v2410_v31  ;;  %v6014_v37 = vpop.f32.mrb[37].mxu0  ;;  %v3119_v23 = vmin.f32 %v3118_v17, 1.0 }
0x396a   :  { %v3323_v39 = vand.u32 2147483647, %v3318_v34  ;;  %v3319_v57 = vmul.f32 0.2, %v3318_v34  ;;  %v3124_v35 = vmul.f32 %v3119_v23, %v3030_v5 }
0x396c   :  { %v3324_v21 = vadd.f32 1.0, %v3323_v39  ;;  %v3320_v2 = vadd.f32 0.5, %v3319_v57 }
0x396e   :  { %6598 = vrcp.f32 %v3324_v21  ;;  %v3321_v3 = vmax.f32 %v3320_v2, 0.0 }
0x3970   :  { %v6597_v1 = vpop.eup %6596  ;;  %v3322_v4 = vmin.f32 %v3321_v3, 1.0 }
0x3971   :  { %v3123_v40 = vmul.f32 %v6597_v1, %v3115_v43 }
0x3972   :  { %v3327_v22 = vmul.f32 0.0, %v3322_v4 }
0x3973   :  { %3126 = vrot.lane.b32.xlu0 %v3123_v40, %s6842_s30 }
0x3978   :  { %v6599_v30 = vpop.eup %6598 }
0x3979   :  { %v3326_v42 = vmul.f32 %v6599_v30, %v3318_v34 }
0x397b   :  { %3329 = vrot.lane.b32.xlu1 %v3326_v42, %s6842_s30 }
0x39e5   :  { %v3127_v59 = vpop.permute.xlu0 %3126 }
0x39e6   :  { %v3129_v53 = vmul.f32 %v3127_v59, %v3119_v23 }
0x39e8   :  { %3131 = vrot.lane.b32.xlu0 %v3129_v53, %s6842_s30 }
0x39ed   :  { %v3330_v10 = vpop.permute.xlu1 %3329 }
0x39ee   :  { %v3332_v49 = vmul.f32 %v3330_v10, %v3322_v4 }
0x39f0   :  { %3334 = vrot.lane.b32.xlu1 %v3332_v49, %s6842_s30 }
0x3a5a   :  { %v3132_v19 = vpop.permute.xlu0 %3131 }
0x3a5b   :  { %v7676_v41 = vadd.f32 %v3132_v19, %v3124_v35 }
0x3a5d   :  { %v3135_v15 = vand.u32 2147483647, %v7676_v41 }
0x3a5f   :  { %v3136_v48 = vadd.f32 1.0, %v3135_v15 }
0x3a61   :  { %6600 = vrcp.f32 %v3136_v48 }
0x3a62   :  { %v3335_v52 = vpop.permute.xlu1 %3334 }
0x3a63   :  { %v3337_v61 = vadd.f32 %v3335_v52, %v3327_v22 }
0x3a65   :  { %v3338_v50 = vand.u32 2147483647, %v3337_v61 }
0x3a67   :  { %v3339_v7 = vadd.f32 1.0, %v3338_v50 }
0x3a69   :  { %6602 = vrcp.f32 %v3339_v7 }
0x3a6b   :  { %v6601_v20 = vpop.eup %6600 }
0x3a6c   :  { %v3138_v24 = vmul.f32 %v6601_v20, %v7676_v41 }
0x3a6e   :  { %3140 = vrot.lane.b32.xlu0 %v3138_v24, %s6842_s30 }
0x3a73   :  { %v6603_v63 = vpop.eup %6602 }
0x3a74   :  { %v3341_v5 = vmul.f32 %v6603_v63, %v3337_v61 }
0x3a76   :  { %3343 = vrot.lane.b32.xlu1 %v3341_v5, %s6842_s30 }
0x3ae0   :  { %v3141_v26 = vpop.permute.xlu0 %3140 }
0x3ae1   :  { %v7682_v25 = vmul.f32 %v3141_v26, %v3119_v23 }
0x3ae3   :  { %3145 = vrot.lane.b32.xlu0 %v7682_v25, %s6843_s22 }
0x3ae8   :  { %v3344_v16 = vpop.permute.xlu1 %3343 }
0x3ae9   :  { %v7686_v36 = vmul.f32 %v3344_v16, %v3322_v4 }
0x3aeb   :  { %3358 = vrot.lane.b32.xlu1 %v7686_v36, %s6843_s22 }
0x3b55   :  { %v3146_v47 = vpop.permute.xlu0 %3145 }
0x3b56   :  { %6002 = vmatmul.mubr.msk.f32.vlgmr.msra.gmra.mrb[42].mxu1 %vm411_vm2, %v3146_v47 }
0x3b57   :  { %6388 = vmatpush3.bf16.msra.mxu1 %v7651_v32  ;;  %6023 = vmatprep.mubr.msk.f32.mxu1 %vm6840_vm1, %v6841_v12 }
0x3b58   :  { %6389 = vmatprep.subr.bf16.mxu1 %v6839_v9 }
0x3b5b   :  { %6391 = vmatpush3.bf16.msra.mxu1 %v7655_v38 }
0x3b5c   :  { %6398 = vmatprep.subr.bf16.mxu1 %v6839_v9 }
0x3b5d   :  { %v3359_v0 = vpop.permute.xlu1 %3358 }
0x3b5e   :  { %6024 = vmatmul.mubr.msk.f32.vlgmr.msra.gmra.mrb[44].mxu1 %vm411_vm2, %v3359_v0 }
0x3b5f   :  { %6400 = vmatpush3.bf16.msra.mxu1 %v7651_v32  ;;  %6045 = vmatprep.mubr.msk.f32.mxu1 %vm6840_vm1, %v6841_v12 }
0x3b60   :  { %6401 = vmatprep.subr.bf16.mxu1 %v6839_v9 }
0x3b63   :  { %6403 = vmatpush3.bf16.msra.mxu1 %v7655_v38 }
0x3b64   :  { %6410 = vmatprep.subr.bf16.mxu1 %v6839_v9 }
0x3c29   :  { %v3215_v43 = vpop.f32.mrb[42].mxu1 }
0x3c2a   :  { %v7705_v6 = vadd.f32 %v3215_v43, %v7562_v13  ;;  %v6003_v29 = vpop.f32.mrb[43].mxu1 }
0x3c31   :  { %v3428_v46 = vpop.f32.mrb[44].mxu1 }
0x3c32   :  { %v3432_v31 = vadd.f32 %v3428_v46, %v7567_v28  ;;  %v6025_v33 = vpop.f32.mrb[45].mxu1 }
0x3c34   :  { %v3437_v34 = vand.u32 2147483647, %v3432_v31  ;;  %v3433_v1 = vmul.f32 0.2, %v3432_v31 }
0x3c36   :  { %v3438_v37 = vadd.f32 1.0, %v3437_v34  ;;  %v3434_v40 = vadd.f32 0.5, %v3433_v1 }
0x3c38   :  { %6604 = vrcp.f32 %v3438_v37  ;;  %v3435_v30 = vmax.f32 %v3434_v40, 0.0 }
0x3c3a   :  { %v3436_v42 = vmin.f32 %v3435_v30, 1.0 }
0x3c3c   :  { %v3441_v13 = vmul.f32 %v3436_v42, %v3337_v61 }
0x3c42   :  { %v6605_v39 = vpop.eup %6604 }
0x3c43   :  { %v3440_v21 = vmul.f32 %v6605_v39, %v3432_v31 }
0x3c45   :  { %3443 = vrot.lane.b32.xlu0 %v3440_v21, %s6842_s30 }
0x3cb7   :  { %v3444_v27 = vpop.permute.xlu0 %3443 }
0x3cb8   :  { %v3446_v54 = vmul.f32 %v3444_v27, %v3436_v42 }
0x3cba   :  { %3448 = vrot.lane.b32.xlu1 %v3446_v54, %s6842_s30 }
0x3d2c   :  { %v3449_v57 = vpop.permute.xlu1 %3448 }
0x3d2d   :  { %v3451_v17 = vadd.f32 %v3449_v57, %v3441_v13 }
0x3d2f   :  { %v3452_v28 = vand.u32 2147483647, %v3451_v17 }
0x3d31   :  { %v3453_v2 = vadd.f32 1.0, %v3452_v28 }
0x3d33   :  { %6606 = vrcp.f32 %v3453_v2 }
0x3d3d   :  { %v6607_v23 = vpop.eup %6606 }
0x3d3e   :  { %v3455_v59 = vmul.f32 %v6607_v23, %v3451_v17 }
0x3d40   :  { %3457 = vrot.lane.b32.xlu0 %v3455_v59, %s6842_s30 }
0x3db2   :  { %v3458_v53 = vpop.permute.xlu0 %3457 }
0x3db3   :  { %v7711_v3 = vmul.f32 %v3458_v53, %v3436_v42 }
0x3db5   :  { %3472 = vrot.lane.b32.xlu1 %v7711_v3, %s6843_s22 }
0x3e27   :  { %v3473_v4 = vpop.permute.xlu1 %3472 }
0x3e28   :  { %6035 = vmatmul.mubr.msk.f32.vlgmr.msra.gmra.mrb[38].mxu0 %vm411_vm2, %v3473_v4 }
0x3e29   :  { %6406 = vmatpush3.bf16.msra.mxu0 %v7651_v32  ;;  %6056 = vmatprep.mubr.msk.f32.mxu0 %vm6840_vm1, %v6841_v12 }
0x3e2a   :  { %6407 = vmatprep.subr.bf16.mxu0 %v6839_v9 }
0x3e2d   :  { %6409 = vmatpush3.bf16.msra.mxu0 %v7655_v38 }
0x3e2e   :  { %6416 = vmatprep.subr.bf16.mxu0 %v6839_v9 }
0x3efb   :  { %v3542_v10 = vpop.f32.mrb[38].mxu0 }
0x3efc   :  { %v3546_v49 = vadd.f32 %v3542_v10, %v7553_v58  ;;  %v6036_v35 = vpop.f32.mrb[39].mxu0 }
0x3efe   :  { %v3551_v19 = vand.u32 2147483647, %v3546_v49  ;;  %v3547_v52 = vmul.f32 0.2, %v3546_v49 }
0x3f00   :  { %v3552_v15 = vadd.f32 1.0, %v3551_v19  ;;  %v3548_v61 = vadd.f32 0.5, %v3547_v52 }
0x3f02   :  { %6608 = vrcp.f32 %v3552_v15  ;;  %v3549_v50 = vmax.f32 %v3548_v61, 0.0 }
0x3f04   :  { %v3550_v7 = vmin.f32 %v3549_v50, 1.0 }
0x3f06   :  { %v3555_v63 = vmul.f32 %v3550_v7, %v3451_v17 }
0x3f0c   :  { %v6609_v48 = vpop.eup %6608 }
0x3f0d   :  { %v3554_v22 = vmul.f32 %v6609_v48, %v3546_v49 }
0x3f0f   :  { %3557 = vrot.lane.b32.xlu0 %v3554_v22, %s6842_s30 }
0x3f81   :  { %v3558_v20 = vpop.permute.xlu0 %3557 }
0x3f82   :  { %v3560_v24 = vmul.f32 %v3558_v20, %v3550_v7 }
0x3f84   :  { %3562 = vrot.lane.b32.xlu1 %v3560_v24, %s6842_s30 }
0x3ff6   :  { %v3563_v5 = vpop.permute.xlu1 %3562 }
0x3ff7   :  { %v3565_v26 = vadd.f32 %v3563_v5, %v3555_v63 }
0x3ff9   :  { %v3566_v58 = vand.u32 2147483647, %v3565_v26 }
0x3ffb   :  { %v3567_v16 = vadd.f32 1.0, %v3566_v58 }
0x3ffd   :  { %6610 = vrcp.f32 %v3567_v16 }
0x4007   :  { %v6611_v47 = vpop.eup %6610 }
0x4008   :  { %v3569_v0 = vmul.f32 %v6611_v47, %v3565_v26 }
0x400a   :  { %3571 = vrot.lane.b32.xlu0 %v3569_v0, %s6842_s30 }
0x407c   :  { %v3572_v43 = vpop.permute.xlu0 %3571 }
0x407d   :  { %v7726_v29 = vmul.f32 %v3572_v43, %v3550_v7 }
0x407f   :  { %3586 = vrot.lane.b32.xlu1 %v7726_v29, %s6843_s22 }
0x40f1   :  { %v3587_v46 = vpop.permute.xlu1 %3586 }
0x40f2   :  { %6046 = vmatmul.mubr.msk.f32.vlgmr.msra.gmra.mrb[46].mxu1 %vm411_vm2, %v3587_v46 }
0x40f3   :  { %6412 = vmatpush3.bf16.msra.mxu1 %v7651_v32  ;;  %6067 = vmatprep.mubr.msk.f32.mxu1 %vm6840_vm1, %v6841_v12 }
0x40f4   :  { %6413 = vmatprep.subr.bf16.mxu1 %v6839_v9 }
0x40f7   :  { %6415 = vmatpush3.bf16.msra.mxu1 %v7655_v38 }
0x40f8   :  { %6422 = vmatprep.subr.bf16.mxu1 %v6839_v9 }
0x41c5   :  { %v3656_v31 = vpop.f32.mrb[46].mxu1 }
0x41c6   :  { %v3660_v33 = vadd.f32 %v3656_v31, %v7558_v62  ;;  %v6047_v34 = vpop.f32.mrb[47].mxu1 }
0x41c8   :  { %v3665_v37 = vand.u32 2147483647, %v3660_v33  ;;  %v3661_v40 = vmul.f32 0.2, %v3660_v33 }
0x41ca   :  { %v3666_v39 = vadd.f32 1.0, %v3665_v37  ;;  %v3662_v30 = vadd.f32 0.5, %v3661_v40 }
0x41cc   :  { %6612 = vrcp.f32 %v3666_v39  ;;  %v3663_v42 = vmax.f32 %v3662_v30, 0.0 }
0x41ce   :  { %v3664_v27 = vmin.f32 %v3663_v42, 1.0 }
0x41d0   :  { %v3669_v57 = vmul.f32 %v3664_v27, %v3565_v26 }
0x41d6   :  { %v6613_v21 = vpop.eup %6612 }
0x41d7   :  { %v3668_v1 = vmul.f32 %v6613_v21, %v3660_v33 }
0x41d9   :  { %3671 = vrot.lane.b32.xlu0 %v3668_v1, %s6842_s30 }
0x424b   :  { %v3672_v54 = vpop.permute.xlu0 %3671 }
0x424c   :  { %v3674_v13 = vmul.f32 %v3672_v54, %v3664_v27 }
0x424e   :  { %3676 = vrot.lane.b32.xlu1 %v3674_v13, %s6842_s30 }
0x42c0   :  { %v3677_v17 = vpop.permute.xlu1 %3676 }
0x42c1   :  { %v3679_v28 = vadd.f32 %v3677_v17, %v3669_v57 }
0x42c3   :  { %v3680_v62 = vand.u32 2147483647, %v3679_v28 }
0x42c5   :  { %v3681_v2 = vadd.f32 1.0, %v3680_v62 }
0x42c7   :  { %6614 = vrcp.f32 %v3681_v2 }
0x42d1   :  { %v6615_v23 = vpop.eup %6614 }
0x42d2   :  { %v3683_v59 = vmul.f32 %v6615_v23, %v3679_v28 }
0x42d4   :  { %3685 = vrot.lane.b32.xlu0 %v3683_v59, %s6842_s30 }
0x4346   :  { %v3686_v53 = vpop.permute.xlu0 %3685 }
0x4347   :  { %v7741_v4 = vmul.f32 %v3686_v53, %v3664_v27 }
0x4349   :  { %3700 = vrot.lane.b32.xlu1 %v7741_v4, %s6843_s22 }
0x43bb   :  { %v3701_v10 = vpop.permute.xlu1 %3700 }
0x43bc   :  { %6057 = vmatmul.mubr.msk.f32.vlgmr.msra.gmra.mrb[40].mxu0 %vm411_vm2, %v3701_v10 }
0x43bd   :  { %6418 = vmatpush3.bf16.msra.mxu0 %v7651_v32  ;;  %6078 = vmatprep.mubr.msk.f32.mxu0 %vm6840_vm1, %v6841_v12 }
0x43be   :  { %6419 = vmatprep.subr.bf16.mxu0 %v6839_v9 }
0x43c1   :  { %6421 = vmatpush3.bf16.msra.mxu0 %v7655_v38 }
0x448f   :  { %v3770_v49 = vpop.f32.mrb[40].mxu0 }
0x4490   :  { %v3774_v35 = vadd.f32 %v3770_v49, %v7543_v44  ;;  %v6058_v19 = vpop.f32.mrb[41].mxu0 }
0x4492   :  { %v3779_v15 = vand.u32 2147483647, %v3774_v35  ;;  %v3775_v61 = vmul.f32 0.2, %v3774_v35 }
0x4494   :  { %v3780_v48 = vadd.f32 1.0, %v3779_v15  ;;  %v3776_v50 = vadd.f32 0.5, %v3775_v61 }
0x4496   :  { %6616 = vrcp.f32 %v3780_v48  ;;  %v3777_v7 = vmax.f32 %v3776_v50, 0.0 }
0x4498   :  { %v3778_v20 = vmin.f32 %v3777_v7, 1.0 }
0x449a   :  { %v3783_v5 = vmul.f32 %v3778_v20, %v3679_v28 }
0x44a0   :  { %v6617_v22 = vpop.eup %6616 }
0x44a1   :  { %v3782_v52 = vmul.f32 %v6617_v22, %v3774_v35 }
0x44a3   :  { %3785 = vrot.lane.b32.xlu0 %v3782_v52, %s6842_s30 }
0x4515   :  { %v3786_v24 = vpop.permute.xlu0 %3785 }
0x4516   :  { %v3788_v63 = vmul.f32 %v3786_v24, %v3778_v20 }
0x4518   :  { %3790 = vrot.lane.b32.xlu1 %v3788_v63, %s6842_s30 }
0x458a   :  { %v3791_v26 = vpop.permute.xlu1 %3790 }
0x458b   :  { %v3793_v58 = vadd.f32 %v3791_v26, %v3783_v5 }
0x458d   :  { %v3794_v44 = vand.u32 2147483647, %v3793_v58 }
0x458f   :  { %v3795_v16 = vadd.f32 1.0, %v3794_v44 }
0x4591   :  { %6618 = vrcp.f32 %v3795_v16 }
0x459b   :  { %v6619_v47 = vpop.eup %6618 }
0x459c   :  { %v3797_v0 = vmul.f32 %v6619_v47, %v3793_v58 }
0x459e   :  { %3799 = vrot.lane.b32.xlu0 %v3797_v0, %s6842_s30 }
0x4610   :  { %v3800_v43 = vpop.permute.xlu0 %3799 }
0x4611   :  { %v7755_v46 = vmul.f32 %v3800_v43, %v3778_v20 }
0x4613   :  { %3814 = vrot.lane.b32.xlu1 %v7755_v46, %s6843_s22 }
0x4685   :  { %v3815_v31 = vpop.permute.xlu1 %3814 }
0x4686   :  { %6068 = vmatmul.mubr.msk.f32.vlgmr.msra.gmra.mrb[48].mxu1 %vm411_vm2, %v3815_v31 }
0x4687   :  { %6424 = vmatpush3.bf16.msra.mxu1 %v7651_v32  ;;  %6089 = vmatprep.mubr.msk.f32.mxu1 %vm6840_vm1, %v6841_v12 }
0x4688   :  { %6425 = vmatprep.subr.bf16.mxu1 %v6839_v9 }
0x468b   :  { %6427 = vmatpush3.bf16.msra.mxu1 %v7655_v38 }
0x468c   :  { %6436 = vmatprep.subr.bf16.mxu1 %v6839_v9 }
0x4759   :  { %v3884_v33 = vpop.f32.mrb[48].mxu1 }
0x475a   :  { %v3888_v34 = vadd.f32 %v3884_v33, %v7548_v51  ;;  %v6069_v37 = vpop.f32.mrb[49].mxu1 }
0x475c   :  { %v3893_v39 = vand.u32 2147483647, %v3888_v34  ;;  %v3889_v32 = vmul.f32 0.2, %v3888_v34 }
0x475e   :  { %v3894_v21 = vadd.f32 1.0, %v3893_v39  ;;  %v3890_v30 = vadd.f32 0.5, %v3889_v32 }
0x4760   :  { %6620 = vrcp.f32 %v3894_v21  ;;  %v3891_v42 = vmax.f32 %v3890_v30, 0.0 }
0x4762   :  { %v3892_v27 = vmin.f32 %v3891_v42, 1.0 }
0x4764   :  { %v3897_v38 = vmul.f32 %v3892_v27, %v3793_v58 }
0x476a   :  { %v6621_v1 = vpop.eup %6620 }
0x476b   :  { %v3896_v40 = vmul.f32 %v6621_v1, %v3888_v34 }
0x476d   :  { %3899 = vrot.lane.b32.xlu0 %v3896_v40, %s6842_s30 }
0x47df   :  { %v3900_v54 = vpop.permute.xlu0 %3899 }
0x47e0   :  { %v3902_v13 = vmul.f32 %v3900_v54, %v3892_v27 }
0x47e2   :  { %3904 = vrot.lane.b32.xlu1 %v3902_v13, %s6842_s30 }
0x4854   :  { %v3905_v57 = vpop.permute.xlu1 %3904 }
0x4855   :  { %v3907_v17 = vadd.f32 %v3905_v57, %v3897_v38 }
0x4857   :  { %v3908_v51 = vand.u32 2147483647, %v3907_v17 }
0x4859   :  { %v3909_v28 = vadd.f32 1.0, %v3908_v51 }
0x485b   :  { %6622 = vrcp.f32 %v3909_v28 }
0x4865   :  { %v6623_v62 = vpop.eup %6622 }
0x4866   :  { %v3911_v2 = vmul.f32 %v6623_v62, %v3907_v17 }
0x4868   :  { %3913 = vrot.lane.b32.xlu0 %v3911_v2, %s6842_s30 }
0x48da   :  { %v3914_v23 = vpop.permute.xlu0 %3913 }
0x48db   :  { %v7770_v59 = vmul.f32 %v3914_v23, %v3892_v27 }
0x48dd   :  { %3928 = vrot.lane.b32.xlu1 %v7770_v59, %s6843_s22 }
0x494f   :  { %v3929_v53 = vpop.permute.xlu1 %3928 }
0x4950   :  { %6079 = vmatmul.mubr.msk.f32.vlgmr.msra.gmra.mrb[42].mxu0 %vm411_vm2, %v3929_v53 }
0x4a23   :  { %v3998_v10 = vpop.f32.mrb[42].mxu0 }
0x4a24   :  { %v4002_v49 = vadd.f32 %v3998_v10, %v7535_v8  ;;  %v6080_v35 = vpop.f32.mrb[43].mxu0 }
0x4a25   :  { %v4164_v35 = vld [vmem:[%s8066_s13 + $0x8] sm:$0xff] }
0x4a26   :  { %v4007_v19 = vand.u32 2147483647, %v4002_v49  ;;  %v4003_v52 = vmul.f32 0.2, %v4002_v49 }
0x4a28   :  { %v4008_v15 = vadd.f32 1.0, %v4007_v19  ;;  %v4004_v61 = vadd.f32 0.5, %v4003_v52 }
0x4a2a   :  { %6624 = vrcp.f32 %v4008_v15  ;;  %v4005_v50 = vmax.f32 %v4004_v61, 0.0  ;;  %v4165_v15 = vld [vmem:[%s8066_s13 + $0x10] sm:$0xff] }
0x4a2c   :  { %v4006_v7 = vmin.f32 %v4005_v50, 1.0  ;;  %v4304_v50 = vld [vmem:[#allocation14 + $0x8] sm:$0xff] }
0x4a2e   :  { %v4011_v63 = vmul.f32 %v4006_v7, %v3907_v17 }
0x4a34   :  { %v6625_v48 = vpop.eup %6624 }
0x4a35   :  { %v4010_v22 = vmul.f32 %v6625_v48, %v4002_v49  ;;  %v4163_v49 = vld [vmem:[%s8066_s13] sm:$0xff]  ;;  %v4166_v48 = vld [vmem:[%s8066_s13 + $0x18] sm:$0xff] }
0x4a36   :  { %v6432_v61 = vpack.c.bf16 %v4166_v48, %v4165_v15 }
0x4a37   :  { %4013 = vrot.lane.b32.xlu0 %v4010_v22, %s6842_s30  ;;  %v4303_v22 = vld [vmem:[#allocation14] sm:$0xff] }
0x4aa9   :  { %v4014_v20 = vpop.permute.xlu0 %4013 }
0x4aaa   :  { %v4016_v24 = vmul.f32 %v4014_v20, %v4006_v7 }
0x4aac   :  { %4018 = vrot.lane.b32.xlu1 %v4016_v24, %s6842_s30 }
0x4b1e   :  { %v4019_v5 = vpop.permute.xlu1 %4018 }
0x4b1f   :  { %v4021_v26 = vadd.f32 %v4019_v5, %v4011_v63  ;;  %v4305_v5 = vld [vmem:[#allocation14 + $0x10] sm:$0xff] }
0x4b21   :  { %v4022_v8 = vand.u32 2147483647, %v4021_v26 }
0x4b23   :  { %v4023_v58 = vadd.f32 1.0, %v4022_v8 }
0x4b25   :  { %6626 = vrcp.f32 %v4023_v58 }
0x4b2f   :  { %v6627_v44 = vpop.eup %6626 }
0x4b30   :  { %v4025_v16 = vmul.f32 %v6627_v44, %v4021_v26 }
0x4b32   :  { %4027 = vrot.lane.b32.xlu0 %v4025_v16, %s6842_s30 }
0x4ba4   :  { %v4028_v47 = vpop.permute.xlu0 %4027 }
0x4ba5   :  { %v4030_v0 = vmul.f32 %v4028_v47, %v4006_v7  ;;  %v7801_v7 = vpack.c.bf16 %v4304_v50, %v4303_v22 }
0x4ba7   :  { %4042 = vrot.lane.b32.xlu1 %v4030_v0, %s6843_s22  ;;  %v4031_v51 = vadd.f32 %v4030_v0, %v7587_v14  ;;  %v6428_v14 = vpack.c.bf16 %v4164_v35, %v4163_v49 }
0x4ba9   :  { %v4032_v28 = vmul.f32 0.2, %v4031_v51  ;;  %6429 = vmatprep.subr.bf16.mxu0 %v6428_v14  ;;  %v3224_v51 = vand.u32 2147483647, %v7705_v6 }
0x4baa   :  { %6431 = vmatpush3.bf16.msra.mxu0 %v6428_v14  ;;  %v3220_v14 = vmul.f32 0.2, %v7705_v6 }
0x4bab   :  { %v4033_v62 = vadd.f32 0.5, %v4032_v28  ;;  %6433 = vmatprep.subr.bf16.mxu0 %v6432_v61 }
0x4bad   :  { %v4034_v23 = vmax.f32 %v4033_v62, 0.0 }
0x4bae   :  { %6435 = vmatpush3.bf16.msra.mxu0 %v6432_v61 }
0x4baf   :  { %v4035_v10 = vmin.f32 %v4034_v23, 1.0  ;;  %6448 = vmatprep.subr.bf16.mxu0 %v6839_v9 }
0x4c19   :  { %v4043_v43 = vpop.permute.xlu1 %4042 }
0x4c1a   :  { %6090 = vmatmul.mubr.msk.f32.vlgmr.msra.gmra.mrb[50].mxu1 %vm411_vm2, %v4043_v43 }
0x4c1b   :  { %6120 = vmatprep.mubr.msk.f32.mxu1 %vm6840_vm1, %v6841_v12  ;;  %6438 = vmatpush3.bf16.msra.mxu1 %v7801_v7 }
0x4c1c   :  { %6439 = vmatprep.subr.bf16.mxu1 %v6839_v9 }
0x4ced   :  { %v4112_v31 = vpop.f32.mrb[50].mxu1 }
0x4cee   :  { %v4116_v33 = vadd.f32 %v4112_v31, %v7538_v18  ;;  %v6091_v34 = vpop.f32.mrb[51].mxu1 }
0x4cf0   :  { %v4121_v37 = vand.u32 2147483647, %v4116_v33  ;;  %v4117_v40 = vmul.f32 0.2, %v4116_v33 }
0x4cf2   :  { %v4122_v39 = vadd.f32 1.0, %v4121_v37  ;;  %v4118_v32 = vadd.f32 0.5, %v4117_v40 }
0x4cf4   :  { %6628 = vrcp.f32 %v4122_v39  ;;  %v4119_v30 = vmax.f32 %v4118_v32, 0.0 }
0x4cf6   :  { %v4120_v42 = vmin.f32 %v4119_v30, 1.0 }
0x4cf8   :  { %v4125_v13 = vmul.f32 %v4120_v42, %v4021_v26  ;;  %v4306_v26 = vld [vmem:[#allocation14 + $0x18] sm:$0xff] }
0x4cf9   :  { %v7807_v8 = vpack.c.bf16 %v4306_v26, %v4305_v5 }
0x4cfb   :  { %6441 = vmatpush3.bf16.msra.mxu1 %v7807_v8 }
0x4cfc   :  { %6442 = vmatprep.subr.bf16.mxu1 %v6839_v9 }
0x4cfe   :  { %v6629_v21 = vpop.eup %6628  ;;  %6121 = vmatmul.mubr.f32.vlgmr.msra.gmra.mrb[52].mxu1 %v6841_v12 }
0x4cff   :  { %v4124_v1 = vmul.f32 %v6629_v21, %v4116_v33  ;;  %6444 = vmatpush3.bf16.msra.mxu1 %v7801_v7  ;;  %6131 = vmatprep.mubr.msk.f32.mxu1 %vm6840_vm1, %v6841_v12  ;;  %v7830_v33 = vld [vmem:[%s8068_s15] ss:$0 sm:$0xff] }
0x4d00   :  { %6445 = vmatprep.subr.bf16.mxu1 %v6839_v9 }
0x4d01   :  { %4127 = vrot.lane.b32.xlu0 %v4124_v1, %s6842_s30 }
0x4d03   :  { %6447 = vmatpush3.bf16.msra.mxu1 %v7807_v8 }
0x4d04   :  { %6454 = vmatprep.subr.bf16.mxu1 %v6839_v9 }
0x4d73   :  { %v4128_v27 = vpop.permute.xlu0 %4127 }
0x4d74   :  { %v4130_v54 = vmul.f32 %v4128_v27, %v4120_v42 }
0x4d76   :  { %4132 = vrot.lane.b32.xlu1 %v4130_v54, %s6842_s30 }
0x4dd1   :  { %v4373_v43 = vpop.f32.mrb[52].mxu1 }
0x4dd2   :  { %v6122_v31 = vpop.f32.mrb[53].mxu1 }
0x4de8   :  { %v4133_v38 = vpop.permute.xlu1 %4132 }
0x4de9   :  { %v4135_v57 = vadd.f32 %v4133_v38, %v4125_v13 }
0x4deb   :  { %v4136_v18 = vand.u32 2147483647, %v4135_v57 }
0x4ded   :  { %v4137_v17 = vadd.f32 1.0, %v4136_v18 }
0x4def   :  { %6630 = vrcp.f32 %v4137_v17 }
0x4df9   :  { %v6631_v2 = vpop.eup %6630 }
0x4dfa   :  { %v4139_v53 = vmul.f32 %v6631_v2, %v4135_v57  ;;  %v3225_v2 = vadd.f32 1.0, %v3224_v51 }
0x4dfc   :  { %4141 = vrot.lane.b32.xlu0 %v4139_v53, %s6842_s30 }
0x4e00   :  { %4037 = vrot.lane.b32.xlu0 %v4035_v10, %s6843_s22 }
0x4e6e   :  { %v4142_v19 = vpop.permute.xlu0 %4141 }
0x4e6f   :  { %v4144_v52 = vmul.f32 %v4142_v19, %v4120_v42  ;;  %v3221_v19 = vadd.f32 0.5, %v3220_v14 }
0x4e71   :  { %v4145_v20 = vadd.f32 %v4144_v52, %v7572_v60  ;;  %v3222_v15 = vmax.f32 %v3221_v19, 0.0 }
0x4e72   :  { %v4038_v24 = vpop.permute.xlu0 %4037 }
0x4e73   :  { %v4146_v63 = vmul.f32 0.2, %v4145_v20  ;;  %4040 = vst.msk [vmem:[#allocation3 + $0x8] sm:$0xff] %vm411_vm2, %v4038_v24  ;;  %v7847_v52 = vmin.f32 %v3222_v15, 1.0  ;;  %v3803_v15 = vadd.f32 %v7755_v46, %v7617_v45 }
0x4e75   :  { %v4147_v58 = vadd.f32 0.5, %v4146_v63 }
0x4e77   :  { %v4148_v60 = vmax.f32 %v4147_v58, 0.0  ;;  %v3917_v58 = vadd.f32 %v7770_v59, %v7602_v56 }
0x4e79   :  { %v4149_v44 = vmin.f32 %v4148_v60, 1.0  ;;  %v3689_v60 = vadd.f32 %v7741_v4, %v7632_v55 }
0x4e7a   :  { %v4156_v0 = vld [vmem:[#allocation3 + $0x8] sm:$0xff] }
0x4e7b   :  { %4151 = vrot.lane.b32.xlu1 %v4149_v44, %s6843_s22  ;;  %v3918_v44 = vmul.f32 0.2, %v3917_v58 }
0x4eed   :  { %v4152_v16 = vpop.permute.xlu1 %4151 }
0x4eee   :  { %4154 = vst.msk [vmem:[#allocation3] sm:$0xff] %vm411_vm2, %v4152_v16  ;;  %v3690_v16 = vmul.f32 0.2, %v3689_v60 }
0x4ef0   :  { %v3691_v31 = vadd.f32 0.5, %v3690_v16 }
0x4ef5   :  { %v4155_v47 = vld [vmem:[#allocation3] sm:$0xff] }
0x4ef6   :  { %6100 = vmatprep.mubr.msk.f32.mxu0 %vm411_vm2, %v4155_v47  ;;  %v3919_v47 = vadd.f32 0.5, %v3918_v44 }
0x4ef7   :  { %6101 = vmatmul.mubr.msk.f32.vlgmr.msra.gmra.mrb[44].mxu0 %vm411_vm2, %v4156_v0 }
0x4ef8   :  { %6450 = vmatpush3.bf16.msra.mxu0 %v7801_v7 }
0x4ef9   :  { %6451 = vmatprep.subr.bf16.mxu0 %v6839_v9 }
0x4efc   :  { %6453 = vmatpush3.bf16.msra.mxu0 %v7807_v8 }
0x4efd   :  { %6460 = vmatprep.subr.bf16.mxu0 %v6839_v9 }
0x4fca   :  { %v7832_v34 = vpop.f32.mrb[44].mxu0 }
0x4fcb   :  { %v4264_v37 = vpop.f32.mrb[45].mxu0 }
0x4fcc   :  { %v4265_v39 = vadd.f32 %v7830_v33, %v4264_v37  ;;  %v3920_v37 = vmax.f32 %v3919_v47, 0.0 }
0x4fce   :  { %v4377_v21 = vadd.f32 %v4373_v43, %v4265_v39  ;;  %v3921_v56 = vmin.f32 %v3920_v37, 1.0 }
0x4fd0   :  { %v4382_v1 = vand.u32 2147483647, %v4377_v21  ;;  %v4378_v42 = vmul.f32 0.2, %v4377_v21 }
0x4fd2   :  { %v4383_v40 = vadd.f32 1.0, %v4382_v1  ;;  %v4379_v27 = vadd.f32 0.5, %v4378_v42  ;;  %v3692_v1 = vmax.f32 %v3691_v31, 0.0  ;;  %v4270_v42 = vadd.f32 %v7832_v34, %v7830_v33 }
0x4fd4   :  { %6632 = vrcp.f32 %v4383_v40  ;;  %v4380_v54 = vmax.f32 %v4379_v27, 0.0  ;;  %v3693_v55 = vmin.f32 %v3692_v1, 1.0 }
0x4fd6   :  { %v4381_v13 = vmin.f32 %v4380_v54, 1.0 }
0x4fd8   :  { %v4386_v18 = vmul.f32 0.0, %v4381_v13 }
0x4fde   :  { %v6633_v32 = vpop.eup %6632 }
0x4fdf   :  { %v4385_v30 = vmul.f32 %v6633_v32, %v4377_v21 }
0x4fe1   :  { %4388 = vrot.lane.b32.xlu1 %v4385_v30, %s6842_s30 }
0x5053   :  { %v4389_v38 = vpop.permute.xlu1 %4388 }
0x5054   :  { %v4391_v57 = vmul.f32 %v4389_v38, %v4381_v13 }
0x5056   :  { %4393 = vrot.lane.b32.xlu0 %v4391_v57, %s6842_s30 }
0x50c8   :  { %v4394_v17 = vpop.permute.xlu0 %4393 }
0x50c9   :  { %v7838_v28 = vadd.f32 %v4394_v17, %v4386_v18 }
0x50cb   :  { %v4397_v62 = vand.u32 2147483647, %v7838_v28 }
0x50cd   :  { %v4398_v23 = vadd.f32 1.0, %v4397_v62 }
0x50cf   :  { %6634 = vrcp.f32 %v4398_v23 }
0x50d0   :  { %6636 = vrcp.f32 %v3225_v2 }
0x50d9   :  { %v6635_v53 = vpop.eup %6634 }
0x50da   :  { %v4400_v10 = vmul.f32 %v6635_v53, %v7838_v28  ;;  %v6637_v49 = vpop.eup %6636 }
0x50db   :  { %v3227_v35 = vmul.f32 %v6637_v49, %v7705_v6  ;;  %v3228_v6 = vmul.f32 %v7847_v52, %v7676_v41  ;;  %v3461_v41 = vadd.f32 %v7711_v3, %v7682_v25 }
0x50dc   :  { %4402 = vrot.lane.b32.xlu1 %v4400_v10, %s6842_s30 }
0x50dd   :  { %v3462_v43 = vmul.f32 0.2, %v3461_v41 }
0x50df   :  { %v3463_v21 = vadd.f32 0.5, %v3462_v43 }
0x50e0   :  { %3230 = vrot.lane.b32.xlu1 %v3227_v35, %s6842_s30 }
0x50e1   :  { %v3464_v59 = vmax.f32 %v3463_v21, 0.0 }
0x50e3   :  { %v3465_v4 = vmin.f32 %v3464_v59, 1.0 }
0x514e   :  { %v4403_v48 = vpop.permute.xlu1 %4402 }
0x514f   :  { %v4405_v22 = vmul.f32 %v4403_v48, %v4381_v13  ;;  %v3575_v48 = vadd.f32 %v7726_v29, %v7647_v11 }
0x5151   :  { %4407 = vrot.lane.b32.xlu0 %v4405_v22, %s6843_s22  ;;  %v3804_v22 = vmul.f32 0.2, %v3803_v15 }
0x5152   :  { %v3231_v61 = vpop.permute.xlu1 %3230 }
0x5153   :  { %v3233_v50 = vmul.f32 %v3231_v61, %v7847_v52 }
0x5155   :  { %3235 = vrot.lane.b32.xlu1 %v3233_v50, %s6842_s30  ;;  %v3576_v50 = vmul.f32 0.2, %v3575_v48 }
0x51c3   :  { %v4408_v20 = vpop.permute.xlu0 %4407 }
0x51c4   :  { %4410 = vst.msk [vmem:[#allocation2] sm:$0xff] %vm411_vm2, %v4408_v20  ;;  %6132 = vmatmul.mubr.msk.f32.vlgmr.msra.gmra.mrb[54].mxu1 %vm411_vm2, %v4408_v20  ;;  %v3805_v20 = vadd.f32 0.5, %v3804_v22 }
0x51c5   :  { %6456 = vmatpush3.bf16.msra.mxu1 %v7801_v7  ;;  %6153 = vmatprep.mubr.msk.f32.mxu1 %vm6840_vm1, %v6841_v12 }
0x51c6   :  { %6457 = vmatprep.subr.bf16.mxu1 %v6839_v9 }
0x51c7   :  { %v3236_v24 = vpop.permute.xlu1 %3235 }
0x51c8   :  { %v3238_v63 = vadd.f32 %v3236_v24, %v3228_v6  ;;  %v3577_v24 = vadd.f32 0.5, %v3576_v50 }
0x51c9   :  { %6459 = vmatpush3.bf16.msra.mxu1 %v7807_v8 }
0x51ca   :  { %v3239_v5 = vand.u32 2147483647, %v3238_v63  ;;  %6466 = vmatprep.subr.bf16.mxu1 %v6839_v9  ;;  %v3578_v45 = vmax.f32 %v3577_v24, 0.0 }
0x51cc   :  { %v3240_v26 = vadd.f32 1.0, %v3239_v5  ;;  %v3579_v11 = vmin.f32 %v3578_v45, 1.0 }
0x51ce   :  { %6638 = vrcp.f32 %v3240_v26 }
0x51d8   :  { %v6639_v0 = vpop.eup %6638 }
0x51d9   :  { %v3242_v39 = vmul.f32 %v6639_v0, %v3238_v63  ;;  %v3806_v63 = vmax.f32 %v3805_v20, 0.0 }
0x51db   :  { %3244 = vrot.lane.b32.xlu1 %v3242_v39, %s6842_s30  ;;  %v3807_v46 = vmin.f32 %v3806_v63, 1.0 }
0x51df   :  { %3923 = vrot.lane.b32.xlu1 %v3921_v56, %s6843_s22 }
0x51e3   :  { %3695 = vrot.lane.b32.xlu1 %v3693_v55, %s6843_s22 }
0x51e7   :  { %3467 = vrot.lane.b32.xlu1 %v3465_v4, %s6843_s22 }
0x524d   :  { %v3245_v25 = vpop.permute.xlu1 %3244 }
0x524e   :  { %v3247_v61 = vmul.f32 %v3245_v25, %v7847_v52 }
0x5251   :  { %v3924_v3 = vpop.permute.xlu1 %3923 }
0x5252   :  { %3926 = vst.msk [vmem:[#allocation3 + $0x10] sm:$0xff] %vm411_vm2, %v3924_v3 }
0x5255   :  { %v3696_v40 = vpop.permute.xlu1 %3695 }
0x5256   :  { %3698 = vst.msk [vmem:[#allocation3 + $0x20] sm:$0xff] %vm411_vm2, %v3696_v40 }
0x5259   :  { %v3468_v32 = vpop.permute.xlu1 %3467  ;;  %v4157_v30 = vld [vmem:[#allocation3 + $0x10] sm:$0xff] }
0x525a   :  { %3470 = vst.msk [vmem:[#allocation3 + $0x30] sm:$0xff] %vm411_vm2, %v3468_v32  ;;  %6103 = vmatprep.mubr.msk.f32.mxu0 %vm411_vm2, %v4157_v30 }
0x525d   :  { %v4159_v0 = vld [vmem:[#allocation3 + $0x20] sm:$0xff] }
0x5261   :  { %v4161_v31 = vld [vmem:[#allocation3 + $0x30] sm:$0xff] }
0x5297   :  { %v4479_v27 = vpop.f32.mrb[54].mxu1 }
0x5298   :  { %v4483_v54 = vadd.f32 %v4479_v27, %v4270_v42  ;;  %v6133_v13 = vpop.f32.mrb[55].mxu1 }
0x529a   :  { %v4488_v38 = vand.u32 2147483647, %v4483_v54  ;;  %v4484_v51 = vmul.f32 0.2, %v4483_v54 }
0x529c   :  { %v4489_v57 = vadd.f32 1.0, %v4488_v38  ;;  %v4485_v62 = vadd.f32 0.5, %v4484_v51 }
0x529e   :  { %6640 = vrcp.f32 %v4489_v57  ;;  %v4486_v2 = vmax.f32 %v4485_v62, 0.0 }
0x52a0   :  { %v4487_v23 = vmin.f32 %v4486_v2, 1.0 }
0x52a2   :  { %v4492_v34 = vmul.f32 %v4487_v23, %v7838_v28  ;;  %v3347_v28 = vadd.f32 %v7686_v36, %v3247_v61 }
0x52a4   :  { %v3348_v5 = vmul.f32 0.2, %v3347_v28 }
0x52a6   :  { %v3349_v58 = vadd.f32 0.5, %v3348_v5 }
0x52a8   :  { %v6641_v18 = vpop.eup %6640  ;;  %v3350_v29 = vmax.f32 %v3349_v58, 0.0 }
0x52a9   :  { %v4491_v17 = vmul.f32 %v6641_v18, %v4483_v54 }
0x52aa   :  { %v3351_v52 = vmin.f32 %v3350_v29, 1.0 }
0x52ab   :  { %4494 = vrot.lane.b32.xlu0 %v4491_v17, %s6842_s30 }
0x531d   :  { %v4495_v53 = vpop.permute.xlu0 %4494 }
0x531e   :  { %v4497_v10 = vmul.f32 %v4495_v53, %v4487_v23 }
0x5320   :  { %4499 = vrot.lane.b32.xlu0 %v4497_v10, %s6842_s30 }
0x5392   :  { %v4500_v49 = vpop.permute.xlu0 %4499 }
0x5393   :  { %v7880_v35 = vadd.f32 %v4500_v49, %v4492_v34 }
0x5395   :  { %v4503_v14 = vand.u32 2147483647, %v7880_v35 }
0x5397   :  { %v4504_v19 = vadd.f32 1.0, %v4503_v14 }
0x5399   :  { %6642 = vrcp.f32 %v4504_v19 }
0x53a3   :  { %v6643_v6 = vpop.eup %6642 }
0x53a4   :  { %v4506_v26 = vmul.f32 %v6643_v6, %v7880_v35 }
0x53a6   :  { %4508 = vrot.lane.b32.xlu0 %v4506_v26, %s6842_s30 }
0x53aa   :  { %3809 = vrot.lane.b32.xlu0 %v3807_v46, %s6843_s22 }
0x53ae   :  { %3581 = vrot.lane.b32.xlu0 %v3579_v11, %s6843_s22 }
0x53b2   :  { %3353 = vrot.lane.b32.xlu0 %v3351_v52, %s6843_s22 }
0x5418   :  { %v4509_v36 = vpop.permute.xlu0 %4508 }
0x5419   :  { %v4511_v60 = vmul.f32 %v4509_v36, %v4487_v23 }
0x541b   :  { %4513 = vrot.lane.b32.xlu1 %v4511_v60, %s6843_s22 }
0x541c   :  { %v3810_v44 = vpop.permute.xlu0 %3809 }
0x541d   :  { %3812 = vst.msk [vmem:[#allocation3 + $0x18] sm:$0xff] %vm411_vm2, %v3810_v44 }
0x5420   :  { %v3582_v41 = vpop.permute.xlu0 %3581 }
0x5421   :  { %3584 = vst.msk [vmem:[#allocation3 + $0x28] sm:$0xff] %vm411_vm2, %v3582_v41 }
0x5424   :  { %v3354_v16 = vpop.permute.xlu0 %3353  ;;  %v4158_v47 = vld [vmem:[#allocation3 + $0x18] sm:$0xff] }
0x5425   :  { %3356 = vst.msk [vmem:[#allocation3 + $0x38] sm:$0xff] %vm411_vm2, %v3354_v16  ;;  %6104 = vmatmul.mubr.msk.f32.gmra.mrb[46].mxu0 %vm411_vm2, %v4158_v47 }
0x5426   :  { %6106 = vmatprep.mubr.msk.f32.mxu0 %vm411_vm2, %v4159_v0 }
0x5428   :  { %v4160_v43 = vld [vmem:[#allocation3 + $0x28] sm:$0xff] }
0x5429   :  { %6107 = vmatmul.mubr.msk.f32.gmra.mrb[48].mxu0 %vm411_vm2, %v4160_v43 }
0x542a   :  { %6109 = vmatprep.mubr.msk.f32.mxu0 %vm411_vm2, %v4161_v31 }
0x542c   :  { %v4162_v37 = vld [vmem:[#allocation3 + $0x38] sm:$0xff] }
0x542d   :  { %6110 = vmatmul.mubr.msk.f32.gmra.mrb[50].mxu0 %vm411_vm2, %v4162_v37 }
0x542e   :  { %6142 = vmatprep.mubr.msk.f32.mxu0 %vm6840_vm1, %v6841_v12 }
0x548d   :  { %v4514_v39 = vpop.permute.xlu1 %4513 }
0x548e   :  { %4516 = vst.msk [vmem:[#allocation2 + $0x8] sm:$0xff] %vm411_vm2, %v4514_v39  ;;  %6143 = vmatmul.mubr.msk.f32.vlgmr.msra.gmra.mrb[52].mxu0 %vm411_vm2, %v4514_v39 }
0x548f   :  { %6462 = vmatpush3.bf16.msra.mxu0 %v7801_v7  ;;  %6164 = vmatprep.mubr.msk.f32.mxu0 %vm6840_vm1, %v6841_v12 }
0x5490   :  { %6463 = vmatprep.subr.bf16.mxu0 %v6839_v9 }
0x5493   :  { %6465 = vmatpush3.bf16.msra.mxu0 %v7807_v8 }
0x5494   :  { %6472 = vmatprep.subr.bf16.mxu0 %v6839_v9 }
0x54f8   :  { %v6105_v21 = vpop.f32.mrb[46].mxu0 }
0x54f9   :  { %v4274_v1 = vpop.f32.mrb[47].mxu0 }
0x54fa   :  { %v4275_v25 = vadd.f32 %v7830_v33, %v4274_v1 }
0x54fc   :  { %v7913_v56 = vpop.f32.mrb[48].mxu0 }
0x54fd   :  { %v7915_v59 = vpop.f32.mrb[49].mxu0 }
0x54fe   :  { %v4285_v0 = vadd.f32 %v7830_v33, %v7915_v59 }
0x5500   :  { %v7917_v55 = vpop.f32.mrb[50].mxu0 }
0x5501   :  { %v7919_v4 = vpop.f32.mrb[51].mxu0 }
0x5561   :  { %v4585_v3 = vpop.f32.mrb[52].mxu0 }
0x5562   :  { %v4589_v40 = vadd.f32 %v4585_v3, %v4275_v25  ;;  %v6144_v32 = vpop.f32.mrb[53].mxu0 }
0x5564   :  { %v4594_v30 = vand.u32 2147483647, %v4589_v40  ;;  %v4590_v13 = vmul.f32 0.2, %v4589_v40 }
0x5566   :  { %v4595_v42 = vadd.f32 1.0, %v4594_v30  ;;  %v4591_v38 = vadd.f32 0.5, %v4590_v13 }
0x5568   :  { %6644 = vrcp.f32 %v4595_v42  ;;  %v4592_v57 = vmax.f32 %v4591_v38, 0.0 }
0x556a   :  { %v4593_v18 = vmin.f32 %v4592_v57, 1.0 }
0x556c   :  { %v4598_v62 = vmul.f32 %v4593_v18, %v7880_v35  ;;  %v4280_v35 = vadd.f32 %v6105_v21, %v7830_v33 }
0x5572   :  { %v6645_v27 = vpop.eup %6644 }
0x5573   :  { %v4597_v54 = vmul.f32 %v6645_v27, %v4589_v40 }
0x5575   :  { %4600 = vrot.lane.b32.xlu0 %v4597_v54, %s6842_s30 }
0x55e7   :  { %v4601_v17 = vpop.permute.xlu0 %4600 }
0x55e8   :  { %v4603_v51 = vmul.f32 %v4601_v17, %v4593_v18 }
0x55ea   :  { %4605 = vrot.lane.b32.xlu1 %v4603_v51, %s6842_s30 }
0x565c   :  { %v4606_v2 = vpop.permute.xlu1 %4605 }
0x565d   :  { %v4608_v23 = vadd.f32 %v4606_v2, %v4598_v62 }
0x565f   :  { %v4609_v53 = vand.u32 2147483647, %v4608_v23 }
0x5661   :  { %v4610_v10 = vadd.f32 1.0, %v4609_v53 }
0x5663   :  { %6646 = vrcp.f32 %v4610_v10 }
0x566d   :  { %v6647_v34 = vpop.eup %6646 }
0x566e   :  { %v4612_v49 = vmul.f32 %v6647_v34, %v4608_v23 }
0x5670   :  { %4614 = vrot.lane.b32.xlu0 %v4612_v49, %s6842_s30 }
0x56e2   :  { %v4615_v14 = vpop.permute.xlu0 %4614 }
0x56e3   :  { %v4617_v19 = vmul.f32 %v4615_v14, %v4593_v18 }
0x56e5   :  { %4619 = vrot.lane.b32.xlu1 %v4617_v19, %s6843_s22 }
0x5757   :  { %v4620_v15 = vpop.permute.xlu1 %4619 }
0x5758   :  { %4622 = vst.msk [vmem:[#allocation2 + $0x10] sm:$0xff] %vm411_vm2, %v4620_v15  ;;  %6154 = vmatmul.mubr.msk.f32.vlgmr.msra.gmra.mrb[56].mxu1 %vm411_vm2, %v4620_v15 }
0x5759   :  { %6468 = vmatpush3.bf16.msra.mxu1 %v7801_v7  ;;  %6175 = vmatprep.mubr.msk.f32.mxu1 %vm6840_vm1, %v6841_v12 }
0x575a   :  { %6469 = vmatprep.subr.bf16.mxu1 %v6839_v9 }
0x575d   :  { %6471 = vmatpush3.bf16.msra.mxu1 %v7807_v8 }
0x575e   :  { %6478 = vmatprep.subr.bf16.mxu1 %v6839_v9 }
0x582b   :  { %v4691_v48 = vpop.f32.mrb[56].mxu1 }
0x582c   :  { %v4695_v22 = vadd.f32 %v4691_v48, %v4280_v35  ;;  %v6155_v61 = vpop.f32.mrb[57].mxu1 }
0x582e   :  { %v4700_v50 = vand.u32 2147483647, %v4695_v22  ;;  %v4696_v24 = vmul.f32 0.2, %v4695_v22 }
0x5830   :  { %v4701_v20 = vadd.f32 1.0, %v4700_v50  ;;  %v4697_v63 = vadd.f32 0.5, %v4696_v24 }
0x5832   :  { %6648 = vrcp.f32 %v4701_v20  ;;  %v4698_v5 = vmax.f32 %v4697_v63, 0.0 }
0x5834   :  { %v4699_v26 = vmin.f32 %v4698_v5, 1.0 }
0x5836   :  { %v4704_v58 = vmul.f32 %v4699_v26, %v4608_v23  ;;  %v4290_v23 = vadd.f32 %v7913_v56, %v7830_v33 }
0x583c   :  { %v6649_v28 = vpop.eup %6648 }
0x583d   :  { %v4703_v6 = vmul.f32 %v6649_v28, %v4695_v22  ;;  %v5161_v28 = vld [vmem:[%s8069_s16] sm:$0xff] }
0x583f   :  { %4706 = vrot.lane.b32.xlu0 %v4703_v6, %s6842_s30  ;;  %v5162_v6 = vld [vmem:[%s8069_s16 + $0x8] sm:$0xff] }
0x5840   :  { %v6484_v24 = vpack.c.bf16 %v5162_v6, %v5161_v28 }
0x58b1   :  { %v4707_v45 = vpop.permute.xlu0 %4706 }
0x58b2   :  { %v4709_v46 = vmul.f32 %v4707_v45, %v4699_v26 }
0x58b4   :  { %4711 = vrot.lane.b32.xlu1 %v4709_v46, %s6842_s30  ;;  %v5163_v46 = vld [vmem:[%s8069_s16 + $0x10] sm:$0xff] }
0x5926   :  { %v4712_v11 = vpop.permute.xlu1 %4711 }
0x5927   :  { %v4714_v29 = vadd.f32 %v4712_v11, %v4704_v58  ;;  %v5164_v58 = vld [vmem:[%s8069_s16 + $0x18] sm:$0xff] }
0x5928   :  { %v6488_v11 = vpack.c.bf16 %v5164_v58, %v5163_v46 }
0x5929   :  { %v4715_v52 = vand.u32 2147483647, %v4714_v29 }
0x592b   :  { %v4716_v36 = vadd.f32 1.0, %v4715_v52  ;;  %v5153_v52 = vld [vmem:[#allocation2] sm:$0xff] }
0x592d   :  { %6650 = vrcp.f32 %v4716_v36  ;;  %v5154_v36 = vld [vmem:[#allocation2 + $0x8] sm:$0xff] }
0x5937   :  { %v6651_v60 = vpop.eup %6650 }
0x5938   :  { %v4718_v44 = vmul.f32 %v6651_v60, %v4714_v29  ;;  %v5155_v60 = vld [vmem:[#allocation2 + $0x10] sm:$0xff] }
0x593a   :  { %4720 = vrot.lane.b32.xlu0 %v4718_v44, %s6842_s30 }
0x59ac   :  { %v4721_v41 = vpop.permute.xlu0 %4720 }
0x59ad   :  { %v4723_v16 = vmul.f32 %v4721_v41, %v4699_v26 }
0x59af   :  { %4725 = vrot.lane.b32.xlu1 %v4723_v16, %s6843_s22 }
0x5a21   :  { %v4726_v47 = vpop.permute.xlu1 %4725 }
0x5a22   :  { %4728 = vst.msk [vmem:[#allocation2 + $0x18] sm:$0xff] %vm411_vm2, %v4726_v47  ;;  %6165 = vmatmul.mubr.msk.f32.vlgmr.msra.gmra.mrb[54].mxu0 %vm411_vm2, %v4726_v47  ;;  %v4295_v47 = vadd.f32 %v7830_v33, %v7919_v4 }
0x5a23   :  { %6474 = vmatpush3.bf16.msra.mxu0 %v7801_v7  ;;  %6186 = vmatprep.mubr.msk.f32.mxu0 %vm6840_vm1, %v6841_v12 }
0x5a24   :  { %6475 = vmatprep.subr.bf16.mxu0 %v6839_v9 }
0x5a27   :  { %6477 = vmatpush3.bf16.msra.mxu0 %v7807_v8 }
0x5a28   :  { %6485 = vmatprep.subr.bf16.mxu0 %v6484_v24 }
0x5a29   :  { %v5156_v44 = vld [vmem:[#allocation2 + $0x18] sm:$0xff] }
0x5af5   :  { %v4797_v43 = vpop.f32.mrb[54].mxu0 }
0x5af6   :  { %v4801_v31 = vadd.f32 %v4797_v43, %v4285_v0  ;;  %v6166_v37 = vpop.f32.mrb[55].mxu0 }
0x5af8   :  { %v4806_v39 = vand.u32 2147483647, %v4801_v31  ;;  %v4802_v3 = vmul.f32 0.2, %v4801_v31 }
0x5afa   :  { %v4807_v21 = vadd.f32 1.0, %v4806_v39  ;;  %v4803_v40 = vadd.f32 0.5, %v4802_v3 }
0x5afc   :  { %6652 = vrcp.f32 %v4807_v21  ;;  %v4804_v32 = vmax.f32 %v4803_v40, 0.0  ;;  %v7995_v21 = vld [vmem:[%s8070_s17] ss:$0 sm:$0xff] }
0x5afe   :  { %v4805_v30 = vmin.f32 %v4804_v32, 1.0 }
0x5b00   :  { %v4810_v54 = vmul.f32 %v4805_v30, %v4714_v29 }
0x5b06   :  { %v6653_v1 = vpop.eup %6652 }
0x5b07   :  { %v4809_v25 = vmul.f32 %v6653_v1, %v4801_v31 }
0x5b09   :  { %4812 = vrot.lane.b32.xlu0 %v4809_v25, %s6842_s30 }
0x5b7b   :  { %v4813_v42 = vpop.permute.xlu0 %4812 }
0x5b7c   :  { %v4815_v27 = vmul.f32 %v4813_v42, %v4805_v30 }
0x5b7e   :  { %4817 = vrot.lane.b32.xlu1 %v4815_v27, %s6842_s30 }
0x5bf0   :  { %v4818_v59 = vpop.permute.xlu1 %4817 }
0x5bf1   :  { %v4820_v13 = vadd.f32 %v4818_v59, %v4810_v54 }
0x5bf3   :  { %v4821_v38 = vand.u32 2147483647, %v4820_v13 }
0x5bf5   :  { %v4822_v57 = vadd.f32 1.0, %v4821_v38 }
0x5bf7   :  { %6654 = vrcp.f32 %v4822_v57 }
0x5c01   :  { %v6655_v18 = vpop.eup %6654 }
0x5c02   :  { %v4824_v17 = vmul.f32 %v6655_v18, %v4820_v13 }
0x5c04   :  { %4826 = vrot.lane.b32.xlu0 %v4824_v17, %s6842_s30 }
0x5c76   :  { %v4827_v51 = vpop.permute.xlu0 %4826 }
0x5c77   :  { %v4829_v62 = vmul.f32 %v4827_v51, %v4805_v30 }
0x5c79   :  { %4831 = vrot.lane.b32.xlu1 %v4829_v62, %s6843_s22 }
0x5ceb   :  { %v4832_v2 = vpop.permute.xlu1 %4831 }
0x5cec   :  { %4834 = vst.msk [vmem:[#allocation2 + $0x20] sm:$0xff] %vm411_vm2, %v4832_v2  ;;  %6176 = vmatmul.mubr.msk.f32.vlgmr.msra.gmra.mrb[58].mxu1 %vm411_vm2, %v4832_v2 }
0x5ced   :  { %6480 = vmatpush3.bf16.msra.mxu1 %v7801_v7  ;;  %6197 = vmatprep.mubr.msk.f32.mxu1 %vm6840_vm1, %v6841_v12 }
0x5cee   :  { %6481 = vmatprep.subr.bf16.mxu1 %v6839_v9 }
0x5cf1   :  { %6483 = vmatpush3.bf16.msra.mxu1 %v7807_v8 }
0x5cf3   :  { %v5157_v41 = vld [vmem:[#allocation2 + $0x20] sm:$0xff] }
0x5dbf   :  { %v4903_v53 = vpop.f32.mrb[58].mxu1 }
0x5dc0   :  { %v4907_v10 = vadd.f32 %v4903_v53, %v4290_v23  ;;  %v6177_v34 = vpop.f32.mrb[59].mxu1 }
0x5dc2   :  { %v4912_v49 = vand.u32 2147483647, %v4907_v10  ;;  %v4908_v7 = vmul.f32 0.2, %v4907_v10 }
0x5dc4   :  { %v4913_v14 = vadd.f32 1.0, %v4912_v49  ;;  %v4909_v35 = vadd.f32 0.5, %v4908_v7 }
0x5dc6   :  { %6656 = vrcp.f32 %v4913_v14  ;;  %v4910_v12 = vmax.f32 %v4909_v35, 0.0 }
0x5dc8   :  { %v4911_v48 = vmin.f32 %v4910_v12, 1.0 }
0x5dca   :  { %v4916_v8 = vmul.f32 %v4911_v48, %v4820_v13 }
0x5dd0   :  { %v6657_v19 = vpop.eup %6656 }
0x5dd1   :  { %v4915_v15 = vmul.f32 %v6657_v19, %v4907_v10 }
0x5dd3   :  { %4918 = vrot.lane.b32.xlu0 %v4915_v15, %s6842_s30 }
0x5e45   :  { %v4919_v9 = vpop.permute.xlu0 %4918 }
0x5e46   :  { %v4921_v22 = vmul.f32 %v4919_v9, %v4911_v48  ;;  %v4300_v9 = vadd.f32 %v7917_v55, %v7830_v33 }
0x5e48   :  { %4923 = vrot.lane.b32.xlu1 %v4921_v22, %s6842_s30 }
0x5eba   :  { %v4924_v56 = vpop.permute.xlu1 %4923 }
0x5ebb   :  { %v7964_v61 = vadd.f32 %v4924_v56, %v4916_v8 }
0x5ebd   :  { %v4927_v50 = vand.u32 2147483647, %v7964_v61 }
0x5ebf   :  { %v4928_v20 = vadd.f32 1.0, %v4927_v50 }
0x5ec1   :  { %6658 = vrcp.f32 %v4928_v20 }
0x5ecb   :  { %v6659_v63 = vpop.eup %6658 }
0x5ecc   :  { %v4930_v5 = vmul.f32 %v6659_v63, %v7964_v61 }
0x5ece   :  { %4932 = vrot.lane.b32.xlu0 %v4930_v5, %s6842_s30 }
0x5f40   :  { %v4933_v26 = vpop.permute.xlu0 %4932 }
0x5f41   :  { %v4935_v45 = vmul.f32 %v4933_v26, %v4911_v48 }
0x5f43   :  { %4937 = vrot.lane.b32.xlu1 %v4935_v45, %s6843_s22 }
0x5fb5   :  { %v4938_v29 = vpop.permute.xlu1 %4937 }
0x5fb6   :  { %4940 = vst.msk [vmem:[#allocation2 + $0x28] sm:$0xff] %vm411_vm2, %v4938_v29  ;;  %6187 = vmatmul.mubr.msk.f32.vlgmr.msra.gmra.mrb[56].mxu0 %vm411_vm2, %v4938_v29 }
0x5fb7   :  { %6487 = vmatpush3.bf16.msra.mxu0 %v6484_v24  ;;  %6208 = vmatprep.mubr.msk.f32.mxu0 %vm411_vm2, %v5153_v52 }
0x5fb8   :  { %6489 = vmatprep.subr.bf16.mxu0 %v6488_v11 }
0x5fbb   :  { %6491 = vmatpush3.bf16.msra.mxu0 %v6488_v11 }
0x5fbd   :  { %v5158_v16 = vld [vmem:[#allocation2 + $0x28] sm:$0xff] }
0x5fbe   :  { %6209 = vmatmul.mubr.msk.f32.vlgmr.msra.gmra.mrb[58].mxu0 %vm411_vm2, %v5154_v36 }
0x5fbf   :  { %6211 = vmatprep.mubr.msk.f32.mxu0 %vm411_vm2, %v5155_v60 }
0x5fc2   :  { %6212 = vmatmul.mubr.msk.f32.gmra.mrb[60].mxu0 %vm411_vm2, %v5156_v44 }
0x5fc3   :  { %6214 = vmatprep.mubr.msk.f32.mxu0 %vm411_vm2, %v5157_v41 }
0x5fc6   :  { %6215 = vmatmul.mubr.msk.f32.gmra.mrb[62].mxu0 %vm411_vm2, %v5158_v16 }
0x6089   :  { %v5009_v0 = vpop.f32.mrb[56].mxu0 }
0x608a   :  { %v5013_v43 = vadd.f32 %v5009_v0, %v4295_v47  ;;  %v6188_v31 = vpop.f32.mrb[57].mxu0 }
0x608c   :  { %v5018_v37 = vand.u32 2147483647, %v5013_v43  ;;  %v5014_v18 = vmul.f32 0.2, %v5013_v43 }
0x608e   :  { %v5019_v39 = vadd.f32 1.0, %v5018_v37  ;;  %v5015_v17 = vadd.f32 0.5, %v5014_v18 }
0x6090   :  { %6660 = vrcp.f32 %v5019_v39  ;;  %v5016_v51 = vmax.f32 %v5015_v17, 0.0 }
0x6091   :  { %v6210_v1 = vpop.f32.mrb[58].mxu0 }
0x6092   :  { %v5268_v25 = vadd.f32 %v6210_v1, %v7995_v21  ;;  %v5262_v3 = vpop.f32.mrb[59].mxu0  ;;  %v5017_v62 = vmin.f32 %v5016_v51, 1.0 }
0x6093   :  { %v5263_v40 = vadd.f32 %v7995_v21, %v5262_v3 }
0x6094   :  { %5302 = vst.msk [vmem:[%s8071_s18 + $0x8] sm:$0xff] %vm160_vm0, %v5268_v25  ;;  %v5022_v53 = vmul.f32 %v5017_v62, %v7964_v61 }
0x6095   :  { %5301 = vst.msk [vmem:[%s8071_s18] sm:$0xff] %vm160_vm0, %v5263_v40  ;;  %v6213_v4 = vpop.f32.mrb[60].mxu0 }
0x6096   :  { %v5278_v32 = vadd.f32 %v6213_v4, %v7995_v21  ;;  %v5272_v30 = vpop.f32.mrb[61].mxu0 }
0x6097   :  { %v5273_v42 = vadd.f32 %v7995_v21, %v5272_v30 }
0x6098   :  { %5304 = vst.msk [vmem:[%s8071_s18 + $0x18] sm:$0xff] %vm160_vm0, %v5278_v32 }
0x6099   :  { %5303 = vst.msk [vmem:[%s8071_s18 + $0x10] sm:$0xff] %vm160_vm0, %v5273_v42  ;;  %v6216_v27 = vpop.f32.mrb[62].mxu0 }
0x609a   :  { %v6661_v54 = vpop.eup %6660  ;;  %v5288_v59 = vadd.f32 %v6216_v27, %v7995_v21  ;;  %v5282_v13 = vpop.f32.mrb[63].mxu0 }
0x609b   :  { %v5021_v38 = vmul.f32 %v6661_v54, %v5013_v43  ;;  %v5283_v57 = vadd.f32 %v7995_v21, %v5282_v13 }
0x609c   :  { %5306 = vst.msk [vmem:[%s8071_s18 + $0x28] sm:$0xff] %vm160_vm0, %v5288_v59 }
0x609d   :  { %5305 = vst.msk [vmem:[%s8071_s18 + $0x20] sm:$0xff] %vm160_vm0, %v5283_v57  ;;  %5024 = vrot.lane.b32.xlu0 %v5021_v38, %s6842_s30 }
0x610f   :  { %v5025_v2 = vpop.permute.xlu0 %5024 }
0x6110   :  { %v5027_v23 = vmul.f32 %v5025_v2, %v5017_v62 }
0x6112   :  { %5029 = vrot.lane.b32.xlu1 %v5027_v23, %s6842_s30 }
0x6184   :  { %v5030_v10 = vpop.permute.xlu1 %5029 }
0x6185   :  { %v5032_v34 = vadd.f32 %v5030_v10, %v5022_v53 }
0x6187   :  { %v5033_v49 = vand.u32 2147483647, %v5032_v34 }
0x6189   :  { %v5034_v14 = vadd.f32 1.0, %v5033_v49 }
0x618b   :  { %6662 = vrcp.f32 %v5034_v14 }
0x6195   :  { %v6663_v19 = vpop.eup %6662 }
0x6196   :  { %v5036_v15 = vmul.f32 %v6663_v19, %v5032_v34 }
0x6198   :  { %5038 = vrot.lane.b32.xlu0 %v5036_v15, %s6842_s30 }
0x620a   :  { %v5039_v7 = vpop.permute.xlu0 %5038 }
0x620b   :  { %v5041_v35 = vmul.f32 %v5039_v7, %v5017_v62 }
0x620d   :  { %5043 = vrot.lane.b32.xlu1 %v5041_v35, %s6843_s22 }
0x627f   :  { %v5044_v12 = vpop.permute.xlu1 %5043 }
0x6280   :  { %5046 = vst.msk [vmem:[#allocation2 + $0x30] sm:$0xff] %vm411_vm2, %v5044_v12  ;;  %6198 = vmatmul.mubr.msk.f32.vlgmr.msra.gmra.mrb[60].mxu1 %vm411_vm2, %v5044_v12 }
0x6287   :  { %v5159_v48 = vld [vmem:[#allocation2 + $0x30] sm:$0xff] }
0x6288   :  { %6217 = vmatprep.mubr.msk.f32.mxu0 %vm411_vm2, %v5159_v48 }
0x6353   :  { %v5115_v22 = vpop.f32.mrb[60].mxu1 }
0x6354   :  { %v5119_v8 = vadd.f32 %v5115_v22, %v4300_v9  ;;  %v6199_v56 = vpop.f32.mrb[61].mxu1 }
0x6356   :  { %v5124_v61 = vand.u32 2147483647, %v5119_v8  ;;  %v5120_v6 = vmul.f32 0.2, %v5119_v8 }
0x6358   :  { %v5125_v50 = vadd.f32 1.0, %v5124_v61  ;;  %v5121_v24 = vadd.f32 0.5, %v5120_v6 }
0x635a   :  { %6664 = vrcp.f32 %v5125_v50  ;;  %v5122_v63 = vmax.f32 %v5121_v24, 0.0 }
0x635c   :  { %v5123_v5 = vmin.f32 %v5122_v63, 1.0 }
0x635e   :  { %v5128_v46 = vmul.f32 %v5123_v5, %v5032_v34 }
0x6364   :  { %v6665_v20 = vpop.eup %6664 }
0x6365   :  { %v5127_v28 = vmul.f32 %v6665_v20, %v5119_v8 }
0x6367   :  { %5130 = vrot.lane.b32.xlu0 %v5127_v28, %s6842_s30 }
0x63d9   :  { %v5131_v26 = vpop.permute.xlu0 %5130 }
0x63da   :  { %v5133_v45 = vmul.f32 %v5131_v26, %v5123_v5 }
0x63dc   :  { %5135 = vrot.lane.b32.xlu1 %v5133_v45, %s6842_s30 }
0x644e   :  { %v5136_v33 = vpop.permute.xlu1 %5135 }
0x644f   :  { %v5138_v55 = vadd.f32 %v5136_v33, %v5128_v46 }
0x6451   :  { %v5139_v58 = vand.u32 2147483647, %v5138_v55 }
0x6453   :  { %v5140_v11 = vadd.f32 1.0, %v5139_v58 }
0x6455   :  { %6666 = vrcp.f32 %v5140_v11 }
0x645f   :  { %v6667_v29 = vpop.eup %6666 }
0x6460   :  { %v5142_v52 = vmul.f32 %v6667_v29, %v5138_v55 }
0x6462   :  { %5144 = vrot.lane.b32.xlu0 %v5142_v52, %s6842_s30 }
0x64d4   :  { %v5145_v36 = vpop.permute.xlu0 %5144 }
0x64d5   :  { %v5147_v60 = vmul.f32 %v5145_v36, %v5123_v5 }
0x64d7   :  { %5149 = vrot.lane.b32.xlu1 %v5147_v60, %s6843_s22 }
0x6549   :  { %v5150_v44 = vpop.permute.xlu1 %5149 }
0x654a   :  { %5152 = vst.msk [vmem:[#allocation2 + $0x38] sm:$0xff] %vm411_vm2, %v5150_v44 }
0x6551   :  { %v5160_v41 = vld [vmem:[#allocation2 + $0x38] sm:$0xff] }
0x6552   :  { %6218 = vmatmul.mubr.msk.f32.gmra.mrb[64].mxu0 %vm411_vm2, %v5160_v41 }
0x6625   :  { %v6219_v16 = vpop.f32.mrb[64].mxu0 }
0x6626   :  { %v5298_v47 = vadd.f32 %v6219_v16, %v7995_v21  ;;  %v5292_v0 = vpop.f32.mrb[65].mxu0 }
0x6627   :  { %v5293_v43 = vadd.f32 %v7995_v21, %v5292_v0 }
0x6628   :  { %5308 = vst.msk [vmem:[%s8071_s18 + $0x38] sm:$0xff] %vm160_vm0, %v5298_v47 }
0x6629   :  { %5307 = vst.msk [vmem:[%s8071_s18 + $0x30] sm:$0xff] %vm160_vm0, %v5293_v43 }
0x662a   :  { %5313 = vsyncpa [#allocation5], 1 }
0x662b   :  { %5314 = vsyncpa [#allocation7], 1 }
0x662c   :  { %5315 = vsyncpa [#allocation10], 1 }
0x662d   :  { %5316 = vsyncpa [#allocation13], 1 }

</bundles_post_ra>
